<compile_context>
chip_gen: v5e
topology: v5e:2x2
jax: 0.10.0
libtpu: 0.0.40
codegen_flags: <defaults>
</compile_context>

<pallas_src>
import functools

import jax
import jax.numpy as jnp
from jax.experimental import pallas as pl
from jax.experimental.pallas import tpu as pltpu

SELU_ALPHA = 1.6732632423543772
SELU_SCALE = 1.0507009873554805

CPAD = 128              # every layer's channel count zero-padded to 128 lanes
KPAD = 9 * CPAD         # im2col contraction depth: 3*3 taps * CPAD channels
_HALO = 8               # interior columns start at sublane 8 (8-aligned stores)

# MXU operand dtype (f32 accumulate + f32 epilogue regardless). bf16 per the
# perf review for v6e/v7x; switch to jnp.float32 for bit-closer numerics.
MATMUL_DTYPE = jnp.bfloat16


def _zpred_kernel(x_ref, w_ref, b_ref, w5_ref, b5_ref, o_ref,
                  slab_a, slab_b, *, H, W, CIN):
    """Fused 5-layer forward for one batch element.

    x_ref : (1, H, W, CIN)        input image (f32)
    w_ref : (4, KPAD, CPAD)       layers 1-4 weights, im2col-flattened, padded
    b_ref : (4, 1, CPAD)          layers 1-4 biases (f32, zero-padded)
    w5_ref: (1, KPAD)             layer 5 weights as a row (f32, zero-padded)
    b5_ref: (1, 1)                layer 5 bias
    o_ref : (1, 1, H*W)           lane-dense output row
    slab_* : (H+2, W+2*_HALO, CPAD) f32 ping-pong padded activation slabs
    """
    HW = H * W

    def selu(a):
        # SELU(x) = scale * where(x > 0, x, alpha*(exp(x) - 1)); min() keeps
        # exp() finite on the not-taken branch. exp goes to the EUP slot.
        neg = SELU_ALPHA * jnp.exp(jnp.minimum(a, 0.0)) - SELU_ALPHA
        return SELU_SCALE * jnp.where(a > 0.0, a, neg)

    def patches(src):
        # im2col: 9 shifted (HW, CPAD) views of the padded slab, concatenated
        # along lanes at 128-aligned offsets -> (HW, KPAD).
        cols = []
        for dy in range(3):
            for dx in range(3):
                c0 = _HALO - 1 + dx
                cols.append(src[dy:dy + H, c0:c0 + W, :].reshape(HW, CPAD))
        return jnp.concatenate(cols, axis=-1)

    # Zero both slabs: guarantees the 1-pixel halo and the padded channels are
    # 0 no matter what the previous grid step / core left behind (scratch is
    # uninitialized on the first step).
    slab_a[...] = jnp.zeros_like(slab_a)
    slab_b[...] = jnp.zeros_like(slab_b)

    # Drop the input image into the interior of slab_a (channels 0:CIN).
    slab_a[1:1 + H, _HALO:_HALO + W, :CIN] = x_ref[0]

    def conv_selu(src, dst, i):
        p = patches(src).astype(MATMUL_DTYPE)                     # (HW, KPAD)
        a = jnp.dot(p, w_ref[i], preferred_element_type=jnp.float32)
        a = selu(a + b_ref[i])                                    # f32 epilogue
        dst[1:1 + H, _HALO:_HALO + W, :] = a.reshape(H, W, CPAD)  # lane-dense

    conv_selu(slab_a, slab_b, 0)      # 12 -> 96
    conv_selu(slab_b, slab_a, 1)      # 96 -> 48
    conv_selu(slab_a, slab_b, 2)      # 48 -> 24
    conv_selu(slab_b, slab_a, 3)      # 24 -> 12

    # Final 3x3 conv (Cout = 1): one full-lane-width row, (1,KPAD) @ (KPAD,HW),
    # so the output store is a dense (1, HW) row instead of a width-1 column.
    p5 = patches(slab_a)                                          # (HW, KPAD) f32
    o_ref[0] = (jnp.dot(w5_ref[...], p5.T,
                        preferred_element_type=jnp.float32)
                + b5_ref[...])


def _zpred_fused(x_nhwc, w_all, b_all, w5_row, b5):
    N, H, W, CIN = x_nhwc.shape
    HW = H * W
    assert W % 8 == 0 and HW % 128 == 0, "spatial dims must tile (8,128)"
    WP = W + 2 * _HALO   # slab width: interior at [_HALO, _HALO+W), halo at 7 / _HALO+W

    kernel = functools.partial(_zpred_kernel, H=H, W=W, CIN=CIN)

    out = pl.pallas_call(
        kernel,
        out_shape=jax.ShapeDtypeStruct((N, 1, HW), jnp.float32),
        grid=(N,),
        in_specs=[
            pl.BlockSpec((1, H, W, CIN), lambda n: (n, 0, 0, 0)),
            pl.BlockSpec((4, KPAD, CPAD), lambda n: (0, 0, 0)),
            pl.BlockSpec((4, 1, CPAD), lambda n: (0, 0, 0)),
            pl.BlockSpec((1, KPAD), lambda n: (0, 0)),
            pl.BlockSpec((1, 1), lambda n: (0, 0)),
        ],
        out_specs=pl.BlockSpec((1, 1, HW), lambda n: (n, 0, 0)),
        scratch_shapes=[
            pltpu.VMEM((H + 2, WP, CPAD), jnp.float32),
            pltpu.VMEM((H + 2, WP, CPAD), jnp.float32),
        ],
        compiler_params=pltpu.CompilerParams(
            dimension_semantics=("parallel",)),     # batch across v7x TCs
    )(x_nhwc, w_all, b_all, w5_row, b5)
    return out.reshape(N, H, W)


def _pack_params(params):
    """Pad channels to CPAD and flatten HWIO weights to im2col (KPAD, CPAD)."""
    w_list, b_list = [], []
    for w, b in params[:4]:
        cin, cout = w.shape[2], w.shape[3]
        wp = jnp.zeros((3, 3, CPAD, CPAD), jnp.float32).at[:, :, :cin, :cout].set(w)
        bp = jnp.zeros((1, CPAD), jnp.float32).at[0, :cout].set(b)
        w_list.append(wp.reshape(KPAD, CPAD))
        b_list.append(bp)
    w_all = jnp.stack(w_list).astype(MATMUL_DTYPE)      # (4, KPAD, CPAD)
    b_all = jnp.stack(b_list)                           # (4, 1, CPAD) f32

    w5, b5 = params[4]
    cin5 = w5.shape[2]
    w5p = jnp.zeros((3, 3, CPAD, 1), jnp.float32).at[:, :, :cin5, :].set(w5)
    w5_row = w5p.reshape(1, KPAD)                       # (1, KPAD) f32
    b5_arr = b5.reshape(1, 1).astype(jnp.float32)
    return w_all, b_all, w5_row, b5_arr


def init_params(key):
    """Deterministic synthetic parameters (HWIO weights, per-layer bias)."""
    channels = [(12, 96), (96, 48), (48, 24), (24, 12), (12, 1)]
    params = []
    for (cin, cout) in channels:
        key, kw, kb = jax.random.split(key, 3)
        fan_in = cin * 3 * 3
        scale = 1.0 / jnp.sqrt(jnp.float32(fan_in))
        w = jax.random.uniform(kw, (3, 3, cin, cout), jnp.float32,
                               minval=-scale, maxval=scale)
        b = jax.random.uniform(kb, (cout,), jnp.float32,
                               minval=-scale, maxval=scale)
        params.append((w, b))
    return params


@jax.jit
def z_prediction_forward(x_nchw, params):
    """Forward pass matching zPrediction.forward. Input NCHW, output (N,H,W)."""
    x = jnp.transpose(x_nchw.astype(jnp.float32), (0, 2, 3, 1))   # -> NHWC
    w_all, b_all, w5_row, b5 = _pack_params(params)
    return _zpred_fused(x, w_all, b_all, w5_row, b5)


if __name__ == "__main__":
    key = jax.random.PRNGKey(0)
    kx, kp = jax.random.split(key)

    # Small shapes consistent with the module: N=2, Cin=12, 16x16 spatial.
    x = jax.random.normal(kx, (2, 12, 16, 16), jnp.float32)
    params = init_params(kp)

    out = z_prediction_forward(x, params)
    out = jax.block_until_ready(out)

    assert out.shape == (2, 16, 16), out.shape
    assert out.dtype == jnp.float32, out.dtype
    print("KERNEL_OK")
</pallas_src>

<mosaic_0001>
module attributes {stable_mosaic.version = 11 : i64} {
  func.func @_zpred_kernel(%arg0: i32, %arg1: memref<1x16x16x12xf32, #tpu.memory_space<vmem>>, %arg2: memref<4x1152x128xbf16, #tpu.memory_space<vmem>>, %arg3: memref<4x1x128xf32, #tpu.memory_space<vmem>>, %arg4: memref<1x1152xf32, #tpu.memory_space<vmem>>, %arg5: memref<1x1xf32, #tpu.memory_space<vmem>>, %arg6: memref<1x1x256xf32, #tpu.memory_space<vmem>>, %arg7: memref<18x32x128xf32, #tpu.memory_space<vmem>>, %arg8: memref<18x32x128xf32, #tpu.memory_space<vmem>>) attributes {dimension_semantics = [#tpu.dimension_semantics<parallel>], iteration_bounds = array<i64: 2>, scalar_prefetch = 0 : i64, scratch_operands = 2 : i64, tpu.core_type = #tpu.core_type<tc>, window_params = [{transform_indices = @transform_0, window_bounds = array<i64: 1, 16, 16, 12>}, {pipeline_mode = #tpu.pipeline_mode<synchronous>, transform_indices = @transform_1, window_bounds = array<i64: 4, 1152, 128>}, {pipeline_mode = #tpu.pipeline_mode<synchronous>, transform_indices = @transform_2, window_bounds = array<i64: 4, 1, 128>}, {pipeline_mode = #tpu.pipeline_mode<synchronous>, transform_indices = @transform_3, window_bounds = array<i64: 1, 1152>}, {pipeline_mode = #tpu.pipeline_mode<synchronous>, transform_indices = @transform_4, window_bounds = array<i64: 1, 1>}, {transform_indices = @transform_5, window_bounds = array<i64: 1, 1, 256>}]} {
    %cst = arith.constant 0.000000e+00 : f32
    %0 = vector.broadcast %cst : f32 to vector<18x32x128xf32>
    %c0 = arith.constant 0 : index
    %c0_0 = arith.constant 0 : index
    %c0_1 = arith.constant 0 : index
    %1 = vector.load %arg7[%c0, %c0_0, %c0_1] : memref<18x32x128xf32, #tpu.memory_space<vmem>>, vector<18x32x128xf32>
    tpu.vector_store %arg7[%c0, %c0_0, %c0_1], %0 {strides = array<i32>} : memref<18x32x128xf32, #tpu.memory_space<vmem>>, vector<18x32x128xf32>,
    %cst_2 = arith.constant 0.000000e+00 : f32
    %2 = vector.broadcast %cst_2 : f32 to vector<18x32x128xf32>
    %c0_3 = arith.constant 0 : index
    %c0_4 = arith.constant 0 : index
    %c0_5 = arith.constant 0 : index
    %3 = vector.load %arg8[%c0_3, %c0_4, %c0_5] : memref<18x32x128xf32, #tpu.memory_space<vmem>>, vector<18x32x128xf32>
    tpu.vector_store %arg8[%c0_3, %c0_4, %c0_5], %2 {strides = array<i32>} : memref<18x32x128xf32, #tpu.memory_space<vmem>>, vector<18x32x128xf32>,
    %c0_6 = arith.constant 0 : index
    %c0_7 = arith.constant 0 : index
    %c0_8 = arith.constant 0 : index
    %c0_9 = arith.constant 0 : index
    %4 = vector.load %arg1[%c0_6, %c0_7, %c0_8, %c0_9] : memref<1x16x16x12xf32, #tpu.memory_space<vmem>>, vector<1x16x16x12xf32>
    %5 = vector.shape_cast %4 : vector<1x16x16x12xf32> to vector<16x16x12xf32>
    %c1 = arith.constant 1 : index
    %c8 = arith.constant 8 : index
    %c0_10 = arith.constant 0 : index
    %6 = vector.load %arg7[%c1, %c8, %c0_10] : memref<18x32x128xf32, #tpu.memory_space<vmem>>, vector<16x16x12xf32>
    tpu.vector_store %arg7[%c1, %c8, %c0_10], %5 {strides = array<i32>} : memref<18x32x128xf32, #tpu.memory_space<vmem>>, vector<16x16x12xf32>,
    %c0_11 = arith.constant 0 : index
    %c7 = arith.constant 7 : index
    %c0_12 = arith.constant 0 : index
    %7 = vector.load %arg7[%c0_11, %c7, %c0_12] : memref<18x32x128xf32, #tpu.memory_space<vmem>>, vector<16x16x128xf32>
    %8 = vector.shape_cast %7 : vector<16x16x128xf32> to vector<256x128xf32>
    %c0_13 = arith.constant 0 : index
    %c8_14 = arith.constant 8 : index
    %c0_15 = arith.constant 0 : index
    %9 = vector.load %arg7[%c0_13, %c8_14, %c0_15] : memref<18x32x128xf32, #tpu.memory_space<vmem>>, vector<16x16x128xf32>
    %10 = vector.shape_cast %9 : vector<16x16x128xf32> to vector<256x128xf32>
    %c0_16 = arith.constant 0 : index
    %c9 = arith.constant 9 : index
    %c0_17 = arith.constant 0 : index
    %11 = vector.load %arg7[%c0_16, %c9, %c0_17] : memref<18x32x128xf32, #tpu.memory_space<vmem>>, vector<16x16x128xf32>
    %12 = vector.shape_cast %11 : vector<16x16x128xf32> to vector<256x128xf32>
    %c1_18 = arith.constant 1 : index
    %c7_19 = arith.constant 7 : index
    %c0_20 = arith.constant 0 : index
    %13 = vector.load %arg7[%c1_18, %c7_19, %c0_20] : memref<18x32x128xf32, #tpu.memory_space<vmem>>, vector<16x16x128xf32>
    %14 = vector.shape_cast %13 : vector<16x16x128xf32> to vector<256x128xf32>
    %c1_21 = arith.constant 1 : index
    %c8_22 = arith.constant 8 : index
    %c0_23 = arith.constant 0 : index
    %15 = vector.load %arg7[%c1_21, %c8_22, %c0_23] : memref<18x32x128xf32, #tpu.memory_space<vmem>>, vector<16x16x128xf32>
    %16 = vector.shape_cast %15 : vector<16x16x128xf32> to vector<256x128xf32>
    %c1_24 = arith.constant 1 : index
    %c9_25 = arith.constant 9 : index
    %c0_26 = arith.constant 0 : index
    %17 = vector.load %arg7[%c1_24, %c9_25, %c0_26] : memref<18x32x128xf32, #tpu.memory_space<vmem>>, vector<16x16x128xf32>
    %18 = vector.shape_cast %17 : vector<16x16x128xf32> to vector<256x128xf32>
    %c2 = arith.constant 2 : index
    %c7_27 = arith.constant 7 : index
    %c0_28 = arith.constant 0 : index
    %19 = vector.load %arg7[%c2, %c7_27, %c0_28] : memref<18x32x128xf32, #tpu.memory_space<vmem>>, vector<16x16x128xf32>
    %20 = vector.shape_cast %19 : vector<16x16x128xf32> to vector<256x128xf32>
    %c2_29 = arith.constant 2 : index
    %c8_30 = arith.constant 8 : index
    %c0_31 = arith.constant 0 : index
    %21 = vector.load %arg7[%c2_29, %c8_30, %c0_31] : memref<18x32x128xf32, #tpu.memory_space<vmem>>, vector<16x16x128xf32>
    %22 = vector.shape_cast %21 : vector<16x16x128xf32> to vector<256x128xf32>
    %c2_32 = arith.constant 2 : index
    %c9_33 = arith.constant 9 : index
    %c0_34 = arith.constant 0 : index
    %23 = vector.load %arg7[%c2_32, %c9_33, %c0_34] : memref<18x32x128xf32, #tpu.memory_space<vmem>>, vector<16x16x128xf32>
    %24 = vector.shape_cast %23 : vector<16x16x128xf32> to vector<256x128xf32>
    %25 = tpu.concatenate %8, %10, %12, %14, %16, %18, %20, %22, %24 in 1 : vector<256x128xf32>, vector<256x128xf32>, vector<256x128xf32>, vector<256x128xf32>, vector<256x128xf32>, vector<256x128xf32>, vector<256x128xf32>, vector<256x128xf32>, vector<256x128xf32> -> vector<256x1152xf32>
    %26 = arith.truncf %25 : vector<256x1152xf32> to vector<256x1152xbf16>
    %c0_35 = arith.constant 0 : index
    %c0_36 = arith.constant 0 : index
    %c0_37 = arith.constant 0 : index
    %27 = vector.load %arg2[%c0_35, %c0_36, %c0_37] : memref<4x1152x128xbf16, #tpu.memory_space<vmem>>, vector<1x1152x128xbf16>
    %28 = vector.shape_cast %27 : vector<1x1152x128xbf16> to vector<1152x128xbf16>
    %cst_38 = arith.constant dense<0.000000e+00> : vector<256x128xf32>
    %29 = tpu.matmul %26, %28, %cst_38 {dimension_numbers = #tpu.dot_dimension_numbers<[1], [0], [0], [1], [0, 0, 1, 1], [], []>} : vector<256x1152xbf16>, vector<1152x128xbf16>, vector<256x128xf32> -> vector<256x128xf32>
    %c0_39 = arith.constant 0 : index
    %c0_40 = arith.constant 0 : index
    %c0_41 = arith.constant 0 : index
    %30 = vector.load %arg3[%c0_39, %c0_40, %c0_41] : memref<4x1x128xf32, #tpu.memory_space<vmem>>, vector<1x1x128xf32>
    %31 = vector.shape_cast %30 : vector<1x1x128xf32> to vector<1x128xf32>
    %32 = vector.broadcast %31 : vector<1x128xf32> to vector<256x128xf32>
    %33 = arith.addf %29, %32 : vector<256x128xf32>
    %cst_42 = arith.constant 0.000000e+00 : f32
    %34 = vector.broadcast %cst_42 : f32 to vector<256x128xf32>
    %35 = arith.minimumf %33, %34 : vector<256x128xf32>
    %36 = math.exp %35 : vector<256x128xf32>
    %cst_43 = arith.constant 1.67326319 : f32
    %37 = vector.broadcast %cst_43 : f32 to vector<256x128xf32>
    %38 = arith.mulf %37, %36 : vector<256x128xf32>
    %cst_44 = arith.constant 1.67326319 : f32
    %39 = vector.broadcast %cst_44 : f32 to vector<256x128xf32>
    %40 = arith.subf %38, %39 : vector<256x128xf32>
    %cst_45 = arith.constant 0.000000e+00 : f32
    %41 = vector.broadcast %cst_45 : f32 to vector<256x128xf32>
    %42 = arith.cmpf ogt, %33, %41 : vector<256x128xf32>
    %43 = arith.select %42, %33, %40 : vector<256x128xi1>, vector<256x128xf32>
    %cst_46 = arith.constant 1.05070102 : f32
    %44 = vector.broadcast %cst_46 : f32 to vector<256x128xf32>
    %45 = arith.mulf %44, %43 : vector<256x128xf32>
    %46 = vector.shape_cast %45 : vector<256x128xf32> to vector<16x16x128xf32>
    %c1_47 = arith.constant 1 : index
    %c8_48 = arith.constant 8 : index
    %c0_49 = arith.constant 0 : index
    %47 = vector.load %arg8[%c1_47, %c8_48, %c0_49] : memref<18x32x128xf32, #tpu.memory_space<vmem>>, vector<16x16x128xf32>
    tpu.vector_store %arg8[%c1_47, %c8_48, %c0_49], %46 {strides = array<i32>} : memref<18x32x128xf32, #tpu.memory_space<vmem>>, vector<16x16x128xf32>,
    %c0_50 = arith.constant 0 : index
    %c7_51 = arith.constant 7 : index
    %c0_52 = arith.constant 0 : index
    %48 = vector.load %arg8[%c0_50, %c7_51, %c0_52] : memref<18x32x128xf32, #tpu.memory_space<vmem>>, vector<16x16x128xf32>
    %49 = vector.shape_cast %48 : vector<16x16x128xf32> to vector<256x128xf32>
    %c0_53 = arith.constant 0 : index
    %c8_54 = arith.constant 8 : index
    %c0_55 = arith.constant 0 : index
    %50 = vector.load %arg8[%c0_53, %c8_54, %c0_55] : memref<18x32x128xf32, #tpu.memory_space<vmem>>, vector<16x16x128xf32>
    %51 = vector.shape_cast %50 : vector<16x16x128xf32> to vector<256x128xf32>
    %c0_56 = arith.constant 0 : index
    %c9_57 = arith.constant 9 : index
    %c0_58 = arith.constant 0 : index
    %52 = vector.load %arg8[%c0_56, %c9_57, %c0_58] : memref<18x32x128xf32, #tpu.memory_space<vmem>>, vector<16x16x128xf32>
    %53 = vector.shape_cast %52 : vector<16x16x128xf32> to vector<256x128xf32>
    %c1_59 = arith.constant 1 : index
    %c7_60 = arith.constant 7 : index
    %c0_61 = arith.constant 0 : index
    %54 = vector.load %arg8[%c1_59, %c7_60, %c0_61] : memref<18x32x128xf32, #tpu.memory_space<vmem>>, vector<16x16x128xf32>
    %55 = vector.shape_cast %54 : vector<16x16x128xf32> to vector<256x128xf32>
    %c1_62 = arith.constant 1 : index
    %c8_63 = arith.constant 8 : index
    %c0_64 = arith.constant 0 : index
    %56 = vector.load %arg8[%c1_62, %c8_63, %c0_64] : memref<18x32x128xf32, #tpu.memory_space<vmem>>, vector<16x16x128xf32>
    %57 = vector.shape_cast %56 : vector<16x16x128xf32> to vector<256x128xf32>
    %c1_65 = arith.constant 1 : index
    %c9_66 = arith.constant 9 : index
    %c0_67 = arith.constant 0 : index
    %58 = vector.load %arg8[%c1_65, %c9_66, %c0_67] : memref<18x32x128xf32, #tpu.memory_space<vmem>>, vector<16x16x128xf32>
    %59 = vector.shape_cast %58 : vector<16x16x128xf32> to vector<256x128xf32>
    %c2_68 = arith.constant 2 : index
    %c7_69 = arith.constant 7 : index
    %c0_70 = arith.constant 0 : index
    %60 = vector.load %arg8[%c2_68, %c7_69, %c0_70] : memref<18x32x128xf32, #tpu.memory_space<vmem>>, vector<16x16x128xf32>
    %61 = vector.shape_cast %60 : vector<16x16x128xf32> to vector<256x128xf32>
    %c2_71 = arith.constant 2 : index
    %c8_72 = arith.constant 8 : index
    %c0_73 = arith.constant 0 : index
    %62 = vector.load %arg8[%c2_71, %c8_72, %c0_73] : memref<18x32x128xf32, #tpu.memory_space<vmem>>, vector<16x16x128xf32>
    %63 = vector.shape_cast %62 : vector<16x16x128xf32> to vector<256x128xf32>
    %c2_74 = arith.constant 2 : index
    %c9_75 = arith.constant 9 : index
    %c0_76 = arith.constant 0 : index
    %64 = vector.load %arg8[%c2_74, %c9_75, %c0_76] : memref<18x32x128xf32, #tpu.memory_space<vmem>>, vector<16x16x128xf32>
    %65 = vector.shape_cast %64 : vector<16x16x128xf32> to vector<256x128xf32>
    %66 = tpu.concatenate %49, %51, %53, %55, %57, %59, %61, %63, %65 in 1 : vector<256x128xf32>, vector<256x128xf32>, vector<256x128xf32>, vector<256x128xf32>, vector<256x128xf32>, vector<256x128xf32>, vector<256x128xf32>, vector<256x128xf32>, vector<256x128xf32> -> vector<256x1152xf32>
    %67 = arith.truncf %66 : vector<256x1152xf32> to vector<256x1152xbf16>
    %c1_77 = arith.constant 1 : index
    %c0_78 = arith.constant 0 : index
    %c0_79 = arith.constant 0 : index
    %68 = vector.load %arg2[%c1_77, %c0_78, %c0_79] : memref<4x1152x128xbf16, #tpu.memory_space<vmem>>, vector<1x1152x128xbf16>
    %69 = vector.shape_cast %68 : vector<1x1152x128xbf16> to vector<1152x128xbf16>
    %cst_80 = arith.constant dense<0.000000e+00> : vector<256x128xf32>
    %70 = tpu.matmul %67, %69, %cst_80 {dimension_numbers = #tpu.dot_dimension_numbers<[1], [0], [0], [1], [0, 0, 1, 1], [], []>} : vector<256x1152xbf16>, vector<1152x128xbf16>, vector<256x128xf32> -> vector<256x128xf32>
    %c1_81 = arith.constant 1 : index
    %c0_82 = arith.constant 0 : index
    %c0_83 = arith.constant 0 : index
    %71 = vector.load %arg3[%c1_81, %c0_82, %c0_83] : memref<4x1x128xf32, #tpu.memory_space<vmem>>, vector<1x1x128xf32>
    %72 = vector.shape_cast %71 : vector<1x1x128xf32> to vector<1x128xf32>
    %73 = vector.broadcast %72 : vector<1x128xf32> to vector<256x128xf32>
    %74 = arith.addf %70, %73 : vector<256x128xf32>
    %cst_84 = arith.constant 0.000000e+00 : f32
    %75 = vector.broadcast %cst_84 : f32 to vector<256x128xf32>
    %76 = arith.minimumf %74, %75 : vector<256x128xf32>
    %77 = math.exp %76 : vector<256x128xf32>
    %cst_85 = arith.constant 1.67326319 : f32
    %78 = vector.broadcast %cst_85 : f32 to vector<256x128xf32>
    %79 = arith.mulf %78, %77 : vector<256x128xf32>
    %cst_86 = arith.constant 1.67326319 : f32
    %80 = vector.broadcast %cst_86 : f32 to vector<256x128xf32>
    %81 = arith.subf %79, %80 : vector<256x128xf32>
    %cst_87 = arith.constant 0.000000e+00 : f32
    %82 = vector.broadcast %cst_87 : f32 to vector<256x128xf32>
    %83 = arith.cmpf ogt, %74, %82 : vector<256x128xf32>
    %84 = arith.select %83, %74, %81 : vector<256x128xi1>, vector<256x128xf32>
    %cst_88 = arith.constant 1.05070102 : f32
    %85 = vector.broadcast %cst_88 : f32 to vector<256x128xf32>
    %86 = arith.mulf %85, %84 : vector<256x128xf32>
    %87 = vector.shape_cast %86 : vector<256x128xf32> to vector<16x16x128xf32>
    %c1_89 = arith.constant 1 : index
    %c8_90 = arith.constant 8 : index
    %c0_91 = arith.constant 0 : index
    %88 = vector.load %arg7[%c1_89, %c8_90, %c0_91] : memref<18x32x128xf32, #tpu.memory_space<vmem>>, vector<16x16x128xf32>
    tpu.vector_store %arg7[%c1_89, %c8_90, %c0_91], %87 {strides = array<i32>} : memref<18x32x128xf32, #tpu.memory_space<vmem>>, vector<16x16x128xf32>,
    %c0_92 = arith.constant 0 : index
    %c7_93 = arith.constant 7 : index
    %c0_94 = arith.constant 0 : index
    %89 = vector.load %arg7[%c0_92, %c7_93, %c0_94] : memref<18x32x128xf32, #tpu.memory_space<vmem>>, vector<16x16x128xf32>
    %90 = vector.shape_cast %89 : vector<16x16x128xf32> to vector<256x128xf32>
    %c0_95 = arith.constant 0 : index
    %c8_96 = arith.constant 8 : index
    %c0_97 = arith.constant 0 : index
    %91 = vector.load %arg7[%c0_95, %c8_96, %c0_97] : memref<18x32x128xf32, #tpu.memory_space<vmem>>, vector<16x16x128xf32>
    %92 = vector.shape_cast %91 : vector<16x16x128xf32> to vector<256x128xf32>
    %c0_98 = arith.constant 0 : index
    %c9_99 = arith.constant 9 : index
    %c0_100 = arith.constant 0 : index
    %93 = vector.load %arg7[%c0_98, %c9_99, %c0_100] : memref<18x32x128xf32, #tpu.memory_space<vmem>>, vector<16x16x128xf32>
    %94 = vector.shape_cast %93 : vector<16x16x128xf32> to vector<256x128xf32>
    %c1_101 = arith.constant 1 : index
    %c7_102 = arith.constant 7 : index
    %c0_103 = arith.constant 0 : index
    %95 = vector.load %arg7[%c1_101, %c7_102, %c0_103] : memref<18x32x128xf32, #tpu.memory_space<vmem>>, vector<16x16x128xf32>
    %96 = vector.shape_cast %95 : vector<16x16x128xf32> to vector<256x128xf32>
    %c1_104 = arith.constant 1 : index
    %c8_105 = arith.constant 8 : index
    %c0_106 = arith.constant 0 : index
    %97 = vector.load %arg7[%c1_104, %c8_105, %c0_106] : memref<18x32x128xf32, #tpu.memory_space<vmem>>, vector<16x16x128xf32>
    %98 = vector.shape_cast %97 : vector<16x16x128xf32> to vector<256x128xf32>
    %c1_107 = arith.constant 1 : index
    %c9_108 = arith.constant 9 : index
    %c0_109 = arith.constant 0 : index
    %99 = vector.load %arg7[%c1_107, %c9_108, %c0_109] : memref<18x32x128xf32, #tpu.memory_space<vmem>>, vector<16x16x128xf32>
    %100 = vector.shape_cast %99 : vector<16x16x128xf32> to vector<256x128xf32>
    %c2_110 = arith.constant 2 : index
    %c7_111 = arith.constant 7 : index
    %c0_112 = arith.constant 0 : index
    %101 = vector.load %arg7[%c2_110, %c7_111, %c0_112] : memref<18x32x128xf32, #tpu.memory_space<vmem>>, vector<16x16x128xf32>
    %102 = vector.shape_cast %101 : vector<16x16x128xf32> to vector<256x128xf32>
    %c2_113 = arith.constant 2 : index
    %c8_114 = arith.constant 8 : index
    %c0_115 = arith.constant 0 : index
    %103 = vector.load %arg7[%c2_113, %c8_114, %c0_115] : memref<18x32x128xf32, #tpu.memory_space<vmem>>, vector<16x16x128xf32>
    %104 = vector.shape_cast %103 : vector<16x16x128xf32> to vector<256x128xf32>
    %c2_116 = arith.constant 2 : index
    %c9_117 = arith.constant 9 : index
    %c0_118 = arith.constant 0 : index
    %105 = vector.load %arg7[%c2_116, %c9_117, %c0_118] : memref<18x32x128xf32, #tpu.memory_space<vmem>>, vector<16x16x128xf32>
    %106 = vector.shape_cast %105 : vector<16x16x128xf32> to vector<256x128xf32>
    %107 = tpu.concatenate %90, %92, %94, %96, %98, %100, %102, %104, %106 in 1 : vector<256x128xf32>, vector<256x128xf32>, vector<256x128xf32>, vector<256x128xf32>, vector<256x128xf32>, vector<256x128xf32>, vector<256x128xf32>, vector<256x128xf32>, vector<256x128xf32> -> vector<256x1152xf32>
    %108 = arith.truncf %107 : vector<256x1152xf32> to vector<256x1152xbf16>
    %c2_119 = arith.constant 2 : index
    %c0_120 = arith.constant 0 : index
    %c0_121 = arith.constant 0 : index
    %109 = vector.load %arg2[%c2_119, %c0_120, %c0_121] : memref<4x1152x128xbf16, #tpu.memory_space<vmem>>, vector<1x1152x128xbf16>
    %110 = vector.shape_cast %109 : vector<1x1152x128xbf16> to vector<1152x128xbf16>
    %cst_122 = arith.constant dense<0.000000e+00> : vector<256x128xf32>
    %111 = tpu.matmul %108, %110, %cst_122 {dimension_numbers = #tpu.dot_dimension_numbers<[1], [0], [0], [1], [0, 0, 1, 1], [], []>} : vector<256x1152xbf16>, vector<1152x128xbf16>, vector<256x128xf32> -> vector<256x128xf32>
    %c2_123 = arith.constant 2 : index
    %c0_124 = arith.constant 0 : index
    %c0_125 = arith.constant 0 : index
    %112 = vector.load %arg3[%c2_123, %c0_124, %c0_125] : memref<4x1x128xf32, #tpu.memory_space<vmem>>, vector<1x1x128xf32>
    %113 = vector.shape_cast %112 : vector<1x1x128xf32> to vector<1x128xf32>
    %114 = vector.broadcast %113 : vector<1x128xf32> to vector<256x128xf32>
    %115 = arith.addf %111, %114 : vector<256x128xf32>
    %cst_126 = arith.constant 0.000000e+00 : f32
    %116 = vector.broadcast %cst_126 : f32 to vector<256x128xf32>
    %117 = arith.minimumf %115, %116 : vector<256x128xf32>
    %118 = math.exp %117 : vector<256x128xf32>
    %cst_127 = arith.constant 1.67326319 : f32
    %119 = vector.broadcast %cst_127 : f32 to vector<256x128xf32>
    %120 = arith.mulf %119, %118 : vector<256x128xf32>
    %cst_128 = arith.constant 1.67326319 : f32
    %121 = vector.broadcast %cst_128 : f32 to vector<256x128xf32>
    %122 = arith.subf %120, %121 : vector<256x128xf32>
    %cst_129 = arith.constant 0.000000e+00 : f32
    %123 = vector.broadcast %cst_129 : f32 to vector<256x128xf32>
    %124 = arith.cmpf ogt, %115, %123 : vector<256x128xf32>
    %125 = arith.select %124, %115, %122 : vector<256x128xi1>, vector<256x128xf32>
    %cst_130 = arith.constant 1.05070102 : f32
    %126 = vector.broadcast %cst_130 : f32 to vector<256x128xf32>
    %127 = arith.mulf %126, %125 : vector<256x128xf32>
    %128 = vector.shape_cast %127 : vector<256x128xf32> to vector<16x16x128xf32>
    %c1_131 = arith.constant 1 : index
    %c8_132 = arith.constant 8 : index
    %c0_133 = arith.constant 0 : index
    %129 = vector.load %arg8[%c1_131, %c8_132, %c0_133] : memref<18x32x128xf32, #tpu.memory_space<vmem>>, vector<16x16x128xf32>
    tpu.vector_store %arg8[%c1_131, %c8_132, %c0_133], %128 {strides = array<i32>} : memref<18x32x128xf32, #tpu.memory_space<vmem>>, vector<16x16x128xf32>,
    %c0_134 = arith.constant 0 : index
    %c7_135 = arith.constant 7 : index
    %c0_136 = arith.constant 0 : index
    %130 = vector.load %arg8[%c0_134, %c7_135, %c0_136] : memref<18x32x128xf32, #tpu.memory_space<vmem>>, vector<16x16x128xf32>
    %131 = vector.shape_cast %130 : vector<16x16x128xf32> to vector<256x128xf32>
    %c0_137 = arith.constant 0 : index
    %c8_138 = arith.constant 8 : index
    %c0_139 = arith.constant 0 : index
    %132 = vector.load %arg8[%c0_137, %c8_138, %c0_139] : memref<18x32x128xf32, #tpu.memory_space<vmem>>, vector<16x16x128xf32>
    %133 = vector.shape_cast %132 : vector<16x16x128xf32> to vector<256x128xf32>
    %c0_140 = arith.constant 0 : index
    %c9_141 = arith.constant 9 : index
    %c0_142 = arith.constant 0 : index
    %134 = vector.load %arg8[%c0_140, %c9_141, %c0_142] : memref<18x32x128xf32, #tpu.memory_space<vmem>>, vector<16x16x128xf32>
    %135 = vector.shape_cast %134 : vector<16x16x128xf32> to vector<256x128xf32>
    %c1_143 = arith.constant 1 : index
    %c7_144 = arith.constant 7 : index
    %c0_145 = arith.constant 0 : index
    %136 = vector.load %arg8[%c1_143, %c7_144, %c0_145] : memref<18x32x128xf32, #tpu.memory_space<vmem>>, vector<16x16x128xf32>
    %137 = vector.shape_cast %136 : vector<16x16x128xf32> to vector<256x128xf32>
    %c1_146 = arith.constant 1 : index
    %c8_147 = arith.constant 8 : index
    %c0_148 = arith.constant 0 : index
    %138 = vector.load %arg8[%c1_146, %c8_147, %c0_148] : memref<18x32x128xf32, #tpu.memory_space<vmem>>, vector<16x16x128xf32>
    %139 = vector.shape_cast %138 : vector<16x16x128xf32> to vector<256x128xf32>
    %c1_149 = arith.constant 1 : index
    %c9_150 = arith.constant 9 : index
    %c0_151 = arith.constant 0 : index
    %140 = vector.load %arg8[%c1_149, %c9_150, %c0_151] : memref<18x32x128xf32, #tpu.memory_space<vmem>>, vector<16x16x128xf32>
    %141 = vector.shape_cast %140 : vector<16x16x128xf32> to vector<256x128xf32>
    %c2_152 = arith.constant 2 : index
    %c7_153 = arith.constant 7 : index
    %c0_154 = arith.constant 0 : index
    %142 = vector.load %arg8[%c2_152, %c7_153, %c0_154] : memref<18x32x128xf32, #tpu.memory_space<vmem>>, vector<16x16x128xf32>
    %143 = vector.shape_cast %142 : vector<16x16x128xf32> to vector<256x128xf32>
    %c2_155 = arith.constant 2 : index
    %c8_156 = arith.constant 8 : index
    %c0_157 = arith.constant 0 : index
    %144 = vector.load %arg8[%c2_155, %c8_156, %c0_157] : memref<18x32x128xf32, #tpu.memory_space<vmem>>, vector<16x16x128xf32>
    %145 = vector.shape_cast %144 : vector<16x16x128xf32> to vector<256x128xf32>
    %c2_158 = arith.constant 2 : index
    %c9_159 = arith.constant 9 : index
    %c0_160 = arith.constant 0 : index
    %146 = vector.load %arg8[%c2_158, %c9_159, %c0_160] : memref<18x32x128xf32, #tpu.memory_space<vmem>>, vector<16x16x128xf32>
    %147 = vector.shape_cast %146 : vector<16x16x128xf32> to vector<256x128xf32>
    %148 = tpu.concatenate %131, %133, %135, %137, %139, %141, %143, %145, %147 in 1 : vector<256x128xf32>, vector<256x128xf32>, vector<256x128xf32>, vector<256x128xf32>, vector<256x128xf32>, vector<256x128xf32>, vector<256x128xf32>, vector<256x128xf32>, vector<256x128xf32> -> vector<256x1152xf32>
    %149 = arith.truncf %148 : vector<256x1152xf32> to vector<256x1152xbf16>
    %c3 = arith.constant 3 : index
    %c0_161 = arith.constant 0 : index
    %c0_162 = arith.constant 0 : index
    %150 = vector.load %arg2[%c3, %c0_161, %c0_162] : memref<4x1152x128xbf16, #tpu.memory_space<vmem>>, vector<1x1152x128xbf16>
    %151 = vector.shape_cast %150 : vector<1x1152x128xbf16> to vector<1152x128xbf16>
    %cst_163 = arith.constant dense<0.000000e+00> : vector<256x128xf32>
    %152 = tpu.matmul %149, %151, %cst_163 {dimension_numbers = #tpu.dot_dimension_numbers<[1], [0], [0], [1], [0, 0, 1, 1], [], []>} : vector<256x1152xbf16>, vector<1152x128xbf16>, vector<256x128xf32> -> vector<256x128xf32>
    %c3_164 = arith.constant 3 : index
    %c0_165 = arith.constant 0 : index
    %c0_166 = arith.constant 0 : index
    %153 = vector.load %arg3[%c3_164, %c0_165, %c0_166] : memref<4x1x128xf32, #tpu.memory_space<vmem>>, vector<1x1x128xf32>
    %154 = vector.shape_cast %153 : vector<1x1x128xf32> to vector<1x128xf32>
    %155 = vector.broadcast %154 : vector<1x128xf32> to vector<256x128xf32>
    %156 = arith.addf %152, %155 : vector<256x128xf32>
    %cst_167 = arith.constant 0.000000e+00 : f32
    %157 = vector.broadcast %cst_167 : f32 to vector<256x128xf32>
    %158 = arith.minimumf %156, %157 : vector<256x128xf32>
    %159 = math.exp %158 : vector<256x128xf32>
    %cst_168 = arith.constant 1.67326319 : f32
    %160 = vector.broadcast %cst_168 : f32 to vector<256x128xf32>
    %161 = arith.mulf %160, %159 : vector<256x128xf32>
    %cst_169 = arith.constant 1.67326319 : f32
    %162 = vector.broadcast %cst_169 : f32 to vector<256x128xf32>
    %163 = arith.subf %161, %162 : vector<256x128xf32>
    %cst_170 = arith.constant 0.000000e+00 : f32
    %164 = vector.broadcast %cst_170 : f32 to vector<256x128xf32>
    %165 = arith.cmpf ogt, %156, %164 : vector<256x128xf32>
    %166 = arith.select %165, %156, %163 : vector<256x128xi1>, vector<256x128xf32>
    %cst_171 = arith.constant 1.05070102 : f32
    %167 = vector.broadcast %cst_171 : f32 to vector<256x128xf32>
    %168 = arith.mulf %167, %166 : vector<256x128xf32>
    %169 = vector.shape_cast %168 : vector<256x128xf32> to vector<16x16x128xf32>
    %c1_172 = arith.constant 1 : index
    %c8_173 = arith.constant 8 : index
    %c0_174 = arith.constant 0 : index
    %170 = vector.load %arg7[%c1_172, %c8_173, %c0_174] : memref<18x32x128xf32, #tpu.memory_space<vmem>>, vector<16x16x128xf32>
    tpu.vector_store %arg7[%c1_172, %c8_173, %c0_174], %169 {strides = array<i32>} : memref<18x32x128xf32, #tpu.memory_space<vmem>>, vector<16x16x128xf32>,
    %c0_175 = arith.constant 0 : index
    %c7_176 = arith.constant 7 : index
    %c0_177 = arith.constant 0 : index
    %171 = vector.load %arg7[%c0_175, %c7_176, %c0_177] : memref<18x32x128xf32, #tpu.memory_space<vmem>>, vector<16x16x128xf32>
    %172 = vector.shape_cast %171 : vector<16x16x128xf32> to vector<256x128xf32>
    %c0_178 = arith.constant 0 : index
    %c8_179 = arith.constant 8 : index
    %c0_180 = arith.constant 0 : index
    %173 = vector.load %arg7[%c0_178, %c8_179, %c0_180] : memref<18x32x128xf32, #tpu.memory_space<vmem>>, vector<16x16x128xf32>
    %174 = vector.shape_cast %173 : vector<16x16x128xf32> to vector<256x128xf32>
    %c0_181 = arith.constant 0 : index
    %c9_182 = arith.constant 9 : index
    %c0_183 = arith.constant 0 : index
    %175 = vector.load %arg7[%c0_181, %c9_182, %c0_183] : memref<18x32x128xf32, #tpu.memory_space<vmem>>, vector<16x16x128xf32>
    %176 = vector.shape_cast %175 : vector<16x16x128xf32> to vector<256x128xf32>
    %c1_184 = arith.constant 1 : index
    %c7_185 = arith.constant 7 : index
    %c0_186 = arith.constant 0 : index
    %177 = vector.load %arg7[%c1_184, %c7_185, %c0_186] : memref<18x32x128xf32, #tpu.memory_space<vmem>>, vector<16x16x128xf32>
    %178 = vector.shape_cast %177 : vector<16x16x128xf32> to vector<256x128xf32>
    %c1_187 = arith.constant 1 : index
    %c8_188 = arith.constant 8 : index
    %c0_189 = arith.constant 0 : index
    %179 = vector.load %arg7[%c1_187, %c8_188, %c0_189] : memref<18x32x128xf32, #tpu.memory_space<vmem>>, vector<16x16x128xf32>
    %180 = vector.shape_cast %179 : vector<16x16x128xf32> to vector<256x128xf32>
    %c1_190 = arith.constant 1 : index
    %c9_191 = arith.constant 9 : index
    %c0_192 = arith.constant 0 : index
    %181 = vector.load %arg7[%c1_190, %c9_191, %c0_192] : memref<18x32x128xf32, #tpu.memory_space<vmem>>, vector<16x16x128xf32>
    %182 = vector.shape_cast %181 : vector<16x16x128xf32> to vector<256x128xf32>
    %c2_193 = arith.constant 2 : index
    %c7_194 = arith.constant 7 : index
    %c0_195 = arith.constant 0 : index
    %183 = vector.load %arg7[%c2_193, %c7_194, %c0_195] : memref<18x32x128xf32, #tpu.memory_space<vmem>>, vector<16x16x128xf32>
    %184 = vector.shape_cast %183 : vector<16x16x128xf32> to vector<256x128xf32>
    %c2_196 = arith.constant 2 : index
    %c8_197 = arith.constant 8 : index
    %c0_198 = arith.constant 0 : index
    %185 = vector.load %arg7[%c2_196, %c8_197, %c0_198] : memref<18x32x128xf32, #tpu.memory_space<vmem>>, vector<16x16x128xf32>
    %186 = vector.shape_cast %185 : vector<16x16x128xf32> to vector<256x128xf32>
    %c2_199 = arith.constant 2 : index
    %c9_200 = arith.constant 9 : index
    %c0_201 = arith.constant 0 : index
    %187 = vector.load %arg7[%c2_199, %c9_200, %c0_201] : memref<18x32x128xf32, #tpu.memory_space<vmem>>, vector<16x16x128xf32>
    %188 = vector.shape_cast %187 : vector<16x16x128xf32> to vector<256x128xf32>
    %189 = tpu.concatenate %172, %174, %176, %178, %180, %182, %184, %186, %188 in 1 : vector<256x128xf32>, vector<256x128xf32>, vector<256x128xf32>, vector<256x128xf32>, vector<256x128xf32>, vector<256x128xf32>, vector<256x128xf32>, vector<256x128xf32>, vector<256x128xf32> -> vector<256x1152xf32>
    %c0_202 = arith.constant 0 : index
    %c0_203 = arith.constant 0 : index
    %190 = vector.load %arg4[%c0_202, %c0_203] : memref<1x1152xf32, #tpu.memory_space<vmem>>, vector<1x1152xf32>
    %191 = tpu.transpose %189, [1, 0] : vector<256x1152xf32> -> vector<1152x256xf32>
    %cst_204 = arith.constant dense<0.000000e+00> : vector<1x256xf32>
    %192 = tpu.matmul %190, %191, %cst_204 {dimension_numbers = #tpu.dot_dimension_numbers<[1], [0], [0], [1], [0, 0, 1, 1], [], []>} : vector<1x1152xf32>, vector<1152x256xf32>, vector<1x256xf32> -> vector<1x256xf32>
    %c0_205 = arith.constant 0 : index
    %c0_206 = arith.constant 0 : index
    %193 = vector.load %arg5[%c0_205, %c0_206] : memref<1x1xf32, #tpu.memory_space<vmem>>, vector<1x1xf32>
    %194 = vector.broadcast %193 : vector<1x1xf32> to vector<1x256xf32>
    %195 = arith.addf %192, %194 : vector<1x256xf32>
    %c0_207 = arith.constant 0 : index
    %c0_208 = arith.constant 0 : index
    %c0_209 = arith.constant 0 : index
    %196 = vector.load %arg6[%c0_207, %c0_208, %c0_209] : memref<1x1x256xf32, #tpu.memory_space<vmem>>, vector<1x1x256xf32>
    %197 = vector.shape_cast %196 : vector<1x1x256xf32> to vector<1x256xf32>
    %198 = vector.shape_cast %195 : vector<1x256xf32> to vector<1x1x256xf32>
    tpu.vector_store %arg6[%c0_207, %c0_208, %c0_209], %198 {strides = array<i32>} : memref<1x1x256xf32, #tpu.memory_space<vmem>>, vector<1x1x256xf32>,
    return
  }
  func.func @transform_0(%arg0: i32) -> (i32, i32, i32, i32) {
    %c0_i32 = arith.constant 0 : i32
    %c0_i32_0 = arith.constant 0 : i32
    %c0_i32_1 = arith.constant 0 : i32
    %c0_i32_2 = arith.constant 0 : i32
    return %arg0, %c0_i32, %c0_i32_0, %c0_i32_1 : i32, i32, i32, i32
  }
  func.func @transform_1(%arg0: i32) -> (i32, i32, i32) {
    %c0_i32 = arith.constant 0 : i32
    %c0_i32_0 = arith.constant 0 : i32
    %c0_i32_1 = arith.constant 0 : i32
    %c0_i32_2 = arith.constant 0 : i32
    return %c0_i32, %c0_i32_0, %c0_i32_1 : i32, i32, i32
  }
  func.func @transform_2(%arg0: i32) -> (i32, i32, i32) {
    %c0_i32 = arith.constant 0 : i32
    %c0_i32_0 = arith.constant 0 : i32
    %c0_i32_1 = arith.constant 0 : i32
    %c0_i32_2 = arith.constant 0 : i32
    return %c0_i32, %c0_i32_0, %c0_i32_1 : i32, i32, i32
  }
  func.func @transform_3(%arg0: i32) -> (i32, i32) {
    %c0_i32 = arith.constant 0 : i32
    %c0_i32_0 = arith.constant 0 : i32
    %c0_i32_1 = arith.constant 0 : i32
    return %c0_i32, %c0_i32_0 : i32, i32
  }
  func.func @transform_4(%arg0: i32) -> (i32, i32) {
    %c0_i32 = arith.constant 0 : i32
    %c0_i32_0 = arith.constant 0 : i32
    %c0_i32_1 = arith.constant 0 : i32
    return %c0_i32, %c0_i32_0 : i32, i32
  }
  func.func @transform_5(%arg0: i32) -> (i32, i32, i32) {
    %c0_i32 = arith.constant 0 : i32
    %c0_i32_0 = arith.constant 0 : i32
    %c0_i32_1 = arith.constant 0 : i32
    return %arg0, %c0_i32, %c0_i32_0 : i32, i32, i32
  }
}

</mosaic_0001>

<bundles_post_ra>
// kernel: z_prediction_forward.1
= control target key start
LH: loop header
LB: loop body
LE: loop exit
PB: predicated region body
PF: predicated region fallthrough
CT: control target
= control target key end

     0   :  { %s11945_s20 = smov 0   ;;  %s16381_s0 = inlined_call_operand.vmem [shape: f32[2,16,16,12], index: 0, kind: input, shape index: {}]   ;;  %s16382_s1 = inlined_call_operand.vmem [shape: bf16[4,1152,128], index: 1, kind: input, shape index: {}]   ;;  %s16383_s2 = inlined_call_operand.vmem [shape: f32[4,1,128], index: 2, kind: input, shape index: {}]   ;;  %s16384_s3 = inlined_call_operand.vmem [shape: f32[1,1152], index: 3, kind: input, shape index: {}]   ;;  %s16385_s4 = inlined_call_operand.<no memory space> [shape: f32[1,1], index: 4, kind: input, shape index: {}]   ;;  %s16386_s5 = inlined_call_operand.vmem [shape: f32[2,1,256], index: 5, kind: output, shape index: {}]  }
   0x1   :  { %v10_v0 = vstv %s16385_s4 }
   0x2   :  { %11 = vst [vmem:[#allocation4] sm:$0x1] %v10_v0 }
   0x3 LB: > { %s9589_s21 = sadd.s32 4294967295, %s11907_s20   ;;  %p9593_p0 = scmp.ge.s32.totalorder %s11907_s20, 1  ;;  %s11907_s20 = sphi %s11945_s20, %s17_s20  }
   0x4   : > { %p189_p1 = scmp.lt.s32.totalorder %s11907_s20, 3 }
   0x6   : > { %p190_p2 = pnand %p9593_p0, %p189_p1 }
   0x8   : > { %193 = sbr.rel (%p190_p2) target bundleno = 3307 (0xceb), region = 40 }
   0xd   : > { %v11322_v1 = vld [vmem:[%s16382_s1 + $0x38] sm:$0xff]  ;;  %v11909_v3 = vmov 0.0   ;;  %v11321_v4 = vld [vmem:[%s16382_s1 + $0x30] sm:$0xff]  ;;  %v11320_v6 = vld [vmem:[%s16382_s1 + $0x28] sm:$0xff]  ;;  %v11910_v24 = vmov 0.0|0.0   ;;  %p216_p3 = scmp.lt.s32.totalorder %s9589_s21, 1 }
   0xe   : > { %v11330_v2 = vld [vmem:[%s16382_s1 + $0x78] sm:$0xff]  ;;  %225 = vst [vmem:[#allocation2] sm:$0xff] %v11909_v3  ;;  %1448 = vmatpush.bf16.msra.mxu0 %v11322_v1  ;;  %11603 = vmatpush.bf16.msra.mxu2 %v11322_v1  ;;  %v11329_v5 = vld [vmem:[%s16382_s1 + $0x70] sm:$0xff]  ;;  %v11328_v7 = vld [vmem:[%s16382_s1 + $0x68] sm:$0xff]  ;;  %vm402_vm0 = vcmask 97280  }
   0xf   : > { %226 = vst [vmem:[#allocation2 + $0x8] sm:$0xff] %v11909_v3  ;;  %1537 = vmatpush.bf16.msra.mxu1 %v11330_v2  ;;  %11611 = vmatpush.bf16.msra.mxu3 %v11330_v2  ;;  %v11319_v8 = vld [vmem:[%s16382_s1 + $0x20] sm:$0xff]  ;;  %v11318_v10 = vld [vmem:[%s16382_s1 + $0x18] sm:$0xff]  ;;  %v11317_v12 = vld [vmem:[%s16382_s1 + $0x10] sm:$0xff]  ;;  %s16573_s21 = smov (!%p216_p3, %s9589_s21), 1 }
  0x10   : > { %227 = vst [vmem:[#allocation2 + $0x10] sm:$0xff] %v11909_v3  ;;  %v11327_v9 = vld [vmem:[%s16382_s1 + $0x60] sm:$0xff]  ;;  %v11326_v11 = vld [vmem:[%s16382_s1 + $0x58] sm:$0xff]  ;;  %v11325_v13 = vld [vmem:[%s16382_s1 + $0x50] sm:$0xff]  ;;  %s11314_s22 = sshll.u32 %s16573_s21, 8  ;;  %s9596_s19 = sshll.u32 %s16573_s21, 1 }
  0x11   : > { %228 = vst [vmem:[#allocation2 + $0x18] sm:$0xff] %v11909_v3  ;;  %v11316_v14 = vld [vmem:[%s16382_s1 + $0x8] sm:$0xff]  ;;  %v11315_v16 = vld [vmem:[%s16382_s1] sm:$0xff]  ;;  %v11338_v21 = vld [vmem:[%s16382_s1 + $0xb8] sm:$0xff]  ;;  %s12142_s24 = scalar_lea.vmem %s16381_s0, %s11314_s22  ;;  %s224_s4 = scalar_lea.vmem %s16386_s5, %s9596_s19 }
  0x12   : > { %229 = vst [vmem:[#allocation2 + $0x20] sm:$0xff] %v11909_v3  ;;  %1449 = vmatpush.bf16.msra.mxu0 %v11321_v4  ;;  %11604 = vmatpush.bf16.msra.mxu2 %v11321_v4  ;;  %v11324_v15 = vld [vmem:[%s16382_s1 + $0x48] sm:$0xff]  ;;  %v11323_v19 = vld [vmem:[%s16382_s1 + $0x40] sm:$0xff]  ;;  %v11346_v22 = vld [vmem:[%s16382_s1 + $0xf8] sm:$0xff] }
  0x13   : > { %230 = vst [vmem:[#allocation2 + $0x28] sm:$0xff] %v11909_v3  ;;  %1538 = vmatpush.bf16.msra.mxu1 %v11329_v5  ;;  %11612 = vmatpush.bf16.msra.mxu3 %v11329_v5  ;;  %v11337_v23 = vld [vmem:[%s16382_s1 + $0xb0] sm:$0xff]  ;;  %v11336_v26 = vld [vmem:[%s16382_s1 + $0xa8] sm:$0xff]  ;;  %v11335_v28 = vld [vmem:[%s16382_s1 + $0xa0] sm:$0xff] }
  0x14   : > { %231 = vst [vmem:[#allocation2 + $0x30] sm:$0xff] %v11909_v3  ;;  %v11345_v25 = vld [vmem:[%s16382_s1 + $0xf0] sm:$0xff]  ;;  %v11344_v27 = vld [vmem:[%s16382_s1 + $0xe8] sm:$0xff]  ;;  %v11343_v29 = vld [vmem:[%s16382_s1 + $0xe0] sm:$0xff] }
  0x15   : > { %232 = vst [vmem:[#allocation2 + $0x38] sm:$0xff] %v11909_v3  ;;  %v11334_v30 = vld [vmem:[%s16382_s1 + $0x98] sm:$0xff]  ;;  %v11333_v32 = vld [vmem:[%s16382_s1 + $0x90] sm:$0xff]  ;;  %v369_v36 = vld [vmem:[%s12142_s24] sm:$0xff] }
  0x16   : > { %233 = vst [vmem:[#allocation2 + $0x40] sm:$0xff] %v11909_v3  ;;  %1450 = vmatpush.bf16.msra.mxu0 %v11320_v6  ;;  %11605 = vmatpush.bf16.msra.mxu2 %v11320_v6  ;;  %v435_v17 = vld [vmem:[#allocation2 + $0x7] sm:$0xff]  ;;  %v11342_v31 = vld [vmem:[%s16382_s1 + $0xd8] sm:$0xff]  ;;  %v395_v33 = vld [vmem:[%s12142_s24 + $0xd0] sm:$0xff] }
  0x17   : > { %234 = vst [vmem:[#allocation2 + $0x48] sm:$0xff] %v11909_v3  ;;  %1539 = vmatpush.bf16.msra.mxu1 %v11328_v7  ;;  %11613 = vmatpush.bf16.msra.mxu3 %v11328_v7  ;;  %v436_v18 = vld [vmem:[#allocation2 + $0xf] sm:$0xff]  ;;  %v396_v35 = vld [vmem:[%s12142_s24 + $0xd8] sm:$0xff]  ;;  %v397_v39 = vld [vmem:[%s12142_s24 + $0xe0] sm:$0xff] }
  0x18   : > { %235 = vst [vmem:[#allocation2 + $0x50] sm:$0xff] %v11909_v3  ;;  %v724_v20 = vpack.c.bf16 %v436_v18, %v435_v17  ;;  %v11341_v34 = vld [vmem:[%s16382_s1 + $0xd0] sm:$0xff]  ;;  %v370_v37 = vld [vmem:[%s12142_s24 + $0x8] sm:$0xff]  ;;  %v11331_v43 = vld [vmem:[%s16382_s1 + $0x80] sm:$0xff] }
  0x19   : > { %236 = vst [vmem:[#allocation2 + $0x58] sm:$0xff] %v11909_v3  ;;  %v11332_v38 = vld [vmem:[%s16382_s1 + $0x88] sm:$0xff]  ;;  %v371_v42 = vld [vmem:[%s12142_s24 + $0x10] sm:$0xff]  ;;  %v372_v44 = vld [vmem:[%s12142_s24 + $0x18] sm:$0xff] }
  0x1a   : > { %237 = vst [vmem:[#allocation2 + $0x60] sm:$0xff] %v11909_v3  ;;  %1451 = vmatpush.bf16.msra.mxu0 %v11319_v8  ;;  %11606 = vmatpush.bf16.msra.mxu2 %v11319_v8  ;;  %v11340_v40 = vld [vmem:[%s16382_s1 + $0xc8] sm:$0xff]  ;;  %v11339_v45 = vld [vmem:[%s16382_s1 + $0xc0] sm:$0xff]  ;;  %v375_v8 = vld [vmem:[%s12142_s24 + $0x30] sm:$0xff] }
  0x1b   : > { %238 = vst [vmem:[#allocation2 + $0x68] sm:$0xff] %v11909_v3  ;;  %1540 = vmatpush.bf16.msra.mxu1 %v11327_v9  ;;  %11614 = vmatpush.bf16.msra.mxu3 %v11327_v9  ;;  %v398_v41 = vld [vmem:[%s12142_s24 + $0xe8] sm:$0xff]  ;;  %v373_v58 = vld [vmem:[%s12142_s24 + $0x20] sm:$0xff]  ;;  %v376_v9 = vld [vmem:[%s12142_s24 + $0x38] sm:$0xff] }
  0x1c   : > { %239 = vst [vmem:[#allocation2 + $0x70] sm:$0xff] %v11909_v3  ;;  %v374_v59 = vld [vmem:[%s12142_s24 + $0x28] sm:$0xff] }
  0x1d   : > { %240 = vst [vmem:[#allocation2 + $0x78] sm:$0xff] %v11909_v3 }
  0x1e   : > { %241 = vst [vmem:[#allocation2 + $0x80] sm:$0xff] %v11909_v3  ;;  %1452 = vmatpush.bf16.msra.mxu0 %v11318_v10  ;;  %11607 = vmatpush.bf16.msra.mxu2 %v11318_v10  ;;  %v499_v10 = vld [vmem:[#allocation2 + $0x9] sm:$0xff] }
  0x1f   : > { %242 = vst [vmem:[#allocation2 + $0x88] sm:$0xff] %v11909_v3  ;;  %1541 = vmatpush.bf16.msra.mxu1 %v11326_v11  ;;  %11615 = vmatpush.bf16.msra.mxu3 %v11326_v11  ;;  %v500_v11 = vld [vmem:[#allocation2 + $0x11] sm:$0xff] }
  0x20   : > { %243 = vst [vmem:[#allocation2 + $0x90] sm:$0xff] %v11909_v3 }
  0x21   : > { %244 = vst [vmem:[#allocation2 + $0x98] sm:$0xff] %v11909_v3 }
  0x22   : > { %245 = vst [vmem:[#allocation2 + $0xa0] sm:$0xff] %v11909_v3  ;;  %1453 = vmatpush.bf16.msra.mxu0 %v11317_v12  ;;  %11608 = vmatpush.bf16.msra.mxu2 %v11317_v12 }
  0x23   : > { %246 = vst [vmem:[#allocation2 + $0xa8] sm:$0xff] %v11909_v3  ;;  %1542 = vmatpush.bf16.msra.mxu1 %v11325_v13  ;;  %11616 = vmatpush.bf16.msra.mxu3 %v11325_v13 }
  0x24   : > { %247 = vst [vmem:[#allocation2 + $0xb0] sm:$0xff] %v11909_v3 }
  0x25   : > { %248 = vst [vmem:[#allocation2 + $0xb8] sm:$0xff] %v11909_v3 }
  0x26   : > { %249 = vst [vmem:[#allocation2 + $0xc0] sm:$0xff] %v11909_v3  ;;  %1454 = vmatpush.bf16.msra.mxu0 %v11316_v14  ;;  %11609 = vmatpush.bf16.msra.mxu2 %v11316_v14 }
  0x27   : > { %250 = vst [vmem:[#allocation2 + $0xc8] sm:$0xff] %v11909_v3  ;;  %1543 = vmatpush.bf16.msra.mxu1 %v11324_v15  ;;  %11617 = vmatpush.bf16.msra.mxu3 %v11324_v15 }
  0x28   : > { %251 = vst [vmem:[#allocation2 + $0xd0] sm:$0xff] %v11909_v3 }
  0x29   : > { %252 = vst [vmem:[#allocation2 + $0xd8] sm:$0xff] %v11909_v3 }
  0x2a   : > { %253 = vst [vmem:[#allocation2 + $0xe0] sm:$0xff] %v11909_v3  ;;  %1455 = vmatpush.bf16.msra.mxu0 %v11315_v16  ;;  %11610 = vmatpush.bf16.msra.mxu2 %v11315_v16  ;;  %v726_v16 = vpack.c.bf16 %v500_v11, %v499_v10 }
  0x2b   : > { %254 = vst [vmem:[#allocation2 + $0xe8] sm:$0xff] %v11909_v3  ;;  %1544 = vmatpush.bf16.msra.mxu1 %v11323_v19  ;;  %11618 = vmatpush.bf16.msra.mxu3 %v11323_v19  ;;  %v377_v19 = vld [vmem:[%s12142_s24 + $0x40] sm:$0xff] }
  0x2c   : > { %255 = vst [vmem:[#allocation2 + $0xf0] sm:$0xff] %v11909_v3 }
  0x2d   : > { %256 = vst [vmem:[#allocation2 + $0xf8] sm:$0xff] %v11909_v3  ;;  %1456 = vmatmul.bf16.vlgmr.msra.gmra.mxu0 %v724_v20  ;;  %v378_v20 = vld [vmem:[%s12142_s24 + $0x48] sm:$0xff] }
  0x2e   : > { %257 = vst [vmem:[#allocation2 + $0x100] sm:$0xff] %v11909_v3  ;;  %1626 = vmatpush.bf16.msrb.mxu2 %v11338_v21  ;;  %1545 = vmatmul.bf16.vlgmr.msra.gmra.mxu1 %v11910_v24 }
  0x2f   : > { %258 = vst [vmem:[#allocation2 + $0x108] sm:$0xff] %v11909_v3  ;;  %1715 = vmatpush.bf16.msrb.mxu3 %v11346_v22 }
  0x30   : > { %259 = vst [vmem:[#allocation2 + $0x110] sm:$0xff] %v11909_v3 }
  0x31   : > { %260 = vst [vmem:[#allocation2 + $0x118] sm:$0xff] %v11909_v3 }
  0x32   : > { %261 = vst [vmem:[#allocation2 + $0x120] sm:$0xff] %v11909_v3  ;;  %1627 = vmatpush.bf16.msrb.mxu2 %v11337_v23 }
  0x33   : > { %262 = vst [vmem:[#allocation2 + $0x128] sm:$0xff] %v11909_v3  ;;  %1716 = vmatpush.bf16.msrb.mxu3 %v11345_v25 }
  0x34   : > { %263 = vst [vmem:[#allocation2 + $0x130] sm:$0xff] %v11909_v3 }
  0x35   : > { %264 = vst [vmem:[#allocation2 + $0x138] sm:$0xff] %v11909_v3 }
  0x36   : > { %265 = vst [vmem:[#allocation2 + $0x140] sm:$0xff] %v11909_v3  ;;  %1628 = vmatpush.bf16.msrb.mxu2 %v11336_v26 }
  0x37   : > { %266 = vst [vmem:[#allocation2 + $0x148] sm:$0xff] %v11909_v3  ;;  %1717 = vmatpush.bf16.msrb.mxu3 %v11344_v27 }
  0x38   : > { %267 = vst [vmem:[#allocation2 + $0x150] sm:$0xff] %v11909_v3 }
  0x39   : > { %268 = vst [vmem:[#allocation2 + $0x158] sm:$0xff] %v11909_v3 }
  0x3a   : > { %269 = vst [vmem:[#allocation2 + $0x160] sm:$0xff] %v11909_v3  ;;  %1629 = vmatpush.bf16.msrb.mxu2 %v11335_v28 }
  0x3b   : > { %270 = vst [vmem:[#allocation2 + $0x168] sm:$0xff] %v11909_v3  ;;  %1718 = vmatpush.bf16.msrb.mxu3 %v11343_v29 }
  0x3c   : > { %271 = vst [vmem:[#allocation2 + $0x170] sm:$0xff] %v11909_v3 }
  0x3d   : > { %272 = vst [vmem:[#allocation2 + $0x178] sm:$0xff] %v11909_v3 }
  0x3e   : > { %273 = vst [vmem:[#allocation2 + $0x180] sm:$0xff] %v11909_v3  ;;  %1630 = vmatpush.bf16.msrb.mxu2 %v11334_v30  ;;  %v379_v30 = vld [vmem:[%s12142_s24 + $0x50] sm:$0xff] }
  0x3f   : > { %274 = vst [vmem:[#allocation2 + $0x188] sm:$0xff] %v11909_v3  ;;  %1719 = vmatpush.bf16.msrb.mxu3 %v11342_v31  ;;  %v380_v31 = vld [vmem:[%s12142_s24 + $0x58] sm:$0xff] }
  0x40   : > { %275 = vst [vmem:[#allocation2 + $0x190] sm:$0xff] %v11909_v3 }
  0x41   : > { %276 = vst [vmem:[#allocation2 + $0x198] sm:$0xff] %v11909_v3 }
  0x42   : > { %277 = vst [vmem:[#allocation2 + $0x1a0] sm:$0xff] %v11909_v3  ;;  %1631 = vmatpush.bf16.msrb.mxu2 %v11333_v32 }
  0x43   : > { %278 = vst [vmem:[#allocation2 + $0x1a8] sm:$0xff] %v11909_v3  ;;  %1720 = vmatpush.bf16.msrb.mxu3 %v11341_v34 }
  0x44   : > { %279 = vst [vmem:[#allocation2 + $0x1b0] sm:$0xff] %v11909_v3 }
  0x45   : > { %280 = vst [vmem:[#allocation2 + $0x1b8] sm:$0xff] %v11909_v3 }
  0x46   : > { %281 = vst [vmem:[#allocation2 + $0x1c0] sm:$0xff] %v11909_v3  ;;  %1632 = vmatpush.bf16.msrb.mxu2 %v11332_v38 }
  0x47   : > { %282 = vst [vmem:[#allocation2 + $0x1c8] sm:$0xff] %v11909_v3  ;;  %1721 = vmatpush.bf16.msrb.mxu3 %v11340_v40 }
  0x48   : > { %283 = vst [vmem:[#allocation2 + $0x1d0] sm:$0xff] %v11909_v3 }
  0x49   : > { %284 = vst [vmem:[#allocation2 + $0x1d8] sm:$0xff] %v11909_v3 }
  0x4a   : > { %285 = vst [vmem:[#allocation2 + $0x1e0] sm:$0xff] %v11909_v3  ;;  %1633 = vmatpush.bf16.msrb.mxu2 %v11331_v43 }
  0x4b   : > { %286 = vst [vmem:[#allocation2 + $0x1e8] sm:$0xff] %v11909_v3  ;;  %1722 = vmatpush.bf16.msrb.mxu3 %v11339_v45 }
  0x4c   : > { %287 = vst [vmem:[#allocation2 + $0x1f0] sm:$0xff] %v11909_v3 }
  0x4d   : > { %288 = vst [vmem:[#allocation2 + $0x1f8] sm:$0xff] %v11909_v3 }
  0x4e   : > { %289 = vst [vmem:[#allocation2 + $0x200] sm:$0xff] %v11909_v3 }
  0x4f   : > { %290 = vst [vmem:[#allocation2 + $0x208] sm:$0xff] %v11909_v3 }
  0x50   : > { %291 = vst [vmem:[#allocation2 + $0x210] sm:$0xff] %v11909_v3 }
  0x51   : > { %292 = vst [vmem:[#allocation2 + $0x218] sm:$0xff] %v11909_v3 }
  0x52   : > { %293 = vst [vmem:[#allocation2 + $0x220] sm:$0xff] %v11909_v3 }
  0x53   : > { %294 = vst [vmem:[#allocation2 + $0x228] sm:$0xff] %v11909_v3 }
  0x54   : > { %295 = vst [vmem:[#allocation2 + $0x230] sm:$0xff] %v11909_v3 }
  0x55   : > { %296 = vst [vmem:[#allocation2 + $0x238] sm:$0xff] %v11909_v3 }
  0x56   : > { %297 = vst [vmem:[#allocation3] sm:$0xff] %v11909_v3 }
  0x57   : > { %298 = vst [vmem:[#allocation3 + $0x8] sm:$0xff] %v11909_v3 }
  0x58   : > { %299 = vst [vmem:[#allocation3 + $0x10] sm:$0xff] %v11909_v3 }
  0x59   : > { %300 = vst [vmem:[#allocation3 + $0x18] sm:$0xff] %v11909_v3 }
  0x5a   : > { %301 = vst [vmem:[#allocation3 + $0x20] sm:$0xff] %v11909_v3 }
  0x5b   : > { %304 = vst [vmem:[#allocation3 + $0x38] sm:$0xff] %v11909_v3 }
  0x5c   : > { %305 = vst [vmem:[#allocation3 + $0x40] sm:$0xff] %v11909_v3 }
  0x5d   : > { %308 = vst [vmem:[#allocation3 + $0x58] sm:$0xff] %v11909_v3 }
  0x5e   : > { %309 = vst [vmem:[#allocation3 + $0x60] sm:$0xff] %v11909_v3 }
  0x5f   : > { %312 = vst [vmem:[#allocation3 + $0x78] sm:$0xff] %v11909_v3 }
  0x60   : > { %313 = vst [vmem:[#allocation3 + $0x80] sm:$0xff] %v11909_v3 }
  0x61   : > { %316 = vst [vmem:[#allocation3 + $0x98] sm:$0xff] %v11909_v3 }
  0x62   : > { %317 = vst [vmem:[#allocation3 + $0xa0] sm:$0xff] %v11909_v3 }
  0x63   : > { %320 = vst [vmem:[#allocation3 + $0xb8] sm:$0xff] %v11909_v3 }
  0x64   : > { %321 = vst [vmem:[#allocation3 + $0xc0] sm:$0xff] %v11909_v3 }
  0x65   : > { %324 = vst [vmem:[#allocation3 + $0xd8] sm:$0xff] %v11909_v3 }
  0x66   : > { %325 = vst [vmem:[#allocation3 + $0xe0] sm:$0xff] %v11909_v3 }
  0x67   : > { %328 = vst [vmem:[#allocation3 + $0xf8] sm:$0xff] %v11909_v3 }
  0x68   : > { %329 = vst [vmem:[#allocation3 + $0x100] sm:$0xff] %v11909_v3 }
  0x69   : > { %332 = vst [vmem:[#allocation3 + $0x118] sm:$0xff] %v11909_v3 }
  0x6a   : > { %333 = vst [vmem:[#allocation3 + $0x120] sm:$0xff] %v11909_v3 }
  0x6b   : > { %336 = vst [vmem:[#allocation3 + $0x138] sm:$0xff] %v11909_v3 }
  0x6c   : > { %337 = vst [vmem:[#allocation3 + $0x140] sm:$0xff] %v11909_v3 }
  0x6d   : > { %340 = vst [vmem:[#allocation3 + $0x158] sm:$0xff] %v11909_v3 }
  0x6e   : > { %341 = vst [vmem:[#allocation3 + $0x160] sm:$0xff] %v11909_v3 }
  0x6f   : > { %344 = vst [vmem:[#allocation3 + $0x178] sm:$0xff] %v11909_v3 }
  0x70   : > { %345 = vst [vmem:[#allocation3 + $0x180] sm:$0xff] %v11909_v3 }
  0x71   : > { %348 = vst [vmem:[#allocation3 + $0x198] sm:$0xff] %v11909_v3 }
  0x72   : > { %349 = vst [vmem:[#allocation3 + $0x1a0] sm:$0xff] %v11909_v3 }
  0x73   : > { %352 = vst [vmem:[#allocation3 + $0x1b8] sm:$0xff] %v11909_v3 }
  0x74   : > { %353 = vst [vmem:[#allocation3 + $0x1c0] sm:$0xff] %v11909_v3 }
  0x75   : > { %356 = vst [vmem:[#allocation3 + $0x1d8] sm:$0xff] %v11909_v3 }
  0x76   : > { %357 = vst [vmem:[#allocation3 + $0x1e0] sm:$0xff] %v11909_v3 }
  0x77   : > { %360 = vst [vmem:[#allocation3 + $0x1f8] sm:$0xff] %v11909_v3 }
  0x78   : > { %361 = vst [vmem:[#allocation3 + $0x200] sm:$0xff] %v11909_v3 }
  0x79   : > { %364 = vst [vmem:[#allocation3 + $0x218] sm:$0xff] %v11909_v3 }
  0x7a   : > { %365 = vst [vmem:[#allocation3 + $0x220] sm:$0xff] %v11909_v3 }
  0x7b   : > { %366 = vst [vmem:[#allocation3 + $0x228] sm:$0xff] %v11909_v3 }
  0x7c   : > { %367 = vst [vmem:[#allocation3 + $0x230] sm:$0xff] %v11909_v3 }
  0x7d   : > { %368 = vst [vmem:[#allocation3 + $0x238] sm:$0xff] %v11909_v3 }
  0x7e   : > { %429 = vst.msk [vmem:[#allocation2 + $0x1c8] sm:$0xff] %vm402_vm0, %v395_v33 }
  0x7f   : > { %430 = vst.msk [vmem:[#allocation2 + $0x1d0] sm:$0xff] %vm402_vm0, %v396_v35 }
  0x80   : > { %403 = vst.msk [vmem:[#allocation2 + $0x28] sm:$0xff] %vm402_vm0, %v369_v36 }
  0x81   : > { %404 = vst.msk [vmem:[#allocation2 + $0x30] sm:$0xff] %vm402_vm0, %v370_v37 }
  0x82   : > { %431 = vst.msk [vmem:[#allocation2 + $0x1e8] sm:$0xff] %vm402_vm0, %v397_v39 }
  0x83   : > { %432 = vst.msk [vmem:[#allocation2 + $0x1f0] sm:$0xff] %vm402_vm0, %v398_v41  ;;  %v381_v41 = vld [vmem:[%s12142_s24 + $0x60] sm:$0xff] }
  0x84   : > { %405 = vst.msk [vmem:[#allocation2 + $0x48] sm:$0xff] %vm402_vm0, %v371_v42  ;;  %v382_v42 = vld [vmem:[%s12142_s24 + $0x68] sm:$0xff] }
  0x85   : > { %v463_v46 = vld [vmem:[#allocation2 + $0x1c7] sm:$0xff]  ;;  %406 = vst.msk [vmem:[#allocation2 + $0x50] sm:$0xff] %vm402_vm0, %v372_v44 }
  0x86   : > { %v495_v47 = vld [vmem:[#allocation2 + $0x1c8] sm:$0xff]  ;;  %v496_v49 = vld [vmem:[#allocation2 + $0x1d0] sm:$0xff]  ;;  %407 = vst.msk [vmem:[#allocation2 + $0x68] sm:$0xff] %vm402_vm0, %v373_v58 }
  0x87   : > { %v464_v48 = vld [vmem:[#allocation2 + $0x1cf] sm:$0xff]  ;;  %v851_v51 = vpack.c.bf16 %v496_v49, %v495_v47  ;;  %v437_v52 = vld [vmem:[#allocation2 + $0x27] sm:$0xff]  ;;  %408 = vst.msk [vmem:[#allocation2 + $0x70] sm:$0xff] %vm402_vm0, %v374_v59 }
  0x88   : > { %v850_v50 = vpack.c.bf16 %v464_v48, %v463_v46  ;;  %v469_v53 = vld [vmem:[#allocation2 + $0x28] sm:$0xff]  ;;  %v470_v55 = vld [vmem:[#allocation2 + $0x30] sm:$0xff]  ;;  %409 = vst.msk [vmem:[#allocation2 + $0x88] sm:$0xff] %vm402_vm0, %v375_v8 }
  0x89   : > { %v438_v54 = vld [vmem:[#allocation2 + $0x2f] sm:$0xff]  ;;  %1615 = vmatmul.bf16.vlgmr.msra.gmra.mxu3 %v851_v51  ;;  %v12189_v57 = vpack.c.bf16 %v470_v55, %v469_v53  ;;  %v465_v60 = vld [vmem:[#allocation2 + $0x1e7] sm:$0xff]  ;;  %410 = vst.msk [vmem:[#allocation2 + $0x90] sm:$0xff] %vm402_vm0, %v376_v9  ;;  %v384_v53 = vld [vmem:[%s12142_s24 + $0x78] sm:$0xff] }
  0x8a   : > { %1526 = vmatmul.bf16.vlgmr.msra.gmra.mxu2 %v850_v50  ;;  %v733_v56 = vpack.c.bf16 %v438_v54, %v437_v52  ;;  %v466_v61 = vld [vmem:[#allocation2 + $0x1ef] sm:$0xff]  ;;  %411 = vst.msk [vmem:[#allocation2 + $0xa8] sm:$0xff] %vm402_vm0, %v377_v19  ;;  %v12237_v54 = vld [vmem:[%s16383_s2] ss:$0 sm:$0xff] }
  0x8b   : > { %1550 = vmatmul.bf16.gmra.mxu1 %v12189_v57  ;;  %v497_v62 = vld [vmem:[#allocation2 + $0x1e8] sm:$0xff]  ;;  %v498_v63 = vld [vmem:[#allocation2 + $0x1f0] sm:$0xff]  ;;  %v859_v4 = vpack.c.bf16 %v466_v61, %v465_v60  ;;  %412 = vst.msk [vmem:[#allocation2 + $0xb0] sm:$0xff] %vm402_vm0, %v378_v20 }
  0x8c   : > { %1461 = vmatmul.bf16.gmra.mxu0 %v733_v56  ;;  %v439_v0 = vld [vmem:[#allocation2 + $0x47] sm:$0xff]  ;;  %v440_v1 = vld [vmem:[#allocation2 + $0x4f] sm:$0xff]  ;;  %v860_v5 = vpack.c.bf16 %v498_v63, %v497_v62  ;;  %413 = vst.msk [vmem:[#allocation2 + $0xc8] sm:$0xff] %vm402_vm0, %v379_v30 }
  0x8d   : > { %v471_v2 = vld [vmem:[#allocation2 + $0x48] sm:$0xff]  ;;  %v472_v3 = vld [vmem:[#allocation2 + $0x50] sm:$0xff]  ;;  %v742_v6 = vpack.c.bf16 %v440_v1, %v439_v0  ;;  %414 = vst.msk [vmem:[#allocation2 + $0xd0] sm:$0xff] %vm402_vm0, %v380_v31 }
  0x8e   : > { %v12196_v7 = vpack.c.bf16 %v472_v3, %v471_v2  ;;  %v441_v12 = vld [vmem:[#allocation2 + $0x67] sm:$0xff]  ;;  %v442_v13 = vld [vmem:[#allocation2 + $0x6f] sm:$0xff]  ;;  %415 = vst.msk [vmem:[#allocation2 + $0xe8] sm:$0xff] %vm402_vm0, %v381_v41 }
  0x8f   : > { %v473_v14 = vld [vmem:[#allocation2 + $0x68] sm:$0xff]  ;;  %v474_v15 = vld [vmem:[#allocation2 + $0x70] sm:$0xff]  ;;  %v751_v17 = vpack.c.bf16 %v442_v13, %v441_v12  ;;  %416 = vst.msk [vmem:[#allocation2 + $0xf0] sm:$0xff] %vm402_vm0, %v382_v42 }
  0x90   : > { %v12203_v18 = vpack.c.bf16 %v474_v15, %v473_v14  ;;  %v501_v21 = vld [vmem:[#allocation2 + $0x29] sm:$0xff]  ;;  %v502_v22 = vld [vmem:[#allocation2 + $0x31] sm:$0xff]  ;;  %418 = vst.msk [vmem:[#allocation2 + $0x110] sm:$0xff] %vm402_vm0, %v384_v53 }
  0x91   : > { %v443_v23 = vld [vmem:[#allocation2 + $0x87] sm:$0xff]  ;;  %v444_v24 = vld [vmem:[#allocation2 + $0x8f] sm:$0xff]  ;;  %v12210_v27 = vpack.c.bf16 %v502_v22, %v501_v21  ;;  %v388_v22 = vld [vmem:[%s12142_s24 + $0x98] sm:$0xff] }
  0x92   : > { %v475_v25 = vld [vmem:[#allocation2 + $0x88] sm:$0xff]  ;;  %v476_v26 = vld [vmem:[#allocation2 + $0x90] sm:$0xff]  ;;  %v760_v28 = vpack.c.bf16 %v444_v24, %v443_v23  ;;  %422 = vst.msk [vmem:[#allocation2 + $0x150] sm:$0xff] %vm402_vm0, %v388_v22 }
  0x93   : > { %v12212_v29 = vpack.c.bf16 %v476_v26, %v475_v25  ;;  %v503_v32 = vld [vmem:[#allocation2 + $0x49] sm:$0xff]  ;;  %v504_v33 = vld [vmem:[#allocation2 + $0x51] sm:$0xff] }
  0x94   : > { %v445_v34 = vld [vmem:[#allocation2 + $0xa7] sm:$0xff]  ;;  %v446_v35 = vld [vmem:[#allocation2 + $0xaf] sm:$0xff]  ;;  %v12220_v38 = vpack.c.bf16 %v504_v33, %v503_v32 }
  0x95   : > { %v477_v36 = vld [vmem:[#allocation2 + $0xa8] sm:$0xff]  ;;  %v478_v37 = vld [vmem:[#allocation2 + $0xb0] sm:$0xff]  ;;  %v769_v39 = vpack.c.bf16 %v446_v35, %v445_v34 }
  0x96   : > { %v770_v40 = vpack.c.bf16 %v478_v37, %v477_v36  ;;  %v505_v43 = vld [vmem:[#allocation2 + $0x69] sm:$0xff]  ;;  %v506_v44 = vld [vmem:[#allocation2 + $0x71] sm:$0xff] }
  0x97   : > { %v447_v45 = vld [vmem:[#allocation2 + $0xc7] sm:$0xff]  ;;  %v448_v46 = vld [vmem:[#allocation2 + $0xcf] sm:$0xff]  ;;  %v12227_v49 = vpack.c.bf16 %v506_v44, %v505_v43 }
  0x98   : > { %v479_v47 = vld [vmem:[#allocation2 + $0xc8] sm:$0xff]  ;;  %v480_v48 = vld [vmem:[#allocation2 + $0xd0] sm:$0xff]  ;;  %v778_v50 = vpack.c.bf16 %v448_v46, %v447_v45  ;;  %v389_v43 = vld [vmem:[%s12142_s24 + $0xa0] sm:$0xff] }
  0x99   : > { %1620 = vmatmul.bf16.gmra.mxu3 %v860_v5  ;;  %v779_v51 = vpack.c.bf16 %v480_v48, %v479_v47  ;;  %v383_v52 = vld [vmem:[%s12142_s24 + $0x70] sm:$0xff]  ;;  %v449_v59 = vld [vmem:[#allocation2 + $0xe7] sm:$0xff]  ;;  %v11354_v5 = vld [vmem:[%s16382_s1 + $0x138] sm:$0xff]  ;;  %423 = vst.msk [vmem:[#allocation2 + $0x168] sm:$0xff] %vm402_vm0, %v389_v43 }
  0x9a   : > { %1531 = vmatmul.bf16.gmra.mxu2 %v859_v4  ;;  %417 = vst.msk [vmem:[#allocation2 + $0x108] sm:$0xff] %vm402_vm0, %v383_v52  ;;  %v507_v55 = vld [vmem:[#allocation2 + $0x89] sm:$0xff]  ;;  %1804 = vmatpush.bf16.msrb.mxu0 %v11354_v5  ;;  %v510_v10 = vld [vmem:[#allocation2 + $0xb1] sm:$0xff] }
  0x9b   : > { %1555 = vmatmul.bf16.gmra.mxu1 %v12196_v7  ;;  %v450_v60 = vld [vmem:[#allocation2 + $0xef] sm:$0xff] }
  0x9c   : > { %1466 = vmatmul.bf16.gmra.mxu0 %v742_v6  ;;  %v481_v61 = vld [vmem:[#allocation2 + $0xe8] sm:$0xff]  ;;  %v482_v62 = vld [vmem:[#allocation2 + $0xf0] sm:$0xff]  ;;  %v787_v1 = vpack.c.bf16 %v450_v60, %v449_v59 }
  0x9d   : > { %v788_v2 = vpack.c.bf16 %v482_v62, %v481_v61  ;;  %v386_v8 = vld [vmem:[%s12142_s24 + $0x88] sm:$0xff]  ;;  %v484_v14 = vld [vmem:[#allocation2 + $0x110] sm:$0xff] }
  0x9e   : > { %420 = vst.msk [vmem:[#allocation2 + $0x130] sm:$0xff] %vm402_vm0, %v386_v8  ;;  %v509_v9 = vld [vmem:[#allocation2 + $0xa9] sm:$0xff]  ;;  %v512_v24 = vld [vmem:[#allocation2 + $0xd1] sm:$0xff] }
  0x9f   : > { %v12252_v15 = vpack.c.bf16 %v510_v10, %v509_v9  ;;  %v387_v21 = vld [vmem:[%s12142_s24 + $0x90] sm:$0xff]  ;;  %v390_v44 = vld [vmem:[%s12142_s24 + $0xa8] sm:$0xff] }
  0xa0   : > { %421 = vst.msk [vmem:[#allocation2 + $0x148] sm:$0xff] %vm402_vm0, %v387_v21  ;;  %v511_v23 = vld [vmem:[#allocation2 + $0xc9] sm:$0xff] }
  0xa1   : > { %v451_v11 = vld [vmem:[#allocation2 + $0x107] sm:$0xff]  ;;  %v452_v12 = vld [vmem:[#allocation2 + $0x10f] sm:$0xff]  ;;  %v12263_v31 = vpack.c.bf16 %v512_v24, %v511_v23  ;;  %424 = vst.msk [vmem:[#allocation2 + $0x170] sm:$0xff] %vm402_vm0, %v390_v44 }
  0xa2   : > { %v483_v13 = vld [vmem:[#allocation2 + $0x108] sm:$0xff]  ;;  %v11353_v34 = vld [vmem:[%s16382_s1 + $0x130] sm:$0xff] }
  0xa3   : > { %1805 = vmatpush.bf16.msrb.mxu0 %v11353_v34  ;;  %v488_v60 = vld [vmem:[#allocation2 + $0x150] sm:$0xff]  ;;  %v489_v34 = vld [vmem:[#allocation2 + $0x168] sm:$0xff] }
  0xa4   : > { %v515_v23 = vld [vmem:[#allocation2 + $0x109] sm:$0xff]  ;;  %v516_v24 = vld [vmem:[#allocation2 + $0x111] sm:$0xff] }
  0xa5   : > { %v486_v30 = vld [vmem:[#allocation2 + $0x130] sm:$0xff] }
  0xa7   : > { %v455_v53 = vld [vmem:[#allocation2 + $0x147] sm:$0xff] }
  0xa8   : > { %v487_v59 = vld [vmem:[#allocation2 + $0x148] sm:$0xff] }
  0xa9   : > { %1723 = vmatmul.bf16.vlgmr.msrb.gmra.mxu3 %v733_v56  ;;  %v508_v56 = vld [vmem:[#allocation2 + $0x91] sm:$0xff] }
  0xaa   : > { %1634 = vmatmul.bf16.vlgmr.msrb.gmra.mxu2 %v726_v16  ;;  %v1457_v58 = vpop.f32.mrf.mxu0  ;;  %v12239_v63 = vpack.c.bf16 %v508_v56, %v507_v55  ;;  %v796_v16 = vpack.c.bf16 %v452_v12, %v451_v11  ;;  %v391_v12 = vld [vmem:[%s12142_s24 + $0xb0] sm:$0xff] }
  0xab   : > { %1560 = vmatmul.bf16.gmra.mxu1 %v12203_v18  ;;  %v1458_v0 = vadd.f32 %v12237_v54, %v1457_v58  ;;  %v1546_v3 = vpop.f32.mrf.mxu1  ;;  %v456_v58 = vld [vmem:[#allocation2 + $0x14f] sm:$0xff]  ;;  %425 = vst.msk [vmem:[#allocation2 + $0x188] sm:$0xff] %vm402_vm0, %v391_v12 }
  0xac   : > { %1471 = vmatmul.bf16.gmra.mxu0 %v751_v17 }
  0xad   : > { %v12243_v4 = vadd.f32 %v1546_v3, %v1458_v0 }
  0xb2   : > { %v12255_v19 = vpop.f32.mrf.mxu0 }
  0xb3   : > { %v12257_v20 = vpop.f32.mrf.mxu1 }
  0xb9   : > { %1728 = vmatmul.bf16.gmra.mxu3 %v742_v6  ;;  %v385_v6 = vld [vmem:[%s12142_s24 + $0x80] sm:$0xff] }
  0xba   : > { %1639 = vmatmul.bf16.gmra.mxu2 %v12210_v27  ;;  %419 = vst.msk [vmem:[#allocation2 + $0x128] sm:$0xff] %vm402_vm0, %v385_v6 }
  0xbb   : > { %1565 = vmatmul.bf16.gmra.mxu1 %v12212_v29 }
  0xbc   : > { %1476 = vmatmul.bf16.gmra.mxu0 %v760_v28 }
  0xc1   : > { %v453_v25 = vld [vmem:[#allocation2 + $0x127] sm:$0xff]  ;;  %v454_v26 = vld [vmem:[#allocation2 + $0x12f] sm:$0xff] }
  0xc2   : > { %v12265_v32 = vpack.c.bf16 %v454_v26, %v453_v25  ;;  %v457_v26 = vld [vmem:[#allocation2 + $0x167] sm:$0xff] }
  0xc9   : > { %1733 = vmatmul.bf16.gmra.mxu3 %v751_v17  ;;  %v797_v17 = vpack.c.bf16 %v484_v14, %v483_v13  ;;  %v392_v13 = vld [vmem:[%s12142_s24 + $0xb8] sm:$0xff] }
  0xca   : > { %1644 = vmatmul.bf16.gmra.mxu2 %v12220_v38  ;;  %426 = vst.msk [vmem:[#allocation2 + $0x190] sm:$0xff] %vm402_vm0, %v392_v13  ;;  %v491_v13 = vld [vmem:[#allocation2 + $0x188] sm:$0xff] }
  0xcb   : > { %1570 = vmatmul.bf16.gmra.mxu1 %v770_v40 }
  0xcc   : > { %1481 = vmatmul.bf16.gmra.mxu0 %v769_v39 }
  0xd9   : > { %1738 = vmatmul.bf16.gmra.mxu3 %v760_v28  ;;  %v485_v28 = vld [vmem:[#allocation2 + $0x128] sm:$0xff] }
  0xda   : > { %1649 = vmatmul.bf16.gmra.mxu2 %v12227_v49  ;;  %v806_v33 = vpack.c.bf16 %v486_v30, %v485_v28 }
  0xdb   : > { %1575 = vmatmul.bf16.gmra.mxu1 %v779_v51  ;;  %v514_v51 = vld [vmem:[#allocation2 + $0xf1] sm:$0xff] }
  0xdc   : > { %1486 = vmatmul.bf16.gmra.mxu0 %v778_v50 }
  0xe9   : > { %1743 = vmatmul.bf16.gmra.mxu3 %v769_v39 }
  0xea   : > { %1654 = vmatmul.bf16.gmra.mxu2 %v12239_v63 }
  0xeb   : > { %1580 = vmatmul.bf16.gmra.mxu1 %v788_v2  ;;  %v815_v2 = vpack.c.bf16 %v488_v60, %v487_v59 }
  0xec   : > { %1491 = vmatmul.bf16.gmra.mxu0 %v787_v1 }
  0xf9   : > { %1748 = vmatmul.bf16.gmra.mxu3 %v778_v50  ;;  %v513_v50 = vld [vmem:[#allocation2 + $0xe9] sm:$0xff] }
  0xfa   : > { %1659 = vmatmul.bf16.gmra.mxu2 %v12252_v15  ;;  %v12286_v62 = vpack.c.bf16 %v514_v51, %v513_v50 }
  0xfb   : > { %1585 = vmatmul.bf16.gmra.mxu1 %v797_v17  ;;  %v11352_v17 = vld [vmem:[%s16382_s1 + $0x128] sm:$0xff] }
  0xfc   : > { %1496 = vmatmul.bf16.gmra.mxu0 %v796_v16 }
  0xfd   : > { %1806 = vmatpush.bf16.msrb.mxu0 %v11352_v17  ;;  %v492_v17 = vld [vmem:[#allocation2 + $0x190] sm:$0xff] }
 0x108   : > { %v1551_v36 = vpop.f32.mrf.mxu1 }
 0x109   : > { %v1462_v35 = vpop.f32.mrf.mxu0  ;;  %1753 = vmatmul.bf16.gmra.mxu3 %v787_v1  ;;  %v12290_v1 = vpack.c.bf16 %v456_v58, %v455_v53  ;;  %v1460_v58 = vadd.f32 %v12237_v54, %v12255_v19 }
 0x10a   : > { %1664 = vmatmul.bf16.gmra.mxu2 %v12263_v31  ;;  %v1463_v37 = vadd.f32 %v12237_v54, %v1462_v35  ;;  %v490_v35 = vld [vmem:[#allocation2 + $0x170] sm:$0xff] }
 0x10b   : > { %1590 = vmatmul.bf16.gmra.mxu1 %v806_v33  ;;  %v458_v33 = vld [vmem:[#allocation2 + $0x16f] sm:$0xff] }
 0x10c   : > { %v12272_v39 = vadd.f32 %v1551_v36, %v1463_v37  ;;  %1501 = vmatmul.bf16.gmra.mxu0 %v12265_v32  ;;  %v1616_v41 = vpop.f32.mrf.mxu3  ;;  %v12311_v37 = vpack.c.bf16 %v516_v24, %v515_v23 }
 0x10d   : > { %v1527_v40 = vpop.f32.mrf.mxu2 }
 0x10e   : > { %v1528_v42 = vadd.f32 %v12237_v54, %v1527_v40 }
 0x110   : > { %v12278_v45 = vadd.f32 %v1616_v41, %v1528_v42  ;;  %v1553_v47 = vpop.f32.mrf.mxu1  ;;  %v12315_v41 = vpack.c.bf16 %v458_v33, %v457_v26  ;;  %v824_v42 = vpack.c.bf16 %v490_v35, %v489_v34  ;;  %v833_v26 = vpack.c.bf16 %v492_v17, %v491_v13  ;;  %v11350_v33 = vld [vmem:[%s16382_s1 + $0x118] sm:$0xff] }
 0x111   : > { %v1464_v46 = vpop.f32.mrf.mxu0  ;;  %v11358_v35 = vld [vmem:[%s16382_s1 + $0x158] sm:$0xff] }
 0x112   : > { %v1465_v48 = vadd.f32 %v12237_v54, %v1464_v46 }
 0x114   : > { %v12283_v52 = vadd.f32 %v1553_v47, %v1465_v48  ;;  %v1618_v56 = vpop.f32.mrf.mxu3  ;;  %v11362_v47 = vld [vmem:[%s16382_s1 + $0x178] sm:$0xff] }
 0x115   : > { %v1529_v55 = vpop.f32.mrf.mxu2  ;;  %1893 = vmatpush.bf16.msrb.mxu1 %v11362_v47 }
 0x116   : > { %v1530_v61 = vadd.f32 %v12237_v54, %v1529_v55  ;;  %v393_v55 = vld [vmem:[%s12142_s24 + $0xc0] sm:$0xff] }
 0x117   : > { %427 = vst.msk [vmem:[#allocation2 + $0x1a8] sm:$0xff] %vm402_vm0, %v393_v55  ;;  %v519_v55 = vld [vmem:[#allocation2 + $0x149] sm:$0xff] }
 0x118   : > { %v12288_v0 = vadd.f32 %v1618_v56, %v1530_v61  ;;  %v1556_v5 = vpop.f32.mrf.mxu1  ;;  %v394_v56 = vld [vmem:[%s12142_s24 + $0xc8] sm:$0xff] }
 0x119   : > { %v1467_v3 = vpop.f32.mrf.mxu0  ;;  %1758 = vmatmul.bf16.gmra.mxu3 %v796_v16  ;;  %428 = vst.msk [vmem:[#allocation2 + $0x1b0] sm:$0xff] %vm402_vm0, %v394_v56  ;;  %v520_v56 = vld [vmem:[#allocation2 + $0x151] sm:$0xff] }
 0x11a   : > { %1669 = vmatmul.bf16.gmra.mxu2 %v12286_v62  ;;  %v1468_v6 = vadd.f32 %v12237_v54, %v1467_v3  ;;  %v518_v3 = vld [vmem:[#allocation2 + $0x131] sm:$0xff] }
 0x11b   : > { %1595 = vmatmul.bf16.gmra.mxu1 %v815_v2  ;;  %v517_v2 = vld [vmem:[#allocation2 + $0x129] sm:$0xff] }
 0x11c   : > { %v12294_v8 = vadd.f32 %v1556_v5, %v1468_v6  ;;  %1506 = vmatmul.bf16.gmra.mxu0 %v12290_v1  ;;  %v1621_v10 = vpop.f32.mrf.mxu3  ;;  %v11360_v5 = vld [vmem:[%s16382_s1 + $0x168] sm:$0xff]  ;;  %v1549_v6 = vadd.f32 %v12257_v20, %v1460_v58  ;;  %v11359_v20 = vld [vmem:[%s16382_s1 + $0x160] sm:$0xff] }
 0x11d   : > { %v1532_v9 = vpop.f32.mrf.mxu2 }
 0x11e   : > { %v1533_v11 = vadd.f32 %v12237_v54, %v1532_v9  ;;  %v459_v9 = vld [vmem:[#allocation2 + $0x187] sm:$0xff] }
 0x120   : > { %v12300_v14 = vadd.f32 %v1621_v10, %v1533_v11  ;;  %v1558_v21 = vpop.f32.mrf.mxu1  ;;  %v460_v10 = vld [vmem:[#allocation2 + $0x18f] sm:$0xff] }
 0x121   : > { %v1469_v16 = vpop.f32.mrf.mxu0  ;;  %v12355_v24 = vpack.c.bf16 %v460_v10, %v459_v9  ;;  %v12391_v10 = vpack.c.bf16 %v520_v56, %v519_v55 }
 0x122   : > { %v1470_v22 = vadd.f32 %v12237_v54, %v1469_v16  ;;  %v11351_v16 = vld [vmem:[%s16382_s1 + $0x120] sm:$0xff] }
 0x123   : > { %1807 = vmatpush.bf16.msrb.mxu0 %v11351_v16 }
 0x124   : > { %v12308_v25 = vadd.f32 %v1558_v21, %v1470_v22  ;;  %v1623_v30 = vpop.f32.mrf.mxu3  ;;  %v12348_v22 = vpack.c.bf16 %v518_v3, %v517_v2  ;;  %v493_v3 = vld [vmem:[#allocation2 + $0x1a8] sm:$0xff] }
 0x125   : > { %v1534_v28 = vpop.f32.mrf.mxu2 }
 0x126   : > { %v1535_v36 = vadd.f32 %v12237_v54, %v1534_v28 }
 0x127   : > { %1808 = vmatpush.bf16.msrb.mxu0 %v11350_v33 }
 0x128   : > { %v12313_v40 = vadd.f32 %v1623_v30, %v1535_v36  ;;  %v1561_v44 = vpop.f32.mrf.mxu1 }
 0x129   : > { %v1472_v43 = vpop.f32.mrf.mxu0  ;;  %1763 = vmatmul.bf16.gmra.mxu3 %v12265_v32  ;;  %v11361_v32 = vld [vmem:[%s16382_s1 + $0x170] sm:$0xff] }
 0x12a   : > { %1674 = vmatmul.bf16.gmra.mxu2 %v12311_v37  ;;  %v1473_v46 = vadd.f32 %v12237_v54, %v1472_v43  ;;  %1894 = vmatpush.bf16.msrb.mxu1 %v11361_v32 }
 0x12b   : > { %1600 = vmatmul.bf16.gmra.mxu1 %v824_v42 }
 0x12c   : > { %v12323_v48 = vadd.f32 %v1561_v44, %v1473_v46  ;;  %1511 = vmatmul.bf16.gmra.mxu0 %v12315_v41  ;;  %v1724_v51 = vpop.f32.mrf.mxu3  ;;  %v11349_v44 = vld [vmem:[%s16382_s1 + $0x110] sm:$0xff] }
 0x12d   : > { %v1635_v50 = vpop.f32.mrf.mxu2  ;;  %1809 = vmatpush.bf16.msrb.mxu0 %v11349_v44  ;;  %v11357_v46 = vld [vmem:[%s16382_s1 + $0x150] sm:$0xff] }
 0x12e   : > { %v1636_v53 = vadd.f32 %v1635_v50, %v12243_v4  ;;  %1895 = vmatpush.bf16.msrb.mxu1 %v11360_v5  ;;  %v11348_v50 = vld [vmem:[%s16382_s1 + $0x108] sm:$0xff]  ;;  %v494_v5 = vld [vmem:[#allocation2 + $0x1b0] sm:$0xff] }
 0x12f   : > { %v12398_v17 = vpack.c.bf16 %v494_v5, %v493_v3  ;;  %v522_v44 = vld [vmem:[#allocation2 + $0x171] sm:$0xff]  ;;  %v523_v5 = vld [vmem:[#allocation2 + $0x189] sm:$0xff] }
 0x130   : > { %v12334_v59 = vadd.f32 %v1724_v51, %v1636_v53  ;;  %v1563_v61 = vpop.f32.mrf.mxu1 }
 0x131   : > { %v1474_v60 = vpop.f32.mrf.mxu0  ;;  %1810 = vmatpush.bf16.msrb.mxu0 %v11348_v50 }
 0x132   : > { %v1475_v4 = vadd.f32 %v12237_v54, %v1474_v60  ;;  %1896 = vmatpush.bf16.msrb.mxu1 %v11359_v20  ;;  %v461_v60 = vld [vmem:[#allocation2 + $0x1a7] sm:$0xff] }
 0x134   : > { %v12343_v19 = vadd.f32 %v1563_v61, %v1475_v4  ;;  %v1726_v12 = vpop.f32.mrf.mxu3  ;;  %v462_v61 = vld [vmem:[#allocation2 + $0x1af] sm:$0xff] }
 0x135   : > { %v1637_v11 = vpop.f32.mrf.mxu2  ;;  %v841_v13 = vpack.c.bf16 %v462_v61, %v461_v60 }
 0x136   : > { %v1638_v21 = vadd.f32 %v1637_v11, %v1549_v6  ;;  %1897 = vmatpush.bf16.msrb.mxu1 %v11358_v35  ;;  %v11347_v6 = vld [vmem:[%s16382_s1 + $0x100] sm:$0xff] }
 0x137   : > { %1811 = vmatpush.bf16.msrb.mxu0 %v11347_v6  ;;  %v11355_v11 = vld [vmem:[%s16382_s1 + $0x140] sm:$0xff] }
 0x138   : > { %v12353_v23 = vadd.f32 %v1726_v12, %v1638_v21  ;;  %v1566_v30 = vpop.f32.mrf.mxu1 }
 0x139   : > { %v1477_v28 = vpop.f32.mrf.mxu0  ;;  %1768 = vmatmul.bf16.gmra.mxu3 %v12290_v1 }
 0x13a   : > { %1679 = vmatmul.bf16.gmra.mxu2 %v12348_v22  ;;  %v1478_v34 = vadd.f32 %v12237_v54, %v1477_v28  ;;  %1898 = vmatpush.bf16.msrb.mxu1 %v11357_v46 }
 0x13b   : > { %1605 = vmatmul.bf16.gmra.mxu1 %v833_v26 }
 0x13c   : > { %v12366_v36 = vadd.f32 %v1566_v30, %v1478_v34  ;;  %1516 = vmatmul.bf16.gmra.mxu0 %v12355_v24  ;;  %v1729_v43 = vpop.f32.mrf.mxu3 }
 0x13d   : > { %v1640_v42 = vpop.f32.mrf.mxu2 }
 0x13e   : > { %v1641_v1 = vadd.f32 %v1640_v42, %v12272_v39  ;;  %v11356_v39 = vld [vmem:[%s16382_s1 + $0x148] sm:$0xff] }
 0x13f   : > { %1899 = vmatpush.bf16.msrb.mxu1 %v11356_v39 }
 0x140   : > { %v12376_v47 = vadd.f32 %v1729_v43, %v1641_v1  ;;  %v1568_v53 = vpop.f32.mrf.mxu1  ;;  %v521_v43 = vld [vmem:[#allocation2 + $0x169] sm:$0xff] }
 0x141   : > { %v1479_v51 = vpop.f32.mrf.mxu0 }
 0x142   : > { %v1480_v32 = vadd.f32 %v12237_v54, %v1479_v51  ;;  %v12413_v51 = vpack.c.bf16 %v522_v44, %v521_v43 }
 0x143   : > { %1900 = vmatpush.bf16.msrb.mxu1 %v11355_v11 }
 0x144   : > { %v12385_v58 = vadd.f32 %v1568_v53, %v1480_v32  ;;  %v1731_v2 = vpop.f32.mrf.mxu3 }
 0x145   : > { %v1642_v4 = vpop.f32.mrf.mxu2 }
 0x146   : > { %v1643_v9 = vadd.f32 %v1642_v4, %v12283_v52 }
 0x148   : > { %v12396_v12 = vadd.f32 %v1731_v2, %v1643_v9  ;;  %v1571_v21 = vpop.f32.mrf.mxu1 }
 0x149   : > { %v1482_v16 = vpop.f32.mrf.mxu0  ;;  %1773 = vmatmul.bf16.gmra.mxu3 %v12315_v41 }
 0x14a   : > { %1684 = vmatmul.bf16.gmra.mxu2 %v12391_v10  ;;  %v1483_v52 = vadd.f32 %v12237_v54, %v1482_v16 }
 0x14b   : > { %1610 = vmatmul.bf16.gmra.mxu1 %v12398_v17 }
 0x14c   : > { %v12403_v20 = vadd.f32 %v1571_v21, %v1483_v52  ;;  %1521 = vmatmul.bf16.gmra.mxu0 %v841_v13  ;;  %v1734_v28 = vpop.f32.mrf.mxu3  ;;  %v11370_v52 = vld [vmem:[%s16382_s1 + $0x1b8] sm:$0xff] }
 0x14d   : > { %v1645_v26 = vpop.f32.mrf.mxu2  ;;  %1982 = vmatpush.bf16.msra.mxu2 %v11370_v52  ;;  %v11374_v52 = vld [vmem:[%s16382_s1 + $0x1d8] sm:$0xff] }
 0x14e   : > { %v1646_v30 = vadd.f32 %v1645_v26, %v12294_v8 }
 0x150   : > { %v12407_v33 = vadd.f32 %v1734_v28, %v1646_v30  ;;  %v1573_v35 = vpop.f32.mrf.mxu1 }
 0x151   : > { %v1484_v34 = vpop.f32.mrf.mxu0 }
 0x152   : > { %v1485_v42 = vadd.f32 %v12237_v54, %v1484_v34 }
 0x154   : > { %v12410_v41 = vadd.f32 %v1573_v35, %v1485_v42  ;;  %v1736_v46 = vpop.f32.mrf.mxu3  ;;  %v11377_v42 = vld [vmem:[%s16382_s1 + $0x1f0] sm:$0xff] }
 0x155   : > { %v1647_v1 = vpop.f32.mrf.mxu2 }
 0x156   : > { %v1648_v50 = vadd.f32 %v1647_v1, %v12308_v25  ;;  %v399_v1 = vld [vmem:[%s12142_s24 + $0xf0] sm:$0xff] }
 0x157   : > { %433 = vst.msk [vmem:[#allocation2 + $0x208] sm:$0xff] %vm402_vm0, %v399_v1 }
 0x158   : > { %v12415_v53 = vadd.f32 %v1736_v46, %v1648_v50  ;;  %v1576_v8 = vpop.f32.mrf.mxu1  ;;  %v400_v46 = vld [vmem:[%s12142_s24 + $0xf8] sm:$0xff]  ;;  %v525_v50 = vld [vmem:[#allocation2 + $0x1a9] sm:$0xff] }
 0x159   : > { %v1487_v32 = vpop.f32.mrf.mxu0  ;;  %1778 = vmatmul.bf16.gmra.mxu3 %v12355_v24  ;;  %v524_v24 = vld [vmem:[#allocation2 + $0x191] sm:$0xff]  ;;  %434 = vst.msk [vmem:[#allocation2 + $0x210] sm:$0xff] %vm402_vm0, %v400_v46  ;;  %v559_v46 = vld [vmem:[#allocation2 + $0x1e7] sm:$0xff] }
 0x15a   : > { %1689 = vmatmul.bf16.gmra.mxu2 %v12413_v51  ;;  %v1488_v55 = vadd.f32 %v12237_v54, %v1487_v32  ;;  %v12431_v16 = vpack.c.bf16 %v524_v24, %v523_v5  ;;  %v526_v32 = vld [vmem:[#allocation2 + $0x1b1] sm:$0xff] }
 0x15b   : > { %1901 = vmatmul.bf16.vlgmr.msrb.gmra.mxu1 %v12210_v27  ;;  %v12473_v5 = vpack.c.bf16 %v526_v32, %v525_v50  ;;  %v11372_v50 = vld [vmem:[%s16382_s1 + $0x1c8] sm:$0xff] }
 0x15c   : > { %v12420_v56 = vadd.f32 %v1576_v8, %v1488_v55  ;;  %1812 = vmatmul.bf16.vlgmr.msrb.gmra.mxu0 %v12189_v57  ;;  %v1739_v25 = vpop.f32.mrf.mxu3  ;;  %v557_v8 = vld [vmem:[#allocation2 + $0x1c7] sm:$0xff]  ;;  %v558_v55 = vld [vmem:[#allocation2 + $0x1cf] sm:$0xff] }
 0x15d   : > { %v1650_v39 = vpop.f32.mrf.mxu2  ;;  %v844_v24 = vpack.c.bf16 %v558_v55, %v557_v8  ;;  %v11363_v55 = vld [vmem:[%s16382_s1 + $0x180] sm:$0xff] }
 0x15e   : > { %v1651_v60 = vadd.f32 %v1650_v39, %v12323_v48  ;;  %v11376_v39 = vld [vmem:[%s16382_s1 + $0x1e8] sm:$0xff] }
 0x160   : > { %v12425_v61 = vadd.f32 %v1739_v25, %v1651_v60  ;;  %v1578_v2 = vpop.f32.mrf.mxu1 }
 0x161   : > { %v1489_v4 = vpop.f32.mrf.mxu0 }
 0x162   : > { %v1490_v3 = vadd.f32 %v12237_v54, %v1489_v4 }
 0x164   : > { %v12428_v6 = vadd.f32 %v1578_v2, %v1490_v3  ;;  %v1741_v11 = vpop.f32.mrf.mxu3  ;;  %v11367_v2 = vld [vmem:[%s16382_s1 + $0x1a0] sm:$0xff] }
 0x165   : > { %v1652_v9 = vpop.f32.mrf.mxu2 }
 0x166   : > { %v1653_v57 = vadd.f32 %v1652_v9, %v12343_v19  ;;  %v11378_v19 = vld [vmem:[%s16382_s1 + $0x1f8] sm:$0xff]  ;;  %v11375_v9 = vld [vmem:[%s16382_s1 + $0x1e0] sm:$0xff] }
 0x167   : > { %2071 = vmatpush.bf16.msra.mxu3 %v11378_v19 }
 0x168   : > { %v12433_v27 = vadd.f32 %v1741_v11, %v1653_v57  ;;  %v1581_v48 = vpop.f32.mrf.mxu1 }
 0x169   : > { %v1492_v21 = vpop.f32.mrf.mxu0  ;;  %1783 = vmatmul.bf16.gmra.mxu3 %v841_v13  ;;  %v11369_v13 = vld [vmem:[%s16382_s1 + $0x1b0] sm:$0xff] }
 0x16a   : > { %1694 = vmatmul.bf16.gmra.mxu2 %v12431_v16  ;;  %v1493_v26 = vadd.f32 %v12237_v54, %v1492_v21 }
 0x16b   : > { %1906 = vmatmul.bf16.gmra.mxu1 %v12220_v38  ;;  %1983 = vmatpush.bf16.msra.mxu2 %v11369_v13 }
 0x16c   : > { %v12443_v28 = vadd.f32 %v1581_v48, %v1493_v26  ;;  %1817 = vmatmul.bf16.gmra.mxu0 %v12196_v7  ;;  %v1744_v34 = vpop.f32.mrf.mxu3  ;;  %v11368_v7 = vld [vmem:[%s16382_s1 + $0x1a8] sm:$0xff]  ;;  %2072 = vmatpush.bf16.msra.mxu3 %v11377_v42  ;;  %v11366_v48 = vld [vmem:[%s16382_s1 + $0x198] sm:$0xff] }
 0x16d   : > { %v1655_v30 = vpop.f32.mrf.mxu2 }
 0x16e   : > { %v1656_v35 = vadd.f32 %v1655_v30, %v12366_v36 }
 0x16f   : > { %1984 = vmatpush.bf16.msra.mxu2 %v11368_v7 }
 0x170   : > { %v12454_v43 = vadd.f32 %v1744_v34, %v1656_v35  ;;  %v1583_v44 = vpop.f32.mrf.mxu1  ;;  %2073 = vmatpush.bf16.msra.mxu3 %v11376_v39  ;;  %v11365_v34 = vld [vmem:[%s16382_s1 + $0x190] sm:$0xff] }
 0x171   : > { %v1494_v38 = vpop.f32.mrf.mxu0  ;;  %v11373_v35 = vld [vmem:[%s16382_s1 + $0x1d0] sm:$0xff] }
 0x172   : > { %v1495_v36 = vadd.f32 %v12237_v54, %v1494_v38  ;;  %v527_v38 = vld [vmem:[#allocation2 + $0x1c9] sm:$0xff] }
 0x173   : > { %1985 = vmatpush.bf16.msra.mxu2 %v11367_v2  ;;  %v11371_v2 = vld [vmem:[%s16382_s1 + $0x1c0] sm:$0xff] }
 0x174   : > { %v12467_v25 = vadd.f32 %v1583_v44, %v1495_v36  ;;  %v1746_v4 = vpop.f32.mrf.mxu3  ;;  %2074 = vmatpush.bf16.msra.mxu3 %v11375_v9  ;;  %v528_v44 = vld [vmem:[#allocation2 + $0x1d1] sm:$0xff] }
 0x175   : > { %v1657_v60 = vpop.f32.mrf.mxu2 }
 0x176   : > { %v1658_v3 = vadd.f32 %v1657_v60, %v12385_v58  ;;  %v12514_v60 = vpack.c.bf16 %v528_v44, %v527_v38  ;;  %v571_v44 = vld [vmem:[#allocation2 + $0xa8] sm:$0xff] }
 0x177   : > { %1986 = vmatpush.bf16.msra.mxu2 %v11366_v48 }
 0x178   : > { %v12478_v11 = vadd.f32 %v1746_v4, %v1658_v3  ;;  %v1586_v21 = vpop.f32.mrf.mxu1  ;;  %2075 = vmatpush.bf16.msra.mxu3 %v11374_v52 }
 0x179   : > { %v1497_v57 = vpop.f32.mrf.mxu0  ;;  %1788 = vmatmul.bf16.gmra.mxu3 %v844_v24 }
 0x17a   : > { %1699 = vmatmul.bf16.gmra.mxu2 %v12473_v5  ;;  %v1498_v58 = vadd.f32 %v12237_v54, %v1497_v57 }
 0x17b   : > { %1911 = vmatmul.bf16.gmra.mxu1 %v12227_v49  ;;  %1987 = vmatpush.bf16.msra.mxu2 %v11365_v34  ;;  %v529_v34 = vld [vmem:[#allocation2 + $0x1e9] sm:$0xff] }
 0x17c   : > { %v12488_v26 = vadd.f32 %v1586_v21, %v1498_v58  ;;  %1822 = vmatmul.bf16.gmra.mxu0 %v12203_v18  ;;  %v1749_v30 = vpop.f32.mrf.mxu3  ;;  %v11364_v18 = vld [vmem:[%s16382_s1 + $0x188] sm:$0xff]  ;;  %2076 = vmatpush.bf16.msra.mxu3 %v11373_v35  ;;  %v530_v35 = vld [vmem:[#allocation2 + $0x1f1] sm:$0xff] }
 0x17d   : > { %v1660_v19 = vpop.f32.mrf.mxu2 }
 0x17e   : > { %v1661_v13 = vadd.f32 %v1660_v19, %v12403_v20  ;;  %v560_v20 = vld [vmem:[#allocation2 + $0x1ef] sm:$0xff] }
 0x17f   : > { %1988 = vmatpush.bf16.msra.mxu2 %v11364_v18  ;;  %v853_v4 = vpack.c.bf16 %v560_v20, %v559_v46  ;;  %v561_v18 = vld [vmem:[#allocation2 + $0x207] sm:$0xff]  ;;  %v12534_v46 = vpack.c.bf16 %v530_v35, %v529_v34 }
 0x180   : > { %v12499_v42 = vadd.f32 %v1749_v30, %v1661_v13  ;;  %v1588_v7 = vpop.f32.mrf.mxu1  ;;  %2077 = vmatpush.bf16.msra.mxu3 %v11372_v50 }
 0x181   : > { %v1499_v49 = vpop.f32.mrf.mxu0 }
 0x182   : > { %v1500_v1 = vadd.f32 %v12237_v54, %v1499_v49  ;;  %v562_v49 = vld [vmem:[#allocation2 + $0x20f] sm:$0xff] }
 0x183   : > { %1989 = vmatpush.bf16.msra.mxu2 %v11363_v55 }
 0x184   : > { %v12508_v32 = vadd.f32 %v1588_v7, %v1500_v1  ;;  %v1751_v8 = vpop.f32.mrf.mxu3  ;;  %2078 = vmatpush.bf16.msra.mxu3 %v11371_v2 }
 0x185   : > { %v1662_v36 = vpop.f32.mrf.mxu2 }
 0x186   : > { %v1663_v39 = vadd.f32 %v1662_v36, %v12410_v41 }
 0x188   : > { %v12519_v3 = vadd.f32 %v1751_v8, %v1663_v39  ;;  %v1591_v9 = vpop.f32.mrf.mxu1 }
 0x189   : > { %v1502_v24 = vpop.f32.mrf.mxu0  ;;  %1793 = vmatmul.bf16.gmra.mxu3 %v853_v4 }
 0x18a   : > { %1704 = vmatmul.bf16.gmra.mxu2 %v12514_v60  ;;  %v1503_v57 = vadd.f32 %v12237_v54, %v1502_v24 }
 0x18b   : > { %1916 = vmatmul.bf16.gmra.mxu1 %v12239_v63  ;;  %v572_v63 = vld [vmem:[#allocation2 + $0xb0] sm:$0xff] }
 0x18c   : > { %v12523_v21 = vadd.f32 %v1591_v9, %v1503_v57  ;;  %1827 = vmatmul.bf16.gmra.mxu0 %v12212_v29  ;;  %v1754_v48 = vpop.f32.mrf.mxu3  ;;  %v12538_v50 = vpack.c.bf16 %v572_v63, %v571_v44 }
 0x18d   : > { %v1665_v41 = vpop.f32.mrf.mxu2 }
 0x18e   : > { %v1666_v58 = vadd.f32 %v1665_v41, %v12420_v56  ;;  %v862_v56 = vpack.c.bf16 %v562_v49, %v561_v18  ;;  %v628_v41 = vld [vmem:[#allocation2 + $0x47] sm:$0xff] }
 0x18f   : > { %v573_v18 = vld [vmem:[#allocation2 + $0xc8] sm:$0xff] }
 0x190   : > { %v12528_v52 = vadd.f32 %v1754_v48, %v1666_v58  ;;  %v1593_v30 = vpop.f32.mrf.mxu1  ;;  %v629_v58 = vld [vmem:[#allocation2 + $0x4f] sm:$0xff] }
 0x191   : > { %v1504_v19 = vpop.f32.mrf.mxu0 }
 0x192   : > { %v1505_v13 = vadd.f32 %v12237_v54, %v1504_v19  ;;  %v660_v19 = vld [vmem:[#allocation2 + $0x48] sm:$0xff] }
 0x194   : > { %v12531_v7 = vadd.f32 %v1593_v30, %v1505_v13  ;;  %v1756_v29 = vpop.f32.mrf.mxu3  ;;  %v661_v30 = vld [vmem:[#allocation2 + $0x50] sm:$0xff] }
 0x195   : > { %v1667_v38 = vpop.f32.mrf.mxu2 }
 0x196   : > { %v1668_v1 = vadd.f32 %v1667_v38, %v12428_v6  ;;  %v730_v38 = vpack.c.bf16 %v629_v58, %v628_v41  ;;  %v631_v41 = vld [vmem:[#allocation2 + $0x6f] sm:$0xff] }
 0x197   : > { %v663_v58 = vld [vmem:[#allocation2 + $0x70] sm:$0xff] }
 0x198   : > { %v12536_v20 = vadd.f32 %v1756_v29, %v1668_v1  ;;  %v1596_v8 = vpop.f32.mrf.mxu1 }
 0x199   : > { %v1507_v36 = vpop.f32.mrf.mxu0  ;;  %1798 = vmatmul.bf16.gmra.mxu3 %v862_v56 }
 0x19a   : > { %1709 = vmatmul.bf16.gmra.mxu2 %v12534_v46  ;;  %v1508_v55 = vadd.f32 %v12237_v54, %v1507_v36 }
 0x19b   : > { %1921 = vmatmul.bf16.gmra.mxu1 %v12252_v15  ;;  %v574_v15 = vld [vmem:[#allocation2 + $0xd0] sm:$0xff] }
 0x19c   : > { %v12542_v39 = vadd.f32 %v1596_v8, %v1508_v55  ;;  %1832 = vmatmul.bf16.gmra.mxu0 %v12538_v50  ;;  %v1759_v4 = vpop.f32.mrf.mxu3  ;;  %v12555_v44 = vpack.c.bf16 %v574_v15, %v573_v18 }
 0x19d   : > { %v1670_v6 = vpop.f32.mrf.mxu2 }
 0x19e   : > { %v1671_v2 = vadd.f32 %v1670_v6, %v12443_v28  ;;  %v731_v28 = vpack.c.bf16 %v661_v30, %v660_v19 }
 0x1a0   : > { %v12547_v24 = vadd.f32 %v1759_v4, %v1671_v2  ;;  %v1598_v57 = vpop.f32.mrf.mxu1 }
 0x1a1   : > { %v1509_v9 = vpop.f32.mrf.mxu0 }
 0x1a2   : > { %v1510_v48 = vadd.f32 %v12237_v54, %v1509_v9  ;;  %v630_v9 = vld [vmem:[#allocation2 + $0x67] sm:$0xff] }
 0x1a3   : > { %v739_v15 = vpack.c.bf16 %v631_v41, %v630_v9  ;;  %v632_v9 = vld [vmem:[#allocation2 + $0x87] sm:$0xff]  ;;  %v633_v41 = vld [vmem:[#allocation2 + $0x8f] sm:$0xff] }
 0x1a4   : > { %v12550_v34 = vadd.f32 %v1598_v57, %v1510_v48  ;;  %v1761_v35 = vpop.f32.mrf.mxu3  ;;  %v662_v48 = vld [vmem:[#allocation2 + $0x68] sm:$0xff] }
 0x1a5   : > { %v1672_v13 = vpop.f32.mrf.mxu2 }
 0x1a6   : > { %v1673_v49 = vadd.f32 %v1672_v13, %v12467_v25 }
 0x1a8   : > { %v12553_v29 = vadd.f32 %v1761_v35, %v1673_v49  ;;  %v1601_v1 = vpop.f32.mrf.mxu1  ;;  %v575_v35 = vld [vmem:[#allocation2 + $0xe8] sm:$0xff] }
 0x1a9   : > { %v1512_v63 = vpop.f32.mrf.mxu0  ;;  %2079 = vmatmul.bf16.vlgmr.msra.gmra.mxu3 %v731_v28 }
 0x1aa   : > { %1990 = vmatmul.bf16.vlgmr.msra.gmra.mxu2 %v730_v38  ;;  %v1513_v56 = vadd.f32 %v12237_v54, %v1512_v63 }
 0x1ab   : > { %1926 = vmatmul.bf16.gmra.mxu1 %v12263_v31  ;;  %v576_v31 = vld [vmem:[#allocation2 + $0xf0] sm:$0xff] }
 0x1ac   : > { %v12558_v36 = vadd.f32 %v1601_v1, %v1513_v56  ;;  %1837 = vmatmul.bf16.gmra.mxu0 %v12555_v44  ;;  %v1764_v25 = vpop.f32.mrf.mxu3  ;;  %v12571_v38 = vpack.c.bf16 %v576_v31, %v575_v35  ;;  %v577_v31 = vld [vmem:[#allocation2 + $0x108] sm:$0xff] }
 0x1ad   : > { %v1675_v8 = vpop.f32.mrf.mxu2 }
 0x1ae   : > { %v1676_v55 = vadd.f32 %v1675_v8, %v12488_v26  ;;  %v740_v26 = vpack.c.bf16 %v663_v58, %v662_v48  ;;  %v664_v48 = vld [vmem:[#allocation2 + $0x88] sm:$0xff]  ;;  %v665_v58 = vld [vmem:[#allocation2 + $0x90] sm:$0xff] }
 0x1b0   : > { %v12563_v6 = vadd.f32 %v1764_v25, %v1676_v55  ;;  %v1603_v2 = vpop.f32.mrf.mxu1 }
 0x1b1   : > { %v1514_v4 = vpop.f32.mrf.mxu0 }
 0x1b2   : > { %v1515_v57 = vadd.f32 %v12237_v54, %v1514_v4 }
 0x1b4   : > { %v12566_v19 = vadd.f32 %v1603_v2, %v1515_v57  ;;  %v1766_v13 = vpop.f32.mrf.mxu3 }
 0x1b5   : > { %v1677_v30 = vpop.f32.mrf.mxu2 }
 0x1b6   : > { %v1678_v18 = vadd.f32 %v1677_v30, %v12508_v32 }
 0x1b8   : > { %v12569_v49 = vadd.f32 %v1766_v13, %v1678_v18  ;;  %v1606_v63 = vpop.f32.mrf.mxu1 }
 0x1b9   : > { %v1517_v28 = vpop.f32.mrf.mxu0  ;;  %2084 = vmatmul.bf16.gmra.mxu3 %v740_v26 }
 0x1ba   : > { %1995 = vmatmul.bf16.gmra.mxu2 %v739_v15  ;;  %v1518_v1 = vadd.f32 %v12237_v54, %v1517_v28  ;;  %v748_v15 = vpack.c.bf16 %v633_v41, %v632_v9 }
 0x1bb   : > { %1931 = vmatmul.bf16.gmra.mxu1 %v12286_v62  ;;  %v578_v62 = vld [vmem:[#allocation2 + $0x110] sm:$0xff] }
 0x1bc   : > { %v12574_v56 = vadd.f32 %v1606_v63, %v1518_v1  ;;  %1842 = vmatmul.bf16.gmra.mxu0 %v12571_v38  ;;  %v1769_v32 = vpop.f32.mrf.mxu3  ;;  %v12587_v28 = vpack.c.bf16 %v578_v62, %v577_v31 }
 0x1bd   : > { %v1680_v8 = vpop.f32.mrf.mxu2 }
 0x1be   : > { %v1681_v25 = vadd.f32 %v1680_v8, %v12523_v21  ;;  %v749_v21 = vpack.c.bf16 %v665_v58, %v664_v48  ;;  %v634_v58 = vld [vmem:[#allocation2 + $0xa7] sm:$0xff] }
 0x1c0   : > { %v12579_v55 = vadd.f32 %v1769_v32, %v1681_v25  ;;  %v1608_v2 = vpop.f32.mrf.mxu1  ;;  %v11386_v32 = vld [vmem:[%s16382_s1 + $0x238] sm:$0xff] }
 0x1c1   : > { %v1519_v4 = vpop.f32.mrf.mxu0  ;;  %2160 = vmatpush.bf16.msra.mxu0 %v11386_v32 }
 0x1c2   : > { %v1520_v57 = vadd.f32 %v12237_v54, %v1519_v4 }
 0x1c4   : > { %v12582_v30 = vadd.f32 %v1608_v2, %v1520_v57  ;;  %v1771_v35 = vpop.f32.mrf.mxu3 }
 0x1c5   : > { %v1682_v13 = vpop.f32.mrf.mxu2 }
 0x1c6   : > { %v1683_v18 = vadd.f32 %v1682_v13, %v12531_v7  ;;  %v635_v13 = vld [vmem:[#allocation2 + $0xaf] sm:$0xff] }
 0x1c8   : > { %v12585_v26 = vadd.f32 %v1771_v35, %v1683_v18  ;;  %v1611_v1 = vpop.f32.mrf.mxu1  ;;  %v579_v18 = vld [vmem:[#allocation2 + $0x128] sm:$0xff] }
 0x1c9   : > { %v1522_v63 = vpop.f32.mrf.mxu0  ;;  %2089 = vmatmul.bf16.gmra.mxu3 %v749_v21  ;;  %v757_v21 = vpack.c.bf16 %v635_v13, %v634_v58  ;;  %v636_v58 = vld [vmem:[#allocation2 + $0xc7] sm:$0xff] }
 0x1ca   : > { %2000 = vmatmul.bf16.gmra.mxu2 %v748_v15  ;;  %v1523_v8 = vadd.f32 %v12237_v54, %v1522_v63  ;;  %v580_v15 = vld [vmem:[#allocation2 + $0x130] sm:$0xff] }
 0x1cb   : > { %1936 = vmatmul.bf16.gmra.mxu1 %v12311_v37 }
 0x1cc   : > { %v12593_v25 = vadd.f32 %v1611_v1, %v1523_v8  ;;  %1847 = vmatmul.bf16.gmra.mxu0 %v12587_v28  ;;  %v1774_v4 = vpop.f32.mrf.mxu3 }
 0x1cd   : > { %v1685_v7 = vpop.f32.mrf.mxu2 }
 0x1ce   : > { %v1686_v2 = vadd.f32 %v1685_v7, %v12542_v39  ;;  %v12606_v39 = vpack.c.bf16 %v580_v15, %v579_v18  ;;  %v582_v18 = vld [vmem:[#allocation2 + $0x150] sm:$0xff] }
 0x1d0   : > { %v12598_v9 = vadd.f32 %v1774_v4, %v1686_v2  ;;  %v1613_v41 = vpop.f32.mrf.mxu1 }
 0x1d1   : > { %v1524_v57 = vpop.f32.mrf.mxu0 }
 0x1d2   : > { %v1525_v48 = vadd.f32 %v12237_v54, %v1524_v57 }
 0x1d4   : > { %v12601_v35 = vadd.f32 %v1613_v41, %v1525_v48  ;;  %v1776_v62 = vpop.f32.mrf.mxu3 }
 0x1d5   : > { %v1687_v31 = vpop.f32.mrf.mxu2 }
 0x1d6   : > { %v1688_v37 = vadd.f32 %v1687_v31, %v12550_v34 }
 0x1d8   : > { %v12604_v63 = vadd.f32 %v1776_v62, %v1688_v37  ;;  %v1902_v8 = vpop.f32.mrf.mxu1  ;;  %v581_v62 = vld [vmem:[#allocation2 + $0x148] sm:$0xff] }
 0x1d9   : > { %v1813_v1 = vpop.f32.mrf.mxu0  ;;  %2094 = vmatmul.bf16.gmra.mxu3 %v12538_v50  ;;  %v637_v50 = vld [vmem:[#allocation2 + $0xcf] sm:$0xff] }
 0x1da   : > { %2005 = vmatmul.bf16.gmra.mxu2 %v757_v21  ;;  %v1814_v54 = vadd.f32 %v1813_v1, %v12334_v59  ;;  %v766_v15 = vpack.c.bf16 %v637_v50, %v636_v58 }
 0x1db   : > { %1941 = vmatmul.bf16.gmra.mxu1 %v12348_v22 }
 0x1dc   : > { %v12610_v32 = vadd.f32 %v1902_v8, %v1814_v54  ;;  %1852 = vmatmul.bf16.gmra.mxu0 %v12606_v39  ;;  %v1779_v34 = vpop.f32.mrf.mxu3  ;;  %v11385_v8 = vld [vmem:[%s16382_s1 + $0x230] sm:$0xff] }
 0x1dd   : > { %v1690_v7 = vpop.f32.mrf.mxu2  ;;  %2161 = vmatpush.bf16.msra.mxu0 %v11385_v8 }
 0x1de   : > { %v1691_v4 = vadd.f32 %v1690_v7, %v12558_v36  ;;  %v12623_v36 = vpack.c.bf16 %v582_v18, %v581_v62  ;;  %v584_v62 = vld [vmem:[#allocation2 + $0x170] sm:$0xff] }
 0x1e0   : > { %v12615_v2 = vadd.f32 %v1779_v34, %v1691_v4  ;;  %v1904_v41 = vpop.f32.mrf.mxu1 }
 0x1e1   : > { %v1815_v57 = vpop.f32.mrf.mxu0 }
 0x1e2   : > { %v1816_v48 = vadd.f32 %v1815_v57, %v12353_v23 }
 0x1e4   : > { %v12618_v13 = vadd.f32 %v1904_v41, %v1816_v48  ;;  %v1781_v31 = vpop.f32.mrf.mxu3  ;;  %v638_v41 = vld [vmem:[#allocation2 + $0xe7] sm:$0xff]  ;;  %v639_v48 = vld [vmem:[#allocation2 + $0xef] sm:$0xff] }
 0x1e5   : > { %v1692_v59 = vpop.f32.mrf.mxu2  ;;  %v775_v18 = vpack.c.bf16 %v639_v48, %v638_v41  ;;  %v585_v48 = vld [vmem:[#allocation2 + $0x188] sm:$0xff] }
 0x1e6   : > { %v1693_v22 = vadd.f32 %v1692_v59, %v12566_v19 }
 0x1e8   : > { %v12621_v37 = vadd.f32 %v1781_v31, %v1693_v22  ;;  %v1907_v1 = vpop.f32.mrf.mxu1  ;;  %v583_v31 = vld [vmem:[#allocation2 + $0x168] sm:$0xff] }
 0x1e9   : > { %v1818_v21 = vpop.f32.mrf.mxu0  ;;  %2099 = vmatmul.bf16.gmra.mxu3 %v12555_v44 }
 0x1ea   : > { %2010 = vmatmul.bf16.gmra.mxu2 %v766_v15  ;;  %v1819_v23 = vadd.f32 %v1818_v21, %v12376_v47 }
 0x1eb   : > { %1946 = vmatmul.bf16.gmra.mxu1 %v12391_v10 }
 0x1ec   : > { %v12630_v54 = vadd.f32 %v1907_v1, %v1819_v23  ;;  %1857 = vmatmul.bf16.gmra.mxu0 %v12623_v36  ;;  %v1784_v7 = vpop.f32.mrf.mxu3 }
 0x1ed   : > { %v1695_v19 = vpop.f32.mrf.mxu2 }
 0x1ee   : > { %v1696_v34 = vadd.f32 %v1695_v19, %v12574_v56  ;;  %v12643_v56 = vpack.c.bf16 %v584_v62, %v583_v31 }
 0x1f0   : > { %v12635_v4 = vadd.f32 %v1784_v7, %v1696_v34  ;;  %v1909_v57 = vpop.f32.mrf.mxu1 }
 0x1f1   : > { %v1820_v44 = vpop.f32.mrf.mxu0 }
 0x1f2   : > { %v1821_v47 = vadd.f32 %v1820_v44, %v12396_v12 }
 0x1f4   : > { %v12638_v58 = vadd.f32 %v1909_v57, %v1821_v47  ;;  %v1786_v59 = vpop.f32.mrf.mxu3  ;;  %v640_v57 = vld [vmem:[#allocation2 + $0x107] sm:$0xff] }
 0x1f5   : > { %v1697_v50 = vpop.f32.mrf.mxu2 }
 0x1f6   : > { %v1698_v10 = vadd.f32 %v1697_v50, %v12582_v30  ;;  %v586_v50 = vld [vmem:[#allocation2 + $0x190] sm:$0xff] }
 0x1f8   : > { %v12641_v22 = vadd.f32 %v1786_v59, %v1698_v10  ;;  %v1912_v21 = vpop.f32.mrf.mxu1 }
 0x1f9   : > { %v1823_v15 = vpop.f32.mrf.mxu0  ;;  %2104 = vmatmul.bf16.gmra.mxu3 %v12571_v38  ;;  %v641_v38 = vld [vmem:[#allocation2 + $0x10f] sm:$0xff] }
 0x1fa   : > { %2015 = vmatmul.bf16.gmra.mxu2 %v775_v18  ;;  %v1824_v12 = vadd.f32 %v1823_v15, %v12407_v33  ;;  %v784_v59 = vpack.c.bf16 %v641_v38, %v640_v57  ;;  %v11384_v18 = vld [vmem:[%s16382_s1 + $0x228] sm:$0xff] }
 0x1fb   : > { %1951 = vmatmul.bf16.gmra.mxu1 %v12413_v51  ;;  %2162 = vmatpush.bf16.msra.mxu0 %v11384_v18 }
 0x1fc   : > { %v12647_v1 = vadd.f32 %v1912_v21, %v1824_v12  ;;  %1862 = vmatmul.bf16.gmra.mxu0 %v12643_v56  ;;  %v1789_v30 = vpop.f32.mrf.mxu3 }
 0x1fd   : > { %v1700_v23 = vpop.f32.mrf.mxu2 }
 0x1fe   : > { %v1701_v8 = vadd.f32 %v1700_v23, %v12593_v25  ;;  %v12660_v25 = vpack.c.bf16 %v586_v50, %v585_v48 }
 0x200   : > { %v12652_v19 = vadd.f32 %v1789_v30, %v1701_v8  ;;  %v1914_v34 = vpop.f32.mrf.mxu1  ;;  %v642_v8 = vld [vmem:[#allocation2 + $0x127] sm:$0xff] }
 0x201   : > { %v1825_v7 = vpop.f32.mrf.mxu0 }
 0x202   : > { %v1826_v44 = vadd.f32 %v1825_v7, %v12415_v53  ;;  %v643_v7 = vld [vmem:[#allocation2 + $0x12f] sm:$0xff] }
 0x204   : > { %v12655_v47 = vadd.f32 %v1914_v34, %v1826_v44  ;;  %v1791_v41 = vpop.f32.mrf.mxu3 }
 0x205   : > { %v1702_v33 = vpop.f32.mrf.mxu2 }
 0x206   : > { %v1703_v51 = vadd.f32 %v1702_v33, %v12601_v35 }
 0x208   : > { %v12658_v31 = vadd.f32 %v1791_v41, %v1703_v51  ;;  %v1917_v10 = vpop.f32.mrf.mxu1 }
 0x209   : > { %v1828_v62 = vpop.f32.mrf.mxu0  ;;  %2109 = vmatmul.bf16.gmra.mxu3 %v12587_v28 }
 0x20a   : > { %2020 = vmatmul.bf16.gmra.mxu2 %v784_v59  ;;  %v1829_v53 = vadd.f32 %v1828_v62, %v12425_v61 }
 0x20b   : > { %1956 = vmatmul.bf16.gmra.mxu1 %v12431_v16  ;;  %v793_v16 = vpack.c.bf16 %v643_v7, %v642_v8  ;;  %v11383_v8 = vld [vmem:[%s16382_s1 + $0x220] sm:$0xff] }
 0x20c   : > { %v12667_v15 = vadd.f32 %v1917_v10, %v1829_v53  ;;  %1867 = vmatmul.bf16.gmra.mxu0 %v12660_v25  ;;  %v1794_v21 = vpop.f32.mrf.mxu3 }
 0x20d   : > { %v1705_v35 = vpop.f32.mrf.mxu2  ;;  %2163 = vmatpush.bf16.msra.mxu0 %v11383_v8  ;;  %v649_v8 = vld [vmem:[#allocation2 + $0x18f] sm:$0xff] }
 0x20e   : > { %v1706_v12 = vadd.f32 %v1705_v35, %v12278_v45 }
 0x210   : > { %v12672_v23 = vadd.f32 %v1794_v21, %v1706_v12  ;;  %v1919_v30 = vpop.f32.mrf.mxu1  ;;  %v589_v21 = vld [vmem:[#allocation2 + $0x1c8] sm:$0xff] }
 0x211   : > { %v1830_v28 = vpop.f32.mrf.mxu0 }
 0x212   : > { %v1831_v61 = vadd.f32 %v1830_v28, %v12433_v27 }
 0x214   : > { %v12675_v34 = vadd.f32 %v1919_v30, %v1831_v61  ;;  %v1796_v57 = vpop.f32.mrf.mxu3 }
 0x215   : > { %v1707_v44 = vpop.f32.mrf.mxu2 }
 0x216   : > { %v1708_v38 = vadd.f32 %v1707_v44, %v12288_v0 }
 0x218   : > { %v12678_v33 = vadd.f32 %v1796_v57, %v1708_v38  ;;  %v1922_v48 = vpop.f32.mrf.mxu1 }
 0x219   : > { %v1833_v41 = vpop.f32.mrf.mxu0  ;;  %2114 = vmatmul.bf16.gmra.mxu3 %v12606_v39  ;;  %v644_v39 = vld [vmem:[#allocation2 + $0x147] sm:$0xff] }
 0x21a   : > { %2025 = vmatmul.bf16.gmra.mxu2 %v793_v16  ;;  %v1834_v45 = vadd.f32 %v1833_v41, %v12454_v43  ;;  %v645_v43 = vld [vmem:[#allocation2 + $0x14f] sm:$0xff]  ;;  %v646_v41 = vld [vmem:[#allocation2 + $0x167] sm:$0xff] }
 0x21b   : > { %1961 = vmatmul.bf16.gmra.mxu1 %v12473_v5  ;;  %v802_v12 = vpack.c.bf16 %v645_v43, %v644_v39 }
 0x21c   : > { %v12682_v50 = vadd.f32 %v1922_v48, %v1834_v45  ;;  %1872 = vmatmul.bf16.gmra.mxu0 %v12398_v17  ;;  %v1799_v51 = vpop.f32.mrf.mxu3  ;;  %v590_v17 = vld [vmem:[#allocation2 + $0x1d0] sm:$0xff] }
 0x21d   : > { %v1710_v27 = vpop.f32.mrf.mxu2  ;;  %v647_v48 = vld [vmem:[#allocation2 + $0x16f] sm:$0xff] }
 0x21e   : > { %v1711_v0 = vadd.f32 %v1710_v27, %v12300_v14  ;;  %v12697_v14 = vpack.c.bf16 %v590_v17, %v589_v21 }
 0x220   : > { %v12687_v59 = vadd.f32 %v1799_v51, %v1711_v0  ;;  %v12689_v10 = vpop.f32.mrf.mxu1  ;;  %v591_v51 = vld [vmem:[#allocation2 + $0x1e8] sm:$0xff]  ;;  %v592_v0 = vld [vmem:[#allocation2 + $0x1f0] sm:$0xff] }
 0x221   : > { %v1835_v62 = vpop.f32.mrf.mxu0 }
 0x222   : > { %v12692_v53 = vadd.f32 %v1835_v62, %v12478_v11  ;;  %v811_v62 = vpack.c.bf16 %v647_v48, %v646_v41  ;;  %v626_v41 = vld [vmem:[#allocation2 + $0x211] sm:$0xff]  ;;  %v11379_v48 = vld [vmem:[%s16382_s1 + $0x200] sm:$0xff] }
 0x224   : > { %v1801_v35 = vpop.f32.mrf.mxu3 }
 0x225   : > { %v1712_v18 = vpop.f32.mrf.mxu2 }
 0x226   : > { %v1713_v5 = vadd.f32 %v1712_v18, %v12313_v40 }
 0x228   : > { %v12695_v28 = vadd.f32 %v1801_v35, %v1713_v5  ;;  %v1927_v61 = vpop.f32.mrf.mxu1  ;;  %v11381_v5 = vld [vmem:[%s16382_s1 + $0x210] sm:$0xff] }
 0x229   : > { %v1838_v30 = vpop.f32.mrf.mxu0  ;;  %2119 = vmatmul.bf16.gmra.mxu3 %v12623_v36 }
 0x22a   : > { %2030 = vmatmul.bf16.gmra.mxu2 %v802_v12  ;;  %v1839_v11 = vadd.f32 %v1838_v30, %v12499_v42 }
 0x22b   : > { %1966 = vmatmul.bf16.gmra.mxu1 %v12514_v60 }
 0x22c   : > { %v12704_v7 = vadd.f32 %v1927_v61, %v1839_v11  ;;  %1877 = vmatmul.bf16.gmra.mxu0 %v12697_v14  ;;  %v2080_v44 = vpop.f32.mrf.mxu3  ;;  %v648_v11 = vld [vmem:[#allocation2 + $0x187] sm:$0xff] }
 0x22d   : > { %v1991_v40 = vpop.f32.mrf.mxu2 }
 0x22e   : > { %v1992_v57 = vadd.f32 %v1991_v40, %v12610_v32  ;;  %v12719_v32 = vpack.c.bf16 %v592_v0, %v591_v51  ;;  %v593_v40 = vld [vmem:[#allocation2 + $0x208] sm:$0xff] }
 0x230   : > { %v12709_v38 = vadd.f32 %v2080_v44, %v1992_v57  ;;  %v12711_v16 = vpop.f32.mrf.mxu1  ;;  %v594_v44 = vld [vmem:[#allocation2 + $0x210] sm:$0xff] }
 0x231   : > { %v1840_v36 = vpop.f32.mrf.mxu0 }
 0x232   : > { %v12714_v42 = vadd.f32 %v1840_v36, %v12519_v3  ;;  %v11382_v3 = vld [vmem:[%s16382_s1 + $0x218] sm:$0xff]  ;;  %v625_v36 = vld [vmem:[#allocation2 + $0x209] sm:$0xff] }
 0x233   : > { %2164 = vmatpush.bf16.msra.mxu0 %v11382_v3  ;;  %v864_v0 = vpack.c.bf16 %v626_v41, %v625_v36 }
 0x234   : > { %v2082_v27 = vpop.f32.mrf.mxu3 }
 0x235   : > { %v1993_v45 = vpop.f32.mrf.mxu2 }
 0x236   : > { %v1994_v60 = vadd.f32 %v1993_v45, %v12618_v13 }
 0x237   : > { %2165 = vmatpush.bf16.msra.mxu0 %v11381_v5 }
 0x238   : > { %v12717_v39 = vadd.f32 %v2082_v27, %v1994_v60  ;;  %v1932_v18 = vpop.f32.mrf.mxu1  ;;  %v820_v27 = vpack.c.bf16 %v649_v8, %v648_v11 }
 0x239   : > { %v1843_v43 = vpop.f32.mrf.mxu0  ;;  %2124 = vmatmul.bf16.gmra.mxu3 %v12643_v56 }
 0x23a   : > { %2035 = vmatmul.bf16.gmra.mxu2 %v811_v62  ;;  %v1844_v35 = vadd.f32 %v1843_v43, %v12528_v52  ;;  %v11380_v52 = vld [vmem:[%s16382_s1 + $0x208] sm:$0xff] }
 0x23b   : > { %1971 = vmatmul.bf16.gmra.mxu1 %v12534_v46  ;;  %2166 = vmatpush.bf16.msra.mxu0 %v11380_v52 }
 0x23c   : > { %v12726_v21 = vadd.f32 %v1932_v18, %v1844_v35  ;;  %1882 = vmatmul.bf16.gmra.mxu0 %v12719_v32  ;;  %v2085_v17 = vpop.f32.mrf.mxu3 }
 0x23d   : > { %v1996_v13 = vpop.f32.mrf.mxu2 }
 0x23e   : > { %v1997_v12 = vadd.f32 %v1996_v13, %v12630_v54 }
 0x23f   : > { %2167 = vmatpush.bf16.msra.mxu0 %v11379_v48 }
 0x240   : > { %v12734_v30 = vadd.f32 %v2085_v17, %v1997_v12  ;;  %v12739_v61 = vpop.f32.mrf.mxu1  ;;  %v650_v12 = vld [vmem:[#allocation2 + $0x1a7] sm:$0xff] }
 0x241   : > { %v1845_v56 = vpop.f32.mrf.mxu0 }
 0x242   : > { %v12742_v46 = vadd.f32 %v1845_v56, %v12536_v20  ;;  %v12750_v20 = vpack.c.bf16 %v594_v44, %v593_v40  ;;  %v683_v56 = vld [vmem:[#allocation2 + $0x1b0] sm:$0xff] }
 0x243   : > { %v692_v40 = vld [vmem:[#allocation2 + $0x49] sm:$0xff]  ;;  %v693_v44 = vld [vmem:[#allocation2 + $0x51] sm:$0xff] }
 0x244   : > { %v2087_v54 = vpop.f32.mrf.mxu3  ;;  %v732_v41 = vpack.c.bf16 %v693_v44, %v692_v40 }
 0x245   : > { %v1998_v57 = vpop.f32.mrf.mxu2 }
 0x246   : > { %v1999_v45 = vadd.f32 %v1998_v57, %v12638_v58 }
 0x248   : > { %v12748_v51 = vadd.f32 %v2087_v54, %v1999_v45  ;;  %v1937_v62 = vpop.f32.mrf.mxu1 }
 0x249   : > { %v1848_v60 = vpop.f32.mrf.mxu0  ;;  %2129 = vmatmul.bf16.gmra.mxu3 %v12660_v25  ;;  %v651_v25 = vld [vmem:[#allocation2 + $0x1af] sm:$0xff] }
 0x24a   : > { %2040 = vmatmul.bf16.gmra.mxu2 %v820_v27  ;;  %v1849_v43 = vadd.f32 %v1848_v60, %v12547_v24  ;;  %v682_v24 = vld [vmem:[#allocation2 + $0x1a8] sm:$0xff]  ;;  %v829_v54 = vpack.c.bf16 %v651_v25, %v650_v12 }
 0x24b   : > { %1976 = vmatmul.bf16.gmra.mxu1 %v864_v0 }
 0x24c   : > { %v12754_v18 = vadd.f32 %v1937_v62, %v1849_v43  ;;  %1887 = vmatmul.bf16.gmra.mxu0 %v12750_v20  ;;  %v2090_v3 = vpop.f32.mrf.mxu3 }
 0x24d   : > { %v2001_v58 = vpop.f32.mrf.mxu2 }
 0x24e   : > { %v2002_v35 = vadd.f32 %v2001_v58, %v12647_v1  ;;  %v830_v1 = vpack.c.bf16 %v683_v56, %v682_v24  ;;  %v694_v24 = vld [vmem:[#allocation2 + $0x69] sm:$0xff]  ;;  %v695_v56 = vld [vmem:[#allocation2 + $0x71] sm:$0xff] }
 0x24f   : > { %v741_v40 = vpack.c.bf16 %v695_v56, %v694_v24  ;;  %v11393_v56 = vld [vmem:[%s16382_s1 + $0x270] sm:$0xff] }
 0x250   : > { %v12758_v13 = vadd.f32 %v2090_v3, %v2002_v35  ;;  %v12760_v5 = vpop.f32.mrf.mxu1 }
 0x251   : > { %v1850_v17 = vpop.f32.mrf.mxu0 }
 0x252   : > { %v12763_v52 = vadd.f32 %v1850_v17, %v12553_v29  ;;  %v653_v17 = vld [vmem:[#allocation2 + $0x1cf] sm:$0xff] }
 0x254   : > { %v2092_v8 = vpop.f32.mrf.mxu3 }
 0x255   : > { %v2003_v11 = vpop.f32.mrf.mxu2 }
 0x256   : > { %v2004_v57 = vadd.f32 %v2003_v11, %v12655_v47  ;;  %v11394_v47 = vld [vmem:[%s16382_s1 + $0x278] sm:$0xff] }
 0x257   : > { %3553 = vmatpush.bf16.msra.mxu1 %v11394_v47  ;;  %v697_v47 = vld [vmem:[#allocation2 + $0x91] sm:$0xff] }
 0x258   : > { %v12766_v36 = vadd.f32 %v2092_v8, %v2004_v57  ;;  %v1942_v45 = vpop.f32.mrf.mxu1 }
 0x259   : > { %v1853_v48 = vpop.f32.mrf.mxu0  ;;  %2134 = vmatmul.bf16.gmra.mxu3 %v830_v1 }
 0x25a   : > { %2045 = vmatmul.bf16.gmra.mxu2 %v829_v54  ;;  %v1854_v29 = vadd.f32 %v1853_v48, %v12563_v6  ;;  %v652_v6 = vld [vmem:[#allocation2 + $0x1c7] sm:$0xff] }
 0x25b   : > { %v838_v11 = vpack.c.bf16 %v653_v17, %v652_v6  ;;  %3554 = vmatpush.bf16.msra.mxu1 %v11393_v56  ;;  %v700_v56 = vld [vmem:[#allocation2 + $0xc9] sm:$0xff] }
 0x25c   : > { %v12769_v27 = vadd.f32 %v1942_v45, %v1854_v29  ;;  %2168 = vmatmul.bf16.vlgmr.msra.gmra.mxu0 %v732_v41  ;;  %v2095_v60 = vpop.f32.mrf.mxu3 }
 0x25d   : > { %v2006_v0 = vpop.f32.mrf.mxu2 }
 0x25e   : > { %v2007_v62 = vadd.f32 %v2006_v0, %v12667_v15 }
 0x260   : > { %v12772_v43 = vadd.f32 %v2095_v60, %v2007_v62  ;;  %v12777_v3 = vpop.f32.mrf.mxu1  ;;  %v654_v60 = vld [vmem:[#allocation2 + $0x1e7] sm:$0xff]  ;;  %v655_v62 = vld [vmem:[#allocation2 + $0x1ef] sm:$0xff] }
 0x261   : > { %v1855_v58 = vpop.f32.mrf.mxu0 }
 0x262   : > { %v12780_v35 = vadd.f32 %v1855_v58, %v12569_v49  ;;  %v847_v58 = vpack.c.bf16 %v655_v62, %v654_v60 }
 0x264   : > { %v2097_v25 = vpop.f32.mrf.mxu3 }
 0x265   : > { %v2008_v12 = vpop.f32.mrf.mxu2 }
 0x266   : > { %v2009_v15 = vadd.f32 %v2008_v12, %v12675_v34 }
 0x268   : > { %v12783_v8 = vadd.f32 %v2097_v25, %v2009_v15  ;;  %v1947_v57 = vpop.f32.mrf.mxu1 }
 0x269   : > { %v1858_v44 = vpop.f32.mrf.mxu0  ;;  %2139 = vmatmul.bf16.gmra.mxu3 %v12697_v14 }
 0x26a   : > { %2050 = vmatmul.bf16.gmra.mxu2 %v838_v11  ;;  %v1859_v49 = vadd.f32 %v1858_v44, %v12579_v55  ;;  %v696_v55 = vld [vmem:[#allocation2 + $0x89] sm:$0xff] }
 0x26b   : > { %v750_v17 = vpack.c.bf16 %v697_v47, %v696_v55 }
 0x26c   : > { %v12787_v54 = vadd.f32 %v1947_v57, %v1859_v49  ;;  %2173 = vmatmul.bf16.gmra.mxu0 %v741_v40  ;;  %v2100_v41 = vpop.f32.mrf.mxu3  ;;  %v698_v57 = vld [vmem:[#allocation2 + $0xa9] sm:$0xff]  ;;  %v699_v49 = vld [vmem:[#allocation2 + $0xb1] sm:$0xff] }
 0x26d   : > { %v2011_v1 = vpop.f32.mrf.mxu2 }
 0x26e   : > { %v2012_v48 = vadd.f32 %v2011_v1, %v12682_v50 }
 0x270   : > { %v12790_v45 = vadd.f32 %v2100_v41, %v2012_v48  ;;  %v12792_v29 = vpop.f32.mrf.mxu1  ;;  %v759_v48 = vpack.c.bf16 %v699_v49, %v698_v57 }
 0x271   : > { %v1860_v34 = vpop.f32.mrf.mxu0 }
 0x272   : > { %v12795_v0 = vadd.f32 %v1860_v34, %v12585_v26 }
 0x274   : > { %v12799_v6 = vpop.f32.mrf.mxu3 }
 0x275   : > { %v12797_v14 = vpop.f32.mrf.mxu2 }
 0x278   : > { %v1952_v50 = vpop.f32.mrf.mxu1 }
 0x279   : > { %v1863_v12 = vpop.f32.mrf.mxu0  ;;  %2144 = vmatmul.bf16.gmra.mxu3 %v12719_v32  ;;  %v656_v32 = vld [vmem:[#allocation2 + $0x207] sm:$0xff] }
 0x27a   : > { %2055 = vmatmul.bf16.gmra.mxu2 %v847_v58  ;;  %v1864_v25 = vadd.f32 %v1863_v12, %v12598_v9  ;;  %v657_v9 = vld [vmem:[#allocation2 + $0x20f] sm:$0xff] }
 0x27b   : > { %v856_v1 = vpack.c.bf16 %v657_v9, %v656_v32  ;;  %v11891_v32 = vld [vmem:[#allocation2] sm:$0xff] }
 0x27c   : > { %v12803_v24 = vadd.f32 %v1952_v50, %v1864_v25  ;;  %2178 = vmatmul.bf16.gmra.mxu0 %v750_v17  ;;  %v12812_v40 = vpop.f32.mrf.mxu3  ;;  %v658_v50 = vld [vmem:[#allocation2 + $0x227] sm:$0xff]  ;;  %v659_v25 = vld [vmem:[#allocation2 + $0x22f] sm:$0xff]  ;;  %v12834_v9 = vpack.c.bf16 %v11891_v32, %v11891_v32 }
 0x27d   : > { %v12805_v26 = vpop.f32.mrf.mxu2 }
 0x27e   : > { %16398 = vst [vmem:[#allocation5_spill] sm:$0xff] %v12803_v24 }
 0x280   : > { %v12810_v11 = vpop.f32.mrf.mxu1 }
 0x281   : > { %v1865_v15 = vpop.f32.mrf.mxu0  ;;  %16399 = vst [vmem:[#allocation6_spill] sm:$0xff] %v12810_v11 }
 0x282   : > { %v12815_v44 = vadd.f32 %v1865_v15, %v12604_v63  ;;  %v701_v15 = vld [vmem:[#allocation2 + $0xd1] sm:$0xff] }
 0x283   : > { %v768_v57 = vpack.c.bf16 %v701_v15, %v700_v56  ;;  %v702_v56 = vld [vmem:[#allocation2 + $0xe9] sm:$0xff] }
 0x284   : > { %16400 = vst [vmem:[#allocation7_spill] sm:$0xff] %v12815_v44  ;;  %v12821_v55 = vpop.f32.mrf.mxu3 }
 0x285   : > { %v12817_v41 = vpop.f32.mrf.mxu2 }
 0x288   : > { %v1957_v60 = vpop.f32.mrf.mxu1 }
 0x289   : > { %v1868_v34 = vpop.f32.mrf.mxu0  ;;  %2149 = vmatmul.bf16.gmra.mxu3 %v12750_v20 }
 0x28a   : > { %2060 = vmatmul.bf16.gmra.mxu2 %v856_v1  ;;  %v1869_v62 = vadd.f32 %v1868_v34, %v12615_v2  ;;  %v865_v2 = vpack.c.bf16 %v659_v25, %v658_v50 }
 0x28c   : > { %v12823_v63 = vadd.f32 %v1957_v60, %v1869_v62  ;;  %2183 = vmatmul.bf16.gmra.mxu0 %v759_v48  ;;  %v12832_v20 = vpop.f32.mrf.mxu3  ;;  %v11392_v62 = vld [vmem:[%s16382_s1 + $0x268] sm:$0xff] }
 0x28d   : > { %v12827_v17 = vpop.f32.mrf.mxu2  ;;  %3555 = vmatpush.bf16.msra.mxu1 %v11392_v62 }
 0x28e   : > { %16401 = vst [vmem:[#allocation8_spill] sm:$0xff] %v12823_v63 }
 0x290   : > { %v12825_v58 = vpop.f32.mrf.mxu1 }
 0x291   : > { %v1870_v47 = vpop.f32.mrf.mxu0  ;;  %16402 = vst [vmem:[#allocation9_spill] sm:$0xff] %v12825_v58  ;;  %v709_v58 = vld [vmem:[#allocation2 + $0x151] sm:$0xff] }
 0x292   : > { %v12830_v12 = vadd.f32 %v1870_v47, %v12621_v37 }
 0x294   : > { %16403 = vst [vmem:[#allocation10_spill] sm:$0xff] %v12830_v12  ;;  %v12842_v60 = vpop.f32.mrf.mxu3 }
 0x295   : > { %v12838_v37 = vpop.f32.mrf.mxu2 }
 0x298   : > { %v1962_v1 = vpop.f32.mrf.mxu1 }
 0x299   : > { %v1873_v49 = vpop.f32.mrf.mxu0  ;;  %2154 = vmatmul.bf16.gmra.mxu3 %v12834_v9 }
 0x29a   : > { %2065 = vmatmul.bf16.gmra.mxu2 %v865_v2  ;;  %v1874_v48 = vadd.f32 %v1873_v49, %v12635_v4  ;;  %v703_v4 = vld [vmem:[#allocation2 + $0xf1] sm:$0xff] }
 0x29b   : > { %v777_v2 = vpack.c.bf16 %v703_v4, %v702_v56 }
 0x29c   : > { %v12840_v34 = vadd.f32 %v1962_v1, %v1874_v48  ;;  %2188 = vmatmul.bf16.gmra.mxu0 %v768_v57  ;;  %v12854_v49 = vpop.f32.mrf.mxu3 }
 0x29d   : > { %v12852_v15 = vpop.f32.mrf.mxu2 }
 0x29e   : > { %16404 = vst [vmem:[#allocation11_spill] sm:$0xff] %v12840_v34 }
 0x2a0   : > { %v12847_v50 = vpop.f32.mrf.mxu1 }
 0x2a1   : > { %v1875_v47 = vpop.f32.mrf.mxu0  ;;  %16405 = vst [vmem:[#allocation12_spill] sm:$0xff] %v12847_v50  ;;  %v11390_v50 = vld [vmem:[%s16382_s1 + $0x258] sm:$0xff] }
 0x2a2   : > { %v12850_v25 = vadd.f32 %v1875_v47, %v12641_v22  ;;  %v11402_v22 = vld [vmem:[%s16382_s1 + $0x2b8] sm:$0xff] }
 0x2a3   : > { %3642 = vmatpush.bf16.msrb.mxu2 %v11402_v22  ;;  %v11400_v22 = vld [vmem:[%s16382_s1 + $0x2a8] sm:$0xff] }
 0x2a4   : > { %16406 = vst [vmem:[#allocation13_spill] sm:$0xff] %v12850_v25  ;;  %v12872_v4 = vpop.f32.mrf.mxu3 }
 0x2a5   : > { %v12859_v34 = vpop.f32.mrf.mxu2 }
 0x2a8   : > { %v1967_v57 = vpop.f32.mrf.mxu1 }
 0x2a9   : > { %v1878_v32 = vpop.f32.mrf.mxu0 }
 0x2aa   : > { %v1879_v1 = vadd.f32 %v1878_v32, %v12652_v19  ;;  %v11410_v19 = vld [vmem:[%s16382_s1 + $0x2f8] sm:$0xff] }
 0x2ab   : > { %v705_v32 = vld [vmem:[#allocation2 + $0x111] sm:$0xff]  ;;  %3731 = vmatpush.bf16.msrb.mxu3 %v11410_v19 }
 0x2ac   : > { %v12857_v48 = vadd.f32 %v1967_v57, %v1879_v1  ;;  %2193 = vmatmul.bf16.gmra.mxu0 %v777_v2  ;;  %v704_v2 = vld [vmem:[#allocation2 + $0x109] sm:$0xff] }
 0x2ad   : > { %v11401_v57 = vld [vmem:[%s16382_s1 + $0x2b0] sm:$0xff]  ;;  %v786_v1 = vpack.c.bf16 %v705_v32, %v704_v2  ;;  %v12884_v19 = vpop.f32.mrf.mxu2  ;;  %v11399_v2 = vld [vmem:[%s16382_s1 + $0x2a0] sm:$0xff]  ;;  %v12894_v32 = vpop.f32.mrf.mxu3 }
 0x2ae   : > { %16407 = vst [vmem:[#allocation14_spill] sm:$0xff] %v12857_v48  ;;  %3643 = vmatpush.bf16.msrb.mxu2 %v11401_v57  ;;  %v11408_v57 = vld [vmem:[%s16382_s1 + $0x2e8] sm:$0xff] }
 0x2b0   : > { %v12864_v47 = vpop.f32.mrf.mxu1 }
 0x2b1   : > { %v1880_v62 = vpop.f32.mrf.mxu0  ;;  %16408 = vst [vmem:[#allocation15_spill] sm:$0xff] %v12864_v47 }
 0x2b2   : > { %v12867_v56 = vadd.f32 %v1880_v62, %v12658_v31  ;;  %v11409_v31 = vld [vmem:[%s16382_s1 + $0x2f0] sm:$0xff]  ;;  %3644 = vmatpush.bf16.msrb.mxu2 %v11400_v22 }
 0x2b3   : > { %3732 = vmatpush.bf16.msrb.mxu3 %v11409_v31  ;;  %v11391_v31 = vld [vmem:[%s16382_s1 + $0x260] sm:$0xff] }
 0x2b4   : > { %16409 = vst [vmem:[#allocation16_spill] sm:$0xff] %v12867_v56  ;;  %3556 = vmatpush.bf16.msra.mxu1 %v11391_v31 }
 0x2b5   : > { %v12924_v31 = vpop.f32.mrf.mxu3 }
 0x2b6   : > { %3645 = vmatpush.bf16.msrb.mxu2 %v11399_v2  ;;  %v12913_v2 = vpop.f32.mrf.mxu2 }
 0x2b7   : > { %3733 = vmatpush.bf16.msrb.mxu3 %v11408_v57  ;;  %v706_v57 = vld [vmem:[#allocation2 + $0x129] sm:$0xff] }
 0x2b8   : > { %v1972_v47 = vpop.f32.mrf.mxu1  ;;  %3557 = vmatpush.bf16.msra.mxu1 %v11390_v50 }
 0x2b9   : > { %v1883_v62 = vpop.f32.mrf.mxu0 }
 0x2ba   : > { %v1884_v56 = vadd.f32 %v1883_v62, %v12672_v23  ;;  %v11407_v23 = vld [vmem:[%s16382_s1 + $0x2e0] sm:$0xff]  ;;  %v11406_v62 = vld [vmem:[%s16382_s1 + $0x2d8] sm:$0xff] }
 0x2bb   : > { %3734 = vmatpush.bf16.msrb.mxu3 %v11407_v23  ;;  %v11405_v23 = vld [vmem:[%s16382_s1 + $0x2d0] sm:$0xff] }
 0x2bc   : > { %v12889_v48 = vadd.f32 %v1972_v47, %v1884_v56  ;;  %2198 = vmatmul.bf16.gmra.mxu0 %v786_v1  ;;  %v11398_v47 = vld [vmem:[%s16382_s1 + $0x298] sm:$0xff] }
 0x2bd   : > { %3646 = vmatpush.bf16.msrb.mxu2 %v11398_v47 }
 0x2be   : > { %16410 = vst [vmem:[#allocation17_spill] sm:$0xff] %v12889_v48  ;;  %v707_v48 = vld [vmem:[#allocation2 + $0x131] sm:$0xff]  ;;  %v12944_v25 = vpop.f32.mrf.mxu2 }
 0x2bf   : > { %3735 = vmatpush.bf16.msrb.mxu3 %v11406_v62  ;;  %v795_v47 = vpack.c.bf16 %v707_v48, %v706_v57  ;;  %v11389_v62 = vld [vmem:[%s16382_s1 + $0x250] sm:$0xff]  ;;  %v11388_v57 = vld [vmem:[%s16382_s1 + $0x248] sm:$0xff] }
 0x2c0   : > { %v12905_v1 = vpop.f32.mrf.mxu1  ;;  %3558 = vmatpush.bf16.msra.mxu1 %v11389_v62 }
 0x2c1   : > { %v1885_v56 = vpop.f32.mrf.mxu0  ;;  %16411 = vst [vmem:[#allocation18_spill] sm:$0xff] %v12905_v1 }
 0x2c2   : > { %v12908_v22 = vadd.f32 %v1885_v56, %v12678_v33  ;;  %v11397_v33 = vld [vmem:[%s16382_s1 + $0x290] sm:$0xff] }
 0x2c3   : > { %3647 = vmatpush.bf16.msrb.mxu2 %v11397_v33  ;;  %3736 = vmatpush.bf16.msrb.mxu3 %v11405_v23  ;;  %v11404_v33 = vld [vmem:[%s16382_s1 + $0x2c8] sm:$0xff]  ;;  %v11395_v23 = vld [vmem:[%s16382_s1 + $0x280] sm:$0xff] }
 0x2c4   : > { %16412 = vst [vmem:[#allocation19_spill] sm:$0xff] %v12908_v22  ;;  %v11396_v22 = vld [vmem:[%s16382_s1 + $0x288] sm:$0xff]  ;;  %3559 = vmatpush.bf16.msra.mxu1 %v11388_v57 }
 0x2c5   : > { %v2538_v57 = vld [vmem:[#allocation3 + $0x7] sm:$0xff] }
 0x2c6   : > { %v12958_v63 = vpop.f32.mrf.mxu2 }
 0x2c7   : > { %3648 = vmatpush.bf16.msrb.mxu2 %v11396_v22  ;;  %3737 = vmatpush.bf16.msrb.mxu3 %v11404_v33  ;;  %v11387_v22 = vld [vmem:[%s16382_s1 + $0x240] sm:$0xff]  ;;  %v12956_v33 = vpop.f32.mrf.mxu3 }
 0x2c8   : > { %v1977_v1 = vpop.f32.mrf.mxu1  ;;  %3560 = vmatpush.bf16.msra.mxu1 %v11387_v22 }
 0x2c9   : > { %v1888_v56 = vpop.f32.mrf.mxu0 }
 0x2ca   : > { %v1889_v50 = vadd.f32 %v1888_v56, %v12687_v59  ;;  %v11403_v59 = vld [vmem:[%s16382_s1 + $0x2c0] sm:$0xff]  ;;  %v2603_v56 = vld [vmem:[#allocation3 + $0x11] sm:$0xff] }
 0x2cb   : > { %3649 = vmatpush.bf16.msrb.mxu2 %v11395_v23  ;;  %3738 = vmatpush.bf16.msrb.mxu3 %v11403_v59  ;;  %v2539_v23 = vld [vmem:[#allocation3 + $0xf] sm:$0xff] }
 0x2cc   : > { %v12936_v48 = vadd.f32 %v1977_v1, %v1889_v50  ;;  %2203 = vmatmul.bf16.gmra.mxu0 %v795_v47  ;;  %v2602_v47 = vld [vmem:[#allocation3 + $0x9] sm:$0xff] }
 0x2cd   : > { %v2829_v50 = vpack.c.bf16 %v2603_v56, %v2602_v47  ;;  %v708_v59 = vld [vmem:[#allocation2 + $0x149] sm:$0xff] }
 0x2ce   : > { %16413 = vst [vmem:[#allocation20_spill] sm:$0xff] %v12936_v48  ;;  %3650 = vmatmul.bf16.vlgmr.msrb.gmra.mxu2 %v12834_v9  ;;  %v2827_v48 = vpack.c.bf16 %v2539_v23, %v2538_v57  ;;  %v804_v12 = vpack.c.bf16 %v709_v58, %v708_v59  ;;  %v710_v23 = vld [vmem:[#allocation2 + $0x169] sm:$0xff] }
 0x2cf   : > { %3739 = vmatmul.bf16.vlgmr.msrb.gmra.mxu3 %v2829_v50  ;;  %v12961_v9 = vpop.f32.mrf.mxu3  ;;  %v12964_v50 = vpop.f32.mrf.mxu2 }
 0x2d0   : > { %3561 = vmatmul.bf16.vlgmr.msra.gmra.mxu1 %v2827_v48  ;;  %16415 = vst [vmem:[#allocation22_spill] sm:$0xff] %v12961_v9  ;;  %v711_v48 = vld [vmem:[#allocation2 + $0x171] sm:$0xff] }
 0x2d1   : > { %v1890_v1 = vpop.f32.mrf.mxu0  ;;  %16416 = vst [vmem:[#allocation23_spill] sm:$0xff] %v12964_v50 }
 0x2d2   : > { %v12953_v62 = vadd.f32 %v1890_v1, %v12695_v28 }
 0x2d4   : > { %16414 = vst [vmem:[#allocation21_spill] sm:$0xff] %v12953_v62 }
 0x2d7   : > { %v12966_v62 = vpop.f32.mrf.mxu3 }
 0x2d8   : > { %16417 = vst [vmem:[#allocation24_spill] sm:$0xff] %v12966_v62 }
 0x2d9   : > { %v2169_v11 = vpop.f32.mrf.mxu0 }
 0x2da   : > { %v2170_v28 = vadd.f32 %v2169_v11, %v12709_v38  ;;  %v813_v38 = vpack.c.bf16 %v711_v48, %v710_v23 }
 0x2dc   : > { %v2249_v1 = vmin.f32 %v2170_v28, 0.0  ;;  %2208 = vmatmul.bf16.gmra.mxu0 %v804_v12  ;;  %vm2409_vm1 = vcmp.gt.f32.partialorder %v2170_v28, 0.0 }
 0x2de   : > { %v2281_v47 = vmul.f32 1.442695, %v2249_v1 }
 0x2df   : > { %v12971_v62 = vpop.f32.mrf.mxu3 }
 0x2e0   : > { %11635 = vpow2.f32 %v2281_v47  ;;  %16419 = vst [vmem:[#allocation26_spill] sm:$0xff] %v12971_v62 }
 0x2e1   : > { %v2171_v22 = vpop.f32.mrf.mxu0 }
 0x2e2   : > { %v2172_v56 = vadd.f32 %v2171_v22, %v12717_v39  ;;  %v12969_v22 = vpop.f32.mrf.mxu2 }
 0x2e3   : > { %16418 = vst [vmem:[#allocation25_spill] sm:$0xff] %v12969_v22 }
 0x2e4   : > { %v2250_v57 = vmin.f32 %v2172_v56, 0.0  ;;  %vm2410_vm2 = vcmp.gt.f32.partialorder %v2172_v56, 0.0 }
 0x2e6   : > { %v11636_v58 = vpop.eup %11635  ;;  %v2283_v59 = vmul.f32 1.442695, %v2250_v57 }
 0x2e7   : > { %v2345_v44 = vmul.f32 1.6732632, %v11636_v58 }
 0x2e8   : > { %11637 = vpow2.f32 %v2283_v59  ;;  %v712_v59 = vld [vmem:[#allocation2 + $0x189] sm:$0xff] }
 0x2e9   : > { %v9885_v11 = vadd.f32 -1.6732632, %v2345_v44  ;;  %v2174_v12 = vpop.f32.mrf.mxu0 }
 0x2ea   : > { %v2175_v1 = vadd.f32 %v2174_v12, %v12734_v30  ;;  %v12974_v22 = vpop.f32.mrf.mxu2 }
 0x2eb   : > { %v2441_v47 = vsel %vm2409_vm1, %v2170_v28, %v9885_v11  ;;  %v713_v11 = vld [vmem:[#allocation2 + $0x191] sm:$0xff]  ;;  %16420 = vst [vmem:[#allocation27_spill] sm:$0xff] %v12974_v22 }
 0x2ec   : > { %v2473_v24 = vmul.f32 1.050701, %v2441_v47  ;;  %v2251_v39 = vmin.f32 %v2175_v1, 0.0  ;;  %2213 = vmatmul.bf16.gmra.mxu0 %v813_v38  ;;  %vm2411_vm3 = vcmp.gt.f32.partialorder %v2175_v1, 0.0 }
 0x2ee   : > { %v11638_v50 = vpop.eup %11637  ;;  %2506 = vst [vmem:[#allocation3 + $0x28] sm:$0xff] %v2473_v24  ;;  %v2285_v9 = vmul.f32 1.442695, %v2251_v39 }
 0x2ef   : > { %v2346_v57 = vmul.f32 1.6732632, %v11638_v50 }
 0x2f0   : > { %11639 = vpow2.f32 %v2285_v9  ;;  %v822_v9 = vpack.c.bf16 %v713_v11, %v712_v59 }
 0x2f1   : > { %v9886_v58 = vadd.f32 -1.6732632, %v2346_v57  ;;  %v2176_v23 = vpop.f32.mrf.mxu0 }
 0x2f2   : > { %v2177_v44 = vadd.f32 %v2176_v23, %v12748_v51 }
 0x2f3   : > { %v2442_v48 = vsel %vm2410_vm2, %v2172_v56, %v9886_v58  ;;  %v12977_v56 = vpop.f32.mrf.mxu3 }
 0x2f4   : > { %v2474_v30 = vmul.f32 1.050701, %v2442_v48  ;;  %v2252_v28 = vmin.f32 %v2177_v44, 0.0  ;;  %16421 = vst [vmem:[#allocation28_spill] sm:$0xff] %v12977_v56  ;;  %vm2412_vm4 = vcmp.gt.f32.partialorder %v2177_v44, 0.0 }
 0x2f5   : > { %v2540_v62 = vld [vmem:[#allocation3 + $0x27] sm:$0xff] }
 0x2f6   : > { %v11640_v38 = vpop.eup %11639  ;;  %2507 = vst [vmem:[#allocation3 + $0x30] sm:$0xff] %v2474_v30  ;;  %v2287_v12 = vmul.f32 1.442695, %v2252_v28  ;;  %v2837_v47 = vpack.c.bf16 %v2474_v30, %v2473_v24 }
 0x2f7   : > { %v2347_v50 = vmul.f32 1.6732632, %v11640_v38 }
 0x2f8   : > { %11641 = vpow2.f32 %v2287_v12  ;;  %3655 = vmatmul.bf16.gmra.mxu2 %v2837_v47 }
 0x2f9   : > { %v9887_v39 = vadd.f32 -1.6732632, %v2347_v50  ;;  %v2179_v57 = vpop.f32.mrf.mxu0 }
 0x2fa   : > { %v2180_v51 = vadd.f32 %v2179_v57, %v12758_v13  ;;  %v12982_v13 = vpop.f32.mrf.mxu2 }
 0x2fb   : > { %v2443_v58 = vsel %vm2411_vm3, %v2175_v1, %v9887_v39  ;;  %16422 = vst [vmem:[#allocation29_spill] sm:$0xff] %v12982_v13 }
 0x2fc   : > { %v2475_v23 = vmul.f32 1.050701, %v2443_v58  ;;  %v2253_v48 = vmin.f32 %v2180_v51, 0.0  ;;  %2218 = vmatmul.bf16.gmra.mxu0 %v822_v9  ;;  %v12985_v58 = vpop.f32.mrf.mxu3  ;;  %vm2413_vm5 = vcmp.gt.f32.partialorder %v2180_v51, 0.0 }
 0x2fd   : > { %v2541_v28 = vld [vmem:[#allocation3 + $0x2f] sm:$0xff]  ;;  %16423 = vst [vmem:[#allocation30_spill] sm:$0xff] %v12985_v58 }
 0x2fe   : > { %v2604_v24 = vld [vmem:[#allocation3 + $0x29] sm:$0xff]  ;;  %v2605_v30 = vld [vmem:[#allocation3 + $0x31] sm:$0xff]  ;;  %v11642_v22 = vpop.eup %11641  ;;  %2508 = vst [vmem:[#allocation3 + $0x48] sm:$0xff] %v2475_v23  ;;  %v2289_v38 = vmul.f32 1.442695, %v2253_v48  ;;  %v12979_v59 = vpack.c.bf16 %v2541_v28, %v2540_v62 }
 0x2ff   : > { %v2838_v11 = vpack.c.bf16 %v2605_v30, %v2604_v24  ;;  %v2348_v12 = vmul.f32 1.6732632, %v11642_v22  ;;  %v714_v62 = vld [vmem:[#allocation2 + $0x1a9] sm:$0xff]  ;;  %v715_v48 = vld [vmem:[#allocation2 + $0x1b1] sm:$0xff] }
 0x300   : > { %11643 = vpow2.f32 %v2289_v38  ;;  %3566 = vmatmul.bf16.gmra.mxu1 %v12979_v59  ;;  %v831_v38 = vpack.c.bf16 %v715_v48, %v714_v62 }
 0x301   : > { %3744 = vmatmul.bf16.gmra.mxu3 %v2838_v11  ;;  %v9888_v1 = vadd.f32 -1.6732632, %v2348_v12  ;;  %v2181_v47 = vpop.f32.mrf.mxu0 }
 0x302   : > { %v2182_v50 = vadd.f32 %v2181_v47, %v12766_v36 }
 0x303   : > { %v2444_v9 = vsel %vm2412_vm4, %v2177_v44, %v9888_v1  ;;  %v12988_v44 = vpop.f32.mrf.mxu2 }
 0x304   : > { %v2476_v39 = vmul.f32 1.050701, %v2444_v9  ;;  %v2254_v57 = vmin.f32 %v2182_v50, 0.0  ;;  %vm2414_vm6 = vcmp.gt.f32.partialorder %v2182_v50, 0.0 }
 0x305   : > { %v2542_v58 = vld [vmem:[#allocation3 + $0x47] sm:$0xff] }
 0x306   : > { %v11644_v28 = vpop.eup %11643  ;;  %2509 = vst [vmem:[#allocation3 + $0x50] sm:$0xff] %v2476_v39  ;;  %v2291_v22 = vmul.f32 1.442695, %v2254_v57  ;;  %v2846_v24 = vpack.c.bf16 %v2476_v39, %v2475_v23 }
 0x307   : > { %v2349_v30 = vmul.f32 1.6732632, %v11644_v28  ;;  %v12992_v28 = vpop.f32.mrf.mxu3 }
 0x308   : > { %11645 = vpow2.f32 %v2291_v22  ;;  %3660 = vmatmul.bf16.gmra.mxu2 %v2846_v24 }
 0x309   : > { %v9889_v11 = vadd.f32 -1.6732632, %v2349_v30  ;;  %v2184_v12 = vpop.f32.mrf.mxu0 }
 0x30a   : > { %v2185_v36 = vadd.f32 %v2184_v12, %v12772_v43 }
 0x30b   : > { %v2445_v1 = vsel %vm2413_vm5, %v2180_v51, %v9889_v11  ;;  %v12996_v12 = vpop.f32.mrf.mxu2 }
 0x30c   : > { %v2477_v47 = vmul.f32 1.050701, %v2445_v1  ;;  %v2255_v9 = vmin.f32 %v2185_v36, 0.0  ;;  %2223 = vmatmul.bf16.gmra.mxu0 %v831_v38  ;;  %vm2415_vm7 = vcmp.gt.f32.partialorder %v2185_v36, 0.0 }
 0x30d   : > { %v2543_v13 = vld [vmem:[#allocation3 + $0x4f] sm:$0xff] }
 0x30e   : > { %v2606_v56 = vld [vmem:[#allocation3 + $0x49] sm:$0xff]  ;;  %v2607_v57 = vld [vmem:[#allocation3 + $0x51] sm:$0xff]  ;;  %v11646_v23 = vpop.eup %11645  ;;  %2510 = vst [vmem:[#allocation3 + $0x68] sm:$0xff] %v2477_v47  ;;  %v2293_v39 = vmul.f32 1.442695, %v2255_v9  ;;  %v12990_v62 = vpack.c.bf16 %v2543_v13, %v2542_v58 }
 0x30f   : > { %v2847_v48 = vpack.c.bf16 %v2607_v57, %v2606_v56  ;;  %v2350_v22 = vmul.f32 1.6732632, %v11646_v23  ;;  %v716_v13 = vld [vmem:[#allocation2 + $0x1c9] sm:$0xff]  ;;  %v717_v58 = vld [vmem:[#allocation2 + $0x1d1] sm:$0xff] }
 0x310   : > { %11647 = vpow2.f32 %v2293_v39  ;;  %3571 = vmatmul.bf16.gmra.mxu1 %v12990_v62  ;;  %v840_v23 = vpack.c.bf16 %v717_v58, %v716_v13  ;;  %v12998_v39 = vpop.f32.mrf.mxu3 }
 0x311   : > { %3749 = vmatmul.bf16.gmra.mxu3 %v2847_v48  ;;  %v9890_v43 = vadd.f32 -1.6732632, %v2350_v22  ;;  %v2186_v51 = vpop.f32.mrf.mxu0 }
 0x312   : > { %v2187_v24 = vadd.f32 %v2186_v51, %v12783_v8  ;;  %v1925_v8 = vadd.f32 %v12689_v10, %v12692_v53 }
 0x313   : > { %v2446_v30 = vsel %vm2414_vm6, %v2182_v50, %v9890_v43  ;;  %v13006_v10 = vpop.f32.mrf.mxu2 }
 0x314   : > { %v2478_v38 = vmul.f32 1.050701, %v2446_v30  ;;  %v2256_v11 = vmin.f32 %v2187_v24, 0.0  ;;  %v2014_v51 = vadd.f32 %v12797_v14, %v1925_v8  ;;  %vm2416_vm8 = vcmp.gt.f32.partialorder %v2187_v24, 0.0 }
 0x315   : > { %v2017_v8 = vadd.f32 %v12805_v26, %v12704_v7  ;;  %v11418_v7 = vld [vmem:[%s16382_s1 + $0x338] sm:$0xff]  ;;  %v1930_v26 = vadd.f32 %v12711_v16, %v12714_v42  ;;  %v11417_v42 = vld [vmem:[%s16382_s1 + $0x330] sm:$0xff] }
 0x316   : > { %v11648_v56 = vpop.eup %11647  ;;  %2511 = vst [vmem:[#allocation3 + $0x70] sm:$0xff] %v2478_v38  ;;  %v2295_v1 = vmul.f32 1.442695, %v2256_v11  ;;  %v2855_v9 = vpack.c.bf16 %v2478_v38, %v2477_v47  ;;  %v2544_v47 = vld [vmem:[#allocation3 + $0x67] sm:$0xff]  ;;  %3820 = vmatpush.bf16.msrb.mxu0 %v11418_v7  ;;  %v2022_v7 = vadd.f32 %v12827_v17, %v12726_v21 }
 0x317   : > { %v2351_v57 = vmul.f32 1.6732632, %v11648_v56 }
 0x318   : > { %11649 = vpow2.f32 %v2295_v1  ;;  %3665 = vmatmul.bf16.gmra.mxu2 %v2855_v9 }
 0x319   : > { %v9891_v48 = vadd.f32 -1.6732632, %v2351_v57  ;;  %v2189_v22 = vpop.f32.mrf.mxu0 }
 0x31a   : > { %v2190_v50 = vadd.f32 %v2189_v22, %v12790_v45  ;;  %v2103_v45 = vadd.f32 %v12799_v6, %v2014_v51  ;;  %3821 = vmatpush.bf16.msrb.mxu0 %v11417_v42  ;;  %v1935_v42 = vadd.f32 %v12739_v61, %v12742_v46  ;;  %v11413_v46 = vld [vmem:[%s16382_s1 + $0x310] sm:$0xff] }
 0x31b   : > { %v2447_v43 = vsel %vm2415_vm7, %v2185_v36, %v9891_v48  ;;  %v13010_v48 = vpop.f32.mrf.mxu3 }
 0x31c   : > { %v2479_v30 = vmul.f32 1.050701, %v2447_v43  ;;  %v2257_v11 = vmin.f32 %v2190_v50, 0.0  ;;  %2228 = vmatmul.bf16.gmra.mxu0 %v840_v23  ;;  %vm2417_vm9 = vcmp.gt.f32.partialorder %v2190_v50, 0.0 }
 0x31d   : > { %v2545_v38 = vld [vmem:[#allocation3 + $0x6f] sm:$0xff] }
 0x31e   : > { %v2608_v13 = vld [vmem:[#allocation3 + $0x69] sm:$0xff]  ;;  %v2609_v58 = vld [vmem:[#allocation3 + $0x71] sm:$0xff]  ;;  %v11650_v56 = vpop.eup %11649  ;;  %2512 = vst [vmem:[#allocation3 + $0x88] sm:$0xff] %v2479_v30  ;;  %v2297_v1 = vmul.f32 1.442695, %v2257_v11  ;;  %v13004_v9 = vpack.c.bf16 %v2545_v38, %v2544_v47 }
 0x31f   : > { %v2856_v57 = vpack.c.bf16 %v2609_v58, %v2608_v13  ;;  %v2352_v53 = vmul.f32 1.6732632, %v11650_v56  ;;  %v718_v47 = vld [vmem:[#allocation2 + $0x1e9] sm:$0xff]  ;;  %v719_v38 = vld [vmem:[#allocation2 + $0x1f1] sm:$0xff]  ;;  %v2106_v56 = vadd.f32 %v12812_v40, %v2017_v8  ;;  %v2019_v40 = vadd.f32 %v12817_v41, %v1930_v26 }
 0x320   : > { %11651 = vpow2.f32 %v2297_v1  ;;  %3576 = vmatmul.bf16.gmra.mxu1 %v13004_v9  ;;  %v849_v1 = vpack.c.bf16 %v719_v38, %v718_v47 }
 0x321   : > { %3754 = vmatmul.bf16.gmra.mxu3 %v2856_v57  ;;  %v9892_v14 = vadd.f32 -1.6732632, %v2352_v53  ;;  %v2191_v36 = vpop.f32.mrf.mxu0  ;;  %v13015_v57 = vpop.f32.mrf.mxu2 }
 0x322   : > { %v2192_v23 = vadd.f32 %v2191_v36, %v2103_v45 }
 0x323   : > { %v2448_v22 = vsel %vm2416_vm8, %v2187_v24, %v9892_v14  ;;  %v13023_v8 = vpop.f32.mrf.mxu3 }
 0x324   : > { %v2480_v43 = vmul.f32 1.050701, %v2448_v22  ;;  %v2258_v11 = vmin.f32 %v2192_v23, 0.0  ;;  %vm2418_vm10 = vcmp.gt.f32.partialorder %v2192_v23, 0.0 }
 0x325   : > { %v2546_v22 = vld [vmem:[#allocation3 + $0x87] sm:$0xff] }
 0x326   : > { %v11652_v13 = vpop.eup %11651  ;;  %2513 = vst [vmem:[#allocation3 + $0x90] sm:$0xff] %v2480_v43  ;;  %v2299_v6 = vmul.f32 1.442695, %v2258_v11  ;;  %v2864_v51 = vpack.c.bf16 %v2480_v43, %v2479_v30 }
 0x327   : > { %v2353_v58 = vmul.f32 1.6732632, %v11652_v13 }
 0x328   : > { %11653 = vpow2.f32 %v2299_v6  ;;  %3670 = vmatmul.bf16.gmra.mxu2 %v2864_v51 }
 0x329   : > { %v9893_v24 = vadd.f32 -1.6732632, %v2353_v58  ;;  %v2194_v53 = vpop.f32.mrf.mxu0 }
 0x32a   : > { %v2195_v45 = vadd.f32 %v2194_v53, %v2106_v56  ;;  %v11416_v56 = vld [vmem:[%s16382_s1 + $0x328] sm:$0xff] }
 0x32b   : > { %v2449_v30 = vsel %vm2417_vm9, %v2190_v50, %v9893_v24  ;;  %v2108_v50 = vadd.f32 %v12821_v55, %v2019_v40  ;;  %v13035_v24 = vpop.f32.mrf.mxu2  ;;  %v721_v40 = vld [vmem:[#allocation2 + $0x211] sm:$0xff]  ;;  %3822 = vmatpush.bf16.msrb.mxu0 %v11416_v56 }
 0x32c   : > { %v2481_v14 = vmul.f32 1.050701, %v2449_v30  ;;  %v2259_v36 = vmin.f32 %v2195_v45, 0.0  ;;  %2233 = vmatmul.bf16.gmra.mxu0 %v849_v1  ;;  %v720_v30 = vld [vmem:[#allocation2 + $0x209] sm:$0xff]  ;;  %vm2419_vm11 = vcmp.gt.f32.partialorder %v2195_v45, 0.0 }
 0x32d   : > { %v2547_v43 = vld [vmem:[#allocation3 + $0x8f] sm:$0xff]  ;;  %v858_v21 = vpack.c.bf16 %v721_v40, %v720_v30 }
 0x32e   : > { %v2610_v11 = vld [vmem:[#allocation3 + $0x89] sm:$0xff]  ;;  %v2611_v47 = vld [vmem:[#allocation3 + $0x91] sm:$0xff]  ;;  %v11654_v38 = vpop.eup %11653  ;;  %2514 = vst [vmem:[#allocation3 + $0xa8] sm:$0xff] %v2481_v14  ;;  %v2301_v13 = vmul.f32 1.442695, %v2259_v36  ;;  %v13025_v6 = vpack.c.bf16 %v2547_v43, %v2546_v22  ;;  %v11415_v36 = vld [vmem:[%s16382_s1 + $0x320] sm:$0xff] }
 0x32f   : > { %v2865_v16 = vpack.c.bf16 %v2611_v47, %v2610_v11  ;;  %v2354_v41 = vmul.f32 1.6732632, %v11654_v38  ;;  %v13042_v47 = vpop.f32.mrf.mxu3  ;;  %3823 = vmatpush.bf16.msrb.mxu0 %v11415_v36 }
 0x330   : > { %11655 = vpow2.f32 %v2301_v13  ;;  %3581 = vmatmul.bf16.gmra.mxu1 %v13025_v6 }
 0x331   : > { %3759 = vmatmul.bf16.gmra.mxu3 %v2865_v16  ;;  %v9894_v51 = vadd.f32 -1.6732632, %v2354_v41  ;;  %v2196_v58 = vpop.f32.mrf.mxu0  ;;  %v11414_v16 = vld [vmem:[%s16382_s1 + $0x318] sm:$0xff] }
 0x332   : > { %v2197_v1 = vadd.f32 %v2196_v58, %v2108_v50  ;;  %v2024_v50 = vadd.f32 %v12838_v37, %v1935_v42  ;;  %v11411_v42 = vld [vmem:[%s16382_s1 + $0x300] sm:$0xff] }
 0x333   : > { %v2450_v53 = vsel %vm2418_vm10, %v2192_v23, %v9894_v51  ;;  %v2111_v23 = vadd.f32 %v12832_v20, %v2022_v7  ;;  %v13051_v56 = vpop.f32.mrf.mxu2  ;;  %3824 = vmatpush.bf16.msrb.mxu0 %v11414_v16  ;;  %v723_v16 = vld [vmem:[#allocation2 + $0x231] sm:$0xff] }
 0x334   : > { %v2482_v55 = vmul.f32 1.050701, %v2450_v53  ;;  %v2260_v26 = vmin.f32 %v2197_v1, 0.0  ;;  %vm2420_vm12 = vcmp.gt.f32.partialorder %v2197_v1, 0.0 }
 0x335   : > { %v2548_v58 = vld [vmem:[#allocation3 + $0xa7] sm:$0xff] }
 0x336   : > { %v11656_v22 = vpop.eup %11655  ;;  %2515 = vst [vmem:[#allocation3 + $0xb0] sm:$0xff] %v2482_v55  ;;  %v2303_v43 = vmul.f32 1.442695, %v2260_v26  ;;  %v2873_v11 = vpack.c.bf16 %v2482_v55, %v2481_v14 }
 0x337   : > { %v2355_v38 = vmul.f32 1.6732632, %v11656_v22  ;;  %v13060_v36 = vpop.f32.mrf.mxu3  ;;  %3825 = vmatpush.bf16.msrb.mxu0 %v11413_v46 }
 0x338   : > { %11657 = vpow2.f32 %v2303_v43  ;;  %3675 = vmatmul.bf16.gmra.mxu2 %v2873_v11  ;;  %v11412_v11 = vld [vmem:[%s16382_s1 + $0x308] sm:$0xff] }
 0x339   : > { %v9895_v17 = vadd.f32 -1.6732632, %v2355_v38  ;;  %v2199_v13 = vpop.f32.mrf.mxu0 }
 0x33a   : > { %v2200_v14 = vadd.f32 %v2199_v13, %v2111_v23  ;;  %v722_v13 = vld [vmem:[#allocation2 + $0x229] sm:$0xff] }
 0x33b   : > { %v2451_v41 = vsel %vm2419_vm11, %v2195_v45, %v9895_v17  ;;  %v2113_v45 = vadd.f32 %v12842_v60, %v2024_v50  ;;  %3826 = vmatpush.bf16.msrb.mxu0 %v11412_v11 }
 0x33c   : > { %v2483_v51 = vmul.f32 1.050701, %v2451_v41  ;;  %v2261_v20 = vmin.f32 %v2200_v14, 0.0  ;;  %2238 = vmatmul.bf16.gmra.mxu0 %v858_v21  ;;  %v2027_v21 = vadd.f32 %v12852_v15, %v12754_v18  ;;  %v867_v18 = vpack.c.bf16 %v723_v16, %v722_v13 }
 0x33d   : > { %v2549_v53 = vld [vmem:[#allocation3 + $0xaf] sm:$0xff]  ;;  %vm2421_vm13 = vcmp.gt.f32.partialorder %v2200_v14, 0.0 }
 0x33e   : > { %v2612_v7 = vld [vmem:[#allocation3 + $0xa9] sm:$0xff]  ;;  %v2613_v55 = vld [vmem:[#allocation3 + $0xb1] sm:$0xff]  ;;  %v11658_v26 = vpop.eup %11657  ;;  %2516 = vst [vmem:[#allocation3 + $0xc8] sm:$0xff] %v2483_v51  ;;  %v2305_v30 = vmul.f32 1.442695, %v2261_v20  ;;  %v13053_v40 = vpack.c.bf16 %v2549_v53, %v2548_v58  ;;  %v13070_v58 = vpop.f32.mrf.mxu2 }
 0x33f   : > { %v2874_v61 = vpack.c.bf16 %v2613_v55, %v2612_v7  ;;  %v2356_v37 = vmul.f32 1.6732632, %v11658_v26  ;;  %3827 = vmatpush.bf16.msrb.mxu0 %v11411_v42  ;;  %v1940_v55 = vadd.f32 %v12760_v5, %v12763_v52  ;;  %v13080_v52 = vpop.f32.mrf.mxu1 }
 0x340   : > { %11659 = vpow2.f32 %v2305_v30  ;;  %3586 = vmatmul.bf16.gmra.mxu1 %v13053_v40  ;;  %v13075_v30 = vpop.f32.mrf.mxu3 }
 0x341   : > { %3764 = vmatmul.bf16.gmra.mxu3 %v2874_v61  ;;  %v9896_v22 = vadd.f32 -1.6732632, %v2356_v37  ;;  %v2201_v43 = vpop.f32.mrf.mxu0 }
 0x342   : > { %v2202_v38 = vadd.f32 %v2201_v43, %v2113_v45 }
 0x343   : > { %v2452_v23 = vsel %vm2420_vm12, %v2197_v1, %v9896_v22  ;;  %v2116_v1 = vadd.f32 %v12854_v49, %v2027_v21 }
 0x344   : > { %v2484_v60 = vmul.f32 1.050701, %v2452_v23  ;;  %v2262_v17 = vmin.f32 %v2202_v38, 0.0  ;;  %vm2422_vm14 = vcmp.gt.f32.partialorder %v2202_v38, 0.0 }
 0x345   : > { %v2550_v49 = vld [vmem:[#allocation3 + $0xc7] sm:$0xff] }
 0x346   : > { %v11660_v41 = vpop.eup %11659  ;;  %2517 = vst [vmem:[#allocation3 + $0xd0] sm:$0xff] %v2484_v60  ;;  %v2307_v50 = vmul.f32 1.442695, %v2262_v17  ;;  %v2882_v20 = vpack.c.bf16 %v2484_v60, %v2483_v51  ;;  %v2029_v51 = vadd.f32 %v12859_v34, %v1940_v55  ;;  %v13084_v34 = vpop.f32.mrf.mxu2 }
 0x347   : > { %v2357_v53 = vmul.f32 1.6732632, %v11660_v41  ;;  %v2032_v41 = vadd.f32 %v12884_v19, %v12769_v27 }
 0x348   : > { %11661 = vpow2.f32 %v2307_v50  ;;  %3680 = vmatmul.bf16.gmra.mxu2 %v2882_v20 }
 0x349   : > { %v9897_v15 = vadd.f32 -1.6732632, %v2357_v53  ;;  %v2204_v7 = vpop.f32.mrf.mxu0  ;;  %v13088_v53 = vpop.f32.mrf.mxu3 }
 0x34a   : > { %v2205_v26 = vadd.f32 %v2204_v7, %v2116_v1 }
 0x34b   : > { %v2453_v61 = vsel %vm2421_vm13, %v2200_v14, %v9897_v15  ;;  %v2118_v14 = vadd.f32 %v12872_v4, %v2029_v51  ;;  %v13093_v15 = vld [vmem:[%s16383_s2 + $0x1] ss:$0 sm:$0xff] }
 0x34c   : > { %v2485_v46 = vmul.f32 1.050701, %v2453_v61  ;;  %v2263_v37 = vmin.f32 %v2205_v26, 0.0  ;;  %2243 = vmatmul.bf16.gmra.mxu0 %v867_v18  ;;  %vm2423_vm15 = vcmp.gt.f32.partialorder %v2205_v26, 0.0 }
 0x34d   : > { %v2551_v45 = vld [vmem:[#allocation3 + $0xcf] sm:$0xff]  ;;  %v3562_v55 = vpop.f32.mrf.mxu1 }
 0x34e   : > { %v2614_v22 = vld [vmem:[#allocation3 + $0xc9] sm:$0xff]  ;;  %v2615_v43 = vld [vmem:[#allocation3 + $0xd1] sm:$0xff]  ;;  %v11662_v11 = vpop.eup %11661  ;;  %2518 = vst [vmem:[#allocation3 + $0xe8] sm:$0xff] %v2485_v46  ;;  %v2309_v23 = vmul.f32 1.442695, %v2263_v37  ;;  %v13078_v21 = vpack.c.bf16 %v2551_v45, %v2550_v49  ;;  %v3563_v27 = vadd.f32 %v13093_v15, %v3562_v55  ;;  %v1945_v37 = vadd.f32 %v12777_v3, %v12780_v35 }
 0x34f   : > { %v2883_v5 = vpack.c.bf16 %v2615_v43, %v2614_v22  ;;  %v2358_v60 = vmul.f32 1.6732632, %v11662_v11 }
 0x350   : > { %11663 = vpow2.f32 %v2309_v23  ;;  %3591 = vmatmul.bf16.gmra.mxu1 %v13078_v21  ;;  %v2034_v22 = vadd.f32 %v12913_v2, %v1945_v37 }
 0x351   : > { %3769 = vmatmul.bf16.gmra.mxu3 %v2883_v5  ;;  %v9898_v17 = vadd.f32 -1.6732632, %v2358_v60  ;;  %v2206_v13 = vpop.f32.mrf.mxu0  ;;  %v3651_v51 = vpop.f32.mrf.mxu2 }
 0x352   : > { %v2207_v16 = vadd.f32 %v2206_v13, %v2118_v14  ;;  %v3652_v49 = vadd.f32 %v3651_v51, %v3563_v27  ;;  %v3740_v14 = vpop.f32.mrf.mxu3  ;;  %v2123_v2 = vadd.f32 %v12924_v31, %v2034_v22  ;;  %v11426_v31 = vld [vmem:[%s16382_s1 + $0x378] sm:$0xff] }
 0x353   : > { %v2454_v42 = vsel %vm2422_vm14, %v2202_v38, %v9898_v17  ;;  %v2121_v38 = vadd.f32 %v12894_v32, %v2032_v41  ;;  %3909 = vmatpush.bf16.msrb.mxu1 %v11426_v31 }
 0x354   : > { %v2486_v50 = vmul.f32 1.050701, %v2454_v42  ;;  %v2264_v20 = vmin.f32 %v2207_v16, 0.0  ;;  %v13103_v35 = vadd.f32 %v3740_v14, %v3652_v49  ;;  %vm2424_vm0 = vcmp.gt.f32.partialorder %v2207_v16, 0.0 }
 0x355   : > { %v2552_v32 = vld [vmem:[#allocation3 + $0xe7] sm:$0xff] }
 0x356   : > { %v11664_v1 = vpop.eup %11663  ;;  %2519 = vst [vmem:[#allocation3 + $0xf0] sm:$0xff] %v2486_v50  ;;  %v2311_v4 = vmul.f32 1.442695, %v2264_v20  ;;  %v2891_v18 = vpack.c.bf16 %v2486_v50, %v2485_v46 }
 0x357   : > { %v2359_v7 = vmul.f32 1.6732632, %v11664_v1  ;;  %v2037_v1 = vadd.f32 %v12944_v25, %v12787_v54  ;;  %v1950_v54 = vadd.f32 %v12792_v29, %v12795_v0  ;;  %v16424_v0 = vld [vmem:[#allocation22_spill] sm:$0xff] }
 0x358   : > { %11665 = vpow2.f32 %v2311_v4  ;;  %3685 = vmatmul.bf16.gmra.mxu2 %v2891_v18 }
 0x359   : > { %v9899_v19 = vadd.f32 -1.6732632, %v2359_v7  ;;  %v2209_v61 = vpop.f32.mrf.mxu0  ;;  %v2039_v37 = vadd.f32 %v12958_v63, %v1950_v54 }
 0x35a   : > { %v2210_v46 = vadd.f32 %v2209_v61, %v2121_v38 }
 0x35b   : > { %v2455_v45 = vsel %vm2423_vm15, %v2205_v26, %v9899_v19  ;;  %v2126_v19 = vadd.f32 %v12956_v33, %v2037_v1  ;;  %v2128_v14 = vadd.f32 %v16424_v0, %v2039_v37 }
 0x35c   : > { %v2487_v43 = vmul.f32 1.050701, %v2455_v45  ;;  %v2265_v11 = vmin.f32 %v2210_v46, 0.0  ;;  %3828 = vmatmul.bf16.vlgmr.msrb.gmra.mxu0 %v12979_v59  ;;  %vm2425_vm1 = vcmp.gt.f32.partialorder %v2210_v46, 0.0 }
 0x35d   : > { %v2553_v23 = vld [vmem:[#allocation3 + $0xef] sm:$0xff] }
 0x35e   : > { %v2616_v5 = vld [vmem:[#allocation3 + $0xe9] sm:$0xff]  ;;  %v2617_v60 = vld [vmem:[#allocation3 + $0xf1] sm:$0xff]  ;;  %v11666_v17 = vpop.eup %11665  ;;  %2520 = vst [vmem:[#allocation3 + $0x108] sm:$0xff] %v2487_v43  ;;  %v2313_v13 = vmul.f32 1.442695, %v2265_v11  ;;  %v13101_v42 = vpack.c.bf16 %v2553_v23, %v2552_v32 }
 0x35f   : > { %v2892_v3 = vpack.c.bf16 %v2617_v60, %v2616_v5  ;;  %v2360_v26 = vmul.f32 1.6732632, %v11666_v17 }
 0x360   : > { %11667 = vpow2.f32 %v2313_v13  ;;  %3596 = vmatmul.bf16.gmra.mxu1 %v13101_v42  ;;  %v13121_v13 = vpop.f32.mrf.mxu2 }
 0x361   : > { %3774 = vmatmul.bf16.gmra.mxu3 %v2892_v3  ;;  %v9900_v59 = vadd.f32 -1.6732632, %v2360_v26  ;;  %v2211_v41 = vpop.f32.mrf.mxu0  ;;  %v16425_v3 = vld [vmem:[#allocation5_spill] sm:$0xff]  ;;  %v16426_v26 = vld [vmem:[#allocation23_spill] sm:$0xff] }
 0x362   : > { %v2212_v50 = vadd.f32 %v2211_v41, %v2123_v2  ;;  %v2042_v2 = vadd.f32 %v16426_v26, %v16425_v3 }
 0x363   : > { %v2456_v20 = vsel %vm2424_vm0, %v2207_v16, %v9900_v59 }
 0x364   : > { %v2488_v4 = vmul.f32 1.050701, %v2456_v20  ;;  %v2266_v18 = vmin.f32 %v2212_v50, 0.0  ;;  %vm2426_vm2 = vcmp.gt.f32.partialorder %v2212_v50, 0.0  ;;  %v13125_v20 = vpop.f32.mrf.mxu1 }
 0x365   : > { %v2554_v22 = vld [vmem:[#allocation3 + $0x107] sm:$0xff] }
 0x366   : > { %v11668_v7 = vpop.eup %11667  ;;  %2521 = vst [vmem:[#allocation3 + $0x110] sm:$0xff] %v2488_v4  ;;  %v2315_v55 = vmul.f32 1.442695, %v2266_v18  ;;  %v2900_v38 = vpack.c.bf16 %v2488_v4, %v2487_v43 }
 0x367   : > { %v2361_v27 = vmul.f32 1.6732632, %v11668_v7 }
 0x368   : > { %11669 = vpow2.f32 %v2315_v55  ;;  %3690 = vmatmul.bf16.gmra.mxu2 %v2900_v38  ;;  %v16427_v55 = vld [vmem:[#allocation24_spill] sm:$0xff] }
 0x369   : > { %v9901_v16 = vadd.f32 -1.6732632, %v2361_v27  ;;  %v2214_v61 = vpop.f32.mrf.mxu0  ;;  %v2131_v38 = vadd.f32 %v16427_v55, %v2042_v2  ;;  %v16428_v27 = vld [vmem:[#allocation7_spill] sm:$0xff] }
 0x36a   : > { %v2215_v25 = vadd.f32 %v2214_v61, %v2126_v19  ;;  %v16429_v19 = vld [vmem:[#allocation6_spill] sm:$0xff] }
 0x36b   : > { %v2457_v51 = vsel %vm2425_vm1, %v2210_v46, %v9901_v16  ;;  %v1955_v16 = vadd.f32 %v16429_v19, %v16428_v27 }
 0x36c   : > { %v2489_v49 = vmul.f32 1.050701, %v2457_v51  ;;  %v2267_v45 = vmin.f32 %v2215_v25, 0.0  ;;  %3833 = vmatmul.bf16.gmra.mxu0 %v12990_v62  ;;  %vm2427_vm3 = vcmp.gt.f32.partialorder %v2215_v25, 0.0  ;;  %v13130_v51 = vpop.f32.mrf.mxu3 }
 0x36d   : > { %v2555_v43 = vld [vmem:[#allocation3 + $0x10f] sm:$0xff] }
 0x36e   : > { %v2618_v33 = vld [vmem:[#allocation3 + $0x109] sm:$0xff]  ;;  %v2619_v11 = vld [vmem:[#allocation3 + $0x111] sm:$0xff]  ;;  %v11670_v32 = vpop.eup %11669  ;;  %2522 = vst [vmem:[#allocation3 + $0x128] sm:$0xff] %v2489_v49  ;;  %v2317_v23 = vmul.f32 1.442695, %v2267_v45  ;;  %v13117_v5 = vpack.c.bf16 %v2555_v43, %v2554_v22  ;;  %v16430_v45 = vld [vmem:[#allocation25_spill] sm:$0xff] }
 0x36f   : > { %v2901_v60 = vpack.c.bf16 %v2619_v11, %v2618_v33  ;;  %v2362_v29 = vmul.f32 1.6732632, %v11670_v32  ;;  %v2044_v22 = vadd.f32 %v16430_v45, %v1955_v16 }
 0x370   : > { %11671 = vpow2.f32 %v2317_v23  ;;  %3601 = vmatmul.bf16.gmra.mxu1 %v13117_v5 }
 0x371   : > { %3779 = vmatmul.bf16.gmra.mxu3 %v2901_v60  ;;  %v9902_v63 = vadd.f32 -1.6732632, %v2362_v29  ;;  %v2216_v46 = vpop.f32.mrf.mxu0 }
 0x372   : > { %v2217_v62 = vadd.f32 %v2216_v46, %v2128_v14 }
 0x373   : > { %v2458_v17 = vsel %vm2426_vm2, %v2212_v50, %v9902_v63 }
 0x374   : > { %v2490_v59 = vmul.f32 1.050701, %v2458_v17  ;;  %v2268_v41 = vmin.f32 %v2217_v62, 0.0  ;;  %v16431_v17 = vld [vmem:[#allocation26_spill] sm:$0xff]  ;;  %vm2428_vm4 = vcmp.gt.f32.partialorder %v2217_v62, 0.0 }
 0x375   : > { %v2556_v33 = vld [vmem:[#allocation3 + $0x127] sm:$0xff]  ;;  %v2133_v3 = vadd.f32 %v16431_v17, %v2044_v22  ;;  %v16434_v22 = vld [vmem:[#allocation28_spill] sm:$0xff] }
 0x376   : > { %v11672_v1 = vpop.eup %11671  ;;  %2523 = vst [vmem:[#allocation3 + $0x130] sm:$0xff] %v2490_v59  ;;  %v2319_v4 = vmul.f32 1.442695, %v2268_v41  ;;  %v2909_v18 = vpack.c.bf16 %v2490_v59, %v2489_v49 }
 0x377   : > { %v2363_v7 = vmul.f32 1.6732632, %v11672_v1 }
 0x378   : > { %11673 = vpow2.f32 %v2319_v4  ;;  %3695 = vmatmul.bf16.gmra.mxu2 %v2909_v18  ;;  %v16432_v18 = vld [vmem:[#allocation8_spill] sm:$0xff] }
 0x379   : > { %v9903_v31 = vadd.f32 -1.6732632, %v2363_v7  ;;  %v2219_v50 = vpop.f32.mrf.mxu0  ;;  %v16433_v7 = vld [vmem:[#allocation27_spill] sm:$0xff] }
 0x37a   : > { %v2220_v61 = vadd.f32 %v2219_v50, %v2131_v38  ;;  %v2047_v55 = vadd.f32 %v16433_v7, %v16432_v18 }
 0x37b   : > { %v2459_v54 = vsel %vm2427_vm3, %v2215_v25, %v9903_v31  ;;  %v3656_v37 = vpop.f32.mrf.mxu2 }
 0x37c   : > { %v2491_v43 = vmul.f32 1.050701, %v2459_v54  ;;  %v2269_v49 = vmin.f32 %v2220_v61, 0.0  ;;  %3838 = vmatmul.bf16.gmra.mxu0 %v13004_v9  ;;  %vm2429_vm5 = vcmp.gt.f32.partialorder %v2220_v61, 0.0 }
 0x37d   : > { %v3567_v11 = vpop.f32.mrf.mxu1  ;;  %v2557_v32 = vld [vmem:[#allocation3 + $0x12f] sm:$0xff] }
 0x37e   : > { %v2620_v23 = vld [vmem:[#allocation3 + $0x129] sm:$0xff]  ;;  %v2621_v60 = vld [vmem:[#allocation3 + $0x131] sm:$0xff]  ;;  %v11674_v29 = vpop.eup %11673  ;;  %2524 = vst [vmem:[#allocation3 + $0x148] sm:$0xff] %v2491_v43  ;;  %v2321_v0 = vmul.f32 1.442695, %v2269_v49  ;;  %v3568_v14 = vadd.f32 %v13093_v15, %v3567_v11  ;;  %v13135_v25 = vpack.c.bf16 %v2557_v32, %v2556_v33  ;;  %v2136_v49 = vadd.f32 %v16434_v22, %v2047_v55 }
 0x37f   : > { %v2910_v63 = vpack.c.bf16 %v2621_v60, %v2620_v23  ;;  %v2364_v46 = vmul.f32 1.6732632, %v11674_v29  ;;  %v16435_v23 = vld [vmem:[#allocation10_spill] sm:$0xff]  ;;  %v16436_v60 = vld [vmem:[#allocation9_spill] sm:$0xff] }
 0x380   : > { %11675 = vpow2.f32 %v2321_v0  ;;  %3606 = vmatmul.bf16.gmra.mxu1 %v13135_v25  ;;  %v3657_v9 = vadd.f32 %v3656_v37, %v3568_v14  ;;  %v1960_v29 = vadd.f32 %v16436_v60, %v16435_v23 }
 0x381   : > { %3784 = vmatmul.bf16.gmra.mxu3 %v2910_v63  ;;  %v9904_v26 = vadd.f32 -1.6732632, %v2364_v46  ;;  %v2221_v2 = vpop.f32.mrf.mxu0  ;;  %v16437_v46 = vld [vmem:[#allocation29_spill] sm:$0xff] }
 0x382   : > { %v2222_v59 = vadd.f32 %v2221_v2, %v2133_v3  ;;  %v2049_v17 = vadd.f32 %v16437_v46, %v1960_v29 }
 0x383   : > { %v2460_v41 = vsel %vm2428_vm4, %v2217_v62, %v9904_v26  ;;  %v3658_v4 = vpop.f32.mrf.mxu2  ;;  %v11425_v62 = vld [vmem:[%s16382_s1 + $0x370] sm:$0xff] }
 0x384   : > { %v3745_v1 = vpop.f32.mrf.mxu3  ;;  %v2492_v38 = vmul.f32 1.050701, %v2460_v41  ;;  %v2270_v31 = vmin.f32 %v2222_v59, 0.0  ;;  %3910 = vmatpush.bf16.msrb.mxu1 %v11425_v62  ;;  %vm2430_vm6 = vcmp.gt.f32.partialorder %v2222_v59, 0.0 }
 0x385   : > { %v13141_v50 = vadd.f32 %v3745_v1, %v3657_v9  ;;  %v3569_v27 = vpop.f32.mrf.mxu1  ;;  %v2558_v2 = vld [vmem:[#allocation3 + $0x147] sm:$0xff] }
 0x386   : > { %v11676_v19 = vpop.eup %11675  ;;  %2525 = vst [vmem:[#allocation3 + $0x150] sm:$0xff] %v2492_v38  ;;  %v2323_v16 = vmul.f32 1.442695, %v2270_v31  ;;  %v3570_v54 = vadd.f32 %v13093_v15, %v3569_v27  ;;  %v2918_v37 = vpack.c.bf16 %v2492_v38, %v2491_v43 }
 0x387   : > { %v2365_v45 = vmul.f32 1.6732632, %v11676_v19  ;;  %v16438_v19 = vld [vmem:[#allocation30_spill] sm:$0xff] }
 0x388   : > { %11677 = vpow2.f32 %v2323_v16  ;;  %v3659_v33 = vadd.f32 %v3658_v4, %v3570_v54  ;;  %3700 = vmatmul.bf16.gmra.mxu2 %v2918_v37  ;;  %v2138_v16 = vadd.f32 %v16438_v19, %v2049_v17 }
 0x389   : > { %v9905_v11 = vadd.f32 -1.6732632, %v2365_v45  ;;  %v2224_v32 = vpop.f32.mrf.mxu0 }
 0x38a   : > { %v2225_v0 = vadd.f32 %v2224_v32, %v2136_v49 }
 0x38b   : > { %v2461_v14 = vsel %vm2429_vm5, %v2220_v61, %v9905_v11  ;;  %v3661_v63 = vpop.f32.mrf.mxu2 }
 0x38c   : > { %v3747_v43 = vpop.f32.mrf.mxu3  ;;  %v2493_v3 = vmul.f32 1.050701, %v2461_v14  ;;  %v2271_v9 = vmin.f32 %v2225_v0, 0.0  ;;  %3843 = vmatmul.bf16.gmra.mxu0 %v13025_v6  ;;  %vm2431_vm7 = vcmp.gt.f32.partialorder %v2225_v0, 0.0 }
 0x38d   : > { %v13151_v26 = vadd.f32 %v3747_v43, %v3659_v33  ;;  %v3572_v41 = vpop.f32.mrf.mxu1  ;;  %v2559_v1 = vld [vmem:[#allocation3 + $0x14f] sm:$0xff] }
 0x38e   : > { %v2622_v4 = vld [vmem:[#allocation3 + $0x149] sm:$0xff]  ;;  %v2623_v18 = vld [vmem:[#allocation3 + $0x151] sm:$0xff]  ;;  %v11678_v7 = vpop.eup %11677  ;;  %2526 = vst [vmem:[#allocation3 + $0x168] sm:$0xff] %v2493_v3  ;;  %v2325_v55 = vmul.f32 1.442695, %v2271_v9  ;;  %v3573_v61 = vadd.f32 %v13093_v15, %v3572_v41  ;;  %v13155_v38 = vpack.c.bf16 %v2559_v1, %v2558_v2  ;;  %v16441_v1 = vld [vmem:[#allocation12_spill] sm:$0xff] }
 0x38f   : > { %v2919_v31 = vpack.c.bf16 %v2623_v18, %v2622_v4  ;;  %v2366_v27 = vmul.f32 1.6732632, %v11678_v7  ;;  %v16439_v33 = vld [vmem:[#allocation11_spill] sm:$0xff] }
 0x390   : > { %11679 = vpow2.f32 %v2325_v55  ;;  %3611 = vmatmul.bf16.gmra.mxu1 %v13155_v38  ;;  %v3662_v6 = vadd.f32 %v3661_v63, %v3573_v61  ;;  %v2052_v11 = vadd.f32 %v12988_v44, %v16439_v33  ;;  %v16440_v44 = vld [vmem:[#allocation13_spill] sm:$0xff] }
 0x391   : > { %3789 = vmatmul.bf16.gmra.mxu3 %v2919_v31  ;;  %v9906_v54 = vadd.f32 -1.6732632, %v2366_v27  ;;  %v2226_v37 = vpop.f32.mrf.mxu0  ;;  %v1965_v4 = vadd.f32 %v16441_v1, %v16440_v44 }
 0x392   : > { %v2227_v62 = vadd.f32 %v2226_v37, %v2138_v16  ;;  %v2141_v9 = vadd.f32 %v12992_v28, %v2052_v11 }
 0x393   : > { %v2462_v45 = vsel %vm2430_vm6, %v2222_v59, %v9906_v54  ;;  %v3663_v49 = vpop.f32.mrf.mxu2  ;;  %v2054_v31 = vadd.f32 %v12996_v12, %v1965_v4 }
 0x394   : > { %v3750_v22 = vpop.f32.mrf.mxu3  ;;  %v2494_v32 = vmul.f32 1.050701, %v2462_v45  ;;  %v2272_v23 = vmin.f32 %v2227_v62, 0.0  ;;  %vm2432_vm8 = vcmp.gt.f32.partialorder %v2227_v62, 0.0 }
 0x395   : > { %v13161_v60 = vadd.f32 %v3750_v22, %v3662_v6  ;;  %v3574_v29 = vpop.f32.mrf.mxu1  ;;  %v2560_v28 = vld [vmem:[#allocation3 + $0x167] sm:$0xff]  ;;  %v2143_v11 = vadd.f32 %v12998_v39, %v2054_v31 }
 0x396   : > { %v11680_v14 = vpop.eup %11679  ;;  %2527 = vst [vmem:[#allocation3 + $0x170] sm:$0xff] %v2494_v32  ;;  %v2327_v43 = vmul.f32 1.442695, %v2272_v23  ;;  %v3575_v63 = vadd.f32 %v13093_v15, %v3574_v29  ;;  %v2927_v46 = vpack.c.bf16 %v2494_v32, %v2493_v3 }
 0x397   : > { %v2367_v17 = vmul.f32 1.6732632, %v11680_v14 }
 0x398   : > { %11681 = vpow2.f32 %v2327_v43  ;;  %v3664_v59 = vadd.f32 %v3663_v49, %v3575_v63  ;;  %3705 = vmatmul.bf16.gmra.mxu2 %v2927_v46  ;;  %v16442_v46 = vld [vmem:[#allocation14_spill] sm:$0xff] }
 0x399   : > { %v9907_v2 = vadd.f32 -1.6732632, %v2367_v17  ;;  %v2229_v41 = vpop.f32.mrf.mxu0  ;;  %v2057_v17 = vadd.f32 %v13006_v10, %v16442_v46 }
 0x39a   : > { %v2230_v18 = vadd.f32 %v2229_v41, %v2141_v9 }
 0x39b   : > { %v2463_v7 = vsel %vm2431_vm7, %v2225_v0, %v9907_v2  ;;  %v3666_v61 = vpop.f32.mrf.mxu2 }
 0x39c   : > { %v3752_v55 = vpop.f32.mrf.mxu3  ;;  %v2495_v27 = vmul.f32 1.050701, %v2463_v7  ;;  %v2273_v3 = vmin.f32 %v2230_v18, 0.0  ;;  %3848 = vmatmul.bf16.gmra.mxu0 %v13053_v40  ;;  %vm2433_vm9 = vcmp.gt.f32.partialorder %v2230_v18, 0.0 }
 0x39d   : > { %v13168_v19 = vadd.f32 %v3752_v55, %v3664_v59  ;;  %v3577_v16 = vpop.f32.mrf.mxu1  ;;  %v2561_v6 = vld [vmem:[#allocation3 + $0x16f] sm:$0xff]  ;;  %v2146_v55 = vadd.f32 %v13010_v48, %v2057_v17 }
 0x39e   : > { %v2624_v54 = vld [vmem:[#allocation3 + $0x169] sm:$0xff]  ;;  %v2625_v37 = vld [vmem:[#allocation3 + $0x171] sm:$0xff]  ;;  %v11682_v45 = vpop.eup %11681  ;;  %2528 = vst [vmem:[#allocation3 + $0x188] sm:$0xff] %v2495_v27  ;;  %v2329_v22 = vmul.f32 1.442695, %v2273_v3  ;;  %v3578_v0 = vadd.f32 %v13093_v15, %v3577_v16  ;;  %v13172_v49 = vpack.c.bf16 %v2561_v6, %v2560_v28  ;;  %v16443_v3 = vld [vmem:[#allocation16_spill] sm:$0xff] }
 0x39f   : > { %v2928_v33 = vpack.c.bf16 %v2625_v37, %v2624_v54  ;;  %v2368_v12 = vmul.f32 1.6732632, %v11682_v45  ;;  %v16444_v28 = vld [vmem:[#allocation15_spill] sm:$0xff] }
 0x3a0   : > { %11683 = vpow2.f32 %v2329_v22  ;;  %3616 = vmatmul.bf16.gmra.mxu1 %v13172_v49  ;;  %v3667_v40 = vadd.f32 %v3666_v61, %v3578_v0  ;;  %v1970_v16 = vadd.f32 %v16444_v28, %v16443_v3 }
 0x3a1   : > { %3794 = vmatmul.bf16.gmra.mxu3 %v2928_v33  ;;  %v9908_v32 = vadd.f32 -1.6732632, %v2368_v12  ;;  %v2231_v23 = vpop.f32.mrf.mxu0 }
 0x3a2   : > { %v2232_v29 = vadd.f32 %v2231_v23, %v2143_v11  ;;  %v2059_v45 = vadd.f32 %v13015_v57, %v1970_v16 }
 0x3a3   : > { %v2464_v14 = vsel %vm2432_vm8, %v2227_v62, %v9908_v32  ;;  %v3668_v63 = vpop.f32.mrf.mxu2  ;;  %v11424_v62 = vld [vmem:[%s16382_s1 + $0x368] sm:$0xff] }
 0x3a4   : > { %v3755_v43 = vpop.f32.mrf.mxu3  ;;  %v2496_v9 = vmul.f32 1.050701, %v2464_v14  ;;  %v2274_v59 = vmin.f32 %v2232_v29, 0.0  ;;  %3911 = vmatpush.bf16.msrb.mxu1 %v11424_v62  ;;  %v2148_v46 = vadd.f32 %v13023_v8, %v2059_v45  ;;  %vm2434_vm10 = vcmp.gt.f32.partialorder %v2232_v29, 0.0  ;;  %v16446_v45 = vld [vmem:[#allocation19_spill] sm:$0xff] }
 0x3a5   : > { %v13178_v2 = vadd.f32 %v3755_v43, %v3667_v40  ;;  %v3579_v39 = vpop.f32.mrf.mxu1  ;;  %v2562_v48 = vld [vmem:[#allocation3 + $0x187] sm:$0xff] }
 0x3a6   : > { %v11684_v41 = vpop.eup %11683  ;;  %2529 = vst [vmem:[#allocation3 + $0x190] sm:$0xff] %v2496_v9  ;;  %v2331_v44 = vmul.f32 1.442695, %v2274_v59  ;;  %v3580_v1 = vadd.f32 %v13093_v15, %v3579_v39  ;;  %v2936_v4 = vpack.c.bf16 %v2496_v9, %v2495_v27 }
 0x3a7   : > { %v2369_v7 = vmul.f32 1.6732632, %v11684_v41 }
 0x3a8   : > { %11685 = vpow2.f32 %v2331_v44  ;;  %v3669_v10 = vadd.f32 %v3668_v63, %v3580_v1  ;;  %3710 = vmatmul.bf16.gmra.mxu2 %v2936_v4  ;;  %v16445_v1 = vld [vmem:[#allocation17_spill] sm:$0xff] }
 0x3a9   : > { %v9909_v61 = vadd.f32 -1.6732632, %v2369_v7  ;;  %v2234_v31 = vpop.f32.mrf.mxu0  ;;  %v2062_v4 = vadd.f32 %v13035_v24, %v16445_v1 }
 0x3aa   : > { %v2235_v6 = vadd.f32 %v2234_v31, %v2146_v55 }
 0x3ab   : > { %v2465_v54 = vsel %vm2433_vm9, %v2230_v18, %v9909_v61  ;;  %v3671_v37 = vpop.f32.mrf.mxu2  ;;  %v2151_v24 = vadd.f32 %v13042_v47, %v2062_v4 }
 0x3ac   : > { %v3757_v27 = vpop.f32.mrf.mxu3  ;;  %v2497_v22 = vmul.f32 1.050701, %v2465_v54  ;;  %v2275_v0 = vmin.f32 %v2235_v6, 0.0  ;;  %3853 = vmatmul.bf16.gmra.mxu0 %v13078_v21  ;;  %vm2435_vm11 = vcmp.gt.f32.partialorder %v2235_v6, 0.0 }
 0x3ad   : > { %v13188_v33 = vadd.f32 %v3757_v27, %v3669_v10  ;;  %v3582_v12 = vpop.f32.mrf.mxu1  ;;  %v2563_v11 = vld [vmem:[#allocation3 + $0x18f] sm:$0xff]  ;;  %v11434_v10 = vld [vmem:[%s16382_s1 + $0x3b8] sm:$0xff] }
 0x3ae   : > { %v2626_v40 = vld [vmem:[#allocation3 + $0x189] sm:$0xff]  ;;  %v2627_v32 = vld [vmem:[#allocation3 + $0x191] sm:$0xff]  ;;  %v11686_v23 = vpop.eup %11685  ;;  %2530 = vst [vmem:[#allocation3 + $0x1a8] sm:$0xff] %v2497_v22  ;;  %v2333_v14 = vmul.f32 1.442695, %v2275_v0  ;;  %v3583_v18 = vadd.f32 %v13093_v15, %v3582_v12  ;;  %v13192_v43 = vpack.c.bf16 %v2563_v11, %v2562_v48  ;;  %3998 = vmatpush.bf16.msra.mxu2 %v11434_v10  ;;  %v11431_v10 = vld [vmem:[%s16382_s1 + $0x3a0] sm:$0xff] }
 0x3af   : > { %v2937_v63 = vpack.c.bf16 %v2627_v32, %v2626_v40  ;;  %v2370_v57 = vmul.f32 1.6732632, %v11686_v23  ;;  %v16447_v0 = vld [vmem:[#allocation18_spill] sm:$0xff] }
 0x3b0   : > { %11687 = vpow2.f32 %v2333_v14  ;;  %3621 = vmatmul.bf16.gmra.mxu1 %v13192_v43  ;;  %v3672_v21 = vadd.f32 %v3671_v37, %v3583_v18  ;;  %v11433_v37 = vld [vmem:[%s16382_s1 + $0x3b0] sm:$0xff]  ;;  %v1975_v48 = vadd.f32 %v16447_v0, %v16446_v45 }
 0x3b1   : > { %3799 = vmatmul.bf16.gmra.mxu3 %v2937_v63  ;;  %v9910_v17 = vadd.f32 -1.6732632, %v2370_v57  ;;  %v2236_v9 = vpop.f32.mrf.mxu0 }
 0x3b2   : > { %v13196_v59 = vadd.f32 %v2236_v9, %v2148_v46  ;;  %3999 = vmatpush.bf16.msra.mxu2 %v11433_v37  ;;  %v2064_v47 = vadd.f32 %v13051_v56, %v1975_v48  ;;  %v11440_v37 = vld [vmem:[%s16382_s1 + $0x3e8] sm:$0xff] }
 0x3b3   : > { %v2466_v39 = vsel %vm2434_vm10, %v2232_v29, %v9910_v17  ;;  %v3673_v44 = vpop.f32.mrf.mxu2 }
 0x3b4   : > { %v3760_v41 = vpop.f32.mrf.mxu3  ;;  %v2498_v62 = vmul.f32 1.050701, %v2466_v39  ;;  %v2276_v7 = vmin.f32 %v13196_v59, 0.0  ;;  %v2153_v1 = vadd.f32 %v13060_v36, %v2064_v47  ;;  %vm2436_vm12 = vcmp.gt.f32.partialorder %v13196_v59, 0.0 }
 0x3b5   : > { %v13201_v8 = vadd.f32 %v3760_v41, %v3672_v21  ;;  %v3584_v55 = vpop.f32.mrf.mxu1  ;;  %v2564_v18 = vld [vmem:[#allocation3 + $0x1a7] sm:$0xff]  ;;  %v11442_v41 = vld [vmem:[%s16382_s1 + $0x3f8] sm:$0xff] }
 0x3b6   : > { %v11688_v61 = vpop.eup %11687  ;;  %2531 = vst [vmem:[#allocation3 + $0x1b0] sm:$0xff] %v2498_v62  ;;  %v2335_v31 = vmul.f32 1.442695, %v2276_v7  ;;  %v3585_v29 = vadd.f32 %v13093_v15, %v3584_v55  ;;  %v2945_v3 = vpack.c.bf16 %v2498_v62, %v2497_v22  ;;  %4087 = vmatpush.bf16.msra.mxu3 %v11442_v41  ;;  %v11441_v55 = vld [vmem:[%s16382_s1 + $0x3f0] sm:$0xff] }
 0x3b7   : > { %v2371_v28 = vmul.f32 1.6732632, %v11688_v61 }
 0x3b8   : > { %11689 = vpow2.f32 %v2335_v31  ;;  %v3674_v16 = vadd.f32 %v3673_v44, %v3585_v29  ;;  %3715 = vmatmul.bf16.gmra.mxu2 %v2945_v3  ;;  %v16448_v3 = vld [vmem:[#allocation20_spill] sm:$0xff] }
 0x3b9   : > { %v9911_v54 = vadd.f32 -1.6732632, %v2371_v28  ;;  %v2239_v27 = vpop.f32.mrf.mxu0  ;;  %v2067_v28 = vadd.f32 %v13070_v58, %v16448_v3 }
 0x3ba   : > { %v13213_v12 = vadd.f32 %v2239_v27, %v2151_v24  ;;  %4088 = vmatpush.bf16.msra.mxu3 %v11441_v55 }
 0x3bb   : > { %v2467_v22 = vsel %vm2435_vm11, %v2235_v6, %v9911_v54  ;;  %v3676_v40 = vpop.f32.mrf.mxu2 }
 0x3bc   : > { %v3762_v11 = vpop.f32.mrf.mxu3  ;;  %v2499_v32 = vmul.f32 1.050701, %v2467_v22  ;;  %v2277_v23 = vmin.f32 %v13213_v12, 0.0  ;;  %3858 = vmatmul.bf16.gmra.mxu0 %v13101_v42  ;;  %v11432_v42 = vld [vmem:[%s16382_s1 + $0x3a8] sm:$0xff]  ;;  %v11423_v22 = vld [vmem:[%s16382_s1 + $0x360] sm:$0xff]  ;;  %vm2437_vm13 = vcmp.gt.f32.partialorder %v13213_v12, 0.0 }
 0x3bd   : > { %v13217_v14 = vadd.f32 %v3762_v11, %v3674_v16  ;;  %v3587_v63 = vpop.f32.mrf.mxu1  ;;  %v2565_v57 = vld [vmem:[#allocation3 + $0x1af] sm:$0xff]  ;;  %4000 = vmatpush.bf16.msra.mxu2 %v11432_v42  ;;  %3912 = vmatpush.bf16.msrb.mxu1 %v11423_v22 }
 0x3be   : > { %v2628_v46 = vld [vmem:[#allocation3 + $0x1a9] sm:$0xff]  ;;  %v2629_v21 = vld [vmem:[#allocation3 + $0x1b1] sm:$0xff]  ;;  %v11690_v17 = vpop.eup %11689  ;;  %2532 = vst [vmem:[#allocation3 + $0x1c8] sm:$0xff] %v2499_v32  ;;  %v2337_v6 = vmul.f32 1.442695, %v2277_v23  ;;  %v3588_v9 = vadd.f32 %v13093_v15, %v3587_v63  ;;  %v13221_v39 = vpack.c.bf16 %v2565_v57, %v2564_v18  ;;  %4089 = vmatpush.bf16.msra.mxu3 %v11440_v37  ;;  %v16449_v57 = vld [vmem:[#allocation21_spill] sm:$0xff] }
 0x3bf   : > { %v2946_v56 = vpack.c.bf16 %v2629_v21, %v2628_v46  ;;  %v2372_v44 = vmul.f32 1.6732632, %v11690_v17  ;;  %v11422_v23 = vld [vmem:[%s16382_s1 + $0x358] sm:$0xff]  ;;  %v1980_v46 = vadd.f32 %v13080_v52, %v16449_v57  ;;  %v11437_v37 = vld [vmem:[%s16382_s1 + $0x3d0] sm:$0xff] }
 0x3c0   : > { %11691 = vpow2.f32 %v2337_v6  ;;  %3626 = vmatmul.bf16.gmra.mxu1 %v13221_v39  ;;  %v3677_v4 = vadd.f32 %v3676_v40, %v3588_v9  ;;  %v2156_v40 = vadd.f32 %v13075_v30, %v2067_v28  ;;  %v11429_v30 = vld [vmem:[%s16382_s1 + $0x390] sm:$0xff]  ;;  %v11438_v52 = vld [vmem:[%s16382_s1 + $0x3d8] sm:$0xff] }
 0x3c1   : > { %3804 = vmatmul.bf16.gmra.mxu3 %v2946_v56  ;;  %v9912_v62 = vadd.f32 -1.6732632, %v2372_v44  ;;  %v2241_v7 = vpop.f32.mrf.mxu0  ;;  %4001 = vmatpush.bf16.msra.mxu2 %v11431_v10  ;;  %v2069_v56 = vadd.f32 %v13084_v34, %v1980_v46 }
 0x3c2   : > { %v13238_v36 = vadd.f32 %v2241_v7, %v2153_v1  ;;  %3913 = vmatpush.bf16.msrb.mxu1 %v11422_v23  ;;  %v11436_v23 = vld [vmem:[%s16382_s1 + $0x3c8] sm:$0xff] }
 0x3c3   : > { %v2468_v61 = vsel %vm2436_vm12, %v13196_v59, %v9912_v62  ;;  %v3678_v29 = vpop.f32.mrf.mxu2  ;;  %v11430_v59 = vld [vmem:[%s16382_s1 + $0x398] sm:$0xff]  ;;  %v2158_v28 = vadd.f32 %v13088_v53, %v2069_v56 }
 0x3c4   : > { %v3765_v31 = vpop.f32.mrf.mxu3  ;;  %v2500_v24 = vmul.f32 1.050701, %v2468_v61  ;;  %v2278_v16 = vmin.f32 %v13238_v36, 0.0  ;;  %vm2438_vm14 = vcmp.gt.f32.partialorder %v13238_v36, 0.0 }
 0x3c5   : > { %v13244_v54 = vadd.f32 %v3765_v31, %v3677_v4  ;;  %v3589_v27 = vpop.f32.mrf.mxu1  ;;  %4002 = vmatpush.bf16.msra.mxu2 %v11430_v59  ;;  %v2566_v1 = vld [vmem:[#allocation3 + $0x1c7] sm:$0xff] }
 0x3c6   : > { %v11692_v45 = vpop.eup %11691  ;;  %2533 = vst [vmem:[#allocation3 + $0x1d0] sm:$0xff] %v2500_v24  ;;  %v2339_v0 = vmul.f32 1.442695, %v2278_v16  ;;  %v3590_v58 = vadd.f32 %v13093_v15, %v3589_v27  ;;  %v2954_v48 = vpack.c.bf16 %v2500_v24, %v2499_v32  ;;  %v11439_v32 = vld [vmem:[%s16382_s1 + $0x3e0] sm:$0xff]  ;;  %v11420_v59 = vld [vmem:[%s16382_s1 + $0x348] sm:$0xff] }
 0x3c7   : > { %v2373_v11 = vmul.f32 1.6732632, %v11692_v45  ;;  %4090 = vmatpush.bf16.msra.mxu3 %v11439_v32  ;;  %v11427_v45 = vld [vmem:[%s16382_s1 + $0x380] sm:$0xff] }
 0x3c8   : > { %11693 = vpow2.f32 %v2339_v0  ;;  %v3679_v47 = vadd.f32 %v3678_v29, %v3590_v58  ;;  %3720 = vmatmul.bf16.gmra.mxu2 %v2954_v48  ;;  %v11428_v29 = vld [vmem:[%s16382_s1 + $0x388] sm:$0xff] }
 0x3c9   : > { %v9913_v18 = vadd.f32 -1.6732632, %v2373_v11  ;;  %v2244_v63 = vpop.f32.mrf.mxu0  ;;  %4003 = vmatpush.bf16.msra.mxu2 %v11429_v30 }
 0x3ca   : > { %v13269_v21 = vadd.f32 %v2244_v63, %v2156_v40 }
 0x3cb   : > { %v2469_v17 = vsel %vm2437_vm13, %v13213_v12, %v9913_v18  ;;  %v3681_v9 = vpop.f32.mrf.mxu2  ;;  %v11421_v12 = vld [vmem:[%s16382_s1 + $0x350] sm:$0xff]  ;;  %4091 = vmatpush.bf16.msra.mxu3 %v11438_v52  ;;  %v11419_v18 = vld [vmem:[%s16382_s1 + $0x340] sm:$0xff] }
 0x3cc   : > { %v3767_v6 = vpop.f32.mrf.mxu3  ;;  %v2501_v41 = vmul.f32 1.050701, %v2469_v17  ;;  %v2279_v42 = vmin.f32 %v13269_v21, 0.0  ;;  %3863 = vmatmul.bf16.gmra.mxu0 %v13117_v5  ;;  %3914 = vmatpush.bf16.msrb.mxu1 %v11421_v12  ;;  %vm2439_vm15 = vcmp.gt.f32.partialorder %v13269_v21, 0.0 }
 0x3cd   : > { %v13274_v44 = vadd.f32 %v3767_v6, %v3679_v47  ;;  %v3592_v4 = vpop.f32.mrf.mxu1  ;;  %v2567_v62 = vld [vmem:[#allocation3 + $0x1cf] sm:$0xff]  ;;  %4004 = vmatpush.bf16.msra.mxu2 %v11428_v29 }
 0x3ce   : > { %v2630_v34 = vld [vmem:[#allocation3 + $0x1c9] sm:$0xff]  ;;  %v2631_v7 = vld [vmem:[#allocation3 + $0x1d1] sm:$0xff]  ;;  %v11694_v55 = vpop.eup %11693  ;;  %2534 = vst [vmem:[#allocation3 + $0x1e8] sm:$0xff] %v2501_v41  ;;  %v2341_v10 = vmul.f32 1.442695, %v2279_v42  ;;  %v3593_v5 = vadd.f32 %v13093_v15, %v3592_v4  ;;  %v13284_v61 = vpack.c.bf16 %v2567_v62, %v2566_v1 }
 0x3cf   : > { %v2955_v31 = vpack.c.bf16 %v2631_v7, %v2630_v34  ;;  %v2374_v3 = vmul.f32 1.6732632, %v11694_v55  ;;  %4092 = vmatpush.bf16.msra.mxu3 %v11437_v37  ;;  %v2699_v37 = vld [vmem:[#allocation3 + $0x31] sm:$0xff] }
 0x3d0   : > { %11695 = vpow2.f32 %v2341_v10  ;;  %3631 = vmatmul.bf16.gmra.mxu1 %v13284_v61  ;;  %v3682_v24 = vadd.f32 %v3681_v9, %v3593_v5  ;;  %v11435_v9 = vld [vmem:[%s16382_s1 + $0x3c0] sm:$0xff] }
 0x3d1   : > { %3809 = vmatmul.bf16.gmra.mxu3 %v2955_v31  ;;  %v9914_v16 = vadd.f32 -1.6732632, %v2374_v3  ;;  %v2246_v27 = vpop.f32.mrf.mxu0  ;;  %3915 = vmatpush.bf16.msrb.mxu1 %v11420_v59 }
 0x3d2   : > { %v2247_v53 = vadd.f32 %v2246_v27, %v2158_v28  ;;  %4005 = vmatpush.bf16.msra.mxu2 %v11427_v45  ;;  %v2698_v27 = vld [vmem:[#allocation3 + $0x29] sm:$0xff] }
 0x3d3   : > { %v2470_v0 = vsel %vm2438_vm14, %v13238_v36, %v9914_v16  ;;  %v3683_v48 = vpop.f32.mrf.mxu2  ;;  %4093 = vmatpush.bf16.msra.mxu3 %v11436_v23 }
 0x3d4   : > { %v3770_v58 = vpop.f32.mrf.mxu3  ;;  %v2502_v22 = vmul.f32 1.050701, %v2470_v0  ;;  %v2280_v11 = vmin.f32 %v2247_v53, 0.0  ;;  %vm2440_vm0 = vcmp.gt.f32.partialorder %v2247_v53, 0.0 }
 0x3d5   : > { %v13302_v40 = vadd.f32 %v3770_v58, %v3682_v24  ;;  %v3594_v47 = vpop.f32.mrf.mxu1  ;;  %3916 = vmatpush.bf16.msrb.mxu1 %v11419_v18  ;;  %v2568_v4 = vld [vmem:[#allocation3 + $0x1e7] sm:$0xff]  ;;  %v2732_v18 = vld [vmem:[#allocation3 + $0x4f] sm:$0xff] }
 0x3d6   : > { %v11696_v63 = vpop.eup %11695  ;;  %2535 = vst [vmem:[#allocation3 + $0x1f0] sm:$0xff] %v2502_v22  ;;  %v2343_v36 = vmul.f32 1.442695, %v2280_v11  ;;  %v3595_v32 = vadd.f32 %v13093_v15, %v3594_v47  ;;  %v2963_v30 = vpack.c.bf16 %v2502_v22, %v2501_v41 }
 0x3d7   : > { %v2375_v57 = vmul.f32 1.6732632, %v11696_v63  ;;  %4094 = vmatpush.bf16.msra.mxu3 %v11435_v9 }
 0x3d8   : > { %11697 = vpow2.f32 %v2343_v36  ;;  %v3684_v46 = vadd.f32 %v3683_v48, %v3595_v32  ;;  %3725 = vmatmul.bf16.gmra.mxu2 %v2963_v30  ;;  %v2832_v48 = vpack.c.bf16 %v2699_v37, %v2698_v27  ;;  %v2666_v30 = vld [vmem:[#allocation3 + $0x28] sm:$0xff] }
 0x3d9   : > { %v9915_v17 = vadd.f32 -1.6732632, %v2375_v57  ;;  %v3829_v6 = vpop.f32.mrf.mxu0  ;;  %v2731_v57 = vld [vmem:[#allocation3 + $0x47] sm:$0xff] }
 0x3da   : > { %v13316_v56 = vadd.f32 %v3829_v6, %v13103_v35  ;;  %v2833_v6 = vpack.c.bf16 %v2732_v18, %v2731_v57 }
 0x3db   : > { %v2471_v41 = vsel %vm2439_vm15, %v13269_v21, %v9915_v17  ;;  %v3686_v1 = vpop.f32.mrf.mxu2 }
 0x3dc   : > { %v3772_v42 = vpop.f32.mrf.mxu3  ;;  %v2503_v52 = vmul.f32 1.050701, %v2471_v41  ;;  %3868 = vmatmul.bf16.gmra.mxu0 %v13135_v25 }
 0x3dd   : > { %v13319_v12 = vadd.f32 %v3772_v42, %v3684_v46  ;;  %v3597_v62 = vpop.f32.mrf.mxu1  ;;  %v2569_v34 = vld [vmem:[#allocation3 + $0x1ef] sm:$0xff] }
 0x3de   : > { %v2632_v7 = vld [vmem:[#allocation3 + $0x1e9] sm:$0xff]  ;;  %v2633_v55 = vld [vmem:[#allocation3 + $0x1f1] sm:$0xff]  ;;  %v11698_v10 = vpop.eup %11697  ;;  %2536 = vst [vmem:[#allocation3 + $0x208] sm:$0xff] %v2503_v52  ;;  %v3598_v35 = vadd.f32 %v13093_v15, %v3597_v62  ;;  %v13323_v5 = vpack.c.bf16 %v2569_v34, %v2568_v4 }
 0x3df   : > { %v2964_v21 = vpack.c.bf16 %v2633_v55, %v2632_v7  ;;  %v2376_v31 = vmul.f32 1.6732632, %v11698_v10  ;;  %v2700_v52 = vld [vmem:[#allocation3 + $0x49] sm:$0xff]  ;;  %v2701_v4 = vld [vmem:[#allocation3 + $0x51] sm:$0xff] }
 0x3e0   : > { %3636 = vmatmul.bf16.gmra.mxu1 %v13323_v5  ;;  %v3687_v29 = vadd.f32 %v3686_v1, %v3598_v35  ;;  %v2841_v7 = vpack.c.bf16 %v2701_v4, %v2700_v52 }
 0x3e1   : > { %3814 = vmatmul.bf16.gmra.mxu3 %v2964_v21  ;;  %v9916_v3 = vadd.f32 -1.6732632, %v2376_v31  ;;  %v13326_v25 = vpop.f32.mrf.mxu0  ;;  %v2669_v21 = vld [vmem:[#allocation3 + $0x50] sm:$0xff] }
 0x3e2   : > { %v2734_v31 = vld [vmem:[#allocation3 + $0x6f] sm:$0xff] }
 0x3e3   : > { %v2472_v28 = vsel %vm2440_vm0, %v2247_v53, %v9916_v3  ;;  %v3688_v16 = vpop.f32.mrf.mxu2  ;;  %v2667_v53 = vld [vmem:[#allocation3 + $0x30] sm:$0xff] }
 0x3e4   : > { %v3775_v24 = vpop.f32.mrf.mxu3  ;;  %v2504_v59 = vmul.f32 1.050701, %v2472_v28  ;;  %v2831_v17 = vpack.c.bf16 %v2667_v53, %v2666_v30 }
 0x3e5   : > { %v13328_v45 = vadd.f32 %v3775_v24, %v3687_v29  ;;  %v3599_v0 = vpop.f32.mrf.mxu1  ;;  %v2668_v24 = vld [vmem:[#allocation3 + $0x48] sm:$0xff] }
 0x3e6   : > { %2537 = vst [vmem:[#allocation3 + $0x210] sm:$0xff] %v2504_v59  ;;  %v3600_v58 = vadd.f32 %v13093_v15, %v3599_v0  ;;  %v13356_v37 = vpack.c.bf16 %v2669_v21, %v2668_v24 }
 0x3e8   : > { %v3689_v22 = vadd.f32 %v3688_v16, %v3600_v58  ;;  %4006 = vmatmul.bf16.vlgmr.msra.gmra.mxu2 %v2832_v48  ;;  %v2733_v16 = vld [vmem:[#allocation3 + $0x67] sm:$0xff] }
 0x3e9   : > { %v3834_v11 = vpop.f32.mrf.mxu0  ;;  %v2842_v59 = vpack.c.bf16 %v2734_v31, %v2733_v16 }
 0x3ea   : > { %v13332_v47 = vadd.f32 %v3834_v11, %v13141_v50  ;;  %v2702_v11 = vld [vmem:[#allocation3 + $0x69] sm:$0xff] }
 0x3eb   : > { %v3691_v63 = vpop.f32.mrf.mxu2 }
 0x3ec   : > { %v3777_v23 = vpop.f32.mrf.mxu3  ;;  %3873 = vmatmul.bf16.gmra.mxu0 %v13155_v38 }
 0x3ed   : > { %v13334_v36 = vadd.f32 %v3777_v23, %v3689_v22  ;;  %v3602_v32 = vpop.f32.mrf.mxu1 }
 0x3ee   : > { %v3603_v46 = vadd.f32 %v13093_v15, %v3602_v32  ;;  %v13346_v15 = vld [vmem:[%s16383_s2 + $0x1] ss:$0 sm:$0xff] }
 0x3f0   : > { %3917 = vmatmul.bf16.vlgmr.msrb.gmra.mxu1 %v2831_v17  ;;  %v3692_v9 = vadd.f32 %v3691_v63, %v3603_v46  ;;  %v2671_v17 = vld [vmem:[#allocation3 + $0x70] sm:$0xff] }
 0x3f1   : > { %4095 = vmatmul.bf16.vlgmr.msra.gmra.mxu3 %v2833_v6  ;;  %v3836_v50 = vpop.f32.mrf.mxu0 }
 0x3f2   : > { %v13339_v41 = vadd.f32 %v3836_v50, %v13151_v26 }
 0x3f3   : > { %v3693_v1 = vpop.f32.mrf.mxu2 }
 0x3f4   : > { %v3780_v42 = vpop.f32.mrf.mxu3 }
 0x3f5   : > { %v13341_v62 = vadd.f32 %v3780_v42, %v3692_v9  ;;  %v3604_v38 = vpop.f32.mrf.mxu1  ;;  %v2670_v42 = vld [vmem:[#allocation3 + $0x68] sm:$0xff] }
 0x3f6   : > { %v3605_v34 = vadd.f32 %v13346_v15, %v3604_v38  ;;  %v13372_v4 = vpack.c.bf16 %v2671_v17, %v2670_v42 }
 0x3f8   : > { %v3694_v55 = vadd.f32 %v3693_v1, %v3605_v34  ;;  %4011 = vmatmul.bf16.gmra.mxu2 %v2841_v7  ;;  %v2735_v1 = vld [vmem:[#allocation3 + $0x87] sm:$0xff] }
 0x3f9   : > { %v3839_v10 = vpop.f32.mrf.mxu0 }
 0x3fa   : > { %v13350_v26 = vadd.f32 %v3839_v10, %v13161_v60 }
 0x3fb   : > { %v3696_v29 = vpop.f32.mrf.mxu2 }
 0x3fc   : > { %v3782_v35 = vpop.f32.mrf.mxu3  ;;  %3878 = vmatmul.bf16.gmra.mxu0 %v13172_v49  ;;  %v2703_v49 = vld [vmem:[#allocation3 + $0x71] sm:$0xff] }
 0x3fd   : > { %v13352_v3 = vadd.f32 %v3782_v35, %v3694_v55  ;;  %v3607_v28 = vpop.f32.mrf.mxu1  ;;  %v2850_v63 = vpack.c.bf16 %v2703_v49, %v2702_v11  ;;  %v2704_v35 = vld [vmem:[#allocation3 + $0x89] sm:$0xff] }
 0x3fe   : > { %v3608_v27 = vadd.f32 %v13346_v15, %v3607_v28  ;;  %v2672_v11 = vld [vmem:[#allocation3 + $0x88] sm:$0xff] }
 0x3ff   : > { %v2737_v49 = vld [vmem:[#allocation3 + $0xa7] sm:$0xff] }
 0x400   : > { %3922 = vmatmul.bf16.gmra.mxu1 %v13356_v37  ;;  %v3697_v60 = vadd.f32 %v3696_v29, %v3608_v27 }
 0x401   : > { %4100 = vmatmul.bf16.gmra.mxu3 %v2842_v59  ;;  %v3841_v0 = vpop.f32.mrf.mxu0 }
 0x402   : > { %v13360_v58 = vadd.f32 %v3841_v0, %v13168_v19  ;;  %v2736_v19 = vld [vmem:[#allocation3 + $0x8f] sm:$0xff] }
 0x403   : > { %v3698_v22 = vpop.f32.mrf.mxu2  ;;  %v2851_v38 = vpack.c.bf16 %v2736_v19, %v2735_v1 }
 0x404   : > { %v3785_v48 = vpop.f32.mrf.mxu3 }
 0x405   : > { %v13362_v23 = vadd.f32 %v3785_v48, %v3697_v60  ;;  %v3609_v53 = vpop.f32.mrf.mxu1  ;;  %v2673_v60 = vld [vmem:[#allocation3 + $0x90] sm:$0xff] }
 0x406   : > { %v3610_v18 = vadd.f32 %v13346_v15, %v3609_v53 }
 0x408   : > { %v3699_v32 = vadd.f32 %v3698_v22, %v3610_v18  ;;  %4016 = vmatmul.bf16.gmra.mxu2 %v2850_v63  ;;  %v13388_v18 = vpack.c.bf16 %v2673_v60, %v2672_v11 }
 0x409   : > { %v3844_v30 = vpop.f32.mrf.mxu0 }
 0x40a   : > { %v13366_v57 = vadd.f32 %v3844_v30, %v13178_v2 }
 0x40b   : > { %v3701_v6 = vpop.f32.mrf.mxu2 }
 0x40c   : > { %v3787_v46 = vpop.f32.mrf.mxu3  ;;  %3883 = vmatmul.bf16.gmra.mxu0 %v13192_v43  ;;  %v2705_v43 = vld [vmem:[#allocation3 + $0x91] sm:$0xff] }
 0x40d   : > { %v13368_v9 = vadd.f32 %v3787_v46, %v3699_v32  ;;  %v3612_v50 = vpop.f32.mrf.mxu1  ;;  %v2859_v28 = vpack.c.bf16 %v2705_v43, %v2704_v35  ;;  %v11449_v46 = vld [vmem:[%s16382_s1 + $0x430] sm:$0xff] }
 0x40e   : > { %v3613_v52 = vadd.f32 %v13346_v15, %v3612_v50  ;;  %v2707_v50 = vld [vmem:[#allocation3 + $0xb1] sm:$0xff] }
 0x40f   : > { %v2675_v43 = vld [vmem:[#allocation3 + $0xb0] sm:$0xff] }
 0x410   : > { %3927 = vmatmul.bf16.gmra.mxu1 %v13372_v4  ;;  %v3702_v2 = vadd.f32 %v3701_v6, %v3613_v52  ;;  %v2706_v6 = vld [vmem:[#allocation3 + $0xa9] sm:$0xff] }
 0x411   : > { %4105 = vmatmul.bf16.gmra.mxu3 %v2851_v38  ;;  %v3846_v34 = vpop.f32.mrf.mxu0  ;;  %v2868_v38 = vpack.c.bf16 %v2707_v50, %v2706_v6 }
 0x412   : > { %v13376_v7 = vadd.f32 %v3846_v34, %v13188_v33  ;;  %v2738_v33 = vld [vmem:[#allocation3 + $0xaf] sm:$0xff] }
 0x413   : > { %v3703_v10 = vpop.f32.mrf.mxu2  ;;  %v2860_v63 = vpack.c.bf16 %v2738_v33, %v2737_v49  ;;  %v11445_v49 = vld [vmem:[%s16382_s1 + $0x410] sm:$0xff] }
 0x414   : > { %v3790_v55 = vpop.f32.mrf.mxu3 }
 0x415   : > { %v13378_v21 = vadd.f32 %v3790_v55, %v3702_v2  ;;  %v3614_v31 = vpop.f32.mrf.mxu1 }
 0x416   : > { %v3615_v29 = vadd.f32 %v13346_v15, %v3614_v31  ;;  %v2740_v31 = vld [vmem:[#allocation3 + $0xcf] sm:$0xff] }
 0x418   : > { %v3704_v24 = vadd.f32 %v3703_v10, %v3615_v29  ;;  %4021 = vmatmul.bf16.gmra.mxu2 %v2859_v28  ;;  %v11447_v10 = vld [vmem:[%s16382_s1 + $0x420] sm:$0xff] }
 0x419   : > { %v3849_v16 = vpop.f32.mrf.mxu0 }
 0x41a   : > { %v13382_v27 = vadd.f32 %v3849_v16, %v13201_v8  ;;  %v11450_v8 = vld [vmem:[%s16382_s1 + $0x438] sm:$0xff]  ;;  %v2674_v16 = vld [vmem:[#allocation3 + $0xa8] sm:$0xff] }
 0x41b   : > { %v3706_v0 = vpop.f32.mrf.mxu2  ;;  %4176 = vmatpush.bf16.msra.mxu0 %v11450_v8  ;;  %v2708_v8 = vld [vmem:[#allocation3 + $0xc9] sm:$0xff] }
 0x41c   : > { %v3792_v59 = vpop.f32.mrf.mxu3  ;;  %3888 = vmatmul.bf16.gmra.mxu0 %v13221_v39 }
 0x41d   : > { %v13384_v48 = vadd.f32 %v3792_v59, %v3704_v24  ;;  %v3617_v22 = vpop.f32.mrf.mxu1  ;;  %v2739_v59 = vld [vmem:[#allocation3 + $0xc7] sm:$0xff] }
 0x41e   : > { %v3618_v53 = vadd.f32 %v13346_v15, %v3617_v22  ;;  %v2869_v33 = vpack.c.bf16 %v2740_v31, %v2739_v59  ;;  %v2741_v31 = vld [vmem:[#allocation3 + $0xe7] sm:$0xff] }
 0x41f   : > { %4177 = vmatpush.bf16.msra.mxu0 %v11449_v46 }
 0x420   : > { %3932 = vmatmul.bf16.gmra.mxu1 %v13388_v18  ;;  %v3707_v32 = vadd.f32 %v3706_v0, %v3618_v53  ;;  %v11446_v0 = vld [vmem:[%s16382_s1 + $0x418] sm:$0xff] }
 0x421   : > { %4110 = vmatmul.bf16.gmra.mxu3 %v2860_v63  ;;  %v3851_v30 = vpop.f32.mrf.mxu0 }
 0x422   : > { %v13395_v39 = vadd.f32 %v3851_v30, %v13217_v14  ;;  %v11448_v14 = vld [vmem:[%s16382_s1 + $0x428] sm:$0xff] }
 0x423   : > { %v3708_v19 = vpop.f32.mrf.mxu2  ;;  %4178 = vmatpush.bf16.msra.mxu0 %v11448_v14  ;;  %v2677_v14 = vld [vmem:[#allocation3 + $0xd0] sm:$0xff] }
 0x424   : > { %v3795_v17 = vpop.f32.mrf.mxu3 }
 0x425   : > { %v13400_v42 = vadd.f32 %v3795_v17, %v3707_v32  ;;  %v3619_v1 = vpop.f32.mrf.mxu1  ;;  %v2709_v32 = vld [vmem:[#allocation3 + $0xd1] sm:$0xff] }
 0x426   : > { %v3620_v52 = vadd.f32 %v13346_v15, %v3619_v1 }
 0x427   : > { %4179 = vmatpush.bf16.msra.mxu0 %v11447_v10 }
 0x428   : > { %v3709_v2 = vadd.f32 %v3708_v19, %v3620_v52  ;;  %4026 = vmatmul.bf16.gmra.mxu2 %v2868_v38  ;;  %v13431_v19 = vpack.c.bf16 %v2709_v32, %v2708_v8  ;;  %v11443_v52 = vld [vmem:[%s16382_s1 + $0x400] sm:$0xff]  ;;  %v2665_v8 = vld [vmem:[#allocation3 + $0x20f] sm:$0xff] }
 0x429   : > { %v3854_v34 = vpop.f32.mrf.mxu0 }
 0x42a   : > { %v13407_v55 = vadd.f32 %v3854_v34, %v13244_v54  ;;  %v13416_v54 = vpack.c.bf16 %v2675_v43, %v2674_v16  ;;  %v2676_v43 = vld [vmem:[#allocation3 + $0xc8] sm:$0xff] }
 0x42b   : > { %v3711_v29 = vpop.f32.mrf.mxu2  ;;  %4180 = vmatpush.bf16.msra.mxu0 %v11446_v0 }
 0x42c   : > { %v3797_v35 = vpop.f32.mrf.mxu3  ;;  %3893 = vmatmul.bf16.gmra.mxu0 %v13284_v61 }
 0x42d   : > { %v13412_v28 = vadd.f32 %v3797_v35, %v3709_v2  ;;  %v3622_v24 = vpop.f32.mrf.mxu1  ;;  %v2742_v2 = vld [vmem:[#allocation3 + $0xef] sm:$0xff] }
 0x42e   : > { %v3623_v60 = vadd.f32 %v13346_v15, %v3622_v24  ;;  %v2878_v24 = vpack.c.bf16 %v2742_v2, %v2741_v31 }
 0x42f   : > { %4181 = vmatpush.bf16.msra.mxu0 %v11445_v49 }
 0x430   : > { %3937 = vmatmul.bf16.gmra.mxu1 %v13416_v54  ;;  %v3712_v22 = vadd.f32 %v3711_v29, %v3623_v60 }
 0x431   : > { %4115 = vmatmul.bf16.gmra.mxu3 %v2869_v33  ;;  %v3856_v11 = vpop.f32.mrf.mxu0 }
 0x432   : > { %v13423_v61 = vadd.f32 %v3856_v11, %v13274_v44  ;;  %v11444_v44 = vld [vmem:[%s16382_s1 + $0x408] sm:$0xff] }
 0x433   : > { %v3713_v63 = vpop.f32.mrf.mxu2  ;;  %4182 = vmatpush.bf16.msra.mxu0 %v11444_v44 }
 0x434   : > { %v3800_v53 = vpop.f32.mrf.mxu3 }
 0x435   : > { %v13428_v30 = vadd.f32 %v3800_v53, %v3712_v22  ;;  %v3624_v46 = vpop.f32.mrf.mxu1  ;;  %v2711_v22 = vld [vmem:[#allocation3 + $0xf1] sm:$0xff] }
 0x436   : > { %v3625_v17 = vadd.f32 %v13346_v15, %v3624_v46 }
 0x437   : > { %4183 = vmatpush.bf16.msra.mxu0 %v11443_v52  ;;  %v2744_v52 = vld [vmem:[#allocation3 + $0x10f] sm:$0xff] }
 0x438   : > { %v3714_v6 = vadd.f32 %v3713_v63, %v3625_v17  ;;  %4031 = vmatmul.bf16.gmra.mxu2 %v13431_v19  ;;  %v2664_v17 = vld [vmem:[#allocation3 + $0x207] sm:$0xff] }
 0x439   : > { %v3859_v50 = vpop.f32.mrf.mxu0  ;;  %v13462_v44 = vpack.c.bf16 %v2665_v8, %v2664_v17 }
 0x43a   : > { %v13438_v1 = vadd.f32 %v3859_v50, %v13302_v40  ;;  %v13447_v40 = vpack.c.bf16 %v2677_v14, %v2676_v43  ;;  %v2679_v50 = vld [vmem:[#allocation3 + $0xf0] sm:$0xff] }
 0x43b   : > { %v3716_v34 = vpop.f32.mrf.mxu2 }
 0x43c   : > { %v3802_v38 = vpop.f32.mrf.mxu3  ;;  %3898 = vmatmul.bf16.gmra.mxu0 %v13323_v5  ;;  %v2710_v5 = vld [vmem:[#allocation3 + $0xe9] sm:$0xff] }
 0x43d   : > { %v13443_v10 = vadd.f32 %v3802_v38, %v3714_v6  ;;  %v3627_v35 = vpop.f32.mrf.mxu1  ;;  %v13456_v63 = vpack.c.bf16 %v2711_v22, %v2710_v5  ;;  %v2712_v5 = vld [vmem:[#allocation3 + $0x109] sm:$0xff]  ;;  %v2713_v22 = vld [vmem:[#allocation3 + $0x111] sm:$0xff] }
 0x43e   : > { %v3628_v29 = vadd.f32 %v13346_v15, %v3627_v35  ;;  %v2743_v35 = vld [vmem:[#allocation3 + $0x107] sm:$0xff] }
 0x440   : > { %3942 = vmatmul.bf16.gmra.mxu1 %v13447_v40  ;;  %v3717_v16 = vadd.f32 %v3716_v34, %v3628_v29  ;;  %v2678_v34 = vld [vmem:[#allocation3 + $0xe8] sm:$0xff]  ;;  %v2887_v29 = vpack.c.bf16 %v2744_v52, %v2743_v35 }
 0x441   : > { %4120 = vmatmul.bf16.gmra.mxu3 %v2878_v24  ;;  %v3861_v59 = vpop.f32.mrf.mxu0  ;;  %v13468_v31 = vpack.c.bf16 %v2679_v50, %v2678_v34  ;;  %v2681_v50 = vld [vmem:[#allocation3 + $0x110] sm:$0xff]  ;;  %v2680_v35 = vld [vmem:[#allocation3 + $0x108] sm:$0xff] }
 0x442   : > { %v13451_v60 = vadd.f32 %v3861_v59, %v13319_v12  ;;  %v11458_v59 = vld [vmem:[%s16382_s1 + $0x478] sm:$0xff]  ;;  %v2746_v52 = vld [vmem:[#allocation3 + $0x12f] sm:$0xff] }
 0x443   : > { %v3718_v0 = vpop.f32.mrf.mxu2  ;;  %4265 = vmatpush.bf16.msra.mxu1 %v11458_v59 }
 0x444   : > { %v3805_v33 = vpop.f32.mrf.mxu3 }
 0x445   : > { %v13453_v11 = vadd.f32 %v3805_v33, %v3717_v16  ;;  %v3629_v49 = vpop.f32.mrf.mxu1 }
 0x446   : > { %v3630_v53 = vadd.f32 %v13346_v15, %v3629_v49 }
 0x448   : > { %v3719_v32 = vadd.f32 %v3718_v0, %v3630_v53  ;;  %4036 = vmatmul.bf16.gmra.mxu2 %v13456_v63 }
 0x449   : > { %v3864_v46 = vpop.f32.mrf.mxu0 }
 0x44a   : > { %v13460_v12 = vadd.f32 %v3864_v46, %v13328_v45 }
 0x44b   : > { %v3721_v38 = vpop.f32.mrf.mxu2 }
 0x44c   : > { %v3807_v6 = vpop.f32.mrf.mxu3  ;;  %3903 = vmatmul.bf16.gmra.mxu0 %v13462_v44 }
 0x44d   : > { %v13464_v14 = vadd.f32 %v3807_v6, %v3719_v32  ;;  %v3632_v2 = vpop.f32.mrf.mxu1  ;;  %v13480_v32 = vpack.c.bf16 %v2713_v22, %v2712_v5  ;;  %v2714_v22 = vld [vmem:[#allocation3 + $0x129] sm:$0xff] }
 0x44e   : > { %v3633_v43 = vadd.f32 %v13346_v15, %v3632_v2 }
 0x450   : > { %3947 = vmatmul.bf16.gmra.mxu1 %v13468_v31  ;;  %v3722_v45 = vadd.f32 %v3721_v38, %v3633_v43  ;;  %v2745_v43 = vld [vmem:[#allocation3 + $0x127] sm:$0xff] }
 0x451   : > { %4125 = vmatmul.bf16.gmra.mxu3 %v2887_v29  ;;  %v3866_v24 = vpop.f32.mrf.mxu0 }
 0x452   : > { %v13472_v16 = vadd.f32 %v3866_v24, %v13334_v36  ;;  %v2896_v24 = vpack.c.bf16 %v2746_v52, %v2745_v43  ;;  %v3565_v52 = vadd.f32 %v13346_v15, %v13125_v20 }
 0x453   : > { %v3723_v0 = vpop.f32.mrf.mxu2 }
 0x454   : > { %v3810_v33 = vpop.f32.mrf.mxu3 }
 0x455   : > { %v13477_v49 = vadd.f32 %v3810_v33, %v3722_v45  ;;  %v3634_v53 = vpop.f32.mrf.mxu1  ;;  %v13490_v45 = vpack.c.bf16 %v2681_v50, %v2680_v35  ;;  %v2748_v35 = vld [vmem:[#allocation3 + $0x14f] sm:$0xff] }
 0x456   : > { %v3635_v8 = vadd.f32 %v13346_v15, %v3634_v53 }
 0x458   : > { %v3724_v46 = vadd.f32 %v3723_v0, %v3635_v8  ;;  %4041 = vmatmul.bf16.gmra.mxu2 %v13480_v32 }
 0x459   : > { %v3869_v36 = vpop.f32.mrf.mxu0 }
 0x45a   : > { %v13484_v17 = vadd.f32 %v3869_v36, %v13341_v62 }
 0x45b   : > { %v3726_v38 = vpop.f32.mrf.mxu2 }
 0x45c   : > { %v3812_v6 = vpop.f32.mrf.mxu3  ;;  %4184 = vmatmul.bf16.vlgmr.msra.gmra.mxu0 %v13356_v37  ;;  %v2715_v37 = vld [vmem:[#allocation3 + $0x131] sm:$0xff] }
 0x45d   : > { %v13486_v2 = vadd.f32 %v3812_v6, %v3724_v46  ;;  %v3637_v34 = vpop.f32.mrf.mxu1  ;;  %v13499_v36 = vpack.c.bf16 %v2715_v37, %v2714_v22 }
 0x45e   : > { %v3638_v29 = vadd.f32 %v13346_v15, %v3637_v34  ;;  %v2683_v34 = vld [vmem:[#allocation3 + $0x130] sm:$0xff] }
 0x460   : > { %3952 = vmatmul.bf16.gmra.mxu1 %v13490_v45  ;;  %v3727_v62 = vadd.f32 %v3726_v38, %v3638_v29 }
 0x461   : > { %4130 = vmatmul.bf16.gmra.mxu3 %v2896_v24  ;;  %v3871_v59 = vpop.f32.mrf.mxu0 }
 0x462   : > { %v13494_v33 = vadd.f32 %v3871_v59, %v13352_v3  ;;  %v2747_v59 = vld [vmem:[#allocation3 + $0x147] sm:$0xff] }
 0x463   : > { %v3728_v5 = vpop.f32.mrf.mxu2  ;;  %v2905_v20 = vpack.c.bf16 %v2748_v35, %v2747_v59  ;;  %v2750_v59 = vld [vmem:[#allocation3 + $0x16f] sm:$0xff] }
 0x464   : > { %v3815_v0 = vpop.f32.mrf.mxu3 }
 0x465   : > { %v13496_v53 = vadd.f32 %v3815_v0, %v3727_v62  ;;  %v3639_v8 = vpop.f32.mrf.mxu1  ;;  %v2682_v62 = vld [vmem:[#allocation3 + $0x128] sm:$0xff]  ;;  %v3654_v0 = vadd.f32 %v13121_v13, %v3565_v52 }
 0x466   : > { %v3640_v46 = vadd.f32 %v13346_v15, %v3639_v8  ;;  %v13512_v22 = vpack.c.bf16 %v2683_v34, %v2682_v62  ;;  %v2685_v62 = vld [vmem:[#allocation3 + $0x150] sm:$0xff] }
 0x467   : > { %v3743_v37 = vadd.f32 %v13130_v51, %v3654_v0 }
 0x468   : > { %v3729_v6 = vadd.f32 %v3728_v5, %v3640_v46  ;;  %4046 = vmatmul.bf16.gmra.mxu2 %v13499_v36 }
 0x469   : > { %v3874_v50 = vpop.f32.mrf.mxu0 }
 0x46a   : > { %v13505_v3 = vadd.f32 %v3874_v50, %v13362_v23  ;;  %v3832_v50 = vadd.f32 %v13326_v25, %v3743_v37 }
 0x46b   : > { %v4007_v43 = vpop.f32.mrf.mxu2 }
 0x46c   : > { %v3817_v38 = vpop.f32.mrf.mxu3  ;;  %4189 = vmatmul.bf16.gmra.mxu0 %v13372_v4  ;;  %v11457_v4 = vld [vmem:[%s16382_s1 + $0x470] sm:$0xff] }
 0x46d   : > { %v13507_v29 = vadd.f32 %v3817_v38, %v3729_v6  ;;  %v3918_v24 = vpop.f32.mrf.mxu1  ;;  %v2717_v6 = vld [vmem:[#allocation3 + $0x151] sm:$0xff]  ;;  %4266 = vmatpush.bf16.msra.mxu1 %v11457_v4 }
 0x46e   : > { %v3919_v5 = vadd.f32 %v3918_v24, %v13316_v56  ;;  %v2716_v56 = vld [vmem:[#allocation3 + $0x149] sm:$0xff] }
 0x46f   : > { %v13525_v35 = vpack.c.bf16 %v2717_v6, %v2716_v56 }
 0x470   : > { %3957 = vmatmul.bf16.gmra.mxu1 %v13512_v22  ;;  %v4008_v15 = vadd.f32 %v4007_v43, %v3919_v5 }
 0x471   : > { %4135 = vmatmul.bf16.gmra.mxu3 %v2905_v20  ;;  %v3876_v23 = vpop.f32.mrf.mxu0  ;;  %v2684_v20 = vld [vmem:[#allocation3 + $0x148] sm:$0xff] }
 0x472   : > { %v13517_v8 = vadd.f32 %v3876_v23, %v13368_v9  ;;  %v13535_v37 = vpack.c.bf16 %v2685_v62, %v2684_v20 }
 0x473   : > { %v4009_v46 = vpop.f32.mrf.mxu2 }
 0x474   : > { %v4096_v13 = vpop.f32.mrf.mxu3 }
 0x475   : > { %v13523_v52 = vadd.f32 %v4096_v13, %v4008_v15  ;;  %v3920_v38 = vpop.f32.mrf.mxu1  ;;  %v2749_v15 = vld [vmem:[#allocation3 + $0x167] sm:$0xff] }
 0x476   : > { %v3921_v34 = vadd.f32 %v3920_v38, %v3832_v50  ;;  %v2914_v4 = vpack.c.bf16 %v2750_v59, %v2749_v15  ;;  %v2718_v50 = vld [vmem:[#allocation3 + $0x169] sm:$0xff] }
 0x478   : > { %v4010_v51 = vadd.f32 %v4009_v46, %v3921_v34  ;;  %4051 = vmatmul.bf16.gmra.mxu2 %v13525_v35 }
 0x479   : > { %v3879_v9 = vpop.f32.mrf.mxu0 }
 0x47a   : > { %v13529_v43 = vadd.f32 %v3879_v9, %v13378_v21 }
 0x47b   : > { %v4012_v0 = vpop.f32.mrf.mxu2 }
 0x47c   : > { %v4098_v24 = vpop.f32.mrf.mxu3  ;;  %4194 = vmatmul.bf16.gmra.mxu0 %v13388_v18  ;;  %v2719_v18 = vld [vmem:[#allocation3 + $0x171] sm:$0xff] }
 0x47d   : > { %v13531_v5 = vadd.f32 %v4098_v24, %v4010_v51  ;;  %v3923_v25 = vpop.f32.mrf.mxu1  ;;  %v2922_v51 = vpack.c.bf16 %v2719_v18, %v2718_v50 }
 0x47e   : > { %v3924_v23 = vadd.f32 %v3923_v25, %v13332_v47 }
 0x480   : > { %3962 = vmatmul.bf16.gmra.mxu1 %v13535_v37  ;;  %v4013_v21 = vadd.f32 %v4012_v0, %v3924_v23  ;;  %v2687_v0 = vld [vmem:[#allocation3 + $0x170] sm:$0xff]  ;;  %v2686_v23 = vld [vmem:[#allocation3 + $0x168] sm:$0xff] }
 0x481   : > { %4140 = vmatmul.bf16.gmra.mxu3 %v2914_v4  ;;  %v3881_v13 = vpop.f32.mrf.mxu0  ;;  %v2751_v4 = vld [vmem:[#allocation3 + $0x187] sm:$0xff] }
 0x482   : > { %v13539_v46 = vadd.f32 %v3881_v13, %v13384_v48  ;;  %v2752_v48 = vld [vmem:[#allocation3 + $0x18f] sm:$0xff] }
 0x483   : > { %v4014_v6 = vpop.f32.mrf.mxu2  ;;  %v2923_v13 = vpack.c.bf16 %v2752_v48, %v2751_v4 }
 0x484   : > { %v4101_v56 = vpop.f32.mrf.mxu3 }
 0x485   : > { %v13541_v38 = vadd.f32 %v4101_v56, %v4013_v21  ;;  %v3925_v34 = vpop.f32.mrf.mxu1  ;;  %v13551_v21 = vpack.c.bf16 %v2687_v0, %v2686_v23 }
 0x486   : > { %v3926_v47 = vadd.f32 %v3925_v34, %v13339_v41  ;;  %v2720_v34 = vld [vmem:[#allocation3 + $0x189] sm:$0xff] }
 0x488   : > { %v4015_v9 = vadd.f32 %v4014_v6, %v3926_v47  ;;  %4056 = vmatmul.bf16.gmra.mxu2 %v2922_v51  ;;  %v2721_v47 = vld [vmem:[#allocation3 + $0x191] sm:$0xff] }
 0x489   : > { %v3884_v24 = vpop.f32.mrf.mxu0 }
 0x48a   : > { %v13545_v62 = vadd.f32 %v3884_v24, %v13400_v42  ;;  %v2931_v24 = vpack.c.bf16 %v2721_v47, %v2720_v34 }
 0x48b   : > { %v4017_v25 = vpop.f32.mrf.mxu2 }
 0x48c   : > { %v4103_v59 = vpop.f32.mrf.mxu3  ;;  %4199 = vmatmul.bf16.gmra.mxu0 %v13416_v54  ;;  %v11456_v54 = vld [vmem:[%s16382_s1 + $0x468] sm:$0xff] }
 0x48d   : > { %v13547_v20 = vadd.f32 %v4103_v59, %v4015_v9  ;;  %v3928_v15 = vpop.f32.mrf.mxu1  ;;  %4267 = vmatpush.bf16.msra.mxu1 %v11456_v54 }
 0x48e   : > { %v3929_v41 = vadd.f32 %v3928_v15, %v13350_v26  ;;  %v2754_v15 = vld [vmem:[#allocation3 + $0x1af] sm:$0xff] }
 0x490   : > { %3967 = vmatmul.bf16.gmra.mxu1 %v13551_v21  ;;  %v4018_v42 = vadd.f32 %v4017_v25, %v3929_v41  ;;  %v2689_v25 = vld [vmem:[#allocation3 + $0x190] sm:$0xff] }
 0x491   : > { %4145 = vmatmul.bf16.gmra.mxu3 %v2923_v13  ;;  %v3886_v56 = vpop.f32.mrf.mxu0  ;;  %v2688_v13 = vld [vmem:[#allocation3 + $0x188] sm:$0xff] }
 0x492   : > { %v13555_v6 = vadd.f32 %v3886_v56, %v13412_v28  ;;  %v13570_v56 = vpack.c.bf16 %v2689_v25, %v2688_v13 }
 0x493   : > { %v4019_v18 = vpop.f32.mrf.mxu2 }
 0x494   : > { %v4106_v50 = vpop.f32.mrf.mxu3 }
 0x495   : > { %v13560_v26 = vadd.f32 %v4106_v50, %v4018_v42  ;;  %v3930_v51 = vpop.f32.mrf.mxu1  ;;  %v2753_v42 = vld [vmem:[#allocation3 + $0x1a7] sm:$0xff] }
 0x496   : > { %v3931_v9 = vadd.f32 %v3930_v51, %v13360_v58  ;;  %v2932_v54 = vpack.c.bf16 %v2754_v15, %v2753_v42  ;;  %v2722_v51 = vld [vmem:[#allocation3 + $0x1a9] sm:$0xff] }
 0x498   : > { %v4020_v59 = vadd.f32 %v4019_v18, %v3931_v9  ;;  %4061 = vmatmul.bf16.gmra.mxu2 %v2931_v24 }
 0x499   : > { %v3889_v0 = vpop.f32.mrf.mxu0 }
 0x49a   : > { %v13564_v28 = vadd.f32 %v3889_v0, %v13428_v30 }
 0x49b   : > { %v4022_v23 = vpop.f32.mrf.mxu2 }
 0x49c   : > { %v4108_v48 = vpop.f32.mrf.mxu3  ;;  %4204 = vmatmul.bf16.gmra.mxu0 %v13447_v40  ;;  %v2723_v40 = vld [vmem:[#allocation3 + $0x1b1] sm:$0xff] }
 0x49d   : > { %v13566_v4 = vadd.f32 %v4108_v48, %v4020_v59  ;;  %v3933_v41 = vpop.f32.mrf.mxu1  ;;  %v2940_v59 = vpack.c.bf16 %v2723_v40, %v2722_v51 }
 0x49e   : > { %v3934_v58 = vadd.f32 %v3933_v41, %v13366_v57 }
 0x4a0   : > { %3972 = vmatmul.bf16.gmra.mxu1 %v13570_v56  ;;  %v4023_v30 = vadd.f32 %v4022_v23, %v3934_v58  ;;  %v2691_v23 = vld [vmem:[#allocation3 + $0x1b0] sm:$0xff]  ;;  %v2690_v58 = vld [vmem:[#allocation3 + $0x1a8] sm:$0xff] }
 0x4a1   : > { %4150 = vmatmul.bf16.gmra.mxu3 %v2932_v54  ;;  %v3891_v50 = vpop.f32.mrf.mxu0  ;;  %v2755_v54 = vld [vmem:[#allocation3 + $0x1c7] sm:$0xff] }
 0x4a2   : > { %v13574_v18 = vadd.f32 %v3891_v50, %v13443_v10  ;;  %v2756_v10 = vld [vmem:[#allocation3 + $0x1cf] sm:$0xff] }
 0x4a3   : > { %v4024_v47 = vpop.f32.mrf.mxu2  ;;  %v2941_v50 = vpack.c.bf16 %v2756_v10, %v2755_v54  ;;  %v2758_v10 = vld [vmem:[#allocation3 + $0x1ef] sm:$0xff]  ;;  %v2757_v54 = vld [vmem:[#allocation3 + $0x1e7] sm:$0xff] }
 0x4a4   : > { %v4111_v34 = vpop.f32.mrf.mxu3 }
 0x4a5   : > { %v13576_v9 = vadd.f32 %v4111_v34, %v4023_v30  ;;  %v3935_v24 = vpop.f32.mrf.mxu1  ;;  %v13586_v30 = vpack.c.bf16 %v2691_v23, %v2690_v58  ;;  %v2693_v23 = vld [vmem:[#allocation3 + $0x1d0] sm:$0xff]  ;;  %v2692_v58 = vld [vmem:[#allocation3 + $0x1c8] sm:$0xff] }
 0x4a6   : > { %v3936_v57 = vadd.f32 %v3935_v24, %v13376_v7  ;;  %v2724_v24 = vld [vmem:[#allocation3 + $0x1c9] sm:$0xff] }
 0x4a8   : > { %v4025_v0 = vadd.f32 %v4024_v47, %v3936_v57  ;;  %4066 = vmatmul.bf16.gmra.mxu2 %v2940_v59 }
 0x4a9   : > { %v3894_v48 = vpop.f32.mrf.mxu0 }
 0x4aa   : > { %v13580_v25 = vadd.f32 %v3894_v48, %v13453_v11 }
 0x4ab   : > { %v4027_v41 = vpop.f32.mrf.mxu2 }
 0x4ac   : > { %v4113_v15 = vpop.f32.mrf.mxu3  ;;  %4209 = vmatmul.bf16.gmra.mxu0 %v13468_v31  ;;  %v11455_v31 = vld [vmem:[%s16382_s1 + $0x460] sm:$0xff] }
 0x4ad   : > { %v13582_v13 = vadd.f32 %v4113_v15, %v4025_v0  ;;  %v3938_v42 = vpop.f32.mrf.mxu1  ;;  %4268 = vmatpush.bf16.msra.mxu1 %v11455_v31 }
 0x4ae   : > { %v3939_v7 = vadd.f32 %v3938_v42, %v13382_v27  ;;  %v2725_v27 = vld [vmem:[#allocation3 + $0x1d1] sm:$0xff] }
 0x4af   : > { %v2949_v48 = vpack.c.bf16 %v2725_v27, %v2724_v24 }
 0x4b0   : > { %3977 = vmatmul.bf16.gmra.mxu1 %v13586_v30  ;;  %v4028_v11 = vadd.f32 %v4027_v41, %v3939_v7 }
 0x4b1   : > { %4155 = vmatmul.bf16.gmra.mxu3 %v2941_v50  ;;  %v3896_v34 = vpop.f32.mrf.mxu0  ;;  %v13607_v50 = vpack.c.bf16 %v2693_v23, %v2692_v58  ;;  %v11452_v23 = vld [vmem:[%s16382_s1 + $0x448] sm:$0xff] }
 0x4b2   : > { %v13590_v47 = vadd.f32 %v3896_v34, %v13464_v14 }
 0x4b3   : > { %v13595_v40 = vpop.f32.mrf.mxu2 }
 0x4b4   : > { %v4116_v51 = vpop.f32.mrf.mxu3 }
 0x4b5   : > { %v13597_v57 = vadd.f32 %v4116_v51, %v4028_v11  ;;  %v3940_v59 = vpop.f32.mrf.mxu1  ;;  %v2726_v51 = vld [vmem:[#allocation3 + $0x1e9] sm:$0xff] }
 0x4b6   : > { %v13600_v0 = vadd.f32 %v3940_v59, %v13395_v39  ;;  %v2950_v39 = vpack.c.bf16 %v2758_v10, %v2757_v54  ;;  %v2695_v10 = vld [vmem:[#allocation3 + $0x1f0] sm:$0xff] }
 0x4b8   : > { %4071 = vmatmul.bf16.gmra.mxu2 %v2949_v48  ;;  %v11453_v48 = vld [vmem:[%s16382_s1 + $0x450] sm:$0xff] }
 0x4b9   : > { %v3899_v14 = vpop.f32.mrf.mxu0 }
 0x4ba   : > { %v13603_v15 = vadd.f32 %v3899_v14, %v13477_v49 }
 0x4bb   : > { %v4032_v41 = vpop.f32.mrf.mxu2 }
 0x4bc   : > { %4214 = vmatmul.bf16.gmra.mxu0 %v13490_v45  ;;  %v11454_v45 = vld [vmem:[%s16382_s1 + $0x458] sm:$0xff] }
 0x4bd   : > { %v3943_v42 = vpop.f32.mrf.mxu1  ;;  %4269 = vmatpush.bf16.msra.mxu1 %v11454_v45  ;;  %v2729_v45 = vld [vmem:[#allocation3 + $0x211] sm:$0xff] }
 0x4be   : > { %v3944_v7 = vadd.f32 %v3943_v42, %v13407_v55  ;;  %v2727_v55 = vld [vmem:[#allocation3 + $0x1f1] sm:$0xff]  ;;  %v2694_v42 = vld [vmem:[#allocation3 + $0x1e8] sm:$0xff] }
 0x4bf   : > { %v2958_v59 = vpack.c.bf16 %v2727_v55, %v2726_v51  ;;  %v13634_v54 = vpack.c.bf16 %v2695_v10, %v2694_v42 }
 0x4c0   : > { %3982 = vmatmul.bf16.gmra.mxu1 %v13607_v50  ;;  %v13610_v11 = vadd.f32 %v4032_v41, %v3944_v7 }
 0x4c1   : > { %4160 = vmatmul.bf16.gmra.mxu3 %v2950_v39  ;;  %v3901_v49 = vpop.f32.mrf.mxu0  ;;  %4270 = vmatpush.bf16.msra.mxu1 %v11453_v48  ;;  %v2761_v48 = vld [vmem:[#allocation3 + $0x227] sm:$0xff] }
 0x4c2   : > { %v13613_v34 = vadd.f32 %v3901_v49, %v13486_v2 }
 0x4c3   : > { %v13618_v31 = vpop.f32.mrf.mxu2 }
 0x4c5   : > { %v3945_v24 = vpop.f32.mrf.mxu1  ;;  %4271 = vmatpush.bf16.msra.mxu1 %v11452_v23  ;;  %v2697_v23 = vld [vmem:[#allocation3 + $0x210] sm:$0xff] }
 0x4c6   : > { %v13621_v27 = vadd.f32 %v3945_v24, %v13423_v61 }
 0x4c8   : > { %4076 = vmatmul.bf16.gmra.mxu2 %v2958_v59 }
 0x4c9   : > { %v3904_v2 = vpop.f32.mrf.mxu0 }
 0x4ca   : > { %v13627_v14 = vadd.f32 %v3904_v2, %v13496_v53  ;;  %v11451_v53 = vld [vmem:[%s16382_s1 + $0x440] sm:$0xff] }
 0x4cb   : > { %v4037_v41 = vpop.f32.mrf.mxu2  ;;  %4272 = vmatpush.bf16.msra.mxu1 %v11451_v53 }
 0x4cc   : > { %4219 = vmatmul.bf16.gmra.mxu0 %v13512_v22 }
 0x4cd   : > { %v3948_v61 = vpop.f32.mrf.mxu1 }
 0x4ce   : > { %v3949_v58 = vadd.f32 %v3948_v61, %v13438_v1  ;;  %v2728_v1 = vld [vmem:[#allocation3 + $0x209] sm:$0xff] }
 0x4cf   : > { %v2967_v24 = vpack.c.bf16 %v2729_v45, %v2728_v1  ;;  %v2696_v61 = vld [vmem:[#allocation3 + $0x208] sm:$0xff] }
 0x4d0   : > { %3987 = vmatmul.bf16.gmra.mxu1 %v13634_v54  ;;  %v13641_v7 = vadd.f32 %v4037_v41, %v3949_v58  ;;  %v13656_v58 = vpack.c.bf16 %v2697_v23, %v2696_v61 }
 0x4d1   : > { %4165 = vmatmul.bf16.gmra.mxu3 %v13462_v44  ;;  %v3906_v39 = vpop.f32.mrf.mxu0  ;;  %v2762_v44 = vld [vmem:[#allocation3 + $0x22f] sm:$0xff] }
 0x4d2   : > { %v13644_v22 = vadd.f32 %v3906_v39, %v13507_v29  ;;  %v2968_v29 = vpack.c.bf16 %v2762_v44, %v2761_v48 }
 0x4d3   : > { %v13646_v49 = vpop.f32.mrf.mxu2 }
 0x4d5   : > { %v3950_v51 = vpop.f32.mrf.mxu1 }
 0x4d6   : > { %v13649_v55 = vadd.f32 %v3950_v51, %v13451_v60 }
 0x4d8   : > { %4081 = vmatmul.bf16.gmra.mxu2 %v2967_v24  ;;  %v2795_v24 = vld [vmem:[#allocation3 + $0x49] sm:$0xff] }
 0x4d9   : > { %v4185_v59 = vpop.f32.mrf.mxu0 }
 0x4da   : > { %v13652_v2 = vadd.f32 %v4185_v59, %v13523_v52  ;;  %v2796_v59 = vld [vmem:[#allocation3 + $0x51] sm:$0xff] }
 0x4db   : > { %v4042_v10 = vpop.f32.mrf.mxu2  ;;  %v2835_v23 = vpack.c.bf16 %v2796_v59, %v2795_v24 }
 0x4dc   : > { %4224 = vmatmul.bf16.gmra.mxu0 %v13535_v37 }
 0x4dd   : > { %v3953_v41 = vpop.f32.mrf.mxu1 }
 0x4de   : > { %v3954_v42 = vadd.f32 %v3953_v41, %v13460_v12  ;;  %v11466_v12 = vld [vmem:[%s16382_s1 + $0x4b8] sm:$0xff] }
 0x4df   : > { %5656 = vmatpush.bf16.msrb.mxu2 %v11466_v12 }
 0x4e0   : > { %3992 = vmatmul.bf16.gmra.mxu1 %v13656_v58  ;;  %v13659_v60 = vadd.f32 %v4042_v10, %v3954_v42 }
 0x4e1   : > { %4170 = vmatmul.bf16.gmra.mxu3 %v2968_v29  ;;  %v4187_v53 = vpop.f32.mrf.mxu0 }
 0x4e2   : > { %v13662_v52 = vadd.f32 %v4187_v53, %v13531_v5  ;;  %v2797_v53 = vld [vmem:[#allocation3 + $0x69] sm:$0xff] }
 0x4e3   : > { %v13664_v39 = vpop.f32.mrf.mxu2 }
 0x4e5   : > { %v3955_v1 = vpop.f32.mrf.mxu1 }
 0x4e6   : > { %v13667_v37 = vadd.f32 %v3955_v1, %v13472_v16 }
 0x4e9   : > { %v4190_v45 = vpop.f32.mrf.mxu0 }
 0x4ea   : > { %v13673_v51 = vadd.f32 %v4190_v45, %v13541_v38 }
 0x4eb   : > { %v4047_v48 = vpop.f32.mrf.mxu2 }
 0x4ec   : > { %4229 = vmatmul.bf16.gmra.mxu0 %v13551_v21 }
 0x4ed   : > { %v3958_v5 = vpop.f32.mrf.mxu1 }
 0x4ee   : > { %v3959_v44 = vadd.f32 %v3958_v5, %v13484_v17  ;;  %v2798_v17 = vld [vmem:[#allocation3 + $0x71] sm:$0xff] }
 0x4f0   : > { %4273 = vmatmul.bf16.vlgmr.msra.gmra.mxu1 %v2835_v23  ;;  %v13677_v16 = vadd.f32 %v4047_v48, %v3959_v44  ;;  %v2799_v23 = vld [vmem:[#allocation3 + $0x89] sm:$0xff] }
 0x4f1   : > { %v4192_v10 = vpop.f32.mrf.mxu0 }
 0x4f2   : > { %v13680_v29 = vadd.f32 %v4192_v10, %v13547_v20  ;;  %v2844_v20 = vpack.c.bf16 %v2798_v17, %v2797_v53  ;;  %v2800_v10 = vld [vmem:[#allocation3 + $0x91] sm:$0xff]  ;;  %v13712_v17 = vpop.f32.mrf.mxu3 }
 0x4f3   : > { %v13682_v41 = vpop.f32.mrf.mxu2  ;;  %v2853_v53 = vpack.c.bf16 %v2800_v10, %v2799_v23 }
 0x4f5   : > { %v3960_v38 = vpop.f32.mrf.mxu1 }
 0x4f6   : > { %v13685_v61 = vadd.f32 %v3960_v38, %v13494_v33 }
 0x4f9   : > { %v4195_v42 = vpop.f32.mrf.mxu0 }
 0x4fa   : > { %v13688_v21 = vadd.f32 %v4195_v42, %v13560_v26 }
 0x4fb   : > { %v4052_v1 = vpop.f32.mrf.mxu2 }
 0x4fc   : > { %4234 = vmatmul.bf16.gmra.mxu0 %v13570_v56  ;;  %v11465_v56 = vld [vmem:[%s16382_s1 + $0x4b0] sm:$0xff] }
 0x4fd   : > { %v3963_v12 = vpop.f32.mrf.mxu1  ;;  %5657 = vmatpush.bf16.msrb.mxu2 %v11465_v56  ;;  %v2802_v56 = vld [vmem:[#allocation3 + $0xb1] sm:$0xff] }
 0x4fe   : > { %v3964_v45 = vadd.f32 %v3963_v12, %v13505_v3 }
 0x500   : > { %4278 = vmatmul.bf16.gmra.mxu1 %v2844_v20  ;;  %v13692_v24 = vadd.f32 %v4052_v1, %v3964_v45 }
 0x501   : > { %v4197_v59 = vpop.f32.mrf.mxu0 }
 0x502   : > { %v13695_v33 = vadd.f32 %v4197_v59, %v13566_v4 }
 0x503   : > { %v13697_v48 = vpop.f32.mrf.mxu2 }
 0x505   : > { %v3965_v26 = vpop.f32.mrf.mxu1 }
 0x506   : > { %v13700_v5 = vadd.f32 %v3965_v26, %v13517_v8  ;;  %v2801_v26 = vld [vmem:[#allocation3 + $0xa9] sm:$0xff] }
 0x507   : > { %v2862_v10 = vpack.c.bf16 %v2802_v56, %v2801_v26 }
 0x509   : > { %v4200_v3 = vpop.f32.mrf.mxu0 }
 0x50a   : > { %v13706_v44 = vadd.f32 %v4200_v3, %v13576_v9 }
 0x50b   : > { %v4057_v38 = vpop.f32.mrf.mxu2 }
 0x50c   : > { %4239 = vmatmul.bf16.gmra.mxu0 %v13586_v30 }
 0x50d   : > { %v3968_v4 = vpop.f32.mrf.mxu1 }
 0x50e   : > { %v3969_v42 = vadd.f32 %v3968_v4, %v13529_v43  ;;  %v13725_v43 = vpop.f32.mrf.mxu3 }
 0x510   : > { %4283 = vmatmul.bf16.gmra.mxu1 %v2853_v53  ;;  %v13710_v8 = vadd.f32 %v4057_v38, %v3969_v42 }
 0x511   : > { %v4202_v1 = vpop.f32.mrf.mxu0 }
 0x512   : > { %16450 = vst [vmem:[#allocation22_spill] sm:$0xff] %v13710_v8  ;;  %v13715_v12 = vadd.f32 %v4202_v1, %v13582_v13 }
 0x513   : > { %v13717_v9 = vpop.f32.mrf.mxu2 }
 0x514   : > { %16451 = vst [vmem:[#allocation5_spill] sm:$0xff] %v13717_v9  ;;  %v2814_v9 = vld [vmem:[#allocation3 + $0x171] sm:$0xff] }
 0x515   : > { %v3970_v45 = vpop.f32.mrf.mxu1 }
 0x516   : > { %v13720_v20 = vadd.f32 %v3970_v45, %v13539_v46 }
 0x518   : > { %16452 = vst [vmem:[#allocation23_spill] sm:$0xff] %v13720_v20 }
 0x519   : > { %v4205_v30 = vpop.f32.mrf.mxu0 }
 0x51a   : > { %v13723_v59 = vadd.f32 %v4205_v30, %v13597_v57  ;;  %v13735_v57 = vpop.f32.mrf.mxu3 }
 0x51b   : > { %v4062_v3 = vpop.f32.mrf.mxu2 }
 0x51c   : > { %4244 = vmatmul.bf16.gmra.mxu0 %v13607_v50  ;;  %v11464_v50 = vld [vmem:[%s16382_s1 + $0x4a8] sm:$0xff] }
 0x51d   : > { %v3973_v23 = vpop.f32.mrf.mxu1  ;;  %5658 = vmatpush.bf16.msrb.mxu2 %v11464_v50  ;;  %v11474_v50 = vld [vmem:[%s16382_s1 + $0x4f8] sm:$0xff] }
 0x51e   : > { %v3974_v13 = vadd.f32 %v3973_v23, %v13545_v62  ;;  %5745 = vmatpush.bf16.msrb.mxu3 %v11474_v50 }
 0x520   : > { %4288 = vmatmul.bf16.gmra.mxu1 %v2862_v10  ;;  %v13729_v38 = vadd.f32 %v4062_v3, %v3974_v13 }
 0x521   : > { %v13731_v46 = vpop.f32.mrf.mxu0 }
 0x522   : > { %16453 = vst [vmem:[#allocation24_spill] sm:$0xff] %v13729_v38  ;;  %v13747_v26 = vpop.f32.mrf.mxu3 }
 0x523   : > { %v13733_v4 = vpop.f32.mrf.mxu2 }
 0x524   : > { %16454 = vst [vmem:[#allocation7_spill] sm:$0xff] %v13733_v4 }
 0x525   : > { %v3975_v42 = vpop.f32.mrf.mxu1 }
 0x526   : > { %v13738_v53 = vadd.f32 %v3975_v42, %v13555_v6 }
 0x528   : > { %16455 = vst [vmem:[#allocation6_spill] sm:$0xff] %v13738_v53 }
 0x529   : > { %v13743_v62 = vpop.f32.mrf.mxu0 }
 0x52a   : > { %v13759_v10 = vpop.f32.mrf.mxu3 }
 0x52b   : > { %v4067_v1 = vpop.f32.mrf.mxu2 }
 0x52c   : > { %4249 = vmatmul.bf16.gmra.mxu0 %v13634_v54 }
 0x52d   : > { %v3978_v45 = vpop.f32.mrf.mxu1 }
 0x52e   : > { %v3979_v30 = vadd.f32 %v3978_v45, %v13564_v28  ;;  %v11473_v45 = vld [vmem:[%s16382_s1 + $0x4f0] sm:$0xff] }
 0x52f   : > { %5746 = vmatpush.bf16.msrb.mxu3 %v11473_v45 }
 0x530   : > { %4293 = vmatmul.bf16.gmra.mxu1 %v13431_v19  ;;  %v13750_v56 = vadd.f32 %v4067_v1, %v3979_v30 }
 0x531   : > { %v13752_v6 = vpop.f32.mrf.mxu0 }
 0x532   : > { %16456 = vst [vmem:[#allocation25_spill] sm:$0xff] %v13750_v56  ;;  %v13776_v30 = vpop.f32.mrf.mxu3 }
 0x533   : > { %v13754_v3 = vpop.f32.mrf.mxu2 }
 0x534   : > { %16457 = vst [vmem:[#allocation26_spill] sm:$0xff] %v13754_v3 }
 0x535   : > { %v3980_v23 = vpop.f32.mrf.mxu1 }
 0x536   : > { %v13757_v13 = vadd.f32 %v3980_v23, %v13574_v18 }
 0x538   : > { %16458 = vst [vmem:[#allocation8_spill] sm:$0xff] %v13757_v13 }
 0x539   : > { %v13761_v54 = vpop.f32.mrf.mxu0 }
 0x53b   : > { %v4072_v42 = vpop.f32.mrf.mxu2 }
 0x53c   : > { %4254 = vmatmul.bf16.gmra.mxu0 %v13656_v58 }
 0x53d   : > { %v3983_v28 = vpop.f32.mrf.mxu1 }
 0x53e   : > { %v3984_v19 = vadd.f32 %v3983_v28, %v13580_v25  ;;  %v11472_v28 = vld [vmem:[%s16382_s1 + $0x4e8] sm:$0xff] }
 0x53f   : > { %5747 = vmatpush.bf16.msrb.mxu3 %v11472_v28 }
 0x540   : > { %4298 = vmatmul.bf16.gmra.mxu1 %v13456_v63  ;;  %v13769_v1 = vadd.f32 %v4072_v42, %v3984_v19  ;;  %v11482_v63 = vld [vmem:[%s16382_s1 + $0x538] sm:$0xff]  ;;  %v11463_v42 = vld [vmem:[%s16382_s1 + $0x4a0] sm:$0xff] }
 0x541   : > { %v13771_v18 = vpop.f32.mrf.mxu0  ;;  %v11893_v19 = vld [vmem:[#allocation2] sm:$0xff]  ;;  %5834 = vmatpush.bf16.msrb.mxu0 %v11482_v63  ;;  %5659 = vmatpush.bf16.msrb.mxu2 %v11463_v42 }
 0x542   : > { %16459 = vst [vmem:[#allocation27_spill] sm:$0xff] %v13769_v1  ;;  %v2969_v50 = vpack.c.bf16 %v11893_v19, %v11893_v19 }
 0x543   : > { %v13778_v58 = vpop.f32.mrf.mxu2 }
 0x544   : > { %16460 = vst [vmem:[#allocation28_spill] sm:$0xff] %v13778_v58 }
 0x545   : > { %v3985_v25 = vpop.f32.mrf.mxu1 }
 0x546   : > { %v13781_v23 = vadd.f32 %v3985_v25, %v13590_v47  ;;  %v11481_v47 = vld [vmem:[%s16382_s1 + $0x530] sm:$0xff]  ;;  %v11471_v25 = vld [vmem:[%s16382_s1 + $0x4e0] sm:$0xff] }
 0x547   : > { %5835 = vmatpush.bf16.msrb.mxu0 %v11481_v47  ;;  %5748 = vmatpush.bf16.msrb.mxu3 %v11471_v25  ;;  %v11479_v47 = vld [vmem:[%s16382_s1 + $0x520] sm:$0xff]  ;;  %v11469_v25 = vld [vmem:[%s16382_s1 + $0x4d0] sm:$0xff] }
 0x548   : > { %16461 = vst [vmem:[#allocation10_spill] sm:$0xff] %v13781_v23  ;;  %v13800_v23 = vpop.f32.mrf.mxu3 }
 0x549   : > { %v13792_v45 = vpop.f32.mrf.mxu0 }
 0x54b   : > { %v4077_v58 = vpop.f32.mrf.mxu2 }
 0x54c   : > { %4259 = vmatmul.bf16.gmra.mxu0 %v2969_v50 }
 0x54d   : > { %v3988_v1 = vpop.f32.mrf.mxu1 }
 0x54e   : > { %v3989_v63 = vadd.f32 %v3988_v1, %v13603_v15  ;;  %v11462_v15 = vld [vmem:[%s16382_s1 + $0x498] sm:$0xff] }
 0x54f   : > { %v11470_v1 = vld [vmem:[%s16382_s1 + $0x4d8] sm:$0xff]  ;;  %5660 = vmatpush.bf16.msrb.mxu2 %v11462_v15 }
 0x550   : > { %4303 = vmatmul.bf16.gmra.mxu1 %v13480_v32  ;;  %v13804_v42 = vadd.f32 %v4077_v58, %v3989_v63  ;;  %v13813_v56 = vpop.f32.mrf.mxu3  ;;  %v11480_v32 = vld [vmem:[%s16382_s1 + $0x528] sm:$0xff]  ;;  %5749 = vmatpush.bf16.msrb.mxu3 %v11470_v1  ;;  %v11461_v58 = vld [vmem:[%s16382_s1 + $0x490] sm:$0xff] }
 0x551   : > { %v13806_v28 = vpop.f32.mrf.mxu0  ;;  %5836 = vmatpush.bf16.msrb.mxu0 %v11480_v32  ;;  %v11460_v1 = vld [vmem:[%s16382_s1 + $0x488] sm:$0xff] }
 0x552   : > { %16462 = vst [vmem:[#allocation9_spill] sm:$0xff] %v13804_v42 }
 0x553   : > { %v13808_v3 = vpop.f32.mrf.mxu2  ;;  %5661 = vmatpush.bf16.msrb.mxu2 %v11461_v58  ;;  %v11459_v58 = vld [vmem:[%s16382_s1 + $0x480] sm:$0xff] }
 0x554   : > { %16463 = vst [vmem:[#allocation29_spill] sm:$0xff] %v13808_v3  ;;  %5750 = vmatpush.bf16.msrb.mxu3 %v11469_v25  ;;  %v11478_v3 = vld [vmem:[%s16382_s1 + $0x518] sm:$0xff]  ;;  %v11467_v25 = vld [vmem:[%s16382_s1 + $0x4c0] sm:$0xff] }
 0x555   : > { %v3990_v19 = vpop.f32.mrf.mxu1  ;;  %5837 = vmatpush.bf16.msrb.mxu0 %v11479_v47  ;;  %v11477_v47 = vld [vmem:[%s16382_s1 + $0x510] sm:$0xff] }
 0x556   : > { %v13811_v13 = vadd.f32 %v3990_v19, %v13613_v34 }
 0x557   : > { %5662 = vmatpush.bf16.msrb.mxu2 %v11460_v1 }
 0x558   : > { %16464 = vst [vmem:[#allocation30_spill] sm:$0xff] %v13811_v13  ;;  %v13839_v32 = vpop.f32.mrf.mxu3 }
 0x559   : > { %v13815_v4 = vpop.f32.mrf.mxu0  ;;  %5838 = vmatpush.bf16.msrb.mxu0 %v11478_v3  ;;  %v4642_v3 = vld [vmem:[#allocation2 + $0x7] sm:$0xff] }
 0x55b   : > { %v4082_v19 = vpop.f32.mrf.mxu2  ;;  %5663 = vmatpush.bf16.msrb.mxu2 %v11459_v58  ;;  %v4706_v58 = vld [vmem:[#allocation2 + $0x9] sm:$0xff] }
 0x55d   : > { %v3993_v34 = vpop.f32.mrf.mxu1  ;;  %5839 = vmatpush.bf16.msrb.mxu0 %v11477_v47  ;;  %v4707_v47 = vld [vmem:[#allocation2 + $0x11] sm:$0xff] }
 0x55e   : > { %v3994_v63 = vadd.f32 %v3993_v34, %v13627_v14  ;;  %v11468_v14 = vld [vmem:[%s16382_s1 + $0x4c8] sm:$0xff] }
 0x55f   : > { %5751 = vmatpush.bf16.msrb.mxu3 %v11468_v14  ;;  %v11476_v14 = vld [vmem:[%s16382_s1 + $0x508] sm:$0xff] }
 0x560   : > { %4308 = vmatmul.bf16.gmra.mxu1 %v13499_v36  ;;  %v13837_v15 = vadd.f32 %v4082_v19, %v3994_v63  ;;  %v4643_v19 = vld [vmem:[#allocation2 + $0xf] sm:$0xff] }
 0x561   : > { %v13850_v34 = vpop.f32.mrf.mxu0  ;;  %v4930_v1 = vpack.c.bf16 %v4643_v19, %v4642_v3  ;;  %5840 = vmatpush.bf16.msrb.mxu0 %v11476_v14  ;;  %v4932_v3 = vpack.c.bf16 %v4707_v47, %v4706_v58 }
 0x562   : > { %16465 = vst [vmem:[#allocation11_spill] sm:$0xff] %v13837_v15  ;;  %v13867_v15 = vpop.f32.mrf.mxu3 }
 0x563   : > { %5752 = vmatpush.bf16.msrb.mxu3 %v11467_v25  ;;  %5664 = vmatmul.bf16.vlgmr.msrb.gmra.mxu2 %v4930_v1 }
 0x565   : > { %v3995_v36 = vpop.f32.mrf.mxu1 }
 0x566   : > { %v13862_v63 = vadd.f32 %v3995_v36, %v13644_v22  ;;  %5753 = vmatmul.bf16.vlgmr.msrb.gmra.mxu3 %v2969_v50  ;;  %v11475_v22 = vld [vmem:[%s16382_s1 + $0x500] sm:$0xff] }
 0x567   : > { %5841 = vmatpush.bf16.msrb.mxu0 %v11475_v22  ;;  %v2813_v22 = vld [vmem:[#allocation3 + $0x169] sm:$0xff] }
 0x568   : > { %16466 = vst [vmem:[#allocation13_spill] sm:$0xff] %v13862_v63  ;;  %v2916_v47 = vpack.c.bf16 %v2814_v9, %v2813_v22 }
 0x569   : > { %v13869_v13 = vpop.f32.mrf.mxu0 }
 0x56a   : > { %5842 = vmatmul.bf16.vlgmr.msrb.gmra.mxu0 %v4932_v3  ;;  %v13876_v50 = vpop.f32.mrf.mxu3 }
 0x56d   : > { %v4274_v42 = vpop.f32.mrf.mxu1 }
 0x56e   : > { %v4275_v36 = vadd.f32 %v4274_v42, %v13652_v2 }
 0x570   : > { %v4354_v25 = vmin.f32 %v4275_v36, 0.0  ;;  %4313 = vmatmul.bf16.gmra.mxu1 %v13525_v35  ;;  %vm4514_vm1 = vcmp.gt.f32.partialorder %v4275_v36, 0.0 }
 0x571   : > { %v13879_v63 = vpop.f32.mrf.mxu0 }
 0x572   : > { %v4386_v19 = vmul.f32 1.442695, %v4354_v25  ;;  %16467 = vst [vmem:[#allocation12_spill] sm:$0xff] %v13879_v63  ;;  %v13882_v25 = vpop.f32.mrf.mxu3 }
 0x573   : > { %16468 = vst [vmem:[#allocation14_spill] sm:$0xff] %v13882_v25 }
 0x574   : > { %11699 = vpow2.f32 %v4386_v19 }
 0x575   : > { %v4276_v1 = vpop.f32.mrf.mxu1 }
 0x576   : > { %v4277_v14 = vadd.f32 %v4276_v1, %v13662_v52 }
 0x578   : > { %v4355_v53 = vmin.f32 %v4277_v14, 0.0  ;;  %vm4515_vm2 = vcmp.gt.f32.partialorder %v4277_v14, 0.0 }
 0x579   : > { %v13884_v1 = vpop.f32.mrf.mxu0 }
 0x57a   : > { %v11700_v38 = vpop.eup %11699  ;;  %v4388_v2 = vmul.f32 1.442695, %v4355_v53  ;;  %16469 = vst [vmem:[#allocation16_spill] sm:$0xff] %v13884_v1 }
 0x57b   : > { %v4450_v42 = vmul.f32 1.6732632, %v11700_v38 }
 0x57c   : > { %11701 = vpow2.f32 %v4388_v2 }
 0x57d   : > { %v10350_v20 = vadd.f32 -1.6732632, %v4450_v42  ;;  %v4279_v35 = vpop.f32.mrf.mxu1 }
 0x57e   : > { %v4280_v58 = vadd.f32 %v4279_v35, %v13673_v51  ;;  %v13887_v35 = vpop.f32.mrf.mxu3 }
 0x57f   : > { %v4546_v3 = vsel %vm4514_vm1, %v4275_v36, %v10350_v20  ;;  %16470 = vst [vmem:[#allocation15_spill] sm:$0xff] %v13887_v35 }
 0x580   : > { %v4578_v19 = vmul.f32 1.050701, %v4546_v3  ;;  %v4356_v52 = vmin.f32 %v4280_v58, 0.0  ;;  %4318 = vmatmul.bf16.gmra.mxu1 %v2916_v47  ;;  %vm4516_vm3 = vcmp.gt.f32.partialorder %v4280_v58, 0.0 }
 0x581   : > { %v13889_v1 = vpop.f32.mrf.mxu0 }
 0x582   : > { %v11702_v8 = vpop.eup %11701  ;;  %4610 = vst [vmem:[#allocation2 + $0x28] sm:$0xff] %v4578_v19  ;;  %v4390_v38 = vmul.f32 1.442695, %v4356_v52  ;;  %v2815_v52 = vld [vmem:[#allocation3 + $0x189] sm:$0xff] }
 0x583   : > { %v4451_v53 = vmul.f32 1.6732632, %v11702_v8  ;;  %16471 = vst [vmem:[#allocation17_spill] sm:$0xff] %v13889_v1  ;;  %v2816_v8 = vld [vmem:[#allocation3 + $0x191] sm:$0xff] }
 0x584   : > { %11703 = vpow2.f32 %v4390_v38 }
 0x585   : > { %v10351_v2 = vadd.f32 -1.6732632, %v4451_v53  ;;  %v4281_v42 = vpop.f32.mrf.mxu1 }
 0x586   : > { %v4282_v63 = vadd.f32 %v4281_v42, %v13680_v29 }
 0x587   : > { %v4547_v51 = vsel %vm4515_vm2, %v4277_v14, %v10351_v2  ;;  %v2925_v14 = vpack.c.bf16 %v2816_v8, %v2815_v52 }
 0x588   : > { %v4579_v9 = vmul.f32 1.050701, %v4547_v51  ;;  %v4357_v22 = vmin.f32 %v4282_v63, 0.0  ;;  %vm4517_vm4 = vcmp.gt.f32.partialorder %v4282_v63, 0.0 }
 0x589   : > { %v4644_v35 = vld [vmem:[#allocation2 + $0x27] sm:$0xff] }
 0x58a   : > { %v11704_v20 = vpop.eup %11703  ;;  %4611 = vst [vmem:[#allocation2 + $0x30] sm:$0xff] %v4579_v9  ;;  %v4392_v36 = vmul.f32 1.442695, %v4357_v22  ;;  %v4940_v47 = vpack.c.bf16 %v4579_v9, %v4578_v19 }
 0x58b   : > { %v4452_v3 = vmul.f32 1.6732632, %v11704_v20 }
 0x58c   : > { %11705 = vpow2.f32 %v4392_v36  ;;  %5758 = vmatmul.bf16.gmra.mxu3 %v4940_v47  ;;  %v13894_v47 = vpop.f32.mrf.mxu3 }
 0x58d   : > { %v10352_v38 = vadd.f32 -1.6732632, %v4452_v3  ;;  %v4284_v53 = vpop.f32.mrf.mxu1 }
 0x58e   : > { %v4285_v29 = vadd.f32 %v4284_v53, %v13688_v21 }
 0x58f   : > { %v4548_v2 = vsel %vm4516_vm3, %v4280_v58, %v10352_v38  ;;  %v13897_v58 = vpop.f32.mrf.mxu0 }
 0x590   : > { %v4580_v42 = vmul.f32 1.050701, %v4548_v2  ;;  %v4358_v51 = vmin.f32 %v4285_v29, 0.0  ;;  %4323 = vmatmul.bf16.gmra.mxu1 %v2925_v14  ;;  %16472 = vst [vmem:[#allocation19_spill] sm:$0xff] %v13897_v58  ;;  %vm4518_vm5 = vcmp.gt.f32.partialorder %v4285_v29, 0.0 }
 0x591   : > { %v4645_v22 = vld [vmem:[#allocation2 + $0x2f] sm:$0xff] }
 0x592   : > { %v4708_v19 = vld [vmem:[#allocation2 + $0x29] sm:$0xff]  ;;  %v4709_v9 = vld [vmem:[#allocation2 + $0x31] sm:$0xff]  ;;  %v11706_v20 = vpop.eup %11705  ;;  %4612 = vst [vmem:[#allocation2 + $0x48] sm:$0xff] %v4580_v42  ;;  %v4394_v1 = vmul.f32 1.442695, %v4358_v51  ;;  %v13892_v25 = vpack.c.bf16 %v4645_v22, %v4644_v35 }
 0x593   : > { %v4941_v36 = vpack.c.bf16 %v4709_v9, %v4708_v19  ;;  %v4453_v3 = vmul.f32 1.6732632, %v11706_v20  ;;  %v2817_v19 = vld [vmem:[#allocation3 + $0x1a9] sm:$0xff] }
 0x594   : > { %11707 = vpow2.f32 %v4394_v1  ;;  %5669 = vmatmul.bf16.gmra.mxu2 %v13892_v25  ;;  %v2818_v1 = vld [vmem:[#allocation3 + $0x1b1] sm:$0xff]  ;;  %v13900_v9 = vpop.f32.mrf.mxu3 }
 0x595   : > { %5847 = vmatmul.bf16.gmra.mxu0 %v4941_v36  ;;  %v10353_v21 = vadd.f32 -1.6732632, %v4453_v3  ;;  %v4286_v52 = vpop.f32.mrf.mxu1  ;;  %16473 = vst [vmem:[#allocation18_spill] sm:$0xff] %v13900_v9 }
 0x596   : > { %v4287_v8 = vadd.f32 %v4286_v52, %v13695_v33  ;;  %v2934_v33 = vpack.c.bf16 %v2818_v1, %v2817_v19 }
 0x597   : > { %v4549_v38 = vsel %vm4517_vm4, %v4282_v63, %v10353_v21  ;;  %v13903_v21 = vpop.f32.mrf.mxu0 }
 0x598   : > { %v4581_v53 = vmul.f32 1.050701, %v4549_v38  ;;  %v4359_v14 = vmin.f32 %v4287_v8, 0.0  ;;  %vm4519_vm6 = vcmp.gt.f32.partialorder %v4287_v8, 0.0 }
 0x59a   : > { %v11708_v35 = vpop.eup %11707  ;;  %4613 = vst [vmem:[#allocation2 + $0x50] sm:$0xff] %v4581_v53  ;;  %v4396_v2 = vmul.f32 1.442695, %v4359_v14  ;;  %v4949_v51 = vpack.c.bf16 %v4581_v53, %v4580_v42  ;;  %v4646_v42 = vld [vmem:[#allocation2 + $0x47] sm:$0xff] }
 0x59b   : > { %v4454_v22 = vmul.f32 1.6732632, %v11708_v35 }
 0x59c   : > { %11709 = vpow2.f32 %v4396_v2  ;;  %5763 = vmatmul.bf16.gmra.mxu3 %v4949_v51  ;;  %v13909_v1 = vpop.f32.mrf.mxu3 }
 0x59d   : > { %v10354_v20 = vadd.f32 -1.6732632, %v4454_v22  ;;  %v4289_v36 = vpop.f32.mrf.mxu1 }
 0x59e   : > { %v4290_v3 = vadd.f32 %v4289_v36, %v13706_v44 }
 0x59f   : > { %v4550_v63 = vsel %vm4518_vm5, %v4285_v29, %v10354_v20 }
 0x5a0   : > { %v4582_v52 = vmul.f32 1.050701, %v4550_v63  ;;  %v4360_v38 = vmin.f32 %v4290_v3, 0.0  ;;  %4328 = vmatmul.bf16.gmra.mxu1 %v2934_v33  ;;  %v13911_v63 = vpop.f32.mrf.mxu0  ;;  %vm4520_vm7 = vcmp.gt.f32.partialorder %v4290_v3, 0.0 }
 0x5a1   : > { %v4647_v53 = vld [vmem:[#allocation2 + $0x4f] sm:$0xff]  ;;  %16474 = vst [vmem:[#allocation20_spill] sm:$0xff] %v13911_v63 }
 0x5a2   : > { %v4710_v14 = vld [vmem:[#allocation2 + $0x49] sm:$0xff]  ;;  %v4711_v35 = vld [vmem:[#allocation2 + $0x51] sm:$0xff]  ;;  %v11710_v2 = vpop.eup %11709  ;;  %4614 = vst [vmem:[#allocation2 + $0x68] sm:$0xff] %v4582_v52  ;;  %v4398_v51 = vmul.f32 1.442695, %v4360_v38  ;;  %v13905_v9 = vpack.c.bf16 %v4647_v53, %v4646_v42 }
 0x5a3   : > { %v4950_v22 = vpack.c.bf16 %v4711_v35, %v4710_v14  ;;  %v4455_v58 = vmul.f32 1.6732632, %v11710_v2  ;;  %v2819_v35 = vld [vmem:[#allocation3 + $0x1c9] sm:$0xff]  ;;  %v2820_v2 = vld [vmem:[#allocation3 + $0x1d1] sm:$0xff] }
 0x5a4   : > { %11711 = vpow2.f32 %v4398_v51  ;;  %5674 = vmatmul.bf16.gmra.mxu2 %v13905_v9 }
 0x5a5   : > { %5852 = vmatmul.bf16.gmra.mxu0 %v4950_v22  ;;  %v10355_v44 = vadd.f32 -1.6732632, %v4455_v58  ;;  %v4291_v29 = vpop.f32.mrf.mxu1  ;;  %v2943_v22 = vpack.c.bf16 %v2820_v2, %v2819_v35 }
 0x5a6   : > { %v4292_v19 = vadd.f32 %v4291_v29, %v13715_v12 }
 0x5a7   : > { %v4551_v20 = vsel %vm4519_vm6, %v4287_v8, %v10355_v44  ;;  %v4030_v44 = vadd.f32 %v13595_v40, %v13600_v0 }
 0x5a8   : > { %v4583_v36 = vmul.f32 1.050701, %v4551_v20  ;;  %v4361_v33 = vmin.f32 %v4292_v19, 0.0  ;;  %v13921_v35 = vpop.f32.mrf.mxu0  ;;  %vm4521_vm8 = vcmp.gt.f32.partialorder %v4292_v19, 0.0 }
 0x5aa   : > { %v11712_v38 = vpop.eup %11711  ;;  %4615 = vst [vmem:[#allocation2 + $0x70] sm:$0xff] %v4583_v36  ;;  %v4400_v42 = vmul.f32 1.442695, %v4361_v33  ;;  %v4958_v53 = vpack.c.bf16 %v4583_v36, %v4582_v52  ;;  %v4648_v33 = vld [vmem:[#allocation2 + $0x67] sm:$0xff]  ;;  %v13916_v52 = vpop.f32.mrf.mxu3 }
 0x5ab   : > { %v4456_v14 = vmul.f32 1.6732632, %v11712_v38 }
 0x5ac   : > { %11713 = vpow2.f32 %v4400_v42  ;;  %5768 = vmatmul.bf16.gmra.mxu3 %v4958_v53 }
 0x5ad   : > { %v10356_v58 = vadd.f32 -1.6732632, %v4456_v14  ;;  %v4294_v51 = vpop.f32.mrf.mxu1  ;;  %v4119_v14 = vadd.f32 %v13712_v17, %v4030_v44 }
 0x5ae   : > { %v4295_v12 = vadd.f32 %v4294_v51, %v13723_v59 }
 0x5af   : > { %v4552_v8 = vsel %vm4520_vm7, %v4290_v3, %v10356_v58  ;;  %v4208_v0 = vadd.f32 %v13731_v46, %v4119_v14 }
 0x5b0   : > { %v4584_v29 = vmul.f32 1.050701, %v4552_v8  ;;  %v4362_v20 = vmin.f32 %v4295_v12, 0.0  ;;  %4333 = vmatmul.bf16.gmra.mxu1 %v2943_v22  ;;  %v13930_v14 = vpop.f32.mrf.mxu0  ;;  %vm4522_vm9 = vcmp.gt.f32.partialorder %v4295_v12, 0.0 }
 0x5b1   : > { %v4649_v36 = vld [vmem:[#allocation2 + $0x6f] sm:$0xff] }
 0x5b2   : > { %v4712_v38 = vld [vmem:[#allocation2 + $0x69] sm:$0xff]  ;;  %v4713_v42 = vld [vmem:[#allocation2 + $0x71] sm:$0xff]  ;;  %v11714_v53 = vpop.eup %11713  ;;  %4616 = vst [vmem:[#allocation2 + $0x88] sm:$0xff] %v4584_v29  ;;  %v4402_v63 = vmul.f32 1.442695, %v4362_v20  ;;  %v13919_v59 = vpack.c.bf16 %v4649_v36, %v4648_v33  ;;  %v4122_v20 = vadd.f32 %v13725_v43, %v13610_v11 }
 0x5b3   : > { %v4959_v3 = vpack.c.bf16 %v4713_v42, %v4712_v38  ;;  %v4457_v40 = vmul.f32 1.6732632, %v11714_v53  ;;  %v13927_v38 = vpop.f32.mrf.mxu3  ;;  %v2822_v42 = vld [vmem:[#allocation3 + $0x1f1] sm:$0xff] }
 0x5b4   : > { %11715 = vpow2.f32 %v4402_v63  ;;  %5679 = vmatmul.bf16.gmra.mxu2 %v13919_v59  ;;  %v2821_v63 = vld [vmem:[#allocation3 + $0x1e9] sm:$0xff]  ;;  %v4211_v53 = vadd.f32 %v13743_v62, %v4122_v20  ;;  %v11490_v11 = vld [vmem:[%s16382_s1 + $0x578] sm:$0xff] }
 0x5b5   : > { %5857 = vmatmul.bf16.gmra.mxu0 %v4959_v3  ;;  %v10357_v2 = vadd.f32 -1.6732632, %v4457_v40  ;;  %v4296_v58 = vpop.f32.mrf.mxu1  ;;  %5923 = vmatpush.bf16.msrb.mxu1 %v11490_v11 }
 0x5b6   : > { %v4297_v51 = vadd.f32 %v4296_v58, %v4208_v0  ;;  %v4035_v0 = vadd.f32 %v13618_v31, %v13621_v27 }
 0x5b7   : > { %v4553_v22 = vsel %vm4521_vm8, %v4292_v19, %v10357_v2 }
 0x5b8   : > { %v4585_v17 = vmul.f32 1.050701, %v4553_v22  ;;  %v4363_v8 = vmin.f32 %v4297_v51, 0.0  ;;  %v4124_v20 = vadd.f32 %v13735_v57, %v4035_v0  ;;  %vm4523_vm10 = vcmp.gt.f32.partialorder %v4297_v51, 0.0 }
 0x5b9   : > { %v4650_v58 = vld [vmem:[#allocation2 + $0x87] sm:$0xff] }
 0x5ba   : > { %v11716_v44 = vpop.eup %11715  ;;  %4617 = vst [vmem:[#allocation2 + $0x90] sm:$0xff] %v4585_v17  ;;  %v4404_v33 = vmul.f32 1.442695, %v4363_v8  ;;  %v4967_v36 = vpack.c.bf16 %v4585_v17, %v4584_v29  ;;  %v2952_v29 = vpack.c.bf16 %v2822_v42, %v2821_v63  ;;  %v4213_v27 = vadd.f32 %v13752_v6, %v4124_v20 }
 0x5bb   : > { %v4458_v46 = vmul.f32 1.6732632, %v11716_v44  ;;  %v13945_v63 = vpop.f32.mrf.mxu3 }
 0x5bc   : > { %11717 = vpow2.f32 %v4404_v33  ;;  %5773 = vmatmul.bf16.gmra.mxu3 %v4967_v36 }
 0x5bd   : > { %v10358_v19 = vadd.f32 -1.6732632, %v4458_v46  ;;  %v4299_v3 = vpop.f32.mrf.mxu1 }
 0x5be   : > { %v4300_v43 = vadd.f32 %v4299_v3, %v4211_v53  ;;  %v11488_v53 = vld [vmem:[%s16382_s1 + $0x568] sm:$0xff]  ;;  %v13950_v3 = vpop.f32.mrf.mxu0 }
 0x5bf   : > { %v4554_v40 = vsel %vm4522_vm9, %v4295_v12, %v10358_v19  ;;  %v11489_v12 = vld [vmem:[%s16382_s1 + $0x570] sm:$0xff] }
 0x5c0   : > { %v4586_v2 = vmul.f32 1.050701, %v4554_v40  ;;  %v4364_v62 = vmin.f32 %v4300_v43, 0.0  ;;  %4338 = vmatmul.bf16.gmra.mxu1 %v2952_v29  ;;  %v11487_v40 = vld [vmem:[%s16382_s1 + $0x560] sm:$0xff]  ;;  %vm4524_vm11 = vcmp.gt.f32.partialorder %v4300_v43, 0.0 }
 0x5c1   : > { %v4651_v22 = vld [vmem:[#allocation2 + $0x8f] sm:$0xff]  ;;  %5924 = vmatpush.bf16.msrb.mxu1 %v11489_v12 }
 0x5c2   : > { %v4714_v17 = vld [vmem:[#allocation2 + $0x89] sm:$0xff]  ;;  %v4715_v8 = vld [vmem:[#allocation2 + $0x91] sm:$0xff]  ;;  %v11718_v44 = vpop.eup %11717  ;;  %4618 = vst [vmem:[#allocation2 + $0xa8] sm:$0xff] %v4586_v2  ;;  %v4406_v33 = vmul.f32 1.442695, %v4364_v62  ;;  %v13938_v36 = vpack.c.bf16 %v4651_v22, %v4650_v58  ;;  %v4127_v62 = vadd.f32 %v13747_v26, %v13641_v7 }
 0x5c3   : > { %v4968_v46 = vpack.c.bf16 %v4715_v8, %v4714_v17  ;;  %v4459_v31 = vmul.f32 1.6732632, %v11718_v44  ;;  %v2823_v8 = vld [vmem:[#allocation3 + $0x209] sm:$0xff]  ;;  %v2824_v44 = vld [vmem:[#allocation3 + $0x211] sm:$0xff]  ;;  %v13961_v26 = vpop.f32.mrf.mxu3 }
 0x5c4   : > { %11719 = vpow2.f32 %v4406_v33  ;;  %5684 = vmatmul.bf16.gmra.mxu2 %v13938_v36  ;;  %v4216_v20 = vadd.f32 %v13761_v54, %v4127_v62  ;;  %v2961_v7 = vpack.c.bf16 %v2824_v44, %v2823_v8 }
 0x5c5   : > { %5862 = vmatmul.bf16.gmra.mxu0 %v4968_v46  ;;  %v10359_v42 = vadd.f32 -1.6732632, %v4459_v31  ;;  %v4301_v57 = vpop.f32.mrf.mxu1  ;;  %5925 = vmatpush.bf16.msrb.mxu1 %v11488_v53  ;;  %v11486_v46 = vld [vmem:[%s16382_s1 + $0x558] sm:$0xff]  ;;  %v4040_v31 = vadd.f32 %v13646_v49, %v13649_v55  ;;  %v11485_v49 = vld [vmem:[%s16382_s1 + $0x550] sm:$0xff] }
 0x5c6   : > { %v4302_v19 = vadd.f32 %v4301_v57, %v4213_v27  ;;  %v13965_v57 = vpop.f32.mrf.mxu0 }
 0x5c7   : > { %v4555_v11 = vsel %vm4523_vm10, %v4297_v51, %v10359_v42 }
 0x5c8   : > { %v4587_v29 = vmul.f32 1.050701, %v4555_v11  ;;  %v4365_v6 = vmin.f32 %v4302_v19, 0.0  ;;  %vm4525_vm12 = vcmp.gt.f32.partialorder %v4302_v19, 0.0 }
 0x5c9   : > { %5926 = vmatpush.bf16.msrb.mxu1 %v11487_v40  ;;  %v4652_v42 = vld [vmem:[#allocation2 + $0xa7] sm:$0xff]  ;;  %v4129_v40 = vadd.f32 %v13759_v10, %v4040_v31  ;;  %v4132_v31 = vadd.f32 %v13776_v30, %v13659_v60  ;;  %v4045_v60 = vadd.f32 %v13664_v39, %v13667_v37 }
 0x5ca   : > { %v11720_v0 = vpop.eup %11719  ;;  %4619 = vst [vmem:[#allocation2 + $0xb0] sm:$0xff] %v4587_v29  ;;  %v4408_v58 = vmul.f32 1.442695, %v4365_v6  ;;  %v4976_v22 = vpack.c.bf16 %v4587_v29, %v4586_v2  ;;  %v11484_v10 = vld [vmem:[%s16382_s1 + $0x548] sm:$0xff] }
 0x5cb   : > { %v4460_v17 = vmul.f32 1.6732632, %v11720_v0 }
 0x5cc   : > { %11721 = vpow2.f32 %v4408_v58  ;;  %5778 = vmatmul.bf16.gmra.mxu3 %v4976_v22  ;;  %v4218_v58 = vadd.f32 %v13771_v18, %v4129_v40  ;;  %v2826_v18 = vld [vmem:[#allocation3 + $0x231] sm:$0xff] }
 0x5cd   : > { %v10360_v51 = vadd.f32 -1.6732632, %v4460_v17  ;;  %v4304_v33 = vpop.f32.mrf.mxu1  ;;  %5927 = vmatpush.bf16.msrb.mxu1 %v11486_v46  ;;  %v2825_v46 = vld [vmem:[#allocation3 + $0x229] sm:$0xff] }
 0x5ce   : > { %v4305_v12 = vadd.f32 %v4304_v33, %v4216_v20  ;;  %v13978_v33 = vpop.f32.mrf.mxu3 }
 0x5cf   : > { %v4556_v2 = vsel %vm4524_vm11, %v4300_v43, %v10360_v51 }
 0x5d0   : > { %v4588_v27 = vmul.f32 1.050701, %v4556_v2  ;;  %v4366_v54 = vmin.f32 %v4305_v12, 0.0  ;;  %4343 = vmatmul.bf16.gmra.mxu1 %v2961_v7  ;;  %v11483_v7 = vld [vmem:[%s16382_s1 + $0x540] sm:$0xff]  ;;  %vm4526_vm13 = vcmp.gt.f32.partialorder %v4305_v12, 0.0 }
 0x5d1   : > { %v4653_v53 = vld [vmem:[#allocation2 + $0xaf] sm:$0xff]  ;;  %5928 = vmatpush.bf16.msrb.mxu1 %v11485_v49 }
 0x5d2   : > { %v4716_v11 = vld [vmem:[#allocation2 + $0xa9] sm:$0xff]  ;;  %v4717_v29 = vld [vmem:[#allocation2 + $0xb1] sm:$0xff]  ;;  %v11722_v6 = vpop.eup %11721  ;;  %4620 = vst [vmem:[#allocation2 + $0xc8] sm:$0xff] %v4588_v27  ;;  %v4410_v0 = vmul.f32 1.442695, %v4366_v54  ;;  %v13968_v62 = vpack.c.bf16 %v4653_v53, %v4652_v42  ;;  %v13985_v53 = vpop.f32.mrf.mxu0 }
 0x5d3   : > { %v4977_v43 = vpack.c.bf16 %v4717_v29, %v4716_v11  ;;  %v4461_v55 = vmul.f32 1.6732632, %v11722_v6  ;;  %v4221_v11 = vadd.f32 %v13792_v45, %v4132_v31  ;;  %v2970_v29 = vpack.c.bf16 %v2826_v18, %v2825_v46 }
 0x5d4   : > { %11723 = vpow2.f32 %v4410_v0  ;;  %5689 = vmatmul.bf16.gmra.mxu2 %v13968_v62 }
 0x5d5   : > { %5867 = vmatmul.bf16.gmra.mxu0 %v4977_v43  ;;  %v10361_v22 = vadd.f32 -1.6732632, %v4461_v55  ;;  %v4306_v17 = vpop.f32.mrf.mxu1  ;;  %5929 = vmatpush.bf16.msrb.mxu1 %v11484_v10 }
 0x5d6   : > { %v4307_v8 = vadd.f32 %v4306_v17, %v4218_v58  ;;  %v4134_v17 = vadd.f32 %v13800_v23, %v4045_v60 }
 0x5d7   : > { %v4557_v44 = vsel %vm4525_vm12, %v4302_v19, %v10361_v22 }
 0x5d8   : > { %v4589_v20 = vmul.f32 1.050701, %v4557_v44  ;;  %v4367_v51 = vmin.f32 %v4307_v8, 0.0  ;;  %v4223_v39 = vadd.f32 %v13806_v28, %v4134_v17  ;;  %vm4527_vm14 = vcmp.gt.f32.partialorder %v4307_v8, 0.0 }
 0x5d9   : > { %5930 = vmatpush.bf16.msrb.mxu1 %v11483_v7 }
 0x5da   : > { %v11724_v2 = vpop.eup %11723  ;;  %4621 = vst [vmem:[#allocation2 + $0xd0] sm:$0xff] %v4589_v20  ;;  %v4412_v54 = vmul.f32 1.442695, %v4367_v51  ;;  %v4985_v42 = vpack.c.bf16 %v4589_v20, %v4588_v27  ;;  %v4654_v27 = vld [vmem:[#allocation2 + $0xc7] sm:$0xff]  ;;  %v13993_v51 = vpop.f32.mrf.mxu3 }
 0x5db   : > { %v4462_v19 = vmul.f32 1.6732632, %v11724_v2  ;;  %v13997_v37 = vpop.f32.mrf.mxu0 }
 0x5dc   : > { %11725 = vpow2.f32 %v4412_v54  ;;  %5783 = vmatmul.bf16.gmra.mxu3 %v4985_v42  ;;  %v4137_v42 = vadd.f32 %v13813_v56, %v13677_v16  ;;  %v4050_v16 = vadd.f32 %v13682_v41, %v13685_v61  ;;  %v14017_v41 = vld [vmem:[%s16383_s2 + $0x2] ss:$0 sm:$0xff] }
 0x5dd   : > { %v10362_v6 = vadd.f32 -1.6732632, %v4462_v19  ;;  %v4309_v40 = vpop.f32.mrf.mxu1 }
 0x5de   : > { %v4310_v0 = vadd.f32 %v4309_v40, %v4221_v11  ;;  %v14001_v11 = vpop.f32.mrf.mxu2  ;;  %v4139_v17 = vadd.f32 %v13839_v32, %v4050_v16 }
 0x5df   : > { %v4558_v43 = vsel %vm4526_vm13, %v4305_v12, %v10362_v6  ;;  %v4226_v6 = vadd.f32 %v13815_v4, %v4137_v42 }
 0x5e0   : > { %v4590_v30 = vmul.f32 1.050701, %v4558_v43  ;;  %v4368_v49 = vmin.f32 %v4310_v0, 0.0  ;;  %4348 = vmatmul.bf16.gmra.mxu1 %v2970_v29  ;;  %vm4528_vm15 = vcmp.gt.f32.partialorder %v4310_v0, 0.0 }
 0x5e1   : > { %v4655_v55 = vld [vmem:[#allocation2 + $0xcf] sm:$0xff] }
 0x5e2   : > { %v4718_v58 = vld [vmem:[#allocation2 + $0xc9] sm:$0xff]  ;;  %v4719_v22 = vld [vmem:[#allocation2 + $0xd1] sm:$0xff]  ;;  %v11726_v45 = vpop.eup %11725  ;;  %4622 = vst [vmem:[#allocation2 + $0xe8] sm:$0xff] %v4590_v30  ;;  %v4414_v10 = vmul.f32 1.442695, %v4368_v49  ;;  %v13991_v44 = vpack.c.bf16 %v4655_v55, %v4654_v27  ;;  %v14004_v40 = vpop.f32.mrf.mxu3 }
 0x5e3   : > { %v4986_v20 = vpack.c.bf16 %v4719_v22, %v4718_v58  ;;  %v4463_v12 = vmul.f32 1.6732632, %v11726_v45  ;;  %v14006_v49 = vpop.f32.mrf.mxu0 }
 0x5e4   : > { %11727 = vpow2.f32 %v4414_v10  ;;  %5694 = vmatmul.bf16.gmra.mxu2 %v13991_v44 }
 0x5e5   : > { %5872 = vmatmul.bf16.gmra.mxu0 %v4986_v20  ;;  %v10363_v46 = vadd.f32 -1.6732632, %v4463_v12  ;;  %v4311_v18 = vpop.f32.mrf.mxu1 }
 0x5e6   : > { %v4312_v23 = vadd.f32 %v4311_v18, %v4223_v39 }
 0x5e7   : > { %v4559_v7 = vsel %vm4527_vm14, %v4307_v8, %v10363_v46 }
 0x5e8   : > { %v4591_v2 = vmul.f32 1.050701, %v4559_v7  ;;  %v4369_v31 = vmin.f32 %v4312_v23, 0.0  ;;  %vm4529_vm0 = vcmp.gt.f32.partialorder %v4312_v23, 0.0 }
 0x5e9   : > { %v4656_v55 = vld [vmem:[#allocation2 + $0xe7] sm:$0xff] }
 0x5ea   : > { %v11728_v54 = vpop.eup %11727  ;;  %4623 = vst [vmem:[#allocation2 + $0xf0] sm:$0xff] %v4591_v2  ;;  %v4416_v19 = vmul.f32 1.442695, %v4369_v31  ;;  %v4994_v28 = vpack.c.bf16 %v4591_v2, %v4590_v30  ;;  %v5754_v18 = vpop.f32.mrf.mxu3 }
 0x5eb   : > { %v4464_v29 = vmul.f32 1.6732632, %v11728_v54  ;;  %v5843_v54 = vpop.f32.mrf.mxu0 }
 0x5ec   : > { %11729 = vpow2.f32 %v4416_v19  ;;  %5788 = vmatmul.bf16.gmra.mxu3 %v4994_v28 }
 0x5ed   : > { %v10364_v43 = vadd.f32 -1.6732632, %v4464_v29  ;;  %v4314_v8 = vpop.f32.mrf.mxu1 }
 0x5ee   : > { %v4315_v60 = vadd.f32 %v4314_v8, %v4226_v6  ;;  %v11498_v8 = vld [vmem:[%s16382_s1 + $0x5b8] sm:$0xff] }
 0x5ef   : > { %v4560_v27 = vsel %vm4528_vm15, %v4310_v0, %v10364_v43  ;;  %v5665_v0 = vpop.f32.mrf.mxu2  ;;  %6012 = vmatpush.bf16.msra.mxu2 %v11498_v8 }
 0x5f0   : > { %v4592_v56 = vmul.f32 1.050701, %v4560_v27  ;;  %v4370_v30 = vmin.f32 %v4315_v60, 0.0  ;;  %5931 = vmatmul.bf16.vlgmr.msrb.gmra.mxu1 %v13892_v25  ;;  %v4228_v25 = vadd.f32 %v13850_v34, %v4139_v17  ;;  %v5666_v32 = vadd.f32 %v14017_v41, %v5665_v0 }
 0x5f1   : > { %v4657_v4 = vld [vmem:[#allocation2 + $0xef] sm:$0xff]  ;;  %v4142_v34 = vadd.f32 %v13867_v15, %v13692_v24  ;;  %vm4530_vm1 = vcmp.gt.f32.partialorder %v4315_v60, 0.0  ;;  %v4055_v24 = vadd.f32 %v13697_v48, %v13700_v5 }
 0x5f2   : > { %v4720_v58 = vld [vmem:[#allocation2 + $0xe9] sm:$0xff]  ;;  %v4721_v22 = vld [vmem:[#allocation2 + $0xf1] sm:$0xff]  ;;  %v11730_v45 = vpop.eup %11729  ;;  %4624 = vst [vmem:[#allocation2 + $0x108] sm:$0xff] %v4592_v56  ;;  %v4418_v10 = vmul.f32 1.442695, %v4370_v30  ;;  %v14012_v20 = vpack.c.bf16 %v4657_v4, %v4656_v55  ;;  %v5755_v2 = vadd.f32 %v5754_v18, %v5666_v32 }
 0x5f3   : > { %v4995_v12 = vpack.c.bf16 %v4721_v22, %v4720_v58  ;;  %v4465_v61 = vmul.f32 1.6732632, %v11730_v45  ;;  %v4231_v16 = vadd.f32 %v13869_v13, %v4142_v34 }
 0x5f4   : > { %11731 = vpow2.f32 %v4418_v10  ;;  %5699 = vmatmul.bf16.gmra.mxu2 %v14012_v20  ;;  %v14022_v28 = vadd.f32 %v5843_v54, %v5755_v2  ;;  %v4144_v10 = vadd.f32 %v13876_v50, %v4055_v24  ;;  %v14040_v50 = vpop.f32.mrf.mxu0  ;;  %v16476_v54 = vld [vmem:[#allocation22_spill] sm:$0xff]  ;;  %v16479_v24 = vld [vmem:[#allocation23_spill] sm:$0xff] }
 0x5f5   : > { %5877 = vmatmul.bf16.gmra.mxu0 %v4995_v12  ;;  %v10365_v39 = vadd.f32 -1.6732632, %v4465_v61  ;;  %v4316_v46 = vpop.f32.mrf.mxu1 }
 0x5f6   : > { %v4317_v7 = vadd.f32 %v4316_v46, %v4228_v25  ;;  %v16475_v25 = vld [vmem:[#allocation12_spill] sm:$0xff] }
 0x5f7   : > { %v4561_v31 = vsel %vm4529_vm0, %v4312_v23, %v10365_v39  ;;  %v4233_v32 = vadd.f32 %v16475_v25, %v4144_v10 }
 0x5f8   : > { %v4593_v42 = vmul.f32 1.050701, %v4561_v31  ;;  %v4371_v19 = vmin.f32 %v4317_v7, 0.0  ;;  %vm4531_vm2 = vcmp.gt.f32.partialorder %v4317_v7, 0.0 }
 0x5f9   : > { %v4658_v58 = vld [vmem:[#allocation2 + $0x107] sm:$0xff] }
 0x5fa   : > { %v11732_v29 = vpop.eup %11731  ;;  %4625 = vst [vmem:[#allocation2 + $0x110] sm:$0xff] %v4593_v42  ;;  %v4420_v6 = vmul.f32 1.442695, %v4371_v19  ;;  %v5003_v43 = vpack.c.bf16 %v4593_v42, %v4592_v56  ;;  %v16477_v42 = vld [vmem:[#allocation14_spill] sm:$0xff] }
 0x5fb   : > { %v4466_v27 = vmul.f32 1.6732632, %v11732_v29  ;;  %v4147_v19 = vadd.f32 %v16477_v42, %v16476_v54 }
 0x5fc   : > { %11733 = vpow2.f32 %v4420_v6  ;;  %5793 = vmatmul.bf16.gmra.mxu3 %v5003_v43  ;;  %v16478_v43 = vld [vmem:[#allocation16_spill] sm:$0xff] }
 0x5fd   : > { %v10366_v23 = vadd.f32 -1.6732632, %v4466_v27  ;;  %v4319_v30 = vpop.f32.mrf.mxu1  ;;  %v4236_v8 = vadd.f32 %v16478_v43, %v4147_v19 }
 0x5fe   : > { %v4320_v55 = vadd.f32 %v4319_v30, %v4231_v16  ;;  %v14045_v30 = vpop.f32.mrf.mxu2 }
 0x5ff   : > { %v4562_v4 = vsel %vm4530_vm1, %v4315_v60, %v10366_v23 }
 0x600   : > { %v4594_v15 = vmul.f32 1.050701, %v4562_v4  ;;  %v4372_v56 = vmin.f32 %v4320_v55, 0.0  ;;  %5936 = vmatmul.bf16.gmra.mxu1 %v13905_v9  ;;  %v14038_v9 = vpop.f32.mrf.mxu3  ;;  %vm4532_vm3 = vcmp.gt.f32.partialorder %v4320_v55, 0.0 }
 0x601   : > { %v4659_v22 = vld [vmem:[#allocation2 + $0x10f] sm:$0xff] }
 0x602   : > { %v4722_v45 = vld [vmem:[#allocation2 + $0x109] sm:$0xff]  ;;  %v4723_v17 = vld [vmem:[#allocation2 + $0x111] sm:$0xff]  ;;  %v11734_v13 = vpop.eup %11733  ;;  %4626 = vst [vmem:[#allocation2 + $0x128] sm:$0xff] %v4594_v15  ;;  %v4422_v12 = vmul.f32 1.442695, %v4372_v56  ;;  %v14034_v61 = vpack.c.bf16 %v4659_v22, %v4658_v58  ;;  %v16480_v56 = vld [vmem:[#allocation5_spill] sm:$0xff] }
 0x603   : > { %v5004_v0 = vpack.c.bf16 %v4723_v17, %v4722_v45  ;;  %v4467_v60 = vmul.f32 1.6732632, %v11734_v13  ;;  %v4060_v58 = vadd.f32 %v16480_v56, %v16479_v24 }
 0x604   : > { %11735 = vpow2.f32 %v4422_v12  ;;  %5704 = vmatmul.bf16.gmra.mxu2 %v14034_v61 }
 0x605   : > { %5882 = vmatmul.bf16.gmra.mxu0 %v5004_v0  ;;  %v10367_v48 = vadd.f32 -1.6732632, %v4467_v60  ;;  %v4321_v5 = vpop.f32.mrf.mxu1  ;;  %v16481_v60 = vld [vmem:[#allocation15_spill] sm:$0xff] }
 0x606   : > { %v4322_v39 = vadd.f32 %v4321_v5, %v4233_v32  ;;  %v4149_v25 = vadd.f32 %v16481_v60, %v4060_v58  ;;  %v11497_v58 = vld [vmem:[%s16382_s1 + $0x5b0] sm:$0xff] }
 0x607   : > { %v4563_v46 = vsel %vm4531_vm2, %v4317_v7, %v10367_v48  ;;  %6013 = vmatpush.bf16.msra.mxu2 %v11497_v58  ;;  %v16486_v60 = vld [vmem:[#allocation7_spill] sm:$0xff] }
 0x608   : > { %v4595_v18 = vmul.f32 1.050701, %v4563_v46  ;;  %v4373_v2 = vmin.f32 %v4322_v39, 0.0  ;;  %v16482_v46 = vld [vmem:[#allocation17_spill] sm:$0xff]  ;;  %vm4533_vm4 = vcmp.gt.f32.partialorder %v4322_v39, 0.0 }
 0x60a   : > { %v11736_v31 = vpop.eup %11735  ;;  %4627 = vst [vmem:[#allocation2 + $0x130] sm:$0xff] %v4595_v18  ;;  %v4424_v29 = vmul.f32 1.442695, %v4373_v2  ;;  %v5012_v34 = vpack.c.bf16 %v4595_v18, %v4594_v15  ;;  %v4660_v15 = vld [vmem:[#allocation2 + $0x127] sm:$0xff]  ;;  %v4238_v18 = vadd.f32 %v16482_v46, %v4149_v25 }
 0x60b   : > { %v4468_v6 = vmul.f32 1.6732632, %v11736_v31 }
 0x60c   : > { %11737 = vpow2.f32 %v4424_v29  ;;  %5798 = vmatmul.bf16.gmra.mxu3 %v5012_v34 }
 0x60d   : > { %v10368_v27 = vadd.f32 -1.6732632, %v4468_v6  ;;  %v4324_v16 = vpop.f32.mrf.mxu1 }
 0x60e   : > { %v4325_v7 = vadd.f32 %v4324_v16, %v4236_v8 }
 0x60f   : > { %v4564_v23 = vsel %vm4532_vm3, %v4320_v55, %v10368_v27  ;;  %v5759_v4 = vpop.f32.mrf.mxu3  ;;  %v16483_v27 = vld [vmem:[#allocation24_spill] sm:$0xff] }
 0x610   : > { %v4596_v22 = vmul.f32 1.050701, %v4564_v23  ;;  %v4374_v45 = vmin.f32 %v4325_v7, 0.0  ;;  %5941 = vmatmul.bf16.gmra.mxu1 %v13919_v59  ;;  %v4152_v16 = vadd.f32 %v13894_v47, %v16483_v27  ;;  %vm4534_vm5 = vcmp.gt.f32.partialorder %v4325_v7, 0.0 }
 0x611   : > { %v4661_v13 = vld [vmem:[#allocation2 + $0x12f] sm:$0xff] }
 0x612   : > { %v5848_v17 = vpop.f32.mrf.mxu0  ;;  %v4724_v10 = vld [vmem:[#allocation2 + $0x129] sm:$0xff]  ;;  %v4725_v12 = vld [vmem:[#allocation2 + $0x131] sm:$0xff]  ;;  %v11738_v0 = vpop.eup %11737  ;;  %4628 = vst [vmem:[#allocation2 + $0x148] sm:$0xff] %v4596_v22  ;;  %v4426_v55 = vmul.f32 1.442695, %v4374_v45  ;;  %v14051_v32 = vpack.c.bf16 %v4661_v13, %v4660_v15 }
 0x613   : > { %v5013_v48 = vpack.c.bf16 %v4725_v12, %v4724_v10  ;;  %v4469_v5 = vmul.f32 1.6732632, %v11738_v0  ;;  %v16484_v45 = vld [vmem:[#allocation19_spill] sm:$0xff]  ;;  %v16485_v0 = vld [vmem:[#allocation6_spill] sm:$0xff] }
 0x614   : > { %11739 = vpow2.f32 %v4426_v55  ;;  %5709 = vmatmul.bf16.gmra.mxu2 %v14051_v32  ;;  %v4241_v15 = vadd.f32 %v16484_v45, %v4152_v16 }
 0x615   : > { %5887 = vmatmul.bf16.gmra.mxu0 %v5013_v48  ;;  %v10369_v59 = vadd.f32 -1.6732632, %v4469_v5  ;;  %v4326_v2 = vpop.f32.mrf.mxu1 }
 0x616   : > { %v4327_v31 = vadd.f32 %v4326_v2, %v4238_v18 }
 0x617   : > { %v4565_v54 = vsel %vm4533_vm4, %v4322_v39, %v10369_v59  ;;  %v5670_v42 = vpop.f32.mrf.mxu2  ;;  %v5761_v19 = vpop.f32.mrf.mxu3  ;;  %v16487_v59 = vld [vmem:[#allocation18_spill] sm:$0xff] }
 0x618   : > { %v4597_v29 = vmul.f32 1.050701, %v4565_v54  ;;  %v4375_v34 = vmin.f32 %v4327_v31, 0.0  ;;  %v5671_v6 = vadd.f32 %v14017_v41, %v5670_v42  ;;  %vm4535_vm6 = vcmp.gt.f32.partialorder %v4327_v31, 0.0 }
 0x619   : > { %v4662_v18 = vld [vmem:[#allocation2 + $0x147] sm:$0xff] }
 0x61a   : > { %v5850_v43 = vpop.f32.mrf.mxu0  ;;  %v11740_v8 = vpop.eup %11739  ;;  %4629 = vst [vmem:[#allocation2 + $0x150] sm:$0xff] %v4597_v29  ;;  %v4428_v23 = vmul.f32 1.442695, %v4375_v34  ;;  %v5760_v24 = vadd.f32 %v5759_v4, %v5671_v6  ;;  %v5021_v56 = vpack.c.bf16 %v4597_v29, %v4596_v22  ;;  %v4065_v4 = vadd.f32 %v16486_v60, %v16485_v0 }
 0x61b   : > { %v4470_v39 = vmul.f32 1.6732632, %v11740_v8 }
 0x61c   : > { %11741 = vpow2.f32 %v4428_v23  ;;  %5803 = vmatmul.bf16.gmra.mxu3 %v5021_v56  ;;  %v14062_v13 = vadd.f32 %v5848_v17, %v5760_v24  ;;  %v4154_v17 = vadd.f32 %v16487_v59, %v4065_v4 }
 0x61d   : > { %v10370_v10 = vadd.f32 -1.6732632, %v4470_v39  ;;  %v4329_v12 = vpop.f32.mrf.mxu1 }
 0x61e   : > { %v4330_v47 = vadd.f32 %v4329_v12, %v4241_v15  ;;  %v4243_v23 = vadd.f32 %v13903_v21, %v4154_v17  ;;  %v16488_v21 = vld [vmem:[#allocation25_spill] sm:$0xff] }
 0x61f   : > { %v4566_v22 = vsel %vm4534_vm5, %v4325_v7, %v10370_v10  ;;  %v5672_v25 = vpop.f32.mrf.mxu2  ;;  %v5764_v55 = vpop.f32.mrf.mxu3  ;;  %v4157_v4 = vadd.f32 %v13909_v1, %v16488_v21 }
 0x620   : > { %v4598_v48 = vmul.f32 1.050701, %v4566_v22  ;;  %v4376_v5 = vmin.f32 %v4330_v47, 0.0  ;;  %v5673_v46 = vadd.f32 %v14017_v41, %v5672_v25  ;;  %5946 = vmatmul.bf16.gmra.mxu1 %v13938_v36  ;;  %vm4536_vm7 = vcmp.gt.f32.partialorder %v4330_v47, 0.0 }
 0x621   : > { %v4663_v54 = vld [vmem:[#allocation2 + $0x14f] sm:$0xff] }
 0x622   : > { %v5853_v2 = vpop.f32.mrf.mxu0  ;;  %v4726_v42 = vld [vmem:[#allocation2 + $0x149] sm:$0xff]  ;;  %v4727_v29 = vld [vmem:[#allocation2 + $0x151] sm:$0xff]  ;;  %v11742_v34 = vpop.eup %11741  ;;  %4630 = vst [vmem:[#allocation2 + $0x168] sm:$0xff] %v4598_v48  ;;  %v4430_v6 = vmul.f32 1.442695, %v4376_v5  ;;  %v5762_v8 = vadd.f32 %v5761_v19, %v5673_v46  ;;  %v14069_v7 = vpack.c.bf16 %v4663_v54, %v4662_v18  ;;  %v16489_v46 = vld [vmem:[#allocation20_spill] sm:$0xff] }
 0x623   : > { %v5022_v27 = vpack.c.bf16 %v4727_v29, %v4726_v42  ;;  %v4471_v16 = vmul.f32 1.6732632, %v11742_v34  ;;  %v4246_v18 = vadd.f32 %v16489_v46, %v4157_v4  ;;  %v16490_v42 = vld [vmem:[#allocation8_spill] sm:$0xff]  ;;  %v16491_v29 = vld [vmem:[#allocation26_spill] sm:$0xff] }
 0x624   : > { %11743 = vpow2.f32 %v4430_v6  ;;  %5714 = vmatmul.bf16.gmra.mxu2 %v14069_v7  ;;  %v14073_v36 = vadd.f32 %v5850_v43, %v5762_v8  ;;  %v4070_v34 = vadd.f32 %v16491_v29, %v16490_v42 }
 0x625   : > { %5892 = vmatmul.bf16.gmra.mxu0 %v5022_v27  ;;  %v10371_v24 = vadd.f32 -1.6732632, %v4471_v16  ;;  %v4331_v56 = vpop.f32.mrf.mxu1 }
 0x626   : > { %v4332_v58 = vadd.f32 %v4331_v56, %v4243_v23 }
 0x627   : > { %v4567_v39 = vsel %vm4535_vm6, %v4327_v31, %v10371_v24  ;;  %v5675_v45 = vpop.f32.mrf.mxu2  ;;  %v5766_v15 = vpop.f32.mrf.mxu3 }
 0x628   : > { %v4599_v19 = vmul.f32 1.050701, %v4567_v39  ;;  %v4377_v10 = vmin.f32 %v4332_v58, 0.0  ;;  %v5676_v12 = vadd.f32 %v14017_v41, %v5675_v45  ;;  %vm4537_vm8 = vcmp.gt.f32.partialorder %v4332_v58, 0.0 }
 0x629   : > { %v4664_v16 = vld [vmem:[#allocation2 + $0x167] sm:$0xff] }
 0x62a   : > { %v5855_v0 = vpop.f32.mrf.mxu0  ;;  %v11744_v60 = vpop.eup %11743  ;;  %4631 = vst [vmem:[#allocation2 + $0x170] sm:$0xff] %v4599_v19  ;;  %v4432_v22 = vmul.f32 1.442695, %v4377_v10  ;;  %v5765_v43 = vadd.f32 %v5764_v55, %v5676_v12  ;;  %v5030_v25 = vpack.c.bf16 %v4599_v19, %v4598_v48 }
 0x62b   : > { %v4472_v5 = vmul.f32 1.6732632, %v11744_v60 }
 0x62c   : > { %11745 = vpow2.f32 %v4432_v22  ;;  %5808 = vmatmul.bf16.gmra.mxu3 %v5030_v25  ;;  %v14079_v31 = vadd.f32 %v5853_v2, %v5765_v43  ;;  %v4159_v2 = vadd.f32 %v13916_v52, %v4070_v34 }
 0x62d   : > { %v10372_v59 = vadd.f32 -1.6732632, %v4472_v5  ;;  %v4334_v17 = vpop.f32.mrf.mxu1 }
 0x62e   : > { %v4335_v54 = vadd.f32 %v4334_v17, %v4246_v18  ;;  %v4248_v21 = vadd.f32 %v13921_v35, %v4159_v2  ;;  %v16492_v35 = vld [vmem:[#allocation27_spill] sm:$0xff]  ;;  %v16493_v2 = vld [vmem:[#allocation10_spill] sm:$0xff] }
 0x62f   : > { %v4568_v6 = vsel %vm4536_vm7, %v4330_v47, %v10372_v59  ;;  %v5677_v1 = vpop.f32.mrf.mxu2  ;;  %v5769_v8 = vpop.f32.mrf.mxu3  ;;  %v4162_v42 = vadd.f32 %v13927_v38, %v16492_v35 }
 0x630   : > { %v4600_v27 = vmul.f32 1.050701, %v4568_v6  ;;  %v4378_v55 = vmin.f32 %v4335_v54, 0.0  ;;  %v5678_v48 = vadd.f32 %v14017_v41, %v5677_v1  ;;  %5951 = vmatmul.bf16.gmra.mxu1 %v13968_v62  ;;  %v11496_v6 = vld [vmem:[%s16382_s1 + $0x5a8] sm:$0xff]  ;;  %vm4538_vm9 = vcmp.gt.f32.partialorder %v4335_v54, 0.0 }
 0x631   : > { %v4665_v24 = vld [vmem:[#allocation2 + $0x16f] sm:$0xff]  ;;  %v4251_v1 = vadd.f32 %v13930_v14, %v4162_v42  ;;  %6014 = vmatpush.bf16.msra.mxu2 %v11496_v6 }
 0x632   : > { %v5858_v23 = vpop.f32.mrf.mxu0  ;;  %v4728_v56 = vld [vmem:[#allocation2 + $0x169] sm:$0xff]  ;;  %v4729_v39 = vld [vmem:[#allocation2 + $0x171] sm:$0xff]  ;;  %v11746_v45 = vpop.eup %11745  ;;  %4632 = vst [vmem:[#allocation2 + $0x188] sm:$0xff] %v4600_v27  ;;  %v4434_v19 = vmul.f32 1.442695, %v4378_v55  ;;  %v5767_v10 = vadd.f32 %v5766_v15, %v5678_v48  ;;  %v14086_v47 = vpack.c.bf16 %v4665_v24, %v4664_v16  ;;  %v16494_v24 = vld [vmem:[#allocation28_spill] sm:$0xff] }
 0x633   : > { %v5031_v12 = vpack.c.bf16 %v4729_v39, %v4728_v56  ;;  %v4473_v60 = vmul.f32 1.6732632, %v11746_v45 }
 0x634   : > { %11747 = vpow2.f32 %v4434_v19  ;;  %5719 = vmatmul.bf16.gmra.mxu2 %v14086_v47  ;;  %v14090_v62 = vadd.f32 %v5855_v0, %v5767_v10 }
 0x635   : > { %5897 = vmatmul.bf16.gmra.mxu0 %v5031_v12  ;;  %v10373_v52 = vadd.f32 -1.6732632, %v4473_v60  ;;  %v4336_v4 = vpop.f32.mrf.mxu1 }
 0x636   : > { %v4337_v22 = vadd.f32 %v4336_v4, %v4248_v21 }
 0x637   : > { %v4569_v43 = vsel %vm4537_vm8, %v4332_v58, %v10373_v52  ;;  %v5680_v25 = vpop.f32.mrf.mxu2  ;;  %v5771_v5 = vpop.f32.mrf.mxu3 }
 0x638   : > { %v4601_v15 = vmul.f32 1.050701, %v4569_v43  ;;  %v4379_v46 = vmin.f32 %v4337_v22, 0.0  ;;  %v5681_v18 = vadd.f32 %v14017_v41, %v5680_v25  ;;  %vm4539_vm10 = vcmp.gt.f32.partialorder %v4337_v22, 0.0 }
 0x639   : > { %v4666_v14 = vld [vmem:[#allocation2 + $0x187] sm:$0xff] }
 0x63a   : > { %v5860_v59 = vpop.f32.mrf.mxu0  ;;  %v11748_v17 = vpop.eup %11747  ;;  %4633 = vst [vmem:[#allocation2 + $0x190] sm:$0xff] %v4601_v15  ;;  %v4436_v29 = vmul.f32 1.442695, %v4379_v46  ;;  %v5770_v0 = vadd.f32 %v5769_v8, %v5681_v18  ;;  %v5039_v34 = vpack.c.bf16 %v4601_v15, %v4600_v27  ;;  %v4075_v8 = vadd.f32 %v16494_v24, %v16493_v2 }
 0x63b   : > { %v4474_v58 = vmul.f32 1.6732632, %v11748_v17 }
 0x63c   : > { %11749 = vpow2.f32 %v4436_v29  ;;  %5813 = vmatmul.bf16.gmra.mxu3 %v5039_v34  ;;  %v14099_v55 = vadd.f32 %v5858_v23, %v5770_v0  ;;  %v4164_v23 = vadd.f32 %v13945_v63, %v4075_v8 }
 0x63d   : > { %v10374_v48 = vadd.f32 -1.6732632, %v4474_v58  ;;  %v4339_v16 = vpop.f32.mrf.mxu1  ;;  %v11506_v58 = vld [vmem:[%s16382_s1 + $0x5f8] sm:$0xff] }
 0x63e   : > { %v4340_v38 = vadd.f32 %v4339_v16, %v4251_v1  ;;  %v4253_v18 = vadd.f32 %v13950_v3, %v4164_v23  ;;  %v16495_v1 = vld [vmem:[#allocation9_spill] sm:$0xff]  ;;  %6101 = vmatpush.bf16.msra.mxu3 %v11506_v58 }
 0x63f   : > { %v4570_v27 = vsel %vm4538_vm9, %v4335_v54, %v10374_v48  ;;  %v5682_v56 = vpop.f32.mrf.mxu2  ;;  %v5774_v39 = vpop.f32.mrf.mxu3  ;;  %v4167_v48 = vadd.f32 %v13961_v26, %v16495_v1  ;;  %v11503_v1 = vld [vmem:[%s16382_s1 + $0x5e0] sm:$0xff] }
 0x640   : > { %v4602_v45 = vmul.f32 1.050701, %v4570_v27  ;;  %v4380_v19 = vmin.f32 %v4340_v38, 0.0  ;;  %v5683_v10 = vadd.f32 %v14017_v41, %v5682_v56  ;;  %5956 = vmatmul.bf16.gmra.mxu1 %v13991_v44  ;;  %vm4540_vm11 = vcmp.gt.f32.partialorder %v4340_v38, 0.0 }
 0x641   : > { %v4667_v60 = vld [vmem:[#allocation2 + $0x18f] sm:$0xff]  ;;  %v4256_v8 = vadd.f32 %v13965_v57, %v4167_v48 }
 0x642   : > { %v5863_v12 = vpop.f32.mrf.mxu0  ;;  %v4730_v21 = vld [vmem:[#allocation2 + $0x189] sm:$0xff]  ;;  %v4731_v52 = vld [vmem:[#allocation2 + $0x191] sm:$0xff]  ;;  %v11750_v4 = vpop.eup %11749  ;;  %4634 = vst [vmem:[#allocation2 + $0x1a8] sm:$0xff] %v4602_v45  ;;  %v4438_v43 = vmul.f32 1.442695, %v4380_v19  ;;  %v5772_v25 = vadd.f32 %v5771_v5, %v5683_v10  ;;  %v14106_v54 = vpack.c.bf16 %v4667_v60, %v4666_v14 }
 0x643   : > { %v5040_v15 = vpack.c.bf16 %v4731_v52, %v4730_v21  ;;  %v4475_v46 = vmul.f32 1.6732632, %v11750_v4  ;;  %v11505_v10 = vld [vmem:[%s16382_s1 + $0x5f0] sm:$0xff] }
 0x644   : > { %11751 = vpow2.f32 %v4438_v43  ;;  %5724 = vmatmul.bf16.gmra.mxu2 %v14106_v54  ;;  %v14110_v44 = vadd.f32 %v5860_v59, %v5772_v25  ;;  %v16496_v14 = vld [vmem:[#allocation30_spill] sm:$0xff]  ;;  %6102 = vmatpush.bf16.msra.mxu3 %v11505_v10 }
 0x645   : > { %5902 = vmatmul.bf16.gmra.mxu0 %v5040_v15  ;;  %v10375_v63 = vadd.f32 -1.6732632, %v4475_v46  ;;  %v4341_v17 = vpop.f32.mrf.mxu1 }
 0x646   : > { %v14112_v35 = vadd.f32 %v4341_v17, %v4253_v18 }
 0x647   : > { %v4571_v42 = vsel %vm4539_vm10, %v4337_v22, %v10375_v63  ;;  %v5685_v29 = vpop.f32.mrf.mxu2  ;;  %v5776_v5 = vpop.f32.mrf.mxu3 }
 0x648   : > { %v4603_v0 = vmul.f32 1.050701, %v4571_v42  ;;  %v4381_v34 = vmin.f32 %v14112_v35, 0.0  ;;  %v5686_v6 = vadd.f32 %v14017_v41, %v5685_v29  ;;  %vm4541_vm12 = vcmp.gt.f32.partialorder %v14112_v35, 0.0 }
 0x649   : > { %v4668_v4 = vld [vmem:[#allocation2 + $0x1a7] sm:$0xff] }
 0x64a   : > { %v5865_v3 = vpop.f32.mrf.mxu0  ;;  %v11752_v59 = vpop.eup %11751  ;;  %4635 = vst [vmem:[#allocation2 + $0x1b0] sm:$0xff] %v4603_v0  ;;  %v4440_v16 = vmul.f32 1.442695, %v4381_v34  ;;  %v5775_v2 = vadd.f32 %v5774_v39, %v5686_v6  ;;  %v5048_v22 = vpack.c.bf16 %v4603_v0, %v4602_v45  ;;  %v16497_v39 = vld [vmem:[#allocation29_spill] sm:$0xff]  ;;  %v11514_v0 = vld [vmem:[%s16382_s1 + $0x638] sm:$0xff] }
 0x64b   : > { %v4476_v24 = vmul.f32 1.6732632, %v11752_v59  ;;  %v4080_v45 = vadd.f32 %v16497_v39, %v16496_v14  ;;  %6190 = vmatpush.bf16.msra.mxu0 %v11514_v0  ;;  %v11513_v59 = vld [vmem:[%s16382_s1 + $0x630] sm:$0xff] }
 0x64c   : > { %11753 = vpow2.f32 %v4440_v16  ;;  %5818 = vmatmul.bf16.gmra.mxu3 %v5048_v22  ;;  %v14122_v27 = vadd.f32 %v5863_v12, %v5775_v2 }
 0x64d   : > { %v10376_v56 = vadd.f32 -1.6732632, %v4476_v24  ;;  %v4344_v19 = vpop.f32.mrf.mxu1  ;;  %v4169_v43 = vadd.f32 %v13978_v33, %v4080_v45 }
 0x64e   : > { %v14127_v26 = vadd.f32 %v4344_v19, %v4256_v8  ;;  %v11502_v19 = vld [vmem:[%s16382_s1 + $0x5d8] sm:$0xff] }
 0x64f   : > { %v4572_v23 = vsel %vm4540_vm11, %v4340_v38, %v10376_v56  ;;  %v5687_v60 = vpop.f32.mrf.mxu2  ;;  %v5779_v21 = vpop.f32.mrf.mxu3  ;;  %v4258_v34 = vadd.f32 %v13985_v53, %v4169_v43  ;;  %6191 = vmatpush.bf16.msra.mxu0 %v11513_v59  ;;  %v11512_v56 = vld [vmem:[%s16382_s1 + $0x628] sm:$0xff] }
 0x650   : > { %v4604_v57 = vmul.f32 1.050701, %v4572_v23  ;;  %v4382_v12 = vmin.f32 %v14127_v26, 0.0  ;;  %v5688_v52 = vadd.f32 %v14017_v41, %v5687_v60  ;;  %5961 = vmatmul.bf16.gmra.mxu1 %v14012_v20  ;;  %v11504_v20 = vld [vmem:[%s16382_s1 + $0x5e8] sm:$0xff]  ;;  %v11495_v60 = vld [vmem:[%s16382_s1 + $0x5a0] sm:$0xff]  ;;  %vm4542_vm13 = vcmp.gt.f32.partialorder %v14127_v26, 0.0 }
 0x651   : > { %v4669_v15 = vld [vmem:[#allocation2 + $0x1af] sm:$0xff]  ;;  %6103 = vmatpush.bf16.msra.mxu3 %v11504_v20  ;;  %6015 = vmatpush.bf16.msra.mxu2 %v11495_v60 }
 0x652   : > { %v5868_v25 = vpop.f32.mrf.mxu0  ;;  %v4732_v46 = vld [vmem:[#allocation2 + $0x1a9] sm:$0xff]  ;;  %v4733_v18 = vld [vmem:[#allocation2 + $0x1b1] sm:$0xff]  ;;  %v11754_v63 = vpop.eup %11753  ;;  %4636 = vst [vmem:[#allocation2 + $0x1c8] sm:$0xff] %v4604_v57  ;;  %v4442_v38 = vmul.f32 1.442695, %v4382_v12  ;;  %v5777_v17 = vadd.f32 %v5776_v5, %v5688_v52  ;;  %v14135_v42 = vpack.c.bf16 %v4669_v15, %v4668_v4 }
 0x653   : > { %v5049_v29 = vpack.c.bf16 %v4733_v18, %v4732_v46  ;;  %v4477_v33 = vmul.f32 1.6732632, %v11754_v63  ;;  %v11494_v4 = vld [vmem:[%s16382_s1 + $0x598] sm:$0xff]  ;;  %6192 = vmatpush.bf16.msra.mxu0 %v11512_v56  ;;  %v16499_v46 = vld [vmem:[#allocation13_spill] sm:$0xff] }
 0x654   : > { %11755 = vpow2.f32 %v4442_v38  ;;  %5729 = vmatmul.bf16.gmra.mxu2 %v14135_v42  ;;  %v14145_v6 = vadd.f32 %v5865_v3, %v5777_v17 }
 0x655   : > { %5907 = vmatmul.bf16.gmra.mxu0 %v5049_v29  ;;  %v10377_v5 = vadd.f32 -1.6732632, %v4477_v33  ;;  %v4346_v58 = vpop.f32.mrf.mxu1  ;;  %6104 = vmatpush.bf16.msra.mxu3 %v11503_v1  ;;  %v11510_v33 = vld [vmem:[%s16382_s1 + $0x618] sm:$0xff] }
 0x656   : > { %v14154_v53 = vadd.f32 %v4346_v58, %v4258_v34  ;;  %6016 = vmatpush.bf16.msra.mxu2 %v11494_v4  ;;  %v11508_v4 = vld [vmem:[%s16382_s1 + $0x608] sm:$0xff] }
 0x657   : > { %v4573_v48 = vsel %vm4541_vm12, %v14112_v35, %v10377_v5  ;;  %v5690_v3 = vpop.f32.mrf.mxu2  ;;  %v5781_v16 = vpop.f32.mrf.mxu3  ;;  %v16498_v35 = vld [vmem:[#allocation11_spill] sm:$0xff] }
 0x658   : > { %v4605_v2 = vmul.f32 1.050701, %v4573_v48  ;;  %v4383_v22 = vmin.f32 %v14154_v53, 0.0  ;;  %v5691_v24 = vadd.f32 %v14017_v41, %v5690_v3  ;;  %v4172_v14 = vadd.f32 %v13993_v51, %v16498_v35  ;;  %v11492_v35 = vld [vmem:[%s16382_s1 + $0x588] sm:$0xff] }
 0x659   : > { %6105 = vmatpush.bf16.msra.mxu3 %v11502_v19  ;;  %v4670_v20 = vld [vmem:[#allocation2 + $0x1c7] sm:$0xff]  ;;  %vm4543_vm14 = vcmp.gt.f32.partialorder %v14154_v53, 0.0 }
 0x65a   : > { %v5870_v8 = vpop.f32.mrf.mxu0  ;;  %v11756_v10 = vpop.eup %11755  ;;  %4637 = vst [vmem:[#allocation2 + $0x1d0] sm:$0xff] %v4605_v2  ;;  %v4444_v39 = vmul.f32 1.442695, %v4383_v22  ;;  %v5780_v45 = vadd.f32 %v5779_v21, %v5691_v24  ;;  %v5057_v23 = vpack.c.bf16 %v4605_v2, %v4604_v57  ;;  %v4261_v52 = vadd.f32 %v13997_v37, %v4172_v14  ;;  %v11511_v21 = vld [vmem:[%s16382_s1 + $0x620] sm:$0xff]  ;;  %v11501_v37 = vld [vmem:[%s16382_s1 + $0x5d0] sm:$0xff]  ;;  %v11500_v22 = vld [vmem:[%s16382_s1 + $0x5c8] sm:$0xff] }
 0x65b   : > { %v4478_v12 = vmul.f32 1.6732632, %v11756_v10  ;;  %6193 = vmatpush.bf16.msra.mxu0 %v11511_v21 }
 0x65c   : > { %11757 = vpow2.f32 %v4444_v39  ;;  %5823 = vmatmul.bf16.gmra.mxu3 %v5057_v23  ;;  %v14174_v43 = vadd.f32 %v5868_v25, %v5780_v45  ;;  %v4085_v25 = vadd.f32 %v14001_v11, %v16499_v46  ;;  %v11493_v11 = vld [vmem:[%s16382_s1 + $0x590] sm:$0xff] }
 0x65d   : > { %v10378_v51 = vadd.f32 -1.6732632, %v4478_v12  ;;  %v4349_v15 = vpop.f32.mrf.mxu1  ;;  %6106 = vmatpush.bf16.msra.mxu3 %v11501_v37  ;;  %6017 = vmatpush.bf16.msra.mxu2 %v11493_v11 }
 0x65e   : > { %v14183_v57 = vadd.f32 %v4349_v15, %v4261_v52 }
 0x65f   : > { %v4574_v18 = vsel %vm4542_vm13, %v14127_v26, %v10378_v51  ;;  %v5692_v63 = vpop.f32.mrf.mxu2  ;;  %v5784_v38 = vpop.f32.mrf.mxu3  ;;  %v4174_v26 = vadd.f32 %v14004_v40, %v4085_v25  ;;  %6194 = vmatpush.bf16.msra.mxu0 %v11510_v33  ;;  %v11491_v51 = vld [vmem:[%s16382_s1 + $0x580] sm:$0xff] }
 0x660   : > { %v4606_v17 = vmul.f32 1.050701, %v4574_v18  ;;  %v4384_v29 = vmin.f32 %v14183_v57, 0.0  ;;  %v5693_v0 = vadd.f32 %v14017_v41, %v5692_v63  ;;  %5966 = vmatmul.bf16.gmra.mxu1 %v14034_v61  ;;  %vm4544_vm15 = vcmp.gt.f32.partialorder %v14183_v57, 0.0 }
 0x661   : > { %v4671_v5 = vld [vmem:[#allocation2 + $0x1cf] sm:$0xff]  ;;  %v4263_v40 = vadd.f32 %v14006_v49, %v4174_v26  ;;  %6107 = vmatpush.bf16.msra.mxu3 %v11500_v22  ;;  %6018 = vmatpush.bf16.msra.mxu2 %v11492_v35 }
 0x662   : > { %v5873_v34 = vpop.f32.mrf.mxu0  ;;  %v4734_v58 = vld [vmem:[#allocation2 + $0x1c9] sm:$0xff]  ;;  %v4735_v59 = vld [vmem:[#allocation2 + $0x1d1] sm:$0xff]  ;;  %v11758_v1 = vpop.eup %11757  ;;  %4638 = vst [vmem:[#allocation2 + $0x1e8] sm:$0xff] %v4606_v17  ;;  %v4446_v61 = vmul.f32 1.442695, %v4384_v29  ;;  %v5782_v48 = vadd.f32 %v5781_v16, %v5693_v0  ;;  %v14198_v3 = vpack.c.bf16 %v4671_v5, %v4670_v20  ;;  %v11507_v29 = vld [vmem:[%s16382_s1 + $0x600] sm:$0xff] }
 0x663   : > { %v5058_v2 = vpack.c.bf16 %v4735_v59, %v4734_v58  ;;  %v4479_v24 = vmul.f32 1.6732632, %v11758_v1  ;;  %v11509_v16 = vld [vmem:[%s16382_s1 + $0x610] sm:$0xff] }
 0x664   : > { %11759 = vpow2.f32 %v4446_v61  ;;  %5734 = vmatmul.bf16.gmra.mxu2 %v14198_v3  ;;  %v14205_v56 = vadd.f32 %v5870_v8, %v5782_v48  ;;  %v11499_v8 = vld [vmem:[%s16382_s1 + $0x5c0] sm:$0xff]  ;;  %6195 = vmatpush.bf16.msra.mxu0 %v11509_v16  ;;  %v4803_v16 = vld [vmem:[#allocation2 + $0x31] sm:$0xff] }
 0x665   : > { %5912 = vmatmul.bf16.gmra.mxu0 %v5058_v2  ;;  %v10379_v19 = vadd.f32 -1.6732632, %v4479_v24  ;;  %v4351_v10 = vpop.f32.mrf.mxu1  ;;  %6108 = vmatpush.bf16.msra.mxu3 %v11499_v8 }
 0x666   : > { %v4352_v49 = vadd.f32 %v4351_v10, %v4263_v40  ;;  %6019 = vmatpush.bf16.msra.mxu2 %v11491_v51  ;;  %v4802_v10 = vld [vmem:[#allocation2 + $0x29] sm:$0xff] }
 0x667   : > { %v4575_v14 = vsel %vm4543_vm14, %v14154_v53, %v10379_v19  ;;  %v5695_v39 = vpop.f32.mrf.mxu2  ;;  %v5786_v45 = vpop.f32.mrf.mxu3 }
 0x668   : > { %v4607_v23 = vmul.f32 1.050701, %v4575_v14  ;;  %v4385_v60 = vmin.f32 %v4352_v49, 0.0  ;;  %v5696_v12 = vadd.f32 %v14017_v41, %v5695_v39  ;;  %6196 = vmatpush.bf16.msra.mxu0 %v11508_v4  ;;  %vm4545_vm0 = vcmp.gt.f32.partialorder %v4352_v49, 0.0  ;;  %v4835_v4 = vld [vmem:[#allocation2 + $0x4f] sm:$0xff] }
 0x669   : > { %v4672_v26 = vld [vmem:[#allocation2 + $0x1e7] sm:$0xff] }
 0x66a   : > { %v5875_v52 = vpop.f32.mrf.mxu0  ;;  %v11760_v15 = vpop.eup %11759  ;;  %4639 = vst [vmem:[#allocation2 + $0x1f0] sm:$0xff] %v4607_v23  ;;  %v4448_v53 = vmul.f32 1.442695, %v4385_v60  ;;  %v5785_v21 = vadd.f32 %v5784_v38, %v5696_v12  ;;  %v5066_v37 = vpack.c.bf16 %v4607_v23, %v4606_v17 }
 0x66b   : > { %v4480_v46 = vmul.f32 1.6732632, %v11760_v15 }
 0x66c   : > { %11761 = vpow2.f32 %v4448_v53  ;;  %5828 = vmatmul.bf16.gmra.mxu3 %v5066_v37  ;;  %v14225_v25 = vadd.f32 %v5873_v34, %v5785_v21  ;;  %6197 = vmatpush.bf16.msra.mxu0 %v11507_v29  ;;  %v4770_v21 = vld [vmem:[#allocation2 + $0x28] sm:$0xff] }
 0x66d   : > { %v10380_v18 = vadd.f32 -1.6732632, %v4480_v46  ;;  %v5932_v63 = vpop.f32.mrf.mxu1  ;;  %v4834_v37 = vld [vmem:[#allocation2 + $0x47] sm:$0xff] }
 0x66e   : > { %v14232_v0 = vadd.f32 %v5932_v63, %v14022_v28  ;;  %v4936_v63 = vpack.c.bf16 %v4835_v4, %v4834_v37  ;;  %v4775_v37 = vld [vmem:[#allocation2 + $0x70] sm:$0xff] }
 0x66f   : > { %v4576_v38 = vsel %vm4544_vm15, %v14183_v57, %v10380_v18  ;;  %v5697_v17 = vpop.f32.mrf.mxu2  ;;  %v5789_v20 = vpop.f32.mrf.mxu3 }
 0x670   : > { %v4608_v33 = vmul.f32 1.050701, %v4576_v38  ;;  %v5698_v11 = vadd.f32 %v14017_v41, %v5697_v17  ;;  %5971 = vmatmul.bf16.gmra.mxu1 %v14051_v32 }
 0x671   : > { %v4673_v5 = vld [vmem:[#allocation2 + $0x1ef] sm:$0xff] }
 0x672   : > { %v5878_v34 = vpop.f32.mrf.mxu0  ;;  %v4736_v58 = vld [vmem:[#allocation2 + $0x1e9] sm:$0xff]  ;;  %v4737_v59 = vld [vmem:[#allocation2 + $0x1f1] sm:$0xff]  ;;  %v11762_v1 = vpop.eup %11761  ;;  %4640 = vst [vmem:[#allocation2 + $0x208] sm:$0xff] %v4608_v33  ;;  %v5787_v61 = vadd.f32 %v5786_v45, %v5698_v11  ;;  %v14237_v28 = vpack.c.bf16 %v4673_v5, %v4672_v26  ;;  %v4935_v45 = vpack.c.bf16 %v4803_v16, %v4802_v10 }
 0x673   : > { %v5067_v48 = vpack.c.bf16 %v4737_v59, %v4736_v58  ;;  %v4481_v57 = vmul.f32 1.6732632, %v11762_v1  ;;  %v4804_v33 = vld [vmem:[#allocation2 + $0x49] sm:$0xff]  ;;  %v4805_v11 = vld [vmem:[#allocation2 + $0x51] sm:$0xff] }
 0x674   : > { %5739 = vmatmul.bf16.gmra.mxu2 %v14237_v28  ;;  %v14240_v2 = vadd.f32 %v5875_v52, %v5787_v61  ;;  %v4944_v5 = vpack.c.bf16 %v4805_v11, %v4804_v33 }
 0x675   : > { %5917 = vmatmul.bf16.gmra.mxu0 %v5067_v48  ;;  %v10381_v22 = vadd.f32 -1.6732632, %v4481_v57  ;;  %v14242_v32 = vpop.f32.mrf.mxu1  ;;  %v4773_v48 = vld [vmem:[#allocation2 + $0x50] sm:$0xff] }
 0x677   : > { %v4577_v24 = vsel %vm4545_vm0, %v4352_v49, %v10381_v22  ;;  %v5700_v40 = vpop.f32.mrf.mxu2  ;;  %v5791_v19 = vpop.f32.mrf.mxu3  ;;  %v4771_v49 = vld [vmem:[#allocation2 + $0x30] sm:$0xff] }
 0x678   : > { %v4609_v35 = vmul.f32 1.050701, %v4577_v24  ;;  %v5701_v8 = vadd.f32 %v14017_v41, %v5700_v40  ;;  %v4934_v18 = vpack.c.bf16 %v4771_v49, %v4770_v21  ;;  %v4772_v40 = vld [vmem:[#allocation2 + $0x48] sm:$0xff] }
 0x679   : > { %v14265_v16 = vpack.c.bf16 %v4773_v48, %v4772_v40 }
 0x67a   : > { %v5880_v14 = vpop.f32.mrf.mxu0  ;;  %4641 = vst [vmem:[#allocation2 + $0x210] sm:$0xff] %v4609_v35  ;;  %v5790_v39 = vadd.f32 %v5789_v20, %v5701_v8 }
 0x67c   : > { %6109 = vmatmul.bf16.vlgmr.msra.gmra.mxu3 %v4935_v45  ;;  %v14245_v23 = vadd.f32 %v5878_v34, %v5790_v39  ;;  %v4806_v45 = vld [vmem:[#allocation2 + $0x69] sm:$0xff] }
 0x67d   : > { %v5937_v60 = vpop.f32.mrf.mxu1 }
 0x67e   : > { %v14248_v12 = vadd.f32 %v5937_v60, %v14062_v13  ;;  %v14276_v60 = vld [vmem:[%s16383_s2 + $0x2] ss:$0 sm:$0xff] }
 0x67f   : > { %v5702_v52 = vpop.f32.mrf.mxu2  ;;  %v5794_v51 = vpop.f32.mrf.mxu3 }
 0x680   : > { %v5703_v15 = vadd.f32 %v14017_v41, %v5702_v52  ;;  %5976 = vmatmul.bf16.gmra.mxu1 %v14069_v7 }
 0x682   : > { %v5883_v53 = vpop.f32.mrf.mxu0  ;;  %v5792_v46 = vadd.f32 %v5791_v19, %v5703_v15  ;;  %v4836_v19 = vld [vmem:[#allocation2 + $0x67] sm:$0xff] }
 0x684   : > { %6020 = vmatmul.bf16.vlgmr.msra.gmra.mxu2 %v4934_v18  ;;  %v14252_v29 = vadd.f32 %v5880_v14, %v5792_v46  ;;  %v4839_v46 = vld [vmem:[#allocation2 + $0x8f] sm:$0xff] }
 0x685   : > { %6198 = vmatmul.bf16.vlgmr.msra.gmra.mxu0 %v4936_v63  ;;  %v5939_v13 = vpop.f32.mrf.mxu1 }
 0x686   : > { %v14255_v38 = vadd.f32 %v5939_v13, %v14073_v36  ;;  %v4837_v36 = vld [vmem:[#allocation2 + $0x6f] sm:$0xff] }
 0x687   : > { %v5705_v17 = vpop.f32.mrf.mxu2  ;;  %v5796_v20 = vpop.f32.mrf.mxu3  ;;  %v4945_v35 = vpack.c.bf16 %v4837_v36, %v4836_v19 }
 0x688   : > { %v5706_v7 = vadd.f32 %v14017_v41, %v5705_v17  ;;  %v4774_v17 = vld [vmem:[#allocation2 + $0x68] sm:$0xff] }
 0x689   : > { %v14286_v11 = vpack.c.bf16 %v4775_v37, %v4774_v17 }
 0x68a   : > { %v5885_v26 = vpop.f32.mrf.mxu0  ;;  %v5795_v34 = vadd.f32 %v5794_v51, %v5706_v7 }
 0x68c   : > { %6114 = vmatmul.bf16.gmra.mxu3 %v4944_v5  ;;  %v14258_v58 = vadd.f32 %v5883_v53, %v5795_v34 }
 0x68d   : > { %v5942_v59 = vpop.f32.mrf.mxu1 }
 0x68e   : > { %v14261_v1 = vadd.f32 %v5942_v59, %v14079_v31 }
 0x68f   : > { %v5707_v61 = vpop.f32.mrf.mxu2  ;;  %v5799_v57 = vpop.f32.mrf.mxu3 }
 0x690   : > { %v5708_v22 = vadd.f32 %v14017_v41, %v5707_v61  ;;  %5981 = vmatmul.bf16.gmra.mxu1 %v14086_v47  ;;  %v4807_v47 = vld [vmem:[#allocation2 + $0x71] sm:$0xff]  ;;  %v4808_v61 = vld [vmem:[#allocation2 + $0x89] sm:$0xff] }
 0x691   : > { %v4953_v51 = vpack.c.bf16 %v4807_v47, %v4806_v45  ;;  %v4776_v45 = vld [vmem:[#allocation2 + $0x88] sm:$0xff] }
 0x692   : > { %v5888_v24 = vpop.f32.mrf.mxu0  ;;  %v5797_v10 = vadd.f32 %v5796_v20, %v5708_v22  ;;  %v4838_v20 = vld [vmem:[#allocation2 + $0x87] sm:$0xff] }
 0x693   : > { %v4954_v7 = vpack.c.bf16 %v4839_v46, %v4838_v20  ;;  %v4840_v47 = vld [vmem:[#allocation2 + $0xa7] sm:$0xff] }
 0x694   : > { %6025 = vmatmul.bf16.gmra.mxu2 %v14265_v16  ;;  %v14268_v31 = vadd.f32 %v5885_v26, %v5797_v10 }
 0x695   : > { %6203 = vmatmul.bf16.gmra.mxu0 %v4945_v35  ;;  %v5944_v8 = vpop.f32.mrf.mxu1  ;;  %v4777_v35 = vld [vmem:[#allocation2 + $0x90] sm:$0xff] }
 0x696   : > { %v14271_v14 = vadd.f32 %v5944_v8, %v14090_v62 }
 0x697   : > { %v5710_v39 = vpop.f32.mrf.mxu2  ;;  %v5801_v41 = vpop.f32.mrf.mxu3 }
 0x698   : > { %v5711_v52 = vadd.f32 %v14276_v60, %v5710_v39 }
 0x69a   : > { %v5890_v49 = vpop.f32.mrf.mxu0  ;;  %v5800_v4 = vadd.f32 %v5799_v57, %v5711_v52 }
 0x69c   : > { %6119 = vmatmul.bf16.gmra.mxu3 %v4953_v51  ;;  %v14279_v15 = vadd.f32 %v5888_v24, %v5800_v4 }
 0x69d   : > { %v5947_v53 = vpop.f32.mrf.mxu1 }
 0x69e   : > { %v14282_v62 = vadd.f32 %v5947_v53, %v14099_v55 }
 0x69f   : > { %v5712_v21 = vpop.f32.mrf.mxu2  ;;  %v5804_v18 = vpop.f32.mrf.mxu3 }
 0x6a0   : > { %v5713_v63 = vadd.f32 %v14276_v60, %v5712_v21  ;;  %5986 = vmatmul.bf16.gmra.mxu1 %v14106_v54  ;;  %v4809_v54 = vld [vmem:[#allocation2 + $0x91] sm:$0xff] }
 0x6a1   : > { %v4962_v22 = vpack.c.bf16 %v4809_v54, %v4808_v61  ;;  %v11521_v21 = vld [vmem:[%s16382_s1 + $0x670] sm:$0xff] }
 0x6a2   : > { %v5893_v13 = vpop.f32.mrf.mxu0  ;;  %v5802_v33 = vadd.f32 %v5801_v41, %v5713_v63  ;;  %v4811_v63 = vld [vmem:[#allocation2 + $0xb1] sm:$0xff] }
 0x6a3   : > { %v4779_v54 = vld [vmem:[#allocation2 + $0xb0] sm:$0xff] }
 0x6a4   : > { %6030 = vmatmul.bf16.gmra.mxu2 %v14286_v11  ;;  %v14289_v55 = vadd.f32 %v5890_v49, %v5802_v33  ;;  %v14302_v49 = vpack.c.bf16 %v4777_v35, %v4776_v45  ;;  %v11517_v45 = vld [vmem:[%s16382_s1 + $0x650] sm:$0xff] }
 0x6a5   : > { %6208 = vmatmul.bf16.gmra.mxu0 %v4954_v7  ;;  %v5949_v26 = vpop.f32.mrf.mxu1  ;;  %v11520_v7 = vld [vmem:[%s16382_s1 + $0x668] sm:$0xff] }
 0x6a6   : > { %v14292_v34 = vadd.f32 %v5949_v26, %v14110_v44  ;;  %v4841_v44 = vld [vmem:[#allocation2 + $0xaf] sm:$0xff] }
 0x6a7   : > { %v5715_v5 = vpop.f32.mrf.mxu2  ;;  %v5806_v59 = vpop.f32.mrf.mxu3  ;;  %v4963_v4 = vpack.c.bf16 %v4841_v44, %v4840_v47 }
 0x6a8   : > { %v5716_v48 = vadd.f32 %v14276_v60, %v5715_v5 }
 0x6aa   : > { %v5895_v36 = vpop.f32.mrf.mxu0  ;;  %v5805_v57 = vadd.f32 %v5804_v18, %v5716_v48  ;;  %v4810_v18 = vld [vmem:[#allocation2 + $0xa9] sm:$0xff] }
 0x6ab   : > { %v4971_v33 = vpack.c.bf16 %v4811_v63, %v4810_v18  ;;  %v4843_v48 = vld [vmem:[#allocation2 + $0xcf] sm:$0xff] }
 0x6ac   : > { %6124 = vmatmul.bf16.gmra.mxu3 %v4962_v22  ;;  %v14295_v24 = vadd.f32 %v5893_v13, %v5805_v57 }
 0x6ad   : > { %v5952_v40 = vpop.f32.mrf.mxu1 }
 0x6ae   : > { %v14298_v19 = vadd.f32 %v5952_v40, %v14122_v27  ;;  %v11522_v27 = vld [vmem:[%s16382_s1 + $0x678] sm:$0xff]  ;;  %v4778_v40 = vld [vmem:[#allocation2 + $0xa8] sm:$0xff] }
 0x6af   : > { %v5717_v10 = vpop.f32.mrf.mxu2  ;;  %v5809_v8 = vpop.f32.mrf.mxu3  ;;  %6279 = vmatpush.bf16.msra.mxu1 %v11522_v27  ;;  %v14330_v44 = vpack.c.bf16 %v4779_v54, %v4778_v40  ;;  %v4813_v27 = vld [vmem:[#allocation2 + $0xd1] sm:$0xff]  ;;  %v4780_v54 = vld [vmem:[#allocation2 + $0xc8] sm:$0xff] }
 0x6b0   : > { %v5718_v39 = vadd.f32 %v14276_v60, %v5717_v10  ;;  %5991 = vmatmul.bf16.gmra.mxu1 %v14135_v42  ;;  %v4842_v10 = vld [vmem:[#allocation2 + $0xc7] sm:$0xff] }
 0x6b2   : > { %v5898_v41 = vpop.f32.mrf.mxu0  ;;  %v5807_v52 = vadd.f32 %v5806_v59, %v5718_v39  ;;  %v11519_v59 = vld [vmem:[%s16382_s1 + $0x660] sm:$0xff] }
 0x6b3   : > { %6280 = vmatpush.bf16.msra.mxu1 %v11521_v21 }
 0x6b4   : > { %6035 = vmatmul.bf16.gmra.mxu2 %v14302_v49  ;;  %v14308_v51 = vadd.f32 %v5895_v36, %v5807_v52 }
 0x6b5   : > { %6213 = vmatmul.bf16.gmra.mxu0 %v4963_v4  ;;  %v5954_v53 = vpop.f32.mrf.mxu1  ;;  %v4812_v4 = vld [vmem:[#allocation2 + $0xc9] sm:$0xff] }
 0x6b6   : > { %v14311_v42 = vadd.f32 %v5954_v53, %v14145_v6 }
 0x6b7   : > { %v5720_v37 = vpop.f32.mrf.mxu2  ;;  %v5811_v46 = vpop.f32.mrf.mxu3  ;;  %6281 = vmatpush.bf16.msra.mxu1 %v11520_v7  ;;  %v4845_v7 = vld [vmem:[#allocation2 + $0xef] sm:$0xff] }
 0x6b8   : > { %v5721_v13 = vadd.f32 %v14276_v60, %v5720_v37 }
 0x6ba   : > { %v5900_v17 = vpop.f32.mrf.mxu0  ;;  %v5810_v20 = vadd.f32 %v5809_v8, %v5721_v13  ;;  %v11518_v8 = vld [vmem:[%s16382_s1 + $0x658] sm:$0xff] }
 0x6bb   : > { %6282 = vmatpush.bf16.msra.mxu1 %v11519_v59 }
 0x6bc   : > { %6129 = vmatmul.bf16.gmra.mxu3 %v4971_v33  ;;  %v14320_v6 = vadd.f32 %v5898_v41, %v5810_v20  ;;  %v4781_v33 = vld [vmem:[#allocation2 + $0xd0] sm:$0xff] }
 0x6bd   : > { %v5957_v26 = vpop.f32.mrf.mxu1 }
 0x6be   : > { %v14323_v5 = vadd.f32 %v5957_v26, %v14174_v43  ;;  %v4972_v43 = vpack.c.bf16 %v4843_v48, %v4842_v10  ;;  %v4844_v48 = vld [vmem:[#allocation2 + $0xe7] sm:$0xff] }
 0x6bf   : > { %v5722_v61 = vpop.f32.mrf.mxu2  ;;  %v5814_v36 = vpop.f32.mrf.mxu3  ;;  %6283 = vmatpush.bf16.msra.mxu1 %v11518_v8  ;;  %v4815_v8 = vld [vmem:[#allocation2 + $0xf1] sm:$0xff] }
 0x6c0   : > { %v5723_v57 = vadd.f32 %v14276_v60, %v5722_v61  ;;  %5996 = vmatmul.bf16.gmra.mxu1 %v14198_v3 }
 0x6c2   : > { %v5903_v22 = vpop.f32.mrf.mxu0  ;;  %v5812_v35 = vadd.f32 %v5811_v46, %v5723_v57  ;;  %v14345_v46 = vpack.c.bf16 %v4813_v27, %v4812_v4  ;;  %v14361_v57 = vpack.c.bf16 %v4781_v33, %v4780_v54  ;;  %v4769_v4 = vld [vmem:[#allocation2 + $0x20f] sm:$0xff] }
 0x6c3   : > { %6284 = vmatpush.bf16.msra.mxu1 %v11517_v45 }
 0x6c4   : > { %6040 = vmatmul.bf16.gmra.mxu2 %v14330_v44  ;;  %v14336_v39 = vadd.f32 %v5900_v17, %v5812_v35  ;;  %v11515_v17 = vld [vmem:[%s16382_s1 + $0x640] sm:$0xff] }
 0x6c5   : > { %6218 = vmatmul.bf16.gmra.mxu0 %v4972_v43  ;;  %v5959_v41 = vpop.f32.mrf.mxu1 }
 0x6c6   : > { %v14339_v3 = vadd.f32 %v5959_v41, %v14205_v56  ;;  %v11516_v56 = vld [vmem:[%s16382_s1 + $0x648] sm:$0xff] }
 0x6c7   : > { %v5725_v47 = vpop.f32.mrf.mxu2  ;;  %v5816_v52 = vpop.f32.mrf.mxu3  ;;  %6285 = vmatpush.bf16.msra.mxu1 %v11516_v56 }
 0x6c8   : > { %v5726_v53 = vadd.f32 %v14276_v60, %v5725_v47 }
 0x6ca   : > { %v5905_v21 = vpop.f32.mrf.mxu0  ;;  %v5815_v37 = vadd.f32 %v5814_v36, %v5726_v53 }
 0x6cb   : > { %6286 = vmatpush.bf16.msra.mxu1 %v11515_v17  ;;  %v4847_v17 = vld [vmem:[#allocation2 + $0x10f] sm:$0xff] }
 0x6cc   : > { %6134 = vmatmul.bf16.gmra.mxu3 %v14345_v46  ;;  %v14351_v18 = vadd.f32 %v5903_v22, %v5815_v37 }
 0x6cd   : > { %v5962_v63 = vpop.f32.mrf.mxu1 }
 0x6ce   : > { %v14354_v13 = vadd.f32 %v5962_v63, %v14225_v25  ;;  %v4981_v25 = vpack.c.bf16 %v4845_v7, %v4844_v48  ;;  %v4783_v63 = vld [vmem:[#allocation2 + $0xf0] sm:$0xff] }
 0x6cf   : > { %v5727_v20 = vpop.f32.mrf.mxu2  ;;  %v5819_v26 = vpop.f32.mrf.mxu3 }
 0x6d0   : > { %v5728_v59 = vadd.f32 %v14276_v60, %v5727_v20  ;;  %6001 = vmatmul.bf16.gmra.mxu1 %v14237_v28  ;;  %v4814_v28 = vld [vmem:[#allocation2 + $0xe9] sm:$0xff] }
 0x6d2   : > { %v5908_v61 = vpop.f32.mrf.mxu0  ;;  %v5817_v36 = vadd.f32 %v5816_v52, %v5728_v59  ;;  %v14370_v52 = vpack.c.bf16 %v4815_v8, %v4814_v28  ;;  %v4846_v59 = vld [vmem:[#allocation2 + $0x107] sm:$0xff] }
 0x6d3   : > { %v4990_v48 = vpack.c.bf16 %v4847_v17, %v4846_v59  ;;  %v4816_v8 = vld [vmem:[#allocation2 + $0x109] sm:$0xff] }
 0x6d4   : > { %6045 = vmatmul.bf16.gmra.mxu2 %v14361_v57  ;;  %v14364_v22 = vadd.f32 %v5905_v21, %v5817_v36  ;;  %v4768_v21 = vld [vmem:[#allocation2 + $0x207] sm:$0xff]  ;;  %v4849_v17 = vld [vmem:[#allocation2 + $0x12f] sm:$0xff] }
 0x6d5   : > { %6223 = vmatmul.bf16.gmra.mxu0 %v4981_v25  ;;  %v5964_v40 = vpop.f32.mrf.mxu1  ;;  %v14378_v37 = vpack.c.bf16 %v4769_v4, %v4768_v21 }
 0x6d6   : > { %v14367_v10 = vadd.f32 %v5964_v40, %v14240_v2  ;;  %v11530_v40 = vld [vmem:[%s16382_s1 + $0x6b8] sm:$0xff] }
 0x6d7   : > { %v5730_v35 = vpop.f32.mrf.mxu2  ;;  %v5821_v43 = vpop.f32.mrf.mxu3  ;;  %6368 = vmatpush.bf16.msrb.mxu2 %v11530_v40 }
 0x6d8   : > { %v5731_v41 = vadd.f32 %v14276_v60, %v5730_v35 }
 0x6da   : > { %v5910_v45 = vpop.f32.mrf.mxu0  ;;  %v5820_v47 = vadd.f32 %v5819_v26, %v5731_v41  ;;  %v4782_v26 = vld [vmem:[#allocation2 + $0xe8] sm:$0xff] }
 0x6db   : > { %v14382_v54 = vpack.c.bf16 %v4783_v63, %v4782_v26  ;;  %v4785_v63 = vld [vmem:[#allocation2 + $0x110] sm:$0xff] }
 0x6dc   : > { %6139 = vmatmul.bf16.gmra.mxu3 %v14370_v52  ;;  %v14373_v27 = vadd.f32 %v5908_v61, %v5820_v47 }
 0x6dd   : > { %v5967_v53 = vpop.f32.mrf.mxu1 }
 0x6de   : > { %v14376_v2 = vadd.f32 %v5967_v53, %v14245_v23 }
 0x6df   : > { %v5732_v56 = vpop.f32.mrf.mxu2  ;;  %v5824_v20 = vpop.f32.mrf.mxu3 }
 0x6e0   : > { %v5733_v33 = vadd.f32 %v14276_v60, %v5732_v56  ;;  %6006 = vmatmul.bf16.gmra.mxu1 %v14378_v37 }
 0x6e2   : > { %v5913_v7 = vpop.f32.mrf.mxu0  ;;  %v5822_v61 = vadd.f32 %v5821_v43, %v5733_v33  ;;  %v4817_v43 = vld [vmem:[#allocation2 + $0x111] sm:$0xff] }
 0x6e3   : > { %v14394_v53 = vpack.c.bf16 %v4817_v43, %v4816_v8 }
 0x6e4   : > { %6050 = vmatmul.bf16.gmra.mxu2 %v14382_v54  ;;  %v14385_v23 = vadd.f32 %v5910_v45, %v5822_v61  ;;  %v4848_v61 = vld [vmem:[#allocation2 + $0x127] sm:$0xff] }
 0x6e5   : > { %6228 = vmatmul.bf16.gmra.mxu0 %v4990_v48  ;;  %v5969_v36 = vpop.f32.mrf.mxu1 }
 0x6e6   : > { %v14388_v25 = vadd.f32 %v5969_v36, %v14252_v29 }
 0x6e7   : > { %v5735_v35 = vpop.f32.mrf.mxu2  ;;  %v5826_v28 = vpop.f32.mrf.mxu3 }
 0x6e8   : > { %v5736_v41 = vadd.f32 %v14276_v60, %v5735_v35 }
 0x6ea   : > { %v5915_v47 = vpop.f32.mrf.mxu0  ;;  %v5825_v4 = vadd.f32 %v5824_v20, %v5736_v41  ;;  %v4784_v20 = vld [vmem:[#allocation2 + $0x108] sm:$0xff] }
 0x6eb   : > { %v14404_v36 = vpack.c.bf16 %v4785_v63, %v4784_v20  ;;  %v4818_v41 = vld [vmem:[#allocation2 + $0x129] sm:$0xff] }
 0x6ec   : > { %6144 = vmatmul.bf16.gmra.mxu3 %v14394_v53  ;;  %v14397_v45 = vadd.f32 %v5913_v7, %v5825_v4  ;;  %v4999_v7 = vpack.c.bf16 %v4849_v17, %v4848_v61  ;;  %v4851_v20 = vld [vmem:[#allocation2 + $0x14f] sm:$0xff] }
 0x6ed   : > { %v5972_v29 = vpop.f32.mrf.mxu1 }
 0x6ee   : > { %v14400_v21 = vadd.f32 %v5972_v29, %v14258_v58 }
 0x6ef   : > { %v5737_v56 = vpop.f32.mrf.mxu2  ;;  %v5829_v33 = vpop.f32.mrf.mxu3 }
 0x6f0   : > { %v5738_v26 = vadd.f32 %v14276_v60, %v5737_v56  ;;  %6287 = vmatmul.bf16.vlgmr.msra.gmra.mxu1 %v14265_v16  ;;  %v4819_v16 = vld [vmem:[#allocation2 + $0x131] sm:$0xff] }
 0x6f1   : > { %v14413_v56 = vpack.c.bf16 %v4819_v16, %v4818_v41  ;;  %v5668_v16 = vadd.f32 %v14276_v60, %v14045_v30 }
 0x6f2   : > { %v5918_v59 = vpop.f32.mrf.mxu0  ;;  %v5827_v48 = vadd.f32 %v5826_v28, %v5738_v26  ;;  %v4787_v26 = vld [vmem:[#allocation2 + $0x130] sm:$0xff] }
 0x6f4   : > { %6055 = vmatmul.bf16.gmra.mxu2 %v14404_v36  ;;  %v14407_v58 = vadd.f32 %v5915_v47, %v5827_v48 }
 0x6f5   : > { %6233 = vmatmul.bf16.gmra.mxu0 %v4999_v7  ;;  %v5974_v40 = vpop.f32.mrf.mxu1 }
 0x6f6   : > { %v14410_v35 = vadd.f32 %v5974_v40, %v14268_v31  ;;  %v4850_v40 = vld [vmem:[#allocation2 + $0x147] sm:$0xff] }
 0x6f7   : > { %v5740_v8 = vpop.f32.mrf.mxu2  ;;  %v5831_v43 = vpop.f32.mrf.mxu3 }
 0x6f8   : > { %v5741_v4 = vadd.f32 %v14276_v60, %v5740_v8 }
 0x6fa   : > { %v5920_v29 = vpop.f32.mrf.mxu0  ;;  %v5830_v28 = vadd.f32 %v5829_v33, %v5741_v4  ;;  %v4786_v33 = vld [vmem:[#allocation2 + $0x128] sm:$0xff] }
 0x6fb   : > { %v14423_v41 = vpack.c.bf16 %v4787_v26, %v4786_v33  ;;  %v4821_v26 = vld [vmem:[#allocation2 + $0x151] sm:$0xff] }
 0x6fc   : > { %6149 = vmatmul.bf16.gmra.mxu3 %v14413_v56  ;;  %v14416_v63 = vadd.f32 %v5918_v59, %v5830_v28  ;;  %v5008_v59 = vpack.c.bf16 %v4851_v20, %v4850_v40  ;;  %v5757_v20 = vadd.f32 %v14038_v9, %v5668_v16  ;;  %v4789_v16 = vld [vmem:[#allocation2 + $0x150] sm:$0xff] }
 0x6fd   : > { %v5977_v47 = vpop.f32.mrf.mxu1 }
 0x6fe   : > { %v14419_v17 = vadd.f32 %v5977_v47, %v14279_v15 }
 0x6ff   : > { %v5742_v31 = vpop.f32.mrf.mxu2  ;;  %v6110_v61 = vpop.f32.mrf.mxu3 }
 0x700   : > { %v5743_v48 = vadd.f32 %v14276_v60, %v5742_v31  ;;  %6292 = vmatmul.bf16.gmra.mxu1 %v14286_v11  ;;  %v11529_v11 = vld [vmem:[%s16382_s1 + $0x6b0] sm:$0xff] }
 0x701   : > { %v4820_v31 = vld [vmem:[#allocation2 + $0x149] sm:$0xff]  ;;  %6369 = vmatpush.bf16.msrb.mxu2 %v11529_v11 }
 0x702   : > { %v6199_v7 = vpop.f32.mrf.mxu0  ;;  %v5832_v8 = vadd.f32 %v5831_v43, %v5743_v48  ;;  %v14438_v48 = vpack.c.bf16 %v4821_v26, %v4820_v31 }
 0x704   : > { %6060 = vmatmul.bf16.gmra.mxu2 %v14423_v41  ;;  %v14428_v15 = vadd.f32 %v5920_v29, %v5832_v8 }
 0x705   : > { %6238 = vmatmul.bf16.gmra.mxu0 %v5008_v59  ;;  %v5979_v4 = vpop.f32.mrf.mxu1 }
 0x706   : > { %v14431_v28 = vadd.f32 %v5979_v4, %v14289_v55  ;;  %v5846_v55 = vadd.f32 %v14040_v50, %v5757_v20  ;;  %v4852_v50 = vld [vmem:[#allocation2 + $0x167] sm:$0xff] }
 0x707   : > { %v6021_v43 = vpop.f32.mrf.mxu2  ;;  %v6112_v47 = vpop.f32.mrf.mxu3 }
 0x708   : > { %v6022_v30 = vadd.f32 %v6021_v43, %v14232_v0  ;;  %v5935_v8 = vadd.f32 %v14242_v32, %v5846_v55  ;;  %v4853_v0 = vld [vmem:[#allocation2 + $0x16f] sm:$0xff] }
 0x709   : > { %v4788_v43 = vld [vmem:[#allocation2 + $0x148] sm:$0xff] }
 0x70a   : > { %v6201_v60 = vpop.f32.mrf.mxu0  ;;  %v6111_v29 = vadd.f32 %v6110_v61, %v6022_v30  ;;  %v14449_v26 = vpack.c.bf16 %v4789_v16, %v4788_v43  ;;  %v4822_v55 = vld [vmem:[#allocation2 + $0x169] sm:$0xff] }
 0x70b   : > { %v4791_v43 = vld [vmem:[#allocation2 + $0x170] sm:$0xff] }
 0x70c   : > { %6154 = vmatmul.bf16.gmra.mxu3 %v14438_v48  ;;  %v14442_v33 = vadd.f32 %v6199_v7, %v6111_v29  ;;  %v5017_v7 = vpack.c.bf16 %v4853_v0, %v4852_v50 }
 0x70d   : > { %v5982_v40 = vpop.f32.mrf.mxu1 }
 0x70e   : > { %v14446_v59 = vadd.f32 %v5982_v40, %v14295_v24 }
 0x70f   : > { %v6023_v9 = vpop.f32.mrf.mxu2  ;;  %v6115_v4 = vpop.f32.mrf.mxu3 }
 0x710   : > { %v6024_v11 = vadd.f32 %v6023_v9, %v5935_v8  ;;  %6297 = vmatmul.bf16.gmra.mxu1 %v14302_v49  ;;  %v4823_v49 = vld [vmem:[#allocation2 + $0x171] sm:$0xff] }
 0x711   : > { %v5025_v9 = vpack.c.bf16 %v4823_v49, %v4822_v55 }
 0x712   : > { %v6204_v61 = vpop.f32.mrf.mxu0  ;;  %v6113_v31 = vadd.f32 %v6112_v47, %v6024_v11 }
 0x714   : > { %6065 = vmatmul.bf16.gmra.mxu2 %v14449_v26  ;;  %v14452_v32 = vadd.f32 %v6201_v60, %v6113_v31 }
 0x715   : > { %6243 = vmatmul.bf16.gmra.mxu0 %v5017_v7  ;;  %v5984_v24 = vpop.f32.mrf.mxu1  ;;  %v4790_v7 = vld [vmem:[#allocation2 + $0x168] sm:$0xff] }
 0x716   : > { %v14455_v20 = vadd.f32 %v5984_v24, %v14308_v51  ;;  %v4855_v51 = vld [vmem:[#allocation2 + $0x18f] sm:$0xff] }
 0x717   : > { %v6026_v30 = vpop.f32.mrf.mxu2  ;;  %v6117_v29 = vpop.f32.mrf.mxu3 }
 0x718   : > { %v6027_v40 = vadd.f32 %v6026_v30, %v14248_v12  ;;  %v4854_v12 = vld [vmem:[#allocation2 + $0x187] sm:$0xff]  ;;  %v14465_v30 = vpack.c.bf16 %v4791_v43, %v4790_v7  ;;  %v4793_v7 = vld [vmem:[#allocation2 + $0x190] sm:$0xff] }
 0x71a   : > { %v6206_v8 = vpop.f32.mrf.mxu0  ;;  %v6116_v47 = vadd.f32 %v6115_v4, %v6027_v40 }
 0x71c   : > { %6159 = vmatmul.bf16.gmra.mxu3 %v5025_v9  ;;  %v14458_v16 = vadd.f32 %v6204_v61, %v6116_v47  ;;  %v5026_v61 = vpack.c.bf16 %v4855_v51, %v4854_v12  ;;  %v4825_v47 = vld [vmem:[#allocation2 + $0x191] sm:$0xff] }
 0x71d   : > { %v5987_v0 = vpop.f32.mrf.mxu1  ;;  %v4857_v12 = vld [vmem:[#allocation2 + $0x1af] sm:$0xff] }
 0x71e   : > { %v14461_v60 = vadd.f32 %v5987_v0, %v14320_v6 }
 0x71f   : > { %v6028_v11 = vpop.f32.mrf.mxu2  ;;  %v6120_v50 = vpop.f32.mrf.mxu3 }
 0x720   : > { %v6029_v31 = vadd.f32 %v6028_v11, %v14255_v38  ;;  %6302 = vmatmul.bf16.gmra.mxu1 %v14330_v44  ;;  %v11528_v38 = vld [vmem:[%s16382_s1 + $0x6a8] sm:$0xff] }
 0x721   : > { %6370 = vmatpush.bf16.msrb.mxu2 %v11528_v38 }
 0x722   : > { %v6118_v24 = vadd.f32 %v6117_v29, %v6029_v31  ;;  %v6209_v4 = vpop.f32.mrf.mxu0  ;;  %v4824_v29 = vld [vmem:[#allocation2 + $0x189] sm:$0xff] }
 0x723   : > { %v5034_v11 = vpack.c.bf16 %v4825_v47, %v4824_v29 }
 0x724   : > { %6070 = vmatmul.bf16.gmra.mxu2 %v14465_v30  ;;  %v14468_v6 = vadd.f32 %v6206_v8, %v6118_v24 }
 0x725   : > { %6248 = vmatmul.bf16.gmra.mxu0 %v5026_v61  ;;  %v5989_v55 = vpop.f32.mrf.mxu1 }
 0x726   : > { %v14471_v49 = vadd.f32 %v5989_v55, %v14336_v39  ;;  %v4856_v55 = vld [vmem:[#allocation2 + $0x1a7] sm:$0xff] }
 0x727   : > { %v6031_v44 = vpop.f32.mrf.mxu2  ;;  %v6122_v40 = vpop.f32.mrf.mxu3 }
 0x728   : > { %v6032_v9 = vadd.f32 %v6031_v44, %v14261_v1  ;;  %v4792_v1 = vld [vmem:[#allocation2 + $0x188] sm:$0xff]  ;;  %v5035_v44 = vpack.c.bf16 %v4857_v12, %v4856_v55 }
 0x729   : > { %v14484_v38 = vpack.c.bf16 %v4793_v7, %v4792_v1  ;;  %v4859_v1 = vld [vmem:[#allocation2 + $0x1cf] sm:$0xff] }
 0x72a   : > { %v6121_v0 = vadd.f32 %v6120_v50, %v6032_v9  ;;  %v6211_v43 = vpop.f32.mrf.mxu0 }
 0x72c   : > { %6164 = vmatmul.bf16.gmra.mxu3 %v5034_v11  ;;  %v14477_v8 = vadd.f32 %v6209_v4, %v6121_v0  ;;  %v4826_v0 = vld [vmem:[#allocation2 + $0x1a9] sm:$0xff] }
 0x72d   : > { %v5992_v51 = vpop.f32.mrf.mxu1 }
 0x72e   : > { %v14480_v39 = vadd.f32 %v5992_v51, %v14351_v18 }
 0x72f   : > { %v6033_v31 = vpop.f32.mrf.mxu2  ;;  %v6125_v24 = vpop.f32.mrf.mxu3 }
 0x730   : > { %v6034_v61 = vadd.f32 %v6033_v31, %v14271_v14  ;;  %6307 = vmatmul.bf16.gmra.mxu1 %v14361_v57  ;;  %v4827_v57 = vld [vmem:[#allocation2 + $0x1b1] sm:$0xff] }
 0x731   : > { %v5043_v51 = vpack.c.bf16 %v4827_v57, %v4826_v0 }
 0x732   : > { %v6123_v50 = vadd.f32 %v6122_v40, %v6034_v61  ;;  %v6214_v29 = vpop.f32.mrf.mxu0  ;;  %v4795_v61 = vld [vmem:[#allocation2 + $0x1b0] sm:$0xff] }
 0x734   : > { %6075 = vmatmul.bf16.gmra.mxu2 %v14484_v38  ;;  %v14487_v4 = vadd.f32 %v6211_v43, %v6123_v50 }
 0x735   : > { %6253 = vmatmul.bf16.gmra.mxu0 %v5035_v44  ;;  %v5994_v18 = vpop.f32.mrf.mxu1  ;;  %v4794_v44 = vld [vmem:[#allocation2 + $0x1a8] sm:$0xff] }
 0x736   : > { %v14490_v47 = vadd.f32 %v5994_v18, %v14364_v22  ;;  %v14500_v18 = vpack.c.bf16 %v4795_v61, %v4794_v44  ;;  %v4861_v44 = vld [vmem:[#allocation2 + $0x1ef] sm:$0xff] }
 0x737   : > { %v6036_v9 = vpop.f32.mrf.mxu2  ;;  %v6127_v14 = vpop.f32.mrf.mxu3 }
 0x738   : > { %v6037_v11 = vadd.f32 %v6036_v9, %v14282_v62  ;;  %v4858_v62 = vld [vmem:[#allocation2 + $0x1c7] sm:$0xff] }
 0x73a   : > { %v6126_v40 = vadd.f32 %v6125_v24, %v6037_v11  ;;  %v6216_v50 = vpop.f32.mrf.mxu0  ;;  %v4829_v11 = vld [vmem:[#allocation2 + $0x1d1] sm:$0xff] }
 0x73c   : > { %6169 = vmatmul.bf16.gmra.mxu3 %v5043_v51  ;;  %v14493_v31 = vadd.f32 %v6214_v29, %v6126_v40  ;;  %v5044_v29 = vpack.c.bf16 %v4859_v1, %v4858_v62 }
 0x73d   : > { %v5997_v7 = vpop.f32.mrf.mxu1 }
 0x73e   : > { %v14496_v43 = vadd.f32 %v5997_v7, %v14373_v27 }
 0x73f   : > { %v6038_v12 = vpop.f32.mrf.mxu2  ;;  %v6130_v22 = vpop.f32.mrf.mxu3 }
 0x740   : > { %v6039_v55 = vadd.f32 %v6038_v12, %v14292_v34  ;;  %6312 = vmatmul.bf16.gmra.mxu1 %v14382_v54  ;;  %v11527_v34 = vld [vmem:[%s16382_s1 + $0x6a0] sm:$0xff] }
 0x741   : > { %6371 = vmatpush.bf16.msrb.mxu2 %v11527_v34 }
 0x742   : > { %v6128_v24 = vadd.f32 %v6127_v14, %v6039_v55  ;;  %v4828_v14 = vld [vmem:[#allocation2 + $0x1c9] sm:$0xff]  ;;  %v6219_v12 = vpop.f32.mrf.mxu0 }
 0x743   : > { %v5052_v7 = vpack.c.bf16 %v4829_v11, %v4828_v14  ;;  %v4831_v11 = vld [vmem:[#allocation2 + $0x1f1] sm:$0xff] }
 0x744   : > { %6080 = vmatmul.bf16.gmra.mxu2 %v14500_v18  ;;  %v14503_v27 = vadd.f32 %v6216_v50, %v6128_v24  ;;  %v4797_v50 = vld [vmem:[#allocation2 + $0x1d0] sm:$0xff] }
 0x745   : > { %6258 = vmatmul.bf16.gmra.mxu0 %v5044_v29  ;;  %v5999_v9 = vpop.f32.mrf.mxu1 }
 0x746   : > { %v14506_v0 = vadd.f32 %v5999_v9, %v14385_v23 }
 0x747   : > { %v6041_v54 = vpop.f32.mrf.mxu2  ;;  %v14511_v57 = vpop.f32.mrf.mxu3 }
 0x748   : > { %v6042_v40 = vadd.f32 %v6041_v54, %v14298_v19  ;;  %v4796_v19 = vld [vmem:[#allocation2 + $0x1c8] sm:$0xff]  ;;  %v11526_v54 = vld [vmem:[%s16382_s1 + $0x698] sm:$0xff] }
 0x749   : > { %v14523_v29 = vpack.c.bf16 %v4797_v50, %v4796_v19  ;;  %6372 = vmatpush.bf16.msrb.mxu2 %v11526_v54  ;;  %v4798_v19 = vld [vmem:[#allocation2 + $0x1e8] sm:$0xff] }
 0x74a   : > { %v6131_v51 = vadd.f32 %v6130_v22, %v6042_v40  ;;  %v4860_v22 = vld [vmem:[#allocation2 + $0x1e7] sm:$0xff] }
 0x74b   : > { %v5053_v9 = vpack.c.bf16 %v4861_v44, %v4860_v22 }
 0x74c   : > { %6174 = vmatmul.bf16.gmra.mxu3 %v5052_v7  ;;  %v14514_v61 = vadd.f32 %v6219_v12, %v6131_v51 }
 0x74d   : > { %v6002_v23 = vpop.f32.mrf.mxu1 }
 0x74e   : > { %v14517_v1 = vadd.f32 %v6002_v23, %v14397_v45 }
 0x74f   : > { %v6043_v55 = vpop.f32.mrf.mxu2  ;;  %v6135_v62 = vpop.f32.mrf.mxu3 }
 0x750   : > { %v14520_v24 = vadd.f32 %v6043_v55, %v14311_v42  ;;  %6317 = vmatmul.bf16.gmra.mxu1 %v14404_v36  ;;  %v4830_v36 = vld [vmem:[#allocation2 + $0x1e9] sm:$0xff] }
 0x751   : > { %v5061_v7 = vpack.c.bf16 %v4831_v11, %v4830_v36  ;;  %v11524_v55 = vld [vmem:[%s16382_s1 + $0x688] sm:$0xff] }
 0x754   : > { %6085 = vmatmul.bf16.gmra.mxu2 %v14523_v29 }
 0x755   : > { %6263 = vmatmul.bf16.gmra.mxu0 %v5053_v9  ;;  %v6004_v34 = vpop.f32.mrf.mxu1 }
 0x756   : > { %v14527_v45 = vadd.f32 %v6004_v34, %v14407_v58  ;;  %v11525_v58 = vld [vmem:[%s16382_s1 + $0x690] sm:$0xff] }
 0x757   : > { %v6046_v42 = vpop.f32.mrf.mxu2  ;;  %v14532_v14 = vpop.f32.mrf.mxu3  ;;  %6373 = vmatpush.bf16.msrb.mxu2 %v11525_v58  ;;  %v4864_v58 = vld [vmem:[#allocation2 + $0x227] sm:$0xff] }
 0x758   : > { %v6047_v40 = vadd.f32 %v6046_v42, %v14323_v5  ;;  %v4799_v5 = vld [vmem:[#allocation2 + $0x1f0] sm:$0xff] }
 0x759   : > { %v14550_v22 = vpack.c.bf16 %v4799_v5, %v4798_v19  ;;  %v4833_v42 = vld [vmem:[#allocation2 + $0x211] sm:$0xff] }
 0x75a   : > { %v14535_v51 = vadd.f32 %v6135_v62, %v6047_v40 }
 0x75b   : > { %6374 = vmatpush.bf16.msrb.mxu2 %v11524_v55 }
 0x75c   : > { %6179 = vmatmul.bf16.gmra.mxu3 %v5061_v7 }
 0x75d   : > { %v6007_v12 = vpop.f32.mrf.mxu1 }
 0x75e   : > { %v14541_v23 = vadd.f32 %v6007_v12, %v14416_v63  ;;  %v11523_v63 = vld [vmem:[%s16382_s1 + $0x680] sm:$0xff]  ;;  %v4865_v12 = vld [vmem:[#allocation2 + $0x22f] sm:$0xff] }
 0x75f   : > { %v6048_v50 = vpop.f32.mrf.mxu2  ;;  %v6140_v44 = vpop.f32.mrf.mxu3  ;;  %6375 = vmatpush.bf16.msrb.mxu2 %v11523_v63  ;;  %v5071_v19 = vpack.c.bf16 %v4865_v12, %v4864_v58 }
 0x760   : > { %v14547_v62 = vadd.f32 %v6048_v50, %v14339_v3  ;;  %6322 = vmatmul.bf16.gmra.mxu1 %v14423_v41  ;;  %v4832_v41 = vld [vmem:[#allocation2 + $0x209] sm:$0xff] }
 0x761   : > { %v5070_v40 = vpack.c.bf16 %v4833_v42, %v4832_v41 }
 0x764   : > { %6090 = vmatmul.bf16.gmra.mxu2 %v14550_v22 }
 0x765   : > { %6268 = vmatmul.bf16.gmra.mxu0 %v14378_v37  ;;  %v6009_v9 = vpop.f32.mrf.mxu1 }
 0x766   : > { %v14558_v34 = vadd.f32 %v6009_v9, %v14428_v15  ;;  %v4801_v15 = vld [vmem:[#allocation2 + $0x210] sm:$0xff] }
 0x767   : > { %v6051_v3 = vpop.f32.mrf.mxu2  ;;  %v14560_v54 = vpop.f32.mrf.mxu3 }
 0x768   : > { %v6052_v36 = vadd.f32 %v6051_v3, %v14354_v13  ;;  %v4800_v13 = vld [vmem:[#allocation2 + $0x208] sm:$0xff] }
 0x76a   : > { %v14563_v11 = vadd.f32 %v6140_v44, %v6052_v36  ;;  %v14572_v44 = vpack.c.bf16 %v4801_v15, %v4800_v13 }
 0x76c   : > { %6184 = vmatmul.bf16.gmra.mxu3 %v5070_v40  ;;  %v4898_v40 = vld [vmem:[#allocation2 + $0x49] sm:$0xff] }
 0x76d   : > { %v6288_v7 = vpop.f32.mrf.mxu1 }
 0x76e   : > { %v14566_v37 = vadd.f32 %v6288_v7, %v14442_v33  ;;  %v4899_v7 = vld [vmem:[#allocation2 + $0x51] sm:$0xff] }
 0x76f   : > { %v6053_v55 = vpop.f32.mrf.mxu2  ;;  %v6145_v50 = vpop.f32.mrf.mxu3 }
 0x770   : > { %v14569_v5 = vadd.f32 %v6053_v55, %v14367_v10  ;;  %6327 = vmatmul.bf16.gmra.mxu1 %v14449_v26 }
 0x774   : > { %6095 = vmatmul.bf16.gmra.mxu2 %v14572_v44 }
 0x775   : > { %6273 = vmatmul.bf16.gmra.mxu0 %v5071_v19  ;;  %v6290_v63 = vpop.f32.mrf.mxu1 }
 0x776   : > { %v14576_v9 = vadd.f32 %v6290_v63, %v14452_v32  ;;  %v4938_v32 = vpack.c.bf16 %v4899_v7, %v4898_v40 }
 0x777   : > { %v6056_v33 = vpop.f32.mrf.mxu2  ;;  %v14578_v3 = vpop.f32.mrf.mxu3 }
 0x778   : > { %v6057_v41 = vadd.f32 %v6056_v33, %v14376_v2  ;;  %v11538_v2 = vld [vmem:[%s16382_s1 + $0x6f8] sm:$0xff]  ;;  %v4900_v33 = vld [vmem:[#allocation2 + $0x69] sm:$0xff] }
 0x779   : > { %7759 = vmatpush.bf16.msrb.mxu3 %v11538_v2 }
 0x77a   : > { %v14581_v10 = vadd.f32 %v6145_v50, %v6057_v41  ;;  %v4901_v41 = vld [vmem:[#allocation2 + $0x71] sm:$0xff] }
 0x77d   : > { %v6293_v42 = vpop.f32.mrf.mxu1 }
 0x77e   : > { %v14584_v26 = vadd.f32 %v6293_v42, %v14458_v16 }
 0x77f   : > { %v6058_v36 = vpop.f32.mrf.mxu2  ;;  %v6150_v58 = vpop.f32.mrf.mxu3 }
 0x780   : > { %v14587_v12 = vadd.f32 %v6058_v36, %v14388_v25  ;;  %6332 = vmatmul.bf16.gmra.mxu1 %v14465_v30 }
 0x784   : > { %6376 = vmatmul.bf16.vlgmr.msrb.gmra.mxu2 %v4938_v32 }
 0x785   : > { %v6295_v55 = vpop.f32.mrf.mxu1 }
 0x786   : > { %v14594_v16 = vadd.f32 %v6295_v55, %v14468_v6  ;;  %v4947_v6 = vpack.c.bf16 %v4901_v41, %v4900_v33 }
 0x787   : > { %v6061_v15 = vpop.f32.mrf.mxu2  ;;  %v14596_v50 = vpop.f32.mrf.mxu3 }
 0x788   : > { %v6062_v19 = vadd.f32 %v6061_v15, %v14400_v21  ;;  %v4902_v15 = vld [vmem:[#allocation2 + $0x89] sm:$0xff] }
 0x78a   : > { %v14599_v25 = vadd.f32 %v6150_v58, %v6062_v19 }
 0x78d   : > { %v6298_v13 = vpop.f32.mrf.mxu1 }
 0x78e   : > { %v14602_v30 = vadd.f32 %v6298_v13, %v14477_v8 }
 0x78f   : > { %v6063_v63 = vpop.f32.mrf.mxu2  ;;  %v6155_v42 = vpop.f32.mrf.mxu3 }
 0x790   : > { %v14605_v36 = vadd.f32 %v6063_v63, %v14410_v35  ;;  %6337 = vmatmul.bf16.gmra.mxu1 %v14484_v38  ;;  %v4903_v38 = vld [vmem:[#allocation2 + $0x91] sm:$0xff] }
 0x794   : > { %6381 = vmatmul.bf16.gmra.mxu2 %v4947_v6  ;;  %v14634_v6 = vpop.f32.mrf.mxu0 }
 0x795   : > { %v6300_v40 = vpop.f32.mrf.mxu1 }
 0x796   : > { %v14609_v21 = vadd.f32 %v6300_v40, %v14487_v4  ;;  %v4956_v4 = vpack.c.bf16 %v4903_v38, %v4902_v15 }
 0x797   : > { %v6066_v7 = vpop.f32.mrf.mxu2  ;;  %v14611_v58 = vpop.f32.mrf.mxu3 }
 0x798   : > { %v6067_v8 = vadd.f32 %v6066_v7, %v14419_v17  ;;  %v11537_v17 = vld [vmem:[%s16382_s1 + $0x6f0] sm:$0xff] }
 0x799   : > { %7760 = vmatpush.bf16.msrb.mxu3 %v11537_v17 }
 0x79a   : > { %v14614_v32 = vadd.f32 %v6155_v42, %v6067_v8  ;;  %v4904_v8 = vld [vmem:[#allocation2 + $0xa9] sm:$0xff] }
 0x79c   : > { %v14645_v38 = vpop.f32.mrf.mxu0 }
 0x79d   : > { %v6303_v2 = vpop.f32.mrf.mxu1 }
 0x79e   : > { %v14617_v55 = vadd.f32 %v6303_v2, %v14493_v31  ;;  %v4905_v2 = vld [vmem:[#allocation2 + $0xb1] sm:$0xff] }
 0x79f   : > { %v6068_v35 = vpop.f32.mrf.mxu2  ;;  %v6160_v19 = vpop.f32.mrf.mxu3  ;;  %v4965_v15 = vpack.c.bf16 %v4905_v2, %v4904_v8 }
 0x7a0   : > { %v14620_v13 = vadd.f32 %v6068_v35, %v14431_v28  ;;  %6342 = vmatmul.bf16.gmra.mxu1 %v14500_v18 }
 0x7a4   : > { %6386 = vmatmul.bf16.gmra.mxu2 %v4956_v4 }
 0x7a5   : > { %v6305_v63 = vpop.f32.mrf.mxu1 }
 0x7a6   : > { %v14627_v31 = vadd.f32 %v6305_v63, %v14503_v27 }
 0x7a7   : > { %v6071_v33 = vpop.f32.mrf.mxu2  ;;  %v14629_v41 = vpop.f32.mrf.mxu3 }
 0x7a8   : > { %16500 = vst [vmem:[#allocation21_spill] sm:$0xff] %v14629_v41  ;;  %v6072_v42 = vadd.f32 %v6071_v33, %v14446_v59 }
 0x7aa   : > { %v14632_v28 = vadd.f32 %v6160_v19, %v6072_v42  ;;  %v14654_v42 = vpop.f32.mrf.mxu0 }
 0x7ac   : > { %16501 = vst [vmem:[#allocation12_spill] sm:$0xff] %v14632_v28 }
 0x7ad   : > { %v6308_v18 = vpop.f32.mrf.mxu1 }
 0x7ae   : > { %v14637_v40 = vadd.f32 %v6308_v18, %v14514_v61  ;;  %v11536_v18 = vld [vmem:[%s16382_s1 + $0x6e8] sm:$0xff] }
 0x7af   : > { %v6073_v7 = vpop.f32.mrf.mxu2  ;;  %v6165_v35 = vpop.f32.mrf.mxu3  ;;  %7761 = vmatpush.bf16.msrb.mxu3 %v11536_v18 }
 0x7b0   : > { %v14640_v27 = vadd.f32 %v6073_v7, %v14455_v20  ;;  %6347 = vmatmul.bf16.gmra.mxu1 %v14523_v29 }
 0x7b2   : > { %16502 = vst [vmem:[#allocation22_spill] sm:$0xff] %v14640_v27 }
 0x7b4   : > { %6391 = vmatmul.bf16.gmra.mxu2 %v4965_v15 }
 0x7b5   : > { %v14643_v59 = vpop.f32.mrf.mxu1 }
 0x7b7   : > { %v6076_v19 = vpop.f32.mrf.mxu2  ;;  %v14647_v4 = vpop.f32.mrf.mxu3 }
 0x7b8   : > { %16503 = vst [vmem:[#allocation14_spill] sm:$0xff] %v14647_v4  ;;  %v6077_v61 = vadd.f32 %v6076_v19, %v14461_v60 }
 0x7ba   : > { %v14650_v17 = vadd.f32 %v6165_v35, %v6077_v61  ;;  %v14669_v35 = vpop.f32.mrf.mxu0 }
 0x7bc   : > { %16504 = vst [vmem:[#allocation16_spill] sm:$0xff] %v14650_v17 }
 0x7bd   : > { %v14652_v63 = vpop.f32.mrf.mxu1 }
 0x7bf   : > { %v6078_v33 = vpop.f32.mrf.mxu2  ;;  %v6170_v20 = vpop.f32.mrf.mxu3 }
 0x7c0   : > { %v14657_v29 = vadd.f32 %v6078_v33, %v14471_v49  ;;  %6352 = vmatmul.bf16.gmra.mxu1 %v14550_v22 }
 0x7c2   : > { %16505 = vst [vmem:[#allocation23_spill] sm:$0xff] %v14657_v29  ;;  %v14679_v61 = vpop.f32.mrf.mxu0 }
 0x7c4   : > { %6396 = vmatmul.bf16.gmra.mxu2 %v14345_v46 }
 0x7c5   : > { %v14664_v60 = vpop.f32.mrf.mxu1 }
 0x7c7   : > { %v6081_v7 = vpop.f32.mrf.mxu2  ;;  %v14666_v8 = vpop.f32.mrf.mxu3 }
 0x7c8   : > { %16506 = vst [vmem:[#allocation5_spill] sm:$0xff] %v14666_v8  ;;  %v6082_v2 = vadd.f32 %v6081_v7, %v14480_v39 }
 0x7ca   : > { %v14671_v49 = vadd.f32 %v6170_v20, %v6082_v2  ;;  %v11895_v2 = vld [vmem:[#allocation2] sm:$0xff] }
 0x7cb   : > { %v14689_v8 = vpack.c.bf16 %v11895_v2, %v11895_v2 }
 0x7cc   : > { %16507 = vst [vmem:[#allocation15_spill] sm:$0xff] %v14671_v49 }
 0x7cd   : > { %v14673_v15 = vpop.f32.mrf.mxu1 }
 0x7cf   : > { %v6083_v22 = vpop.f32.mrf.mxu2  ;;  %v6175_v46 = vpop.f32.mrf.mxu3 }
 0x7d0   : > { %v14676_v19 = vadd.f32 %v6083_v22, %v14490_v47  ;;  %6357 = vmatmul.bf16.gmra.mxu1 %v14572_v44  ;;  %v14691_v47 = vpop.f32.mrf.mxu0 }
 0x7d2   : > { %16508 = vst [vmem:[#allocation17_spill] sm:$0xff] %v14676_v19 }
 0x7d4   : > { %6401 = vmatmul.bf16.gmra.mxu2 %v14370_v52  ;;  %v11546_v52 = vld [vmem:[%s16382_s1 + $0x738] sm:$0xff] }
 0x7d5   : > { %v14682_v33 = vpop.f32.mrf.mxu1  ;;  %7848 = vmatpush.bf16.msrb.mxu0 %v11546_v52  ;;  %v11544_v52 = vld [vmem:[%s16382_s1 + $0x728] sm:$0xff] }
 0x7d7   : > { %v6086_v39 = vpop.f32.mrf.mxu2  ;;  %v14687_v7 = vpop.f32.mrf.mxu3 }
 0x7d8   : > { %v6087_v18 = vadd.f32 %v6086_v39, %v14496_v43  ;;  %16510 = vst [vmem:[#allocation19_spill] sm:$0xff] %v14687_v7  ;;  %v11554_v43 = vld [vmem:[%s16382_s1 + $0x778] sm:$0xff] }
 0x7d9   : > { %7937 = vmatpush.bf16.msrb.mxu1 %v11554_v43 }
 0x7da   : > { %v14685_v20 = vadd.f32 %v6175_v46, %v6087_v18  ;;  %v11535_v46 = vld [vmem:[%s16382_s1 + $0x6e0] sm:$0xff]  ;;  %v11553_v18 = vld [vmem:[%s16382_s1 + $0x770] sm:$0xff] }
 0x7db   : > { %7762 = vmatpush.bf16.msrb.mxu3 %v11535_v46 }
 0x7dc   : > { %16509 = vst [vmem:[#allocation24_spill] sm:$0xff] %v14685_v20  ;;  %v11543_v20 = vld [vmem:[%s16382_s1 + $0x720] sm:$0xff] }
 0x7dd   : > { %v14693_v44 = vpop.f32.mrf.mxu1  ;;  %7938 = vmatpush.bf16.msrb.mxu1 %v11553_v18  ;;  %v11552_v18 = vld [vmem:[%s16382_s1 + $0x768] sm:$0xff] }
 0x7df   : > { %v6088_v22 = vpop.f32.mrf.mxu2  ;;  %v6180_v39 = vpop.f32.mrf.mxu3 }
 0x7e0   : > { %v14696_v19 = vadd.f32 %v6088_v22, %v14506_v0  ;;  %6362 = vmatmul.bf16.gmra.mxu1 %v14689_v8  ;;  %v11545_v0 = vld [vmem:[%s16382_s1 + $0x730] sm:$0xff]  ;;  %v14715_v22 = vpop.f32.mrf.mxu0 }
 0x7e1   : > { %7849 = vmatpush.bf16.msrb.mxu0 %v11545_v0  ;;  %7939 = vmatpush.bf16.msrb.mxu1 %v11552_v18  ;;  %v11550_v18 = vld [vmem:[%s16382_s1 + $0x758] sm:$0xff] }
 0x7e2   : > { %16511 = vst [vmem:[#allocation6_spill] sm:$0xff] %v14696_v19 }
 0x7e4   : > { %6406 = vmatmul.bf16.gmra.mxu2 %v14394_v53 }
 0x7e5   : > { %v14718_v19 = vpop.f32.mrf.mxu1  ;;  %7850 = vmatpush.bf16.msrb.mxu0 %v11544_v52  ;;  %v11551_v52 = vld [vmem:[%s16382_s1 + $0x760] sm:$0xff] }
 0x7e6   : > { %7940 = vmatpush.bf16.msrb.mxu1 %v11551_v52 }
 0x7e7   : > { %v6091_v2 = vpop.f32.mrf.mxu2  ;;  %v14725_v46 = vpop.f32.mrf.mxu3 }
 0x7e8   : > { %v6092_v7 = vadd.f32 %v6091_v2, %v14517_v1  ;;  %16513 = vst [vmem:[#allocation18_spill] sm:$0xff] %v14725_v46  ;;  %v14733_v0 = vpop.f32.mrf.mxu0  ;;  %v11542_v2 = vld [vmem:[%s16382_s1 + $0x718] sm:$0xff] }
 0x7e9   : > { %7851 = vmatpush.bf16.msrb.mxu0 %v11543_v20  ;;  %v11533_v20 = vld [vmem:[%s16382_s1 + $0x6d0] sm:$0xff] }
 0x7ea   : > { %v14720_v53 = vadd.f32 %v6180_v39, %v6092_v7  ;;  %v11534_v39 = vld [vmem:[%s16382_s1 + $0x6d8] sm:$0xff]  ;;  %7941 = vmatpush.bf16.msrb.mxu1 %v11550_v18 }
 0x7eb   : > { %7763 = vmatpush.bf16.msrb.mxu3 %v11534_v39  ;;  %v11532_v39 = vld [vmem:[%s16382_s1 + $0x6c8] sm:$0xff] }
 0x7ec   : > { %16512 = vst [vmem:[#allocation7_spill] sm:$0xff] %v14720_v53 }
 0x7ed   : > { %v14735_v7 = vpop.f32.mrf.mxu1  ;;  %7852 = vmatpush.bf16.msrb.mxu0 %v11542_v2  ;;  %v11540_v2 = vld [vmem:[%s16382_s1 + $0x708] sm:$0xff] }
 0x7ef   : > { %v6093_v43 = vpop.f32.mrf.mxu2  ;;  %7764 = vmatpush.bf16.msrb.mxu3 %v11533_v20  ;;  %v11539_v20 = vld [vmem:[%s16382_s1 + $0x700] sm:$0xff] }
 0x7f0   : > { %v14731_v1 = vadd.f32 %v6093_v43, %v14527_v45  ;;  %v11541_v43 = vld [vmem:[%s16382_s1 + $0x710] sm:$0xff]  ;;  %v14768_v53 = vpop.f32.mrf.mxu0 }
 0x7f1   : > { %7853 = vmatpush.bf16.msrb.mxu0 %v11541_v43  ;;  %v6745_v43 = vld [vmem:[#allocation3 + $0x7] sm:$0xff] }
 0x7f2   : > { %16514 = vst [vmem:[#allocation25_spill] sm:$0xff] %v14731_v1  ;;  %v6185_v1 = vpop.f32.mrf.mxu3 }
 0x7f3   : > { %7765 = vmatpush.bf16.msrb.mxu3 %v11532_v39  ;;  %v6746_v39 = vld [vmem:[#allocation3 + $0xf] sm:$0xff] }
 0x7f4   : > { %6411 = vmatmul.bf16.gmra.mxu2 %v14413_v56  ;;  %v7033_v18 = vpack.c.bf16 %v6746_v39, %v6745_v43  ;;  %v6810_v43 = vld [vmem:[#allocation3 + $0x11] sm:$0xff] }
 0x7f5   : > { %7854 = vmatpush.bf16.msrb.mxu0 %v11540_v2  ;;  %v11548_v2 = vld [vmem:[%s16382_s1 + $0x748] sm:$0xff] }
 0x7f7   : > { %v6096_v45 = vpop.f32.mrf.mxu2 }
 0x7f8   : > { %v6097_v46 = vadd.f32 %v6096_v45, %v14541_v23  ;;  %v14770_v23 = vpop.f32.mrf.mxu1  ;;  %v11549_v45 = vld [vmem:[%s16382_s1 + $0x750] sm:$0xff] }
 0x7f9   : > { %7942 = vmatpush.bf16.msrb.mxu1 %v11549_v45  ;;  %7855 = vmatpush.bf16.msrb.mxu0 %v11539_v20  ;;  %v6809_v20 = vld [vmem:[#allocation3 + $0x9] sm:$0xff] }
 0x7fa   : > { %v14757_v56 = vadd.f32 %v6185_v1, %v6097_v46  ;;  %v11531_v1 = vld [vmem:[%s16382_s1 + $0x6c0] sm:$0xff] }
 0x7fb   : > { %7766 = vmatpush.bf16.msrb.mxu3 %v11531_v1  ;;  %v11547_v1 = vld [vmem:[%s16382_s1 + $0x740] sm:$0xff] }
 0x7fc   : > { %16515 = vst [vmem:[#allocation20_spill] sm:$0xff] %v14757_v56  ;;  %7856 = vmatmul.bf16.vlgmr.msrb.gmra.mxu0 %v14689_v8  ;;  %v14789_v56 = vpop.f32.mrf.mxu0 }
 0x7fd   : > { %7943 = vmatpush.bf16.msrb.mxu1 %v11548_v2  ;;  %v4916_v2 = vld [vmem:[#allocation2 + $0x169] sm:$0xff] }
 0x7fe   : > { %7767 = vmatmul.bf16.vlgmr.msrb.gmra.mxu3 %v7033_v18 }
 0x7ff   : > { %v6098_v46 = vpop.f32.mrf.mxu2 }
 0x800   : > { %v14782_v52 = vadd.f32 %v6098_v46, %v14558_v34  ;;  %v14791_v34 = vpop.f32.mrf.mxu1 }
 0x801   : > { %7944 = vmatpush.bf16.msrb.mxu1 %v11547_v1 }
 0x802   : > { %16516 = vst [vmem:[#allocation8_spill] sm:$0xff] %v14782_v52  ;;  %v4917_v52 = vld [vmem:[#allocation2 + $0x171] sm:$0xff] }
 0x803   : > { %v5019_v41 = vpack.c.bf16 %v4917_v52, %v4916_v2 }
 0x804   : > { %6416 = vmatmul.bf16.gmra.mxu2 %v14438_v48  ;;  %v7035_v48 = vpack.c.bf16 %v6810_v43, %v6809_v20  ;;  %v14797_v49 = vpop.f32.mrf.mxu0 }
 0x806   : > { %7945 = vmatmul.bf16.vlgmr.msrb.gmra.mxu1 %v7035_v48 }
 0x807   : > { %v6377_v46 = vpop.f32.mrf.mxu2 }
 0x808   : > { %v6378_v45 = vadd.f32 %v6377_v46, %v14566_v37  ;;  %v14800_v29 = vpop.f32.mrf.mxu1 }
 0x809   : > { %16517 = vst [vmem:[#allocation26_spill] sm:$0xff] %v14800_v29 }
 0x80a   : > { %v6457_v39 = vmin.f32 %v6378_v45, 0.0  ;;  %vm6617_vm1 = vcmp.gt.f32.partialorder %v6378_v45, 0.0 }
 0x80c   : > { %v6489_v18 = vmul.f32 1.442695, %v6457_v39 }
 0x80e   : > { %11763 = vpow2.f32 %v6489_v18  ;;  %v14803_v18 = vpop.f32.mrf.mxu0 }
 0x80f   : > { %v6379_v8 = vpop.f32.mrf.mxu2  ;;  %16518 = vst [vmem:[#allocation27_spill] sm:$0xff] %v14803_v18 }
 0x810   : > { %v6380_v4 = vadd.f32 %v6379_v8, %v14576_v9  ;;  %v14805_v9 = vpop.f32.mrf.mxu1 }
 0x811   : > { %16519 = vst [vmem:[#allocation10_spill] sm:$0xff] %v14805_v9 }
 0x812   : > { %v6458_v17 = vmin.f32 %v6380_v4, 0.0  ;;  %vm6618_vm2 = vcmp.gt.f32.partialorder %v6380_v4, 0.0 }
 0x814   : > { %v11764_v37 = vpop.eup %11763  ;;  %v6491_v46 = vmul.f32 1.442695, %v6458_v17  ;;  %6421 = vmatmul.bf16.gmra.mxu2 %v5019_v41 }
 0x815   : > { %v6553_v1 = vmul.f32 1.6732632, %v11764_v37  ;;  %v4918_v37 = vld [vmem:[#allocation2 + $0x189] sm:$0xff] }
 0x816   : > { %11765 = vpow2.f32 %v6491_v46  ;;  %v4919_v46 = vld [vmem:[#allocation2 + $0x191] sm:$0xff]  ;;  %v14808_v18 = vpop.f32.mrf.mxu0 }
 0x817   : > { %v10815_v20 = vadd.f32 -1.6732632, %v6553_v1  ;;  %v6382_v43 = vpop.f32.mrf.mxu2  ;;  %16520 = vst [vmem:[#allocation28_spill] sm:$0xff] %v14808_v18 }
 0x818   : > { %v6383_v39 = vadd.f32 %v6382_v43, %v14584_v26  ;;  %v5028_v43 = vpack.c.bf16 %v4919_v46, %v4918_v37 }
 0x819   : > { %v6649_v48 = vsel %vm6617_vm1, %v6378_v45, %v10815_v20 }
 0x81a   : > { %v6681_v27 = vmul.f32 1.050701, %v6649_v48  ;;  %v6459_v28 = vmin.f32 %v6383_v39, 0.0  ;;  %vm6619_vm3 = vcmp.gt.f32.partialorder %v6383_v39, 0.0 }
 0x81c   : > { %v11766_v8 = vpop.eup %11765  ;;  %6713 = vst [vmem:[#allocation3 + $0x28] sm:$0xff] %v6681_v27  ;;  %v6493_v52 = vmul.f32 1.442695, %v6459_v28 }
 0x81d   : > { %v6554_v2 = vmul.f32 1.6732632, %v11766_v8  ;;  %v14810_v8 = vpop.f32.mrf.mxu1 }
 0x81e   : > { %11767 = vpow2.f32 %v6493_v52 }
 0x81f   : > { %v10816_v41 = vadd.f32 -1.6732632, %v6554_v2  ;;  %v6384_v17 = vpop.f32.mrf.mxu2 }
 0x820   : > { %v6385_v1 = vadd.f32 %v6384_v17, %v14594_v16 }
 0x821   : > { %v6650_v26 = vsel %vm6618_vm2, %v6380_v4, %v10816_v41 }
 0x822   : > { %v6682_v45 = vmul.f32 1.050701, %v6650_v26  ;;  %v6460_v20 = vmin.f32 %v6385_v1, 0.0  ;;  %vm6620_vm4 = vcmp.gt.f32.partialorder %v6385_v1, 0.0 }
 0x823   : > { %v6747_v37 = vld [vmem:[#allocation3 + $0x27] sm:$0xff] }
 0x824   : > { %v11768_v48 = vpop.eup %11767  ;;  %6714 = vst [vmem:[#allocation3 + $0x30] sm:$0xff] %v6682_v45  ;;  %v6495_v9 = vmul.f32 1.442695, %v6460_v20  ;;  %6426 = vmatmul.bf16.gmra.mxu2 %v5028_v43  ;;  %v7043_v28 = vpack.c.bf16 %v6682_v45, %v6681_v27 }
 0x825   : > { %v6555_v52 = vmul.f32 1.6732632, %v11768_v48  ;;  %v14815_v48 = vpop.f32.mrf.mxu0 }
 0x826   : > { %11769 = vpow2.f32 %v6495_v9  ;;  %7861 = vmatmul.bf16.gmra.mxu0 %v7043_v28  ;;  %16521 = vst [vmem:[#allocation9_spill] sm:$0xff] %v14815_v48  ;;  %v4920_v28 = vld [vmem:[#allocation2 + $0x1a9] sm:$0xff] }
 0x827   : > { %v10817_v2 = vadd.f32 -1.6732632, %v6555_v52  ;;  %v6387_v29 = vpop.f32.mrf.mxu2  ;;  %v4921_v52 = vld [vmem:[#allocation2 + $0x1b1] sm:$0xff] }
 0x828   : > { %v6388_v16 = vadd.f32 %v6387_v29, %v14602_v30  ;;  %v14818_v30 = vpop.f32.mrf.mxu1 }
 0x829   : > { %v6651_v4 = vsel %vm6619_vm3, %v6383_v39, %v10817_v2  ;;  %16522 = vst [vmem:[#allocation30_spill] sm:$0xff] %v14818_v30 }
 0x82a   : > { %v6683_v41 = vmul.f32 1.050701, %v6651_v4  ;;  %v6461_v17 = vmin.f32 %v6388_v16, 0.0  ;;  %vm6621_vm5 = vcmp.gt.f32.partialorder %v6388_v16, 0.0 }
 0x82b   : > { %v6748_v46 = vld [vmem:[#allocation3 + $0x2f] sm:$0xff] }
 0x82c   : > { %v6811_v26 = vld [vmem:[#allocation3 + $0x29] sm:$0xff]  ;;  %v6812_v18 = vld [vmem:[#allocation3 + $0x31] sm:$0xff]  ;;  %v11770_v20 = vpop.eup %11769  ;;  %6715 = vst [vmem:[#allocation3 + $0x48] sm:$0xff] %v6683_v41  ;;  %v6497_v27 = vmul.f32 1.442695, %v6461_v17  ;;  %v14813_v45 = vpack.c.bf16 %v6748_v46, %v6747_v37 }
 0x82d   : > { %v7044_v43 = vpack.c.bf16 %v6812_v18, %v6811_v26  ;;  %v6556_v9 = vmul.f32 1.6732632, %v11770_v20  ;;  %v5037_v18 = vpack.c.bf16 %v4921_v52, %v4920_v28  ;;  %v14821_v30 = vpop.f32.mrf.mxu0 }
 0x82e   : > { %11771 = vpow2.f32 %v6497_v27  ;;  %7772 = vmatmul.bf16.gmra.mxu3 %v14813_v45 }
 0x82f   : > { %7950 = vmatmul.bf16.gmra.mxu1 %v7044_v43  ;;  %v10818_v29 = vadd.f32 -1.6732632, %v6556_v9  ;;  %v6389_v39 = vpop.f32.mrf.mxu2 }
 0x830   : > { %v6390_v2 = vadd.f32 %v6389_v39, %v14609_v21  ;;  %v14824_v21 = vpop.f32.mrf.mxu1 }
 0x831   : > { %v6652_v4 = vsel %vm6620_vm4, %v6385_v1, %v10818_v29  ;;  %16523 = vst [vmem:[#allocation29_spill] sm:$0xff] %v14824_v21 }
 0x832   : > { %v6684_v17 = vmul.f32 1.050701, %v6652_v4  ;;  %v6462_v37 = vmin.f32 %v6390_v2, 0.0  ;;  %vm6622_vm6 = vcmp.gt.f32.partialorder %v6390_v2, 0.0 }
 0x833   : > { %v6749_v28 = vld [vmem:[#allocation3 + $0x47] sm:$0xff] }
 0x834   : > { %v11772_v46 = vpop.eup %11771  ;;  %6716 = vst [vmem:[#allocation3 + $0x50] sm:$0xff] %v6684_v17  ;;  %v6499_v26 = vmul.f32 1.442695, %v6462_v37  ;;  %6431 = vmatmul.bf16.gmra.mxu2 %v5037_v18  ;;  %v7052_v20 = vpack.c.bf16 %v6684_v17, %v6683_v41 }
 0x835   : > { %v6557_v27 = vmul.f32 1.6732632, %v11772_v46 }
 0x836   : > { %11773 = vpow2.f32 %v6499_v26  ;;  %7866 = vmatmul.bf16.gmra.mxu0 %v7052_v20 }
 0x837   : > { %v10819_v43 = vadd.f32 -1.6732632, %v6557_v27  ;;  %v6392_v9 = vpop.f32.mrf.mxu2  ;;  %v4923_v27 = vld [vmem:[#allocation2 + $0x1d1] sm:$0xff] }
 0x838   : > { %v6393_v48 = vadd.f32 %v6392_v9, %v14617_v55 }
 0x839   : > { %v6653_v1 = vsel %vm6621_vm5, %v6388_v16, %v10819_v43  ;;  %v4922_v16 = vld [vmem:[#allocation2 + $0x1c9] sm:$0xff] }
 0x83a   : > { %v6685_v29 = vmul.f32 1.050701, %v6653_v1  ;;  %v6463_v39 = vmin.f32 %v6393_v48, 0.0  ;;  %v14830_v1 = vpop.f32.mrf.mxu0  ;;  %vm6623_vm7 = vcmp.gt.f32.partialorder %v6393_v48, 0.0 }
 0x83b   : > { %v6750_v52 = vld [vmem:[#allocation3 + $0x4f] sm:$0xff] }
 0x83c   : > { %v6813_v4 = vld [vmem:[#allocation3 + $0x49] sm:$0xff]  ;;  %v6814_v37 = vld [vmem:[#allocation3 + $0x51] sm:$0xff]  ;;  %v11774_v41 = vpop.eup %11773  ;;  %6717 = vst [vmem:[#allocation3 + $0x68] sm:$0xff] %v6685_v29  ;;  %v6501_v17 = vmul.f32 1.442695, %v6463_v39  ;;  %v14826_v18 = vpack.c.bf16 %v6750_v52, %v6749_v28  ;;  %v5046_v28 = vpack.c.bf16 %v4923_v27, %v4922_v16  ;;  %v14832_v52 = vpop.f32.mrf.mxu1 }
 0x83d   : > { %v7053_v46 = vpack.c.bf16 %v6814_v37, %v6813_v4  ;;  %v6558_v26 = vmul.f32 1.6732632, %v11774_v41  ;;  %16524 = vst [vmem:[#allocation11_spill] sm:$0xff] %v14832_v52 }
 0x83e   : > { %11775 = vpow2.f32 %v6501_v17  ;;  %7777 = vmatmul.bf16.gmra.mxu3 %v14826_v18 }
 0x83f   : > { %7955 = vmatmul.bf16.gmra.mxu1 %v7053_v46  ;;  %v10820_v55 = vadd.f32 -1.6732632, %v6558_v26  ;;  %v6394_v20 = vpop.f32.mrf.mxu2 }
 0x840   : > { %v6395_v43 = vadd.f32 %v6394_v20, %v14627_v31  ;;  %v6133_v31 = vadd.f32 %v14511_v57, %v14520_v24 }
 0x841   : > { %v6654_v9 = vsel %vm6622_vm6, %v6390_v2, %v10820_v55 }
 0x842   : > { %v6686_v21 = vmul.f32 1.050701, %v6654_v9  ;;  %v6464_v39 = vmin.f32 %v6395_v43, 0.0  ;;  %vm6624_vm8 = vcmp.gt.f32.partialorder %v6395_v43, 0.0 }
 0x843   : > { %v6751_v27 = vld [vmem:[#allocation3 + $0x67] sm:$0xff] }
 0x844   : > { %v11776_v4 = vpop.eup %11775  ;;  %6718 = vst [vmem:[#allocation3 + $0x70] sm:$0xff] %v6686_v21  ;;  %v6503_v37 = vmul.f32 1.442695, %v6464_v39  ;;  %6436 = vmatmul.bf16.gmra.mxu2 %v5046_v28  ;;  %v7061_v41 = vpack.c.bf16 %v6686_v21, %v6685_v29  ;;  %v6222_v21 = vadd.f32 %v14634_v6, %v6133_v31  ;;  %v14838_v29 = vpop.f32.mrf.mxu0  ;;  %v4925_v6 = vld [vmem:[#allocation2 + $0x1f1] sm:$0xff] }
 0x845   : > { %v6559_v17 = vmul.f32 1.6732632, %v11776_v4  ;;  %v14842_v24 = vpop.f32.mrf.mxu1 }
 0x846   : > { %11777 = vpow2.f32 %v6503_v37  ;;  %7871 = vmatmul.bf16.gmra.mxu0 %v7061_v41 }
 0x847   : > { %v10821_v46 = vadd.f32 -1.6732632, %v6559_v17  ;;  %v6397_v26 = vpop.f32.mrf.mxu2 }
 0x848   : > { %v6398_v2 = vadd.f32 %v6397_v26, %v14637_v40 }
 0x849   : > { %v6655_v55 = vsel %vm6623_vm7, %v6393_v48, %v10821_v46  ;;  %v6311_v48 = vadd.f32 %v14643_v59, %v6222_v21  ;;  %v4924_v46 = vld [vmem:[#allocation2 + $0x1e9] sm:$0xff] }
 0x84a   : > { %v6687_v20 = vmul.f32 1.050701, %v6655_v55  ;;  %v6465_v16 = vmin.f32 %v6398_v2, 0.0  ;;  %vm6625_vm9 = vcmp.gt.f32.partialorder %v6398_v2, 0.0 }
 0x84b   : > { %v6752_v9 = vld [vmem:[#allocation3 + $0x6f] sm:$0xff] }
 0x84c   : > { %v6815_v52 = vld [vmem:[#allocation3 + $0x69] sm:$0xff]  ;;  %v6816_v39 = vld [vmem:[#allocation3 + $0x71] sm:$0xff]  ;;  %v11778_v28 = vpop.eup %11777  ;;  %6719 = vst [vmem:[#allocation3 + $0x88] sm:$0xff] %v6687_v20  ;;  %v6505_v4 = vmul.f32 1.442695, %v6465_v16  ;;  %v14840_v37 = vpack.c.bf16 %v6752_v9, %v6751_v27  ;;  %v5055_v27 = vpack.c.bf16 %v4925_v6, %v4924_v46  ;;  %v6225_v9 = vadd.f32 %v14645_v38, %v14535_v51 }
 0x84d   : > { %v7062_v57 = vpack.c.bf16 %v6816_v39, %v6815_v52  ;;  %v6560_v40 = vmul.f32 1.6732632, %v11778_v28  ;;  %v11562_v52 = vld [vmem:[%s16382_s1 + $0x7b8] sm:$0xff]  ;;  %v6138_v51 = vadd.f32 %v14532_v14, %v14547_v62 }
 0x84e   : > { %11779 = vpow2.f32 %v6505_v4  ;;  %7782 = vmatmul.bf16.gmra.mxu3 %v14840_v37  ;;  %8026 = vmatpush.bf16.msra.mxu2 %v11562_v52  ;;  %v6314_v4 = vadd.f32 %v14652_v63, %v6225_v9  ;;  %v11559_v9 = vld [vmem:[%s16382_s1 + $0x7a0] sm:$0xff] }
 0x84f   : > { %7960 = vmatmul.bf16.gmra.mxu1 %v7062_v57  ;;  %v10822_v41 = vadd.f32 -1.6732632, %v6560_v40  ;;  %v6399_v17 = vpop.f32.mrf.mxu2  ;;  %v14855_v57 = vpop.f32.mrf.mxu0 }
 0x850   : > { %v6400_v26 = vadd.f32 %v6399_v17, %v6311_v48  ;;  %v14857_v40 = vpop.f32.mrf.mxu1  ;;  %v11560_v17 = vld [vmem:[%s16382_s1 + $0x7a8] sm:$0xff] }
 0x851   : > { %v6656_v31 = vsel %vm6624_vm8, %v6395_v43, %v10822_v41  ;;  %v11561_v43 = vld [vmem:[%s16382_s1 + $0x7b0] sm:$0xff] }
 0x852   : > { %v6688_v55 = vmul.f32 1.050701, %v6656_v31  ;;  %v6466_v16 = vmin.f32 %v6400_v26, 0.0  ;;  %8027 = vmatpush.bf16.msra.mxu2 %v11561_v43  ;;  %v4926_v43 = vld [vmem:[#allocation2 + $0x209] sm:$0xff]  ;;  %vm6626_vm10 = vcmp.gt.f32.partialorder %v6400_v26, 0.0 }
 0x853   : > { %v6753_v6 = vld [vmem:[#allocation3 + $0x87] sm:$0xff] }
 0x854   : > { %v11780_v59 = vpop.eup %11779  ;;  %6720 = vst [vmem:[#allocation3 + $0x90] sm:$0xff] %v6688_v55  ;;  %v6507_v39 = vmul.f32 1.442695, %v6466_v16  ;;  %6441 = vmatmul.bf16.gmra.mxu2 %v5055_v27  ;;  %v7070_v28 = vpack.c.bf16 %v6688_v55, %v6687_v20  ;;  %v6227_v27 = vadd.f32 %v14654_v42, %v6138_v51  ;;  %v4927_v42 = vld [vmem:[#allocation2 + $0x211] sm:$0xff] }
 0x855   : > { %v6561_v21 = vmul.f32 1.6732632, %v11780_v59 }
 0x856   : > { %11781 = vpow2.f32 %v6507_v39  ;;  %7876 = vmatmul.bf16.gmra.mxu0 %v7070_v28  ;;  %8028 = vmatpush.bf16.msra.mxu2 %v11560_v17  ;;  %v6316_v39 = vadd.f32 %v14664_v60, %v6227_v27  ;;  %v11558_v60 = vld [vmem:[%s16382_s1 + $0x798] sm:$0xff] }
 0x857   : > { %v10823_v48 = vadd.f32 -1.6732632, %v6561_v21  ;;  %v6402_v41 = vpop.f32.mrf.mxu2 }
 0x858   : > { %v6403_v38 = vadd.f32 %v6402_v41, %v6314_v4  ;;  %v14874_v41 = vpop.f32.mrf.mxu1 }
 0x859   : > { %v6657_v20 = vsel %vm6625_vm9, %v6398_v2, %v10823_v48  ;;  %v14872_v48 = vpop.f32.mrf.mxu0 }
 0x85a   : > { %v6689_v63 = vmul.f32 1.050701, %v6657_v20  ;;  %v6467_v46 = vmin.f32 %v6403_v38, 0.0  ;;  %8029 = vmatpush.bf16.msra.mxu2 %v11559_v9  ;;  %vm6627_vm11 = vcmp.gt.f32.partialorder %v6403_v38, 0.0 }
 0x85b   : > { %v6754_v31 = vld [vmem:[#allocation3 + $0x8f] sm:$0xff] }
 0x85c   : > { %v6817_v52 = vld [vmem:[#allocation3 + $0x89] sm:$0xff]  ;;  %v6818_v55 = vld [vmem:[#allocation3 + $0x91] sm:$0xff]  ;;  %v11782_v16 = vpop.eup %11781  ;;  %6721 = vst [vmem:[#allocation3 + $0xa8] sm:$0xff] %v6689_v63  ;;  %v6509_v59 = vmul.f32 1.442695, %v6467_v46  ;;  %v14865_v14 = vpack.c.bf16 %v6754_v31, %v6753_v6  ;;  %v5064_v46 = vpack.c.bf16 %v4927_v42, %v4926_v43  ;;  %v6230_v31 = vadd.f32 %v14669_v35, %v14563_v11 }
 0x85d   : > { %v7071_v62 = vpack.c.bf16 %v6818_v55, %v6817_v52  ;;  %v6562_v2 = vmul.f32 1.6732632, %v11782_v16 }
 0x85e   : > { %11783 = vpow2.f32 %v6509_v59  ;;  %7787 = vmatmul.bf16.gmra.mxu3 %v14865_v14  ;;  %8030 = vmatpush.bf16.msra.mxu2 %v11558_v60  ;;  %v6319_v27 = vadd.f32 %v14673_v15, %v6230_v31  ;;  %v11555_v31 = vld [vmem:[%s16382_s1 + $0x780] sm:$0xff] }
 0x85f   : > { %7965 = vmatmul.bf16.gmra.mxu1 %v7071_v62  ;;  %v10824_v28 = vadd.f32 -1.6732632, %v6562_v2  ;;  %v6404_v21 = vpop.f32.mrf.mxu2  ;;  %v6143_v2 = vadd.f32 %v14560_v54, %v14569_v5 }
 0x860   : > { %v6405_v4 = vadd.f32 %v6404_v21, %v6316_v39  ;;  %v14892_v15 = vpop.f32.mrf.mxu1 }
 0x861   : > { %v6658_v51 = vsel %vm6626_vm10, %v6400_v26, %v10824_v28  ;;  %v11557_v26 = vld [vmem:[%s16382_s1 + $0x790] sm:$0xff]  ;;  %v14890_v21 = vpop.f32.mrf.mxu0  ;;  %v6232_v54 = vadd.f32 %v14679_v61, %v6143_v2 }
 0x862   : > { %v6690_v20 = vmul.f32 1.050701, %v6658_v51  ;;  %v6468_v17 = vmin.f32 %v6405_v4, 0.0  ;;  %8031 = vmatpush.bf16.msra.mxu2 %v11557_v26  ;;  %vm6628_vm12 = vcmp.gt.f32.partialorder %v6405_v4, 0.0 }
 0x863   : > { %v6755_v28 = vld [vmem:[#allocation3 + $0xa7] sm:$0xff] }
 0x864   : > { %v11784_v6 = vpop.eup %11783  ;;  %6722 = vst [vmem:[#allocation3 + $0xb0] sm:$0xff] %v6690_v20  ;;  %v6511_v52 = vmul.f32 1.442695, %v6468_v17  ;;  %6446 = vmatmul.bf16.gmra.mxu2 %v5064_v46  ;;  %v7079_v55 = vpack.c.bf16 %v6690_v20, %v6689_v63  ;;  %v11556_v63 = vld [vmem:[%s16382_s1 + $0x788] sm:$0xff] }
 0x865   : > { %v6563_v16 = vmul.f32 1.6732632, %v11784_v6  ;;  %v4928_v46 = vld [vmem:[#allocation2 + $0x229] sm:$0xff]  ;;  %v4929_v6 = vld [vmem:[#allocation2 + $0x231] sm:$0xff] }
 0x866   : > { %11785 = vpow2.f32 %v6511_v52  ;;  %7881 = vmatmul.bf16.gmra.mxu0 %v7079_v55  ;;  %8032 = vmatpush.bf16.msra.mxu2 %v11556_v63  ;;  %v6321_v52 = vadd.f32 %v14682_v33, %v6232_v54  ;;  %v5073_v26 = vpack.c.bf16 %v4929_v6, %v4928_v46 }
 0x867   : > { %v10825_v59 = vadd.f32 -1.6732632, %v6563_v16  ;;  %v6407_v62 = vpop.f32.mrf.mxu2 }
 0x868   : > { %v6408_v11 = vadd.f32 %v6407_v62, %v6319_v27 }
 0x869   : > { %v6659_v35 = vsel %vm6627_vm11, %v6403_v38, %v10825_v59 }
 0x86a   : > { %v6691_v9 = vmul.f32 1.050701, %v6659_v35  ;;  %v6469_v39 = vmin.f32 %v6408_v11, 0.0  ;;  %8033 = vmatpush.bf16.msra.mxu2 %v11555_v31  ;;  %v6235_v35 = vadd.f32 %v14691_v47, %v14581_v10  ;;  %vm6629_vm13 = vcmp.gt.f32.partialorder %v6408_v11, 0.0 }
 0x86b   : > { %v6756_v43 = vld [vmem:[#allocation3 + $0xaf] sm:$0xff] }
 0x86c   : > { %v6819_v42 = vld [vmem:[#allocation3 + $0xa9] sm:$0xff]  ;;  %v6820_v51 = vld [vmem:[#allocation3 + $0xb1] sm:$0xff]  ;;  %v11786_v60 = vpop.eup %11785  ;;  %6723 = vst [vmem:[#allocation3 + $0xc8] sm:$0xff] %v6691_v9  ;;  %v6513_v5 = vmul.f32 1.442695, %v6469_v39  ;;  %v14895_v38 = vpack.c.bf16 %v6756_v43, %v6755_v28  ;;  %v14904_v39 = vpop.f32.mrf.mxu0 }
 0x86d   : > { %v7080_v20 = vpack.c.bf16 %v6820_v51, %v6819_v42  ;;  %v6564_v17 = vmul.f32 1.6732632, %v11786_v60  ;;  %v14906_v28 = vpop.f32.mrf.mxu1  ;;  %v6324_v42 = vadd.f32 %v14693_v44, %v6235_v35  ;;  %v6148_v60 = vadd.f32 %v14578_v3, %v14587_v12 }
 0x86e   : > { %11787 = vpow2.f32 %v6513_v5  ;;  %7792 = vmatmul.bf16.gmra.mxu3 %v14895_v38 }
 0x86f   : > { %7970 = vmatmul.bf16.gmra.mxu1 %v7080_v20  ;;  %v10826_v55 = vadd.f32 -1.6732632, %v6564_v17  ;;  %v6409_v61 = vpop.f32.mrf.mxu2  ;;  %v6237_v31 = vadd.f32 %v14715_v22, %v6148_v60 }
 0x870   : > { %v6410_v16 = vadd.f32 %v6409_v61, %v6321_v52 }
 0x871   : > { %v6660_v27 = vsel %vm6628_vm12, %v6405_v4, %v10826_v55  ;;  %v6326_v12 = vadd.f32 %v14718_v19, %v6237_v31 }
 0x872   : > { %v6692_v59 = vmul.f32 1.050701, %v6660_v27  ;;  %v6470_v62 = vmin.f32 %v6410_v16, 0.0  ;;  %vm6630_vm14 = vcmp.gt.f32.partialorder %v6410_v16, 0.0 }
 0x874   : > { %v11788_v2 = vpop.eup %11787  ;;  %6724 = vst [vmem:[#allocation3 + $0xd0] sm:$0xff] %v6692_v59  ;;  %v6515_v63 = vmul.f32 1.442695, %v6470_v62  ;;  %6451 = vmatmul.bf16.gmra.mxu2 %v5073_v26  ;;  %v7088_v33 = vpack.c.bf16 %v6692_v59, %v6691_v9  ;;  %v6757_v9 = vld [vmem:[#allocation3 + $0xc7] sm:$0xff]  ;;  %v14914_v61 = vpop.f32.mrf.mxu0 }
 0x875   : > { %v6565_v43 = vmul.f32 1.6732632, %v11788_v2 }
 0x876   : > { %11789 = vpow2.f32 %v6515_v63  ;;  %7886 = vmatmul.bf16.gmra.mxu0 %v7088_v33  ;;  %v6240_v63 = vadd.f32 %v14733_v0, %v14599_v25 }
 0x877   : > { %v10827_v4 = vadd.f32 -1.6732632, %v6565_v43  ;;  %v6412_v51 = vpop.f32.mrf.mxu2  ;;  %v14923_v43 = vpop.f32.mrf.mxu3 }
 0x878   : > { %v6413_v10 = vadd.f32 %v6412_v51, %v6324_v42 }
 0x879   : > { %v6661_v47 = vsel %vm6629_vm13, %v6408_v11, %v10827_v4  ;;  %v14918_v11 = vpop.f32.mrf.mxu1  ;;  %v6329_v4 = vadd.f32 %v14735_v7, %v6240_v63 }
 0x87a   : > { %v6693_v54 = vmul.f32 1.050701, %v6661_v47  ;;  %v6471_v5 = vmin.f32 %v6413_v10, 0.0  ;;  %v6153_v47 = vadd.f32 %v14596_v50, %v14605_v36  ;;  %vm6631_vm15 = vcmp.gt.f32.partialorder %v6413_v10, 0.0  ;;  %v14938_v50 = vld [vmem:[%s16383_s2 + $0x3] ss:$0 sm:$0xff] }
 0x87b   : > { %v6758_v20 = vld [vmem:[#allocation3 + $0xcf] sm:$0xff] }
 0x87c   : > { %v6821_v17 = vld [vmem:[#allocation3 + $0xc9] sm:$0xff]  ;;  %v6822_v46 = vld [vmem:[#allocation3 + $0xd1] sm:$0xff]  ;;  %v11790_v6 = vpop.eup %11789  ;;  %6725 = vst [vmem:[#allocation3 + $0xe8] sm:$0xff] %v6693_v54  ;;  %v6517_v44 = vmul.f32 1.442695, %v6471_v5  ;;  %v14912_v52 = vpack.c.bf16 %v6758_v20, %v6757_v9  ;;  %v14926_v51 = vpop.f32.mrf.mxu0 }
 0x87d   : > { %v7089_v55 = vpack.c.bf16 %v6822_v46, %v6821_v17  ;;  %v6566_v3 = vmul.f32 1.6732632, %v11790_v6  ;;  %v6242_v6 = vadd.f32 %v14768_v53, %v6153_v47 }
 0x87e   : > { %11791 = vpow2.f32 %v6517_v44  ;;  %7797 = vmatmul.bf16.gmra.mxu3 %v14912_v52 }
 0x87f   : > { %7975 = vmatmul.bf16.gmra.mxu1 %v7089_v55  ;;  %v10828_v26 = vadd.f32 -1.6732632, %v6566_v3  ;;  %v6414_v27 = vpop.f32.mrf.mxu2  ;;  %v6331_v3 = vadd.f32 %v14770_v23, %v6242_v6  ;;  %v6245_v23 = vadd.f32 %v14789_v56, %v14614_v32  ;;  %v6158_v32 = vadd.f32 %v14611_v58, %v14620_v13  ;;  %v16525_v13 = vld [vmem:[#allocation26_spill] sm:$0xff] }
 0x880   : > { %v6415_v22 = vadd.f32 %v6414_v27, %v6326_v12 }
 0x881   : > { %v6662_v59 = vsel %vm6630_vm14, %v6410_v16, %v10828_v26  ;;  %v14930_v0 = vpop.f32.mrf.mxu1 }
 0x882   : > { %v6694_v62 = vmul.f32 1.050701, %v6662_v59  ;;  %v6472_v2 = vmin.f32 %v6415_v22, 0.0  ;;  %vm6632_vm0 = vcmp.gt.f32.partialorder %v6415_v22, 0.0 }
 0x883   : > { %v6759_v9 = vld [vmem:[#allocation3 + $0xe7] sm:$0xff] }
 0x884   : > { %v11792_v35 = vpop.eup %11791  ;;  %6726 = vst [vmem:[#allocation3 + $0xf0] sm:$0xff] %v6694_v62  ;;  %v6519_v33 = vmul.f32 1.442695, %v6472_v2  ;;  %8034 = vmatmul.bf16.vlgmr.msra.gmra.mxu2 %v14813_v45  ;;  %v7097_v19 = vpack.c.bf16 %v6694_v62, %v6693_v54  ;;  %v7857_v27 = vpop.f32.mrf.mxu0 }
 0x885   : > { %v6567_v42 = vmul.f32 1.6732632, %v11792_v35 }
 0x886   : > { %11793 = vpow2.f32 %v6519_v33  ;;  %7891 = vmatmul.bf16.gmra.mxu0 %v7097_v19 }
 0x887   : > { %v10829_v16 = vadd.f32 -1.6732632, %v6567_v42  ;;  %v6417_v60 = vpop.f32.mrf.mxu2 }
 0x888   : > { %v6418_v25 = vadd.f32 %v6417_v60, %v6329_v4  ;;  %v11570_v60 = vld [vmem:[%s16382_s1 + $0x7f8] sm:$0xff] }
 0x889   : > { %v6663_v45 = vsel %vm6631_vm15, %v6413_v10, %v10829_v16  ;;  %v7768_v10 = vpop.f32.mrf.mxu3  ;;  %v7946_v35 = vpop.f32.mrf.mxu1  ;;  %8115 = vmatpush.bf16.msra.mxu3 %v11570_v60  ;;  %v16528_v60 = vld [vmem:[#allocation10_spill] sm:$0xff] }
 0x88a   : > { %v6695_v54 = vmul.f32 1.050701, %v6663_v45  ;;  %v6473_v5 = vmin.f32 %v6418_v25, 0.0  ;;  %v7769_v53 = vadd.f32 %v14938_v50, %v7768_v10  ;;  %vm6633_vm1 = vcmp.gt.f32.partialorder %v6418_v25, 0.0 }
 0x88b   : > { %v6760_v20 = vld [vmem:[#allocation3 + $0xef] sm:$0xff] }
 0x88c   : > { %v6823_v17 = vld [vmem:[#allocation3 + $0xe9] sm:$0xff]  ;;  %v6824_v7 = vld [vmem:[#allocation3 + $0xf1] sm:$0xff]  ;;  %v11794_v46 = vpop.eup %11793  ;;  %6727 = vst [vmem:[#allocation3 + $0x108] sm:$0xff] %v6695_v54  ;;  %v6521_v31 = vmul.f32 1.442695, %v6473_v5  ;;  %v14933_v44 = vpack.c.bf16 %v6760_v20, %v6759_v9  ;;  %v7858_v62 = vadd.f32 %v7857_v27, %v7769_v53 }
 0x88d   : > { %v7098_v55 = vpack.c.bf16 %v6824_v7, %v6823_v17  ;;  %v6568_v36 = vmul.f32 1.6732632, %v11794_v46 }
 0x88e   : > { %11795 = vpow2.f32 %v6521_v31  ;;  %7802 = vmatmul.bf16.gmra.mxu3 %v14933_v44  ;;  %v14943_v19 = vadd.f32 %v7946_v35, %v7858_v62  ;;  %v6247_v31 = vadd.f32 %v14797_v49, %v6158_v32 }
 0x88f   : > { %7980 = vmatmul.bf16.gmra.mxu1 %v7098_v55  ;;  %v10830_v12 = vadd.f32 -1.6732632, %v6568_v36  ;;  %v6419_v26 = vpop.f32.mrf.mxu2 }
 0x890   : > { %v6420_v59 = vadd.f32 %v6419_v26, %v6331_v3  ;;  %v6336_v3 = vadd.f32 %v16525_v13, %v6247_v31 }
 0x891   : > { %v6664_v2 = vsel %vm6632_vm0, %v6415_v22, %v10830_v12  ;;  %v6334_v22 = vadd.f32 %v14791_v34, %v6245_v23  ;;  %v14961_v27 = vpop.f32.mrf.mxu1 }
 0x892   : > { %v6696_v63 = vmul.f32 1.050701, %v6664_v2  ;;  %v6474_v33 = vmin.f32 %v6420_v59, 0.0  ;;  %vm6634_vm2 = vcmp.gt.f32.partialorder %v6420_v59, 0.0 }
 0x893   : > { %v6761_v17 = vld [vmem:[#allocation3 + $0x107] sm:$0xff] }
 0x894   : > { %v11796_v42 = vpop.eup %11795  ;;  %6728 = vst [vmem:[#allocation3 + $0x110] sm:$0xff] %v6696_v63  ;;  %v6523_v4 = vmul.f32 1.442695, %v6474_v33  ;;  %8039 = vmatmul.bf16.gmra.mxu2 %v14826_v18  ;;  %v7106_v16 = vpack.c.bf16 %v6696_v63, %v6695_v54  ;;  %v14954_v18 = vpop.f32.mrf.mxu0  ;;  %v16526_v63 = vld [vmem:[#allocation12_spill] sm:$0xff]  ;;  %v16527_v33 = vld [vmem:[#allocation27_spill] sm:$0xff] }
 0x895   : > { %v6569_v47 = vmul.f32 1.6732632, %v11796_v42  ;;  %v6250_v42 = vadd.f32 %v16527_v33, %v16526_v63 }
 0x896   : > { %11797 = vpow2.f32 %v6523_v4  ;;  %7896 = vmatmul.bf16.gmra.mxu0 %v7106_v16 }
 0x897   : > { %v10831_v45 = vadd.f32 -1.6732632, %v6569_v47  ;;  %v6422_v5 = vpop.f32.mrf.mxu2  ;;  %v6339_v47 = vadd.f32 %v16528_v60, %v6250_v42 }
 0x898   : > { %v6423_v56 = vadd.f32 %v6422_v5, %v6334_v22  ;;  %v16530_v5 = vld [vmem:[#allocation21_spill] sm:$0xff] }
 0x899   : > { %v6665_v9 = vsel %vm6633_vm1, %v6418_v25, %v10831_v45  ;;  %v16529_v45 = vld [vmem:[#allocation22_spill] sm:$0xff] }
 0x89a   : > { %v6697_v54 = vmul.f32 1.050701, %v6665_v9  ;;  %v6475_v20 = vmin.f32 %v6423_v56, 0.0  ;;  %v6163_v32 = vadd.f32 %v16530_v5, %v16529_v45  ;;  %vm6635_vm3 = vcmp.gt.f32.partialorder %v6423_v56, 0.0 }
 0x89b   : > { %v6762_v7 = vld [vmem:[#allocation3 + $0x10f] sm:$0xff] }
 0x89c   : > { %v6825_v46 = vld [vmem:[#allocation3 + $0x109] sm:$0xff]  ;;  %v6826_v6 = vld [vmem:[#allocation3 + $0x111] sm:$0xff]  ;;  %v11798_v34 = vpop.eup %11797  ;;  %6729 = vst [vmem:[#allocation3 + $0x128] sm:$0xff] %v6697_v54  ;;  %v6525_v55 = vmul.f32 1.442695, %v6475_v20  ;;  %v14957_v36 = vpack.c.bf16 %v6762_v7, %v6761_v17  ;;  %v14969_v17 = vpop.f32.mrf.mxu3 }
 0x89d   : > { %v7107_v10 = vpack.c.bf16 %v6826_v6, %v6825_v46  ;;  %v6570_v58 = vmul.f32 1.6732632, %v11798_v34 }
 0x89e   : > { %11799 = vpow2.f32 %v6525_v55  ;;  %7807 = vmatmul.bf16.gmra.mxu3 %v14957_v36 }
 0x89f   : > { %7985 = vmatmul.bf16.gmra.mxu1 %v7107_v10  ;;  %v10832_v25 = vadd.f32 -1.6732632, %v6570_v58  ;;  %v6424_v53 = vpop.f32.mrf.mxu2  ;;  %v16531_v58 = vld [vmem:[#allocation28_spill] sm:$0xff] }
 0x8a0   : > { %v6425_v12 = vadd.f32 %v6424_v53, %v6336_v3  ;;  %v6252_v13 = vadd.f32 %v16531_v58, %v6163_v32 }
 0x8a1   : > { %v6666_v26 = vsel %vm6634_vm2, %v6420_v59, %v10832_v25 }
 0x8a2   : > { %v6698_v49 = vmul.f32 1.050701, %v6666_v26  ;;  %v6476_v62 = vmin.f32 %v6425_v12, 0.0  ;;  %vm6636_vm4 = vcmp.gt.f32.partialorder %v6425_v12, 0.0 }
 0x8a3   : > { %v7862_v2 = vpop.f32.mrf.mxu0  ;;  %v6763_v6 = vld [vmem:[#allocation3 + $0x127] sm:$0xff] }
 0x8a4   : > { %v11800_v35 = vpop.eup %11799  ;;  %6730 = vst [vmem:[#allocation3 + $0x130] sm:$0xff] %v6698_v49  ;;  %v6527_v23 = vmul.f32 1.442695, %v6476_v62  ;;  %8044 = vmatmul.bf16.gmra.mxu2 %v14840_v37  ;;  %v7115_v4 = vpack.c.bf16 %v6698_v49, %v6697_v54 }
 0x8a5   : > { %v6571_v16 = vmul.f32 1.6732632, %v11800_v35 }
 0x8a6   : > { %11801 = vpow2.f32 %v6527_v23  ;;  %7901 = vmatmul.bf16.gmra.mxu0 %v7115_v4 }
 0x8a7   : > { %v10833_v59 = vadd.f32 -1.6732632, %v6571_v16  ;;  %v6427_v22 = vpop.f32.mrf.mxu2 }
 0x8a8   : > { %v6428_v9 = vadd.f32 %v6427_v22, %v6339_v47  ;;  %v16533_v22 = vld [vmem:[#allocation9_spill] sm:$0xff] }
 0x8a9   : > { %v6667_v20 = vsel %vm6635_vm3, %v6423_v56, %v10833_v59  ;;  %v6341_v56 = vadd.f32 %v14810_v8, %v6252_v13  ;;  %v16532_v59 = vld [vmem:[#allocation16_spill] sm:$0xff] }
 0x8aa   : > { %v6699_v7 = vmul.f32 1.050701, %v6667_v20  ;;  %v6477_v46 = vmin.f32 %v6428_v9, 0.0  ;;  %v6255_v8 = vadd.f32 %v16533_v22, %v16532_v59  ;;  %vm6637_vm5 = vcmp.gt.f32.partialorder %v6428_v9, 0.0 }
 0x8ab   : > { %v6764_v54 = vld [vmem:[#allocation3 + $0x12f] sm:$0xff]  ;;  %v7864_v55 = vpop.f32.mrf.mxu0 }
 0x8ac   : > { %v7951_v37 = vpop.f32.mrf.mxu1  ;;  %v6827_v34 = vld [vmem:[#allocation3 + $0x129] sm:$0xff]  ;;  %v6828_v31 = vld [vmem:[#allocation3 + $0x131] sm:$0xff]  ;;  %v11802_v10 = vpop.eup %11801  ;;  %6731 = vst [vmem:[#allocation3 + $0x148] sm:$0xff] %v6699_v7  ;;  %v6529_v3 = vmul.f32 1.442695, %v6477_v46  ;;  %v14972_v25 = vpack.c.bf16 %v6764_v54, %v6763_v6 }
 0x8ad   : > { %v7116_v53 = vpack.c.bf16 %v6828_v31, %v6827_v34  ;;  %v6572_v26 = vmul.f32 1.6732632, %v11802_v10  ;;  %v16534_v46 = vld [vmem:[#allocation30_spill] sm:$0xff]  ;;  %v16535_v34 = vld [vmem:[#allocation23_spill] sm:$0xff] }
 0x8ae   : > { %11803 = vpow2.f32 %v6529_v3  ;;  %7812 = vmatmul.bf16.gmra.mxu3 %v14972_v25  ;;  %v6344_v6 = vadd.f32 %v16534_v46, %v6255_v8  ;;  %v16536_v31 = vld [vmem:[#allocation14_spill] sm:$0xff]  ;;  %v16537_v8 = vld [vmem:[#allocation29_spill] sm:$0xff] }
 0x8af   : > { %7990 = vmatmul.bf16.gmra.mxu1 %v7116_v53  ;;  %v10834_v49 = vadd.f32 -1.6732632, %v6572_v26  ;;  %v6429_v62 = vpop.f32.mrf.mxu2  ;;  %v6168_v10 = vadd.f32 %v16536_v31, %v16535_v34 }
 0x8b0   : > { %v6430_v35 = vadd.f32 %v6429_v62, %v6341_v56 }
 0x8b1   : > { %v6668_v63 = vsel %vm6636_vm4, %v6425_v12, %v10834_v49  ;;  %v7773_v33 = vpop.f32.mrf.mxu3  ;;  %v11569_v12 = vld [vmem:[%s16382_s1 + $0x7f0] sm:$0xff]  ;;  %v6257_v49 = vadd.f32 %v14821_v30, %v6168_v10 }
 0x8b2   : > { %v6700_v42 = vmul.f32 1.050701, %v6668_v63  ;;  %v6478_v23 = vmin.f32 %v6430_v35, 0.0  ;;  %v7774_v4 = vadd.f32 %v14938_v50, %v7773_v33  ;;  %8116 = vmatpush.bf16.msra.mxu3 %v11569_v12  ;;  %vm6638_vm6 = vcmp.gt.f32.partialorder %v6430_v35, 0.0 }
 0x8b3   : > { %v7867_v60 = vpop.f32.mrf.mxu0  ;;  %v6765_v56 = vld [vmem:[#allocation3 + $0x147] sm:$0xff] }
 0x8b4   : > { %v7953_v16 = vpop.f32.mrf.mxu1  ;;  %v11804_v47 = vpop.eup %11803  ;;  %6732 = vst [vmem:[#allocation3 + $0x150] sm:$0xff] %v6700_v42  ;;  %v6531_v45 = vmul.f32 1.442695, %v6478_v23  ;;  %v7863_v5 = vadd.f32 %v7862_v2, %v7774_v4  ;;  %8049 = vmatmul.bf16.gmra.mxu2 %v14865_v14  ;;  %v7124_v32 = vpack.c.bf16 %v6700_v42, %v6699_v7 }
 0x8b5   : > { %v6573_v20 = vmul.f32 1.6732632, %v11804_v47 }
 0x8b6   : > { %11805 = vpow2.f32 %v6531_v45  ;;  %7906 = vmatmul.bf16.gmra.mxu0 %v7124_v32  ;;  %v14984_v54 = vadd.f32 %v7951_v37, %v7863_v5  ;;  %v6346_v45 = vadd.f32 %v16537_v8, %v6257_v49 }
 0x8b7   : > { %v10835_v58 = vadd.f32 -1.6732632, %v6573_v20  ;;  %v6432_v2 = vpop.f32.mrf.mxu2 }
 0x8b8   : > { %v6433_v14 = vadd.f32 %v6432_v2, %v6344_v6  ;;  %v16538_v2 = vld [vmem:[#allocation15_spill] sm:$0xff] }
 0x8b9   : > { %v6669_v7 = vsel %vm6637_vm5, %v6428_v9, %v10835_v58  ;;  %v7775_v13 = vpop.f32.mrf.mxu3 }
 0x8ba   : > { %v6701_v3 = vmul.f32 1.050701, %v6669_v7  ;;  %v6479_v53 = vmin.f32 %v6433_v14, 0.0  ;;  %v7776_v26 = vadd.f32 %v14938_v50, %v7775_v13  ;;  %v6260_v7 = vadd.f32 %v14830_v1, %v16538_v2 }
 0x8bb   : > { %v6766_v63 = vld [vmem:[#allocation3 + $0x14f] sm:$0xff]  ;;  %v7869_v42 = vpop.f32.mrf.mxu0  ;;  %vm6639_vm7 = vcmp.gt.f32.partialorder %v6433_v14, 0.0 }
 0x8bc   : > { %v7956_v62 = vpop.f32.mrf.mxu1  ;;  %v6829_v37 = vld [vmem:[#allocation3 + $0x149] sm:$0xff]  ;;  %v6830_v33 = vld [vmem:[#allocation3 + $0x151] sm:$0xff]  ;;  %v11806_v23 = vpop.eup %11805  ;;  %6733 = vst [vmem:[#allocation3 + $0x168] sm:$0xff] %v6701_v3  ;;  %v6533_v4 = vmul.f32 1.442695, %v6479_v53  ;;  %v7865_v47 = vadd.f32 %v7864_v55, %v7776_v26  ;;  %v14990_v59 = vpack.c.bf16 %v6766_v63, %v6765_v56  ;;  %v16540_v63 = vld [vmem:[#allocation17_spill] sm:$0xff] }
 0x8bd   : > { %v7125_v9 = vpack.c.bf16 %v6830_v33, %v6829_v37  ;;  %v6574_v22 = vmul.f32 1.6732632, %v11806_v23  ;;  %v16539_v56 = vld [vmem:[#allocation11_spill] sm:$0xff]  ;;  %v16541_v37 = vld [vmem:[#allocation5_spill] sm:$0xff] }
 0x8be   : > { %11807 = vpow2.f32 %v6533_v4  ;;  %7817 = vmatmul.bf16.gmra.mxu3 %v14990_v59  ;;  %v14994_v30 = vadd.f32 %v7953_v16, %v7865_v47  ;;  %v6173_v33 = vadd.f32 %v16541_v37, %v16540_v63 }
 0x8bf   : > { %7995 = vmatmul.bf16.gmra.mxu1 %v7125_v9  ;;  %v10836_v5 = vadd.f32 -1.6732632, %v6574_v22  ;;  %v6434_v32 = vpop.f32.mrf.mxu2 }
 0x8c0   : > { %v6435_v12 = vadd.f32 %v6434_v32, %v6346_v45  ;;  %v6262_v8 = vadd.f32 %v14838_v29, %v6173_v33 }
 0x8c1   : > { %v6670_v20 = vsel %vm6638_vm6, %v6430_v35, %v10836_v5  ;;  %v7778_v46 = vpop.f32.mrf.mxu3  ;;  %v6349_v35 = vadd.f32 %v16539_v56, %v6260_v7 }
 0x8c2   : > { %v6702_v6 = vmul.f32 1.050701, %v6670_v20  ;;  %v6480_v55 = vmin.f32 %v6435_v12, 0.0  ;;  %v7779_v34 = vadd.f32 %v14938_v50, %v7778_v46  ;;  %v6351_v2 = vadd.f32 %v14842_v24, %v6262_v8  ;;  %v16542_v24 = vld [vmem:[#allocation24_spill] sm:$0xff] }
 0x8c3   : > { %v7872_v10 = vpop.f32.mrf.mxu0  ;;  %vm6640_vm8 = vcmp.gt.f32.partialorder %v6435_v12, 0.0 }
 0x8c4   : > { %v7958_v31 = vpop.f32.mrf.mxu1  ;;  %v11808_v58 = vpop.eup %11807  ;;  %6734 = vst [vmem:[#allocation3 + $0x170] sm:$0xff] %v6702_v6  ;;  %v6535_v13 = vmul.f32 1.442695, %v6480_v55  ;;  %v7868_v16 = vadd.f32 %v7867_v60, %v7779_v34  ;;  %8054 = vmatmul.bf16.gmra.mxu2 %v14895_v38  ;;  %v7133_v53 = vpack.c.bf16 %v6702_v6, %v6701_v3  ;;  %v6767_v3 = vld [vmem:[#allocation3 + $0x167] sm:$0xff] }
 0x8c5   : > { %v6575_v26 = vmul.f32 1.6732632, %v11808_v58 }
 0x8c6   : > { %11809 = vpow2.f32 %v6535_v13  ;;  %7911 = vmatmul.bf16.gmra.mxu0 %v7133_v53  ;;  %v15001_v49 = vadd.f32 %v7956_v62, %v7868_v16 }
 0x8c7   : > { %v10837_v23 = vadd.f32 -1.6732632, %v6575_v26  ;;  %v6437_v4 = vpop.f32.mrf.mxu2 }
 0x8c8   : > { %v6438_v1 = vadd.f32 %v6437_v4, %v6349_v35 }
 0x8c9   : > { %v6671_v47 = vsel %vm6639_vm7, %v6433_v14, %v10837_v23  ;;  %v7780_v9 = vpop.f32.mrf.mxu3  ;;  %v6265_v23 = vadd.f32 %v14855_v57, %v16542_v24  ;;  %v16544_v57 = vld [vmem:[#allocation19_spill] sm:$0xff] }
 0x8ca   : > { %v6703_v60 = vmul.f32 1.050701, %v6671_v47  ;;  %v6481_v22 = vmin.f32 %v6438_v1, 0.0  ;;  %v7781_v38 = vadd.f32 %v14938_v50, %v7780_v9  ;;  %vm6641_vm9 = vcmp.gt.f32.partialorder %v6438_v1, 0.0 }
 0x8cb   : > { %v6768_v5 = vld [vmem:[#allocation3 + $0x16f] sm:$0xff]  ;;  %v7874_v20 = vpop.f32.mrf.mxu0 }
 0x8cc   : > { %v7961_v45 = vpop.f32.mrf.mxu1  ;;  %v6831_v62 = vld [vmem:[#allocation3 + $0x169] sm:$0xff]  ;;  %v6832_v32 = vld [vmem:[#allocation3 + $0x171] sm:$0xff]  ;;  %v11810_v46 = vpop.eup %11809  ;;  %6735 = vst [vmem:[#allocation3 + $0x188] sm:$0xff] %v6703_v60  ;;  %v6537_v6 = vmul.f32 1.442695, %v6481_v22  ;;  %v7870_v55 = vadd.f32 %v7869_v42, %v7781_v38  ;;  %v15007_v34 = vpack.c.bf16 %v6768_v5, %v6767_v3  ;;  %v6354_v22 = vadd.f32 %v14857_v40, %v6265_v23 }
 0x8cd   : > { %v7134_v14 = vpack.c.bf16 %v6832_v32, %v6831_v62  ;;  %v6576_v58 = vmul.f32 1.6732632, %v11810_v46  ;;  %v16543_v3 = vld [vmem:[#allocation6_spill] sm:$0xff] }
 0x8ce   : > { %11811 = vpow2.f32 %v6537_v6  ;;  %7822 = vmatmul.bf16.gmra.mxu3 %v15007_v34  ;;  %v15011_v29 = vadd.f32 %v7958_v31, %v7870_v55  ;;  %v6178_v8 = vadd.f32 %v16544_v57, %v16543_v3  ;;  %v16545_v3 = vld [vmem:[#allocation7_spill] sm:$0xff] }
 0x8cf   : > { %8000 = vmatmul.bf16.gmra.mxu1 %v7134_v14  ;;  %v10838_v7 = vadd.f32 -1.6732632, %v6576_v58  ;;  %v6439_v13 = vpop.f32.mrf.mxu2  ;;  %v6270_v57 = vadd.f32 %v14890_v21, %v16545_v3  ;;  %v11577_v21 = vld [vmem:[%s16382_s1 + $0x830] sm:$0xff] }
 0x8d0   : > { %v6440_v16 = vadd.f32 %v6439_v13, %v6351_v2  ;;  %v6267_v40 = vadd.f32 %v14872_v48, %v6178_v8  ;;  %v11585_v3 = vld [vmem:[%s16382_s1 + $0x870] sm:$0xff] }
 0x8d1   : > { %v6672_v53 = vsel %vm6640_vm8, %v6435_v12, %v10838_v7  ;;  %v7783_v26 = vpop.f32.mrf.mxu3  ;;  %v11568_v12 = vld [vmem:[%s16382_s1 + $0x7e8] sm:$0xff] }
 0x8d2   : > { %v6704_v56 = vmul.f32 1.050701, %v6672_v53  ;;  %v6482_v42 = vmin.f32 %v6440_v16, 0.0  ;;  %v7784_v35 = vadd.f32 %v14938_v50, %v7783_v26  ;;  %8117 = vmatpush.bf16.msra.mxu3 %v11568_v12  ;;  %vm6642_vm10 = vcmp.gt.f32.partialorder %v6440_v16, 0.0 }
 0x8d3   : > { %v7877_v37 = vpop.f32.mrf.mxu0  ;;  %v6769_v55 = vld [vmem:[#allocation3 + $0x187] sm:$0xff] }
 0x8d4   : > { %v7963_v63 = vpop.f32.mrf.mxu1  ;;  %v11812_v33 = vpop.eup %11811  ;;  %6736 = vst [vmem:[#allocation3 + $0x190] sm:$0xff] %v6704_v56  ;;  %v6539_v4 = vmul.f32 1.442695, %v6482_v42  ;;  %v7873_v31 = vadd.f32 %v7872_v10, %v7784_v35  ;;  %8059 = vmatmul.bf16.gmra.mxu2 %v14912_v52  ;;  %v7142_v47 = vpack.c.bf16 %v6704_v56, %v6703_v60  ;;  %v6356_v35 = vadd.f32 %v14874_v41, %v6267_v40 }
 0x8d5   : > { %v6577_v9 = vmul.f32 1.6732632, %v11812_v33 }
 0x8d6   : > { %11813 = vpow2.f32 %v6539_v4  ;;  %7916 = vmatmul.bf16.gmra.mxu0 %v7142_v47  ;;  %v15021_v38 = vadd.f32 %v7961_v45, %v7873_v31 }
 0x8d7   : > { %v10839_v5 = vadd.f32 -1.6732632, %v6577_v9  ;;  %v6442_v10 = vpop.f32.mrf.mxu2 }
 0x8d8   : > { %v6443_v52 = vadd.f32 %v6442_v10, %v6354_v22 }
 0x8d9   : > { %v6673_v60 = vsel %vm6641_vm9, %v6438_v1, %v10839_v5  ;;  %v7785_v62 = vpop.f32.mrf.mxu3 }
 0x8da   : > { %v6705_v32 = vmul.f32 1.050701, %v6673_v60  ;;  %v6483_v46 = vmin.f32 %v6443_v52, 0.0  ;;  %v7786_v6 = vadd.f32 %v14938_v50, %v7785_v62  ;;  %v6359_v60 = vadd.f32 %v14892_v15, %v6270_v57  ;;  %v11575_v57 = vld [vmem:[%s16382_s1 + $0x820] sm:$0xff] }
 0x8db   : > { %v6770_v58 = vld [vmem:[#allocation3 + $0x18f] sm:$0xff]  ;;  %v7879_v7 = vpop.f32.mrf.mxu0  ;;  %vm6643_vm11 = vcmp.gt.f32.partialorder %v6443_v52, 0.0 }
 0x8dc   : > { %v7966_v14 = vpop.f32.mrf.mxu1  ;;  %v6833_v45 = vld [vmem:[#allocation3 + $0x189] sm:$0xff]  ;;  %v6834_v2 = vld [vmem:[#allocation3 + $0x191] sm:$0xff]  ;;  %v11814_v13 = vpop.eup %11813  ;;  %6737 = vst [vmem:[#allocation3 + $0x1a8] sm:$0xff] %v6705_v32  ;;  %v6541_v53 = vmul.f32 1.442695, %v6483_v46  ;;  %v7875_v26 = vadd.f32 %v7874_v20, %v7786_v6  ;;  %v15027_v56 = vpack.c.bf16 %v6770_v58, %v6769_v55  ;;  %v16546_v46 = vld [vmem:[#allocation25_spill] sm:$0xff] }
 0x8dd   : > { %v7143_v1 = vpack.c.bf16 %v6834_v2, %v6833_v45  ;;  %v6578_v42 = vmul.f32 1.6732632, %v11814_v13  ;;  %v16547_v6 = vld [vmem:[#allocation18_spill] sm:$0xff] }
 0x8de   : > { %11815 = vpow2.f32 %v6541_v53  ;;  %7827 = vmatmul.bf16.gmra.mxu3 %v15027_v56  ;;  %v15031_v48 = vadd.f32 %v7963_v63, %v7875_v26  ;;  %v11578_v63 = vld [vmem:[%s16382_s1 + $0x838] sm:$0xff]  ;;  %v6183_v55 = vadd.f32 %v16547_v6, %v16546_v46  ;;  %v11584_v6 = vld [vmem:[%s16382_s1 + $0x868] sm:$0xff] }
 0x8df   : > { %8005 = vmatmul.bf16.gmra.mxu1 %v7143_v1  ;;  %v10840_v33 = vadd.f32 -1.6732632, %v6578_v42  ;;  %v6444_v24 = vpop.f32.mrf.mxu2  ;;  %8204 = vmatpush.bf16.msra.mxu0 %v11578_v63 }
 0x8e0   : > { %v15033_v23 = vadd.f32 %v6444_v24, %v6356_v35  ;;  %v6272_v13 = vadd.f32 %v14904_v39, %v6183_v55  ;;  %v11576_v39 = vld [vmem:[%s16382_s1 + $0x828] sm:$0xff]  ;;  %v11574_v55 = vld [vmem:[%s16382_s1 + $0x818] sm:$0xff] }
 0x8e1   : > { %v6674_v4 = vsel %vm6642_vm10, %v6440_v16, %v10840_v33  ;;  %v7788_v31 = vpop.f32.mrf.mxu3 }
 0x8e2   : > { %v6706_v20 = vmul.f32 1.050701, %v6674_v4  ;;  %v6484_v47 = vmin.f32 %v15033_v23, 0.0  ;;  %v7789_v12 = vadd.f32 %v14938_v50, %v7788_v31  ;;  %vm6644_vm12 = vcmp.gt.f32.partialorder %v15033_v23, 0.0 }
 0x8e3   : > { %v15037_v41 = vpop.f32.mrf.mxu0  ;;  %8205 = vmatpush.bf16.msra.mxu0 %v11577_v21  ;;  %v6771_v2 = vld [vmem:[#allocation3 + $0x1a7] sm:$0xff] }
 0x8e4   : > { %v7968_v9 = vpop.f32.mrf.mxu1  ;;  %v11816_v22 = vpop.eup %11815  ;;  %6738 = vst [vmem:[#allocation3 + $0x1b0] sm:$0xff] %v6706_v20  ;;  %v6543_v8 = vmul.f32 1.442695, %v6484_v47  ;;  %v7878_v16 = vadd.f32 %v7877_v37, %v7789_v12  ;;  %8064 = vmatmul.bf16.gmra.mxu2 %v14933_v44  ;;  %v7151_v5 = vpack.c.bf16 %v6706_v20, %v6705_v32  ;;  %v11586_v20 = vld [vmem:[%s16382_s1 + $0x878] sm:$0xff]  ;;  %v6361_v12 = vadd.f32 %v14906_v28, %v6272_v13 }
 0x8e5   : > { %v6579_v10 = vmul.f32 1.6732632, %v11816_v22  ;;  %8293 = vmatpush.bf16.msra.mxu1 %v11586_v20  ;;  %v11582_v20 = vld [vmem:[%s16382_s1 + $0x858] sm:$0xff] }
 0x8e6   : > { %11817 = vpow2.f32 %v6543_v8  ;;  %7921 = vmatmul.bf16.gmra.mxu0 %v7151_v5  ;;  %v15046_v62 = vadd.f32 %v7966_v14, %v7878_v16 }
 0x8e7   : > { %v10841_v40 = vadd.f32 -1.6732632, %v6579_v10  ;;  %v6447_v58 = vpop.f32.mrf.mxu2  ;;  %8206 = vmatpush.bf16.msra.mxu0 %v11576_v39  ;;  %v11565_v39 = vld [vmem:[%s16382_s1 + $0x7d0] sm:$0xff] }
 0x8e8   : > { %v15053_v44 = vadd.f32 %v6447_v58, %v6359_v60 }
 0x8e9   : > { %v6675_v37 = vsel %vm6643_vm11, %v6443_v52, %v10841_v40  ;;  %v7790_v32 = vpop.f32.mrf.mxu3  ;;  %8294 = vmatpush.bf16.msra.mxu1 %v11585_v3  ;;  %v16548_v40 = vld [vmem:[#allocation20_spill] sm:$0xff] }
 0x8ea   : > { %v6707_v15 = vmul.f32 1.050701, %v6675_v37  ;;  %v6485_v45 = vmin.f32 %v15053_v44, 0.0  ;;  %v7791_v14 = vadd.f32 %v14938_v50, %v7790_v32  ;;  %v6275_v58 = vadd.f32 %v14914_v61, %v16548_v40  ;;  %v11566_v61 = vld [vmem:[%s16382_s1 + $0x7d8] sm:$0xff] }
 0x8eb   : > { %v6772_v26 = vld [vmem:[#allocation3 + $0x1af] sm:$0xff]  ;;  %v15058_v35 = vpop.f32.mrf.mxu0  ;;  %8207 = vmatpush.bf16.msra.mxu0 %v11575_v57  ;;  %vm6645_vm13 = vcmp.gt.f32.partialorder %v15053_v44, 0.0 }
 0x8ec   : > { %v7971_v53 = vpop.f32.mrf.mxu1  ;;  %v6835_v1 = vld [vmem:[#allocation3 + $0x1a9] sm:$0xff]  ;;  %v6836_v42 = vld [vmem:[#allocation3 + $0x1b1] sm:$0xff]  ;;  %v11818_v33 = vpop.eup %11817  ;;  %6739 = vst [vmem:[#allocation3 + $0x1c8] sm:$0xff] %v6707_v15  ;;  %v6545_v24 = vmul.f32 1.442695, %v6485_v45  ;;  %v7880_v52 = vadd.f32 %v7879_v7, %v7791_v14  ;;  %v15060_v4 = vpack.c.bf16 %v6772_v26, %v6771_v2  ;;  %v11567_v45 = vld [vmem:[%s16382_s1 + $0x7e0] sm:$0xff]  ;;  %v6364_v2 = vadd.f32 %v14918_v11, %v6275_v58 }
 0x8ed   : > { %v7152_v31 = vpack.c.bf16 %v6836_v42, %v6835_v1  ;;  %v6580_v47 = vmul.f32 1.6732632, %v11818_v33  ;;  %8118 = vmatpush.bf16.msra.mxu3 %v11567_v45  ;;  %8295 = vmatpush.bf16.msra.mxu1 %v11584_v6  ;;  %v11583_v1 = vld [vmem:[%s16382_s1 + $0x860] sm:$0xff]  ;;  %v11573_v11 = vld [vmem:[%s16382_s1 + $0x810] sm:$0xff]  ;;  %v11564_v58 = vld [vmem:[%s16382_s1 + $0x7c8] sm:$0xff] }
 0x8ee   : > { %11819 = vpow2.f32 %v6545_v24  ;;  %7832 = vmatmul.bf16.gmra.mxu3 %v15060_v4  ;;  %v15070_v63 = vadd.f32 %v7968_v9, %v7880_v52 }
 0x8ef   : > { %8010 = vmatmul.bf16.gmra.mxu1 %v7152_v31  ;;  %v10842_v7 = vadd.f32 -1.6732632, %v6580_v47  ;;  %v6449_v22 = vpop.f32.mrf.mxu2  ;;  %8208 = vmatpush.bf16.msra.mxu0 %v11574_v55 }
 0x8f0   : > { %v15079_v28 = vadd.f32 %v6449_v22, %v6361_v12 }
 0x8f1   : > { %v6676_v8 = vsel %vm6644_vm12, %v15033_v23, %v10842_v7  ;;  %v7793_v9 = vpop.f32.mrf.mxu3  ;;  %8119 = vmatpush.bf16.msra.mxu3 %v11566_v61  ;;  %8296 = vmatpush.bf16.msra.mxu1 %v11583_v1 }
 0x8f2   : > { %v6708_v16 = vmul.f32 1.050701, %v6676_v8  ;;  %v6486_v5 = vmin.f32 %v15079_v28, 0.0  ;;  %v7794_v10 = vadd.f32 %v14938_v50, %v7793_v9  ;;  %vm6646_vm14 = vcmp.gt.f32.partialorder %v15079_v28, 0.0 }
 0x8f3   : > { %v15084_v46 = vpop.f32.mrf.mxu0  ;;  %v6773_v31 = vld [vmem:[#allocation3 + $0x1c7] sm:$0xff]  ;;  %8209 = vmatpush.bf16.msra.mxu0 %v11573_v11 }
 0x8f4   : > { %v7973_v60 = vpop.f32.mrf.mxu1  ;;  %v11820_v23 = vpop.eup %11819  ;;  %6740 = vst [vmem:[#allocation3 + $0x1d0] sm:$0xff] %v6708_v16  ;;  %v6547_v21 = vmul.f32 1.442695, %v6486_v5  ;;  %v7883_v37 = vadd.f32 %v15037_v41, %v7794_v10  ;;  %8069 = vmatmul.bf16.gmra.mxu2 %v14957_v36  ;;  %v7160_v32 = vpack.c.bf16 %v6708_v16, %v6707_v15  ;;  %v16549_v41 = vld [vmem:[#allocation8_spill] sm:$0xff] }
 0x8f5   : > { %v6581_v14 = vmul.f32 1.6732632, %v11820_v23  ;;  %v6188_v36 = vadd.f32 %v14923_v43, %v16549_v41  ;;  %8297 = vmatpush.bf16.msra.mxu1 %v11582_v20  ;;  %8120 = vmatpush.bf16.msra.mxu3 %v11565_v39  ;;  %v11580_v41 = vld [vmem:[%s16382_s1 + $0x848] sm:$0xff] }
 0x8f6   : > { %11821 = vpow2.f32 %v6547_v21  ;;  %7926 = vmatmul.bf16.gmra.mxu0 %v7160_v32  ;;  %v15103_v13 = vadd.f32 %v7971_v53, %v7883_v37 }
 0x8f7   : > { %v10843_v15 = vadd.f32 -1.6732632, %v6581_v14  ;;  %v6452_v26 = vpop.f32.mrf.mxu2  ;;  %v6277_v47 = vadd.f32 %v14926_v51, %v6188_v36  ;;  %v11572_v51 = vld [vmem:[%s16382_s1 + $0x808] sm:$0xff]  ;;  %v11563_v36 = vld [vmem:[%s16382_s1 + $0x7c0] sm:$0xff] }
 0x8f8   : > { %v15114_v42 = vadd.f32 %v6452_v26, %v6364_v2  ;;  %8210 = vmatpush.bf16.msra.mxu0 %v11572_v51 }
 0x8f9   : > { %v6677_v53 = vsel %vm6645_vm13, %v15053_v44, %v10843_v15  ;;  %v7795_v33 = vpop.f32.mrf.mxu3  ;;  %v6366_v6 = vadd.f32 %v14930_v0, %v6277_v47  ;;  %8121 = vmatpush.bf16.msra.mxu3 %v11564_v58 }
 0x8fa   : > { %v6709_v43 = vmul.f32 1.050701, %v6677_v53  ;;  %v6487_v24 = vmin.f32 %v15114_v42, 0.0  ;;  %v7796_v52 = vadd.f32 %v14938_v50, %v7795_v33  ;;  %vm6647_vm15 = vcmp.gt.f32.partialorder %v15114_v42, 0.0 }
 0x8fb   : > { %v6774_v44 = vld [vmem:[#allocation3 + $0x1cf] sm:$0xff]  ;;  %v15126_v3 = vpop.f32.mrf.mxu0 }
 0x8fc   : > { %v7976_v12 = vpop.f32.mrf.mxu1  ;;  %v6837_v7 = vld [vmem:[#allocation3 + $0x1c9] sm:$0xff]  ;;  %v6838_v22 = vld [vmem:[#allocation3 + $0x1d1] sm:$0xff]  ;;  %v11822_v57 = vpop.eup %11821  ;;  %6741 = vst [vmem:[#allocation3 + $0x1e8] sm:$0xff] %v6709_v43  ;;  %v6549_v8 = vmul.f32 1.442695, %v6487_v24  ;;  %v7885_v9 = vadd.f32 %v15058_v35, %v7796_v52  ;;  %v15129_v16 = vpack.c.bf16 %v6774_v44, %v6773_v31  ;;  %v11579_v52 = vld [vmem:[%s16382_s1 + $0x840] sm:$0xff] }
 0x8fd   : > { %v7161_v5 = vpack.c.bf16 %v6838_v22, %v6837_v7  ;;  %v6582_v10 = vmul.f32 1.6732632, %v11822_v57  ;;  %v11581_v35 = vld [vmem:[%s16382_s1 + $0x850] sm:$0xff]  ;;  %8122 = vmatpush.bf16.msra.mxu3 %v11563_v36 }
 0x8fe   : > { %11823 = vpow2.f32 %v6549_v8  ;;  %7837 = vmatmul.bf16.gmra.mxu3 %v15129_v16  ;;  %v15136_v55 = vadd.f32 %v7973_v60, %v7885_v9  ;;  %v11571_v60 = vld [vmem:[%s16382_s1 + $0x800] sm:$0xff]  ;;  %8298 = vmatpush.bf16.msra.mxu1 %v11581_v35  ;;  %v6906_v35 = vld [vmem:[#allocation3 + $0x31] sm:$0xff] }
 0x8ff   : > { %8015 = vmatmul.bf16.gmra.mxu1 %v7161_v5  ;;  %v10844_v23 = vadd.f32 -1.6732632, %v6582_v10  ;;  %v6454_v40 = vpop.f32.mrf.mxu2  ;;  %8211 = vmatpush.bf16.msra.mxu0 %v11571_v60  ;;  %v6938_v36 = vld [vmem:[#allocation3 + $0x4f] sm:$0xff] }
 0x900   : > { %v6455_v0 = vadd.f32 %v6454_v40, %v6366_v6  ;;  %v6905_v40 = vld [vmem:[#allocation3 + $0x29] sm:$0xff] }
 0x901   : > { %v6678_v21 = vsel %vm6646_vm14, %v15079_v28, %v10844_v23  ;;  %v7798_v37 = vpop.f32.mrf.mxu3 }
 0x902   : > { %v6710_v32 = vmul.f32 1.050701, %v6678_v21  ;;  %v6488_v45 = vmin.f32 %v6455_v0, 0.0  ;;  %v7799_v14 = vadd.f32 %v14938_v50, %v7798_v37  ;;  %8299 = vmatpush.bf16.msra.mxu1 %v11580_v41  ;;  %vm6648_vm0 = vcmp.gt.f32.partialorder %v6455_v0, 0.0  ;;  %v6874_v41 = vld [vmem:[#allocation3 + $0x30] sm:$0xff] }
 0x903   : > { %v7892_v61 = vpop.f32.mrf.mxu0  ;;  %v6775_v39 = vld [vmem:[#allocation3 + $0x1e7] sm:$0xff] }
 0x904   : > { %v7978_v2 = vpop.f32.mrf.mxu1  ;;  %v11824_v15 = vpop.eup %11823  ;;  %6742 = vst [vmem:[#allocation3 + $0x1f0] sm:$0xff] %v6710_v32  ;;  %v6551_v28 = vmul.f32 1.442695, %v6488_v45  ;;  %v7888_v26 = vadd.f32 %v15084_v46, %v7799_v14  ;;  %8074 = vmatmul.bf16.gmra.mxu2 %v14972_v25  ;;  %v7169_v1 = vpack.c.bf16 %v6710_v32, %v6709_v43  ;;  %v7038_v32 = vpack.c.bf16 %v6906_v35, %v6905_v40 }
 0x905   : > { %v6583_v11 = vmul.f32 1.6732632, %v11824_v15 }
 0x906   : > { %11825 = vpow2.f32 %v6551_v28  ;;  %7931 = vmatmul.bf16.gmra.mxu0 %v7169_v1  ;;  %v15158_v53 = vadd.f32 %v7976_v12, %v7888_v26  ;;  %8300 = vmatpush.bf16.msra.mxu1 %v11579_v52  ;;  %v6873_v26 = vld [vmem:[#allocation3 + $0x28] sm:$0xff] }
 0x907   : > { %v10845_v33 = vadd.f32 -1.6732632, %v6583_v11  ;;  %v8035_v24 = vpop.f32.mrf.mxu2  ;;  %v6937_v1 = vld [vmem:[#allocation3 + $0x47] sm:$0xff] }
 0x908   : > { %v15165_v46 = vadd.f32 %v8035_v24, %v14943_v19 }
 0x909   : > { %v6679_v25 = vsel %vm6647_vm15, %v15114_v42, %v10845_v33  ;;  %v7800_v43 = vpop.f32.mrf.mxu3  ;;  %v7037_v33 = vpack.c.bf16 %v6874_v41, %v6873_v26 }
 0x90a   : > { %v6711_v31 = vmul.f32 1.050701, %v6679_v25  ;;  %v7801_v20 = vadd.f32 %v14938_v50, %v7800_v43  ;;  %v6907_v43 = vld [vmem:[#allocation3 + $0x49] sm:$0xff] }
 0x90b   : > { %v6776_v12 = vld [vmem:[#allocation3 + $0x1ef] sm:$0xff]  ;;  %v7894_v22 = vpop.f32.mrf.mxu0 }
 0x90c   : > { %v7981_v47 = vpop.f32.mrf.mxu1  ;;  %v6839_v44 = vld [vmem:[#allocation3 + $0x1e9] sm:$0xff]  ;;  %v6840_v7 = vld [vmem:[#allocation3 + $0x1f1] sm:$0xff]  ;;  %v11826_v57 = vpop.eup %11825  ;;  %6743 = vst [vmem:[#allocation3 + $0x208] sm:$0xff] %v6711_v31  ;;  %v7890_v8 = vadd.f32 %v15126_v3, %v7801_v20  ;;  %v15170_v9 = vpack.c.bf16 %v6776_v12, %v6775_v39 }
 0x90d   : > { %v7170_v19 = vpack.c.bf16 %v6840_v7, %v6839_v44  ;;  %v6584_v5 = vmul.f32 1.6732632, %v11826_v57  ;;  %v6908_v31 = vld [vmem:[#allocation3 + $0x51] sm:$0xff] }
 0x90e   : > { %7842 = vmatmul.bf16.gmra.mxu3 %v15170_v9  ;;  %v15173_v42 = vadd.f32 %v7978_v2, %v7890_v8  ;;  %v7047_v44 = vpack.c.bf16 %v6908_v31, %v6907_v43  ;;  %v6876_v8 = vld [vmem:[#allocation3 + $0x50] sm:$0xff] }
 0x90f   : > { %8020 = vmatmul.bf16.gmra.mxu1 %v7170_v19  ;;  %v10846_v51 = vadd.f32 -1.6732632, %v6584_v5  ;;  %v15175_v10 = vpop.f32.mrf.mxu2  ;;  %v6940_v19 = vld [vmem:[#allocation3 + $0x6f] sm:$0xff] }
 0x911   : > { %v6680_v6 = vsel %vm6648_vm0, %v6455_v0, %v10846_v51  ;;  %v7803_v23 = vpop.f32.mrf.mxu3 }
 0x912   : > { %v6712_v58 = vmul.f32 1.050701, %v6680_v6  ;;  %v7804_v3 = vadd.f32 %v14938_v50, %v7803_v23  ;;  %v6875_v6 = vld [vmem:[#allocation3 + $0x48] sm:$0xff] }
 0x913   : > { %v7897_v21 = vpop.f32.mrf.mxu0  ;;  %v6939_v23 = vld [vmem:[#allocation3 + $0x67] sm:$0xff] }
 0x914   : > { %v7983_v60 = vpop.f32.mrf.mxu1  ;;  %6744 = vst [vmem:[#allocation3 + $0x210] sm:$0xff] %v6712_v58  ;;  %v7893_v37 = vadd.f32 %v7892_v61, %v7804_v3  ;;  %8079 = vmatmul.bf16.gmra.mxu2 %v14990_v59  ;;  %v7039_v59 = vpack.c.bf16 %v6938_v36, %v6937_v1  ;;  %v15198_v58 = vpack.c.bf16 %v6876_v8, %v6875_v6  ;;  %v11594_v6 = vld [vmem:[%s16382_s1 + $0x8b8] sm:$0xff] }
 0x915   : > { %8382 = vmatpush.bf16.msrb.mxu2 %v11594_v6  ;;  %v6945_v6 = vld [vmem:[#allocation3 + $0xc7] sm:$0xff] }
 0x916   : > { %8212 = vmatmul.bf16.vlgmr.msra.gmra.mxu0 %v7038_v32  ;;  %v15179_v45 = vadd.f32 %v7981_v47, %v7893_v37  ;;  %v6909_v37 = vld [vmem:[#allocation3 + $0x69] sm:$0xff]  ;;  %v15209_v32 = vld [vmem:[%s16383_s2 + $0x3] ss:$0 sm:$0xff] }
 0x917   : > { %v8040_v14 = vpop.f32.mrf.mxu2 }
 0x918   : > { %v15182_v2 = vadd.f32 %v8040_v14, %v14984_v54 }
 0x919   : > { %v7805_v0 = vpop.f32.mrf.mxu3 }
 0x91a   : > { %v7806_v15 = vadd.f32 %v14938_v50, %v7805_v0 }
 0x91b   : > { %v7899_v11 = vpop.f32.mrf.mxu0 }
 0x91c   : > { %v7986_v28 = vpop.f32.mrf.mxu1  ;;  %v7895_v61 = vadd.f32 %v7894_v22, %v7806_v15 }
 0x91e   : > { %8123 = vmatmul.bf16.vlgmr.msra.gmra.mxu3 %v7037_v33  ;;  %v15185_v24 = vadd.f32 %v7983_v60, %v7895_v61  ;;  %v6942_v61 = vld [vmem:[#allocation3 + $0x8f] sm:$0xff] }
 0x91f   : > { %8301 = vmatmul.bf16.vlgmr.msra.gmra.mxu1 %v7039_v59  ;;  %v8042_v52 = vpop.f32.mrf.mxu2 }
 0x920   : > { %v15188_v54 = vadd.f32 %v8042_v52, %v14994_v30  ;;  %v6877_v52 = vld [vmem:[#allocation3 + $0x68] sm:$0xff] }
 0x921   : > { %v7808_v25 = vpop.f32.mrf.mxu3 }
 0x922   : > { %v7809_v20 = vadd.f32 %v14938_v50, %v7808_v25  ;;  %v6941_v25 = vld [vmem:[#allocation3 + $0x87] sm:$0xff] }
 0x923   : > { %v7902_v47 = vpop.f32.mrf.mxu0 }
 0x924   : > { %v7988_v39 = vpop.f32.mrf.mxu1  ;;  %v7898_v12 = vadd.f32 %v7897_v21, %v7809_v20  ;;  %8084 = vmatmul.bf16.gmra.mxu2 %v15007_v34  ;;  %v7048_v34 = vpack.c.bf16 %v6940_v19, %v6939_v23 }
 0x926   : > { %8217 = vmatmul.bf16.gmra.mxu0 %v7047_v44  ;;  %v15192_v7 = vadd.f32 %v7986_v28, %v7898_v12  ;;  %v6911_v44 = vld [vmem:[#allocation3 + $0x89] sm:$0xff] }
 0x927   : > { %v8045_v22 = vpop.f32.mrf.mxu2 }
 0x928   : > { %v15195_v57 = vadd.f32 %v8045_v22, %v15001_v49  ;;  %v6912_v22 = vld [vmem:[#allocation3 + $0x91] sm:$0xff] }
 0x929   : > { %v7810_v30 = vpop.f32.mrf.mxu3 }
 0x92a   : > { %v7811_v5 = vadd.f32 %v14938_v50, %v7810_v30  ;;  %v6910_v50 = vld [vmem:[#allocation3 + $0x71] sm:$0xff] }
 0x92b   : > { %v7904_v40 = vpop.f32.mrf.mxu0  ;;  %v7056_v15 = vpack.c.bf16 %v6910_v50, %v6909_v37  ;;  %v6943_v50 = vld [vmem:[#allocation3 + $0xa7] sm:$0xff] }
 0x92c   : > { %v7991_v51 = vpop.f32.mrf.mxu1  ;;  %v7900_v35 = vadd.f32 %v7899_v11, %v7811_v5  ;;  %v6878_v11 = vld [vmem:[#allocation3 + $0x70] sm:$0xff] }
 0x92d   : > { %v15219_v20 = vpack.c.bf16 %v6878_v11, %v6877_v52 }
 0x92e   : > { %8128 = vmatmul.bf16.gmra.mxu3 %v15198_v58  ;;  %v15201_v3 = vadd.f32 %v7988_v39, %v7900_v35 }
 0x92f   : > { %8306 = vmatmul.bf16.gmra.mxu1 %v7048_v34  ;;  %v8047_v49 = vpop.f32.mrf.mxu2  ;;  %v6880_v34 = vld [vmem:[#allocation3 + $0x90] sm:$0xff] }
 0x930   : > { %v15204_v60 = vadd.f32 %v8047_v49, %v15011_v29  ;;  %v6944_v49 = vld [vmem:[#allocation3 + $0xaf] sm:$0xff] }
 0x931   : > { %v7813_v21 = vpop.f32.mrf.mxu3 }
 0x932   : > { %v7814_v14 = vadd.f32 %v15209_v32, %v7813_v21 }
 0x933   : > { %v7907_v41 = vpop.f32.mrf.mxu0 }
 0x934   : > { %v7993_v0 = vpop.f32.mrf.mxu1  ;;  %v7903_v36 = vadd.f32 %v7902_v47, %v7814_v14  ;;  %8089 = vmatmul.bf16.gmra.mxu2 %v15027_v56  ;;  %v7057_v56 = vpack.c.bf16 %v6942_v61, %v6941_v25 }
 0x936   : > { %8222 = vmatmul.bf16.gmra.mxu0 %v7056_v15  ;;  %v15213_v28 = vadd.f32 %v7991_v51, %v7903_v36  ;;  %v7065_v51 = vpack.c.bf16 %v6912_v22, %v6911_v44  ;;  %v7066_v36 = vpack.c.bf16 %v6944_v49, %v6943_v50  ;;  %v11593_v15 = vld [vmem:[%s16382_s1 + $0x8b0] sm:$0xff]  ;;  %v11590_v44 = vld [vmem:[%s16382_s1 + $0x898] sm:$0xff] }
 0x937   : > { %v8050_v29 = vpop.f32.mrf.mxu2  ;;  %8383 = vmatpush.bf16.msrb.mxu2 %v11593_v15 }
 0x938   : > { %v15216_v26 = vadd.f32 %v8050_v29, %v15021_v38 }
 0x939   : > { %v7815_v1 = vpop.f32.mrf.mxu3 }
 0x93a   : > { %v7816_v33 = vadd.f32 %v15209_v32, %v7815_v1  ;;  %v11592_v1 = vld [vmem:[%s16382_s1 + $0x8a8] sm:$0xff] }
 0x93b   : > { %v7909_v43 = vpop.f32.mrf.mxu0  ;;  %8384 = vmatpush.bf16.msrb.mxu2 %v11592_v1 }
 0x93c   : > { %v7996_v59 = vpop.f32.mrf.mxu1  ;;  %v7905_v31 = vadd.f32 %v7904_v40, %v7816_v33  ;;  %v6913_v33 = vld [vmem:[#allocation3 + $0xa9] sm:$0xff] }
 0x93e   : > { %8133 = vmatmul.bf16.gmra.mxu3 %v15219_v20  ;;  %v15222_v39 = vadd.f32 %v7993_v0, %v7905_v31 }
 0x93f   : > { %8311 = vmatmul.bf16.gmra.mxu1 %v7057_v56  ;;  %v8052_v38 = vpop.f32.mrf.mxu2 }
 0x940   : > { %v15225_v47 = vadd.f32 %v8052_v38, %v15031_v48  ;;  %v11591_v38 = vld [vmem:[%s16382_s1 + $0x8a0] sm:$0xff] }
 0x941   : > { %v7818_v12 = vpop.f32.mrf.mxu3  ;;  %8385 = vmatpush.bf16.msrb.mxu2 %v11591_v38 }
 0x942   : > { %v7819_v30 = vadd.f32 %v15209_v32, %v7818_v12 }
 0x943   : > { %v7912_v19 = vpop.f32.mrf.mxu0 }
 0x944   : > { %v7998_v8 = vpop.f32.mrf.mxu1  ;;  %v7908_v5 = vadd.f32 %v7907_v41, %v7819_v30  ;;  %8094 = vmatmul.bf16.gmra.mxu2 %v15060_v4  ;;  %v6879_v4 = vld [vmem:[#allocation3 + $0x88] sm:$0xff] }
 0x945   : > { %v15238_v41 = vpack.c.bf16 %v6880_v34, %v6879_v4  ;;  %8386 = vmatpush.bf16.msrb.mxu2 %v11590_v44  ;;  %v11588_v4 = vld [vmem:[%s16382_s1 + $0x888] sm:$0xff] }
 0x946   : > { %8227 = vmatmul.bf16.gmra.mxu0 %v7065_v51  ;;  %v15232_v23 = vadd.f32 %v7996_v59, %v7908_v5  ;;  %v6914_v59 = vld [vmem:[#allocation3 + $0xb1] sm:$0xff]  ;;  %v6881_v51 = vld [vmem:[#allocation3 + $0xa8] sm:$0xff] }
 0x947   : > { %v8055_v48 = vpop.f32.mrf.mxu2  ;;  %v7074_v56 = vpack.c.bf16 %v6914_v59, %v6913_v33  ;;  %v11587_v59 = vld [vmem:[%s16382_s1 + $0x880] sm:$0xff] }
 0x948   : > { %v15235_v40 = vadd.f32 %v8055_v48, %v15046_v62  ;;  %v6947_v44 = vld [vmem:[#allocation3 + $0xe7] sm:$0xff] }
 0x949   : > { %v7820_v35 = vpop.f32.mrf.mxu3 }
 0x94a   : > { %v7821_v21 = vadd.f32 %v15209_v32, %v7820_v35 }
 0x94b   : > { %v7914_v14 = vpop.f32.mrf.mxu0 }
 0x94c   : > { %v8001_v37 = vpop.f32.mrf.mxu1  ;;  %v7910_v0 = vadd.f32 %v7909_v43, %v7821_v21  ;;  %v11589_v21 = vld [vmem:[%s16382_s1 + $0x890] sm:$0xff] }
 0x94d   : > { %8387 = vmatpush.bf16.msrb.mxu2 %v11589_v21  ;;  %v6917_v21 = vld [vmem:[#allocation3 + $0xe9] sm:$0xff] }
 0x94e   : > { %8138 = vmatmul.bf16.gmra.mxu3 %v15238_v41  ;;  %v15244_v62 = vadd.f32 %v7998_v8, %v7910_v0  ;;  %v6882_v8 = vld [vmem:[#allocation3 + $0xb0] sm:$0xff] }
 0x94f   : > { %8316 = vmatmul.bf16.gmra.mxu1 %v7066_v36  ;;  %v8057_v29 = vpop.f32.mrf.mxu2  ;;  %v15266_v34 = vpack.c.bf16 %v6882_v8, %v6881_v51  ;;  %v6915_v0 = vld [vmem:[#allocation3 + $0xc9] sm:$0xff]  ;;  %v6916_v36 = vld [vmem:[#allocation3 + $0xd1] sm:$0xff] }
 0x950   : > { %v15250_v11 = vadd.f32 %v8057_v29, %v15070_v63  ;;  %v15282_v33 = vpack.c.bf16 %v6916_v36, %v6915_v0  ;;  %v6872_v51 = vld [vmem:[#allocation3 + $0x20f] sm:$0xff] }
 0x951   : > { %v7823_v61 = vpop.f32.mrf.mxu3  ;;  %8388 = vmatpush.bf16.msrb.mxu2 %v11588_v4 }
 0x952   : > { %v7824_v52 = vadd.f32 %v15209_v32, %v7823_v61 }
 0x953   : > { %v7917_v43 = vpop.f32.mrf.mxu0 }
 0x954   : > { %v8003_v25 = vpop.f32.mrf.mxu1  ;;  %v7913_v31 = vadd.f32 %v7912_v19, %v7824_v52  ;;  %8099 = vmatmul.bf16.gmra.mxu2 %v15129_v16  ;;  %v6946_v16 = vld [vmem:[#allocation3 + $0xcf] sm:$0xff] }
 0x955   : > { %v7075_v49 = vpack.c.bf16 %v6946_v16, %v6945_v6  ;;  %8389 = vmatpush.bf16.msrb.mxu2 %v11587_v59 }
 0x956   : > { %8232 = vmatmul.bf16.gmra.mxu0 %v7074_v56  ;;  %v15257_v12 = vadd.f32 %v8001_v37, %v7913_v31  ;;  %v6884_v56 = vld [vmem:[#allocation3 + $0xd0] sm:$0xff] }
 0x957   : > { %v8060_v63 = vpop.f32.mrf.mxu2 }
 0x958   : > { %v15263_v22 = vadd.f32 %v8060_v63, %v15103_v13  ;;  %v6883_v63 = vld [vmem:[#allocation3 + $0xc8] sm:$0xff] }
 0x959   : > { %v7825_v30 = vpop.f32.mrf.mxu3  ;;  %v15294_v16 = vpack.c.bf16 %v6884_v56, %v6883_v63 }
 0x95a   : > { %v7826_v19 = vadd.f32 %v15209_v32, %v7825_v30 }
 0x95b   : > { %v7919_v48 = vpop.f32.mrf.mxu0 }
 0x95c   : > { %v8006_v5 = vpop.f32.mrf.mxu1  ;;  %v7915_v35 = vadd.f32 %v7914_v14, %v7826_v19 }
 0x95e   : > { %8143 = vmatmul.bf16.gmra.mxu3 %v15266_v34  ;;  %v15272_v13 = vadd.f32 %v8003_v25, %v7915_v35 }
 0x95f   : > { %8321 = vmatmul.bf16.gmra.mxu1 %v7075_v49  ;;  %v8062_v37 = vpop.f32.mrf.mxu2  ;;  %v6871_v49 = vld [vmem:[#allocation3 + $0x207] sm:$0xff] }
 0x960   : > { %v15278_v50 = vadd.f32 %v8062_v37, %v15136_v55  ;;  %v6918_v37 = vld [vmem:[#allocation3 + $0xf1] sm:$0xff] }
 0x961   : > { %v7828_v14 = vpop.f32.mrf.mxu3 }
 0x962   : > { %v7829_v15 = vadd.f32 %v15209_v32, %v7828_v14 }
 0x963   : > { %v7922_v1 = vpop.f32.mrf.mxu0 }
 0x964   : > { %v8008_v29 = vpop.f32.mrf.mxu1  ;;  %v7918_v61 = vadd.f32 %v7917_v43, %v7829_v15  ;;  %8104 = vmatmul.bf16.gmra.mxu2 %v15170_v9  ;;  %v6948_v43 = vld [vmem:[#allocation3 + $0xef] sm:$0xff]  ;;  %v15306_v15 = vpack.c.bf16 %v6918_v37, %v6917_v21 }
 0x965   : > { %v7084_v19 = vpack.c.bf16 %v6948_v43, %v6947_v44  ;;  %v6920_v21 = vld [vmem:[#allocation3 + $0x111] sm:$0xff] }
 0x966   : > { %8237 = vmatmul.bf16.gmra.mxu0 %v15282_v33  ;;  %v15288_v55 = vadd.f32 %v8006_v5, %v7918_v61 }
 0x967   : > { %v8065_v52 = vpop.f32.mrf.mxu2 }
 0x968   : > { %v15291_v25 = vadd.f32 %v8065_v52, %v15158_v53  ;;  %v6886_v52 = vld [vmem:[#allocation3 + $0xf0] sm:$0xff] }
 0x969   : > { %v7830_v31 = vpop.f32.mrf.mxu3 }
 0x96a   : > { %v7831_v9 = vadd.f32 %v15209_v32, %v7830_v31  ;;  %v6950_v31 = vld [vmem:[#allocation3 + $0x10f] sm:$0xff] }
 0x96b   : > { %v7924_v30 = vpop.f32.mrf.mxu0 }
 0x96c   : > { %v8011_v38 = vpop.f32.mrf.mxu1  ;;  %v7920_v8 = vadd.f32 %v7919_v48, %v7831_v9  ;;  %v15303_v48 = vpack.c.bf16 %v6872_v51, %v6871_v49  ;;  %v6885_v9 = vld [vmem:[#allocation3 + $0xe8] sm:$0xff]  ;;  %v11602_v51 = vld [vmem:[%s16382_s1 + $0x8f8] sm:$0xff] }
 0x96d   : > { %v6919_v49 = vld [vmem:[#allocation3 + $0x109] sm:$0xff]  ;;  %8471 = vmatpush.bf16.msrb.mxu3 %v11602_v51 }
 0x96e   : > { %8148 = vmatmul.bf16.gmra.mxu3 %v15294_v16  ;;  %v15297_v5 = vadd.f32 %v8008_v29, %v7920_v8  ;;  %v15315_v8 = vpack.c.bf16 %v6886_v52, %v6885_v9 }
 0x96f   : > { %8326 = vmatmul.bf16.gmra.mxu1 %v7084_v19  ;;  %v8067_v53 = vpop.f32.mrf.mxu2 }
 0x970   : > { %v15300_v6 = vadd.f32 %v8067_v53, %v15173_v42 }
 0x971   : > { %v7833_v35 = vpop.f32.mrf.mxu3 }
 0x972   : > { %v7834_v4 = vadd.f32 %v15209_v32, %v7833_v35 }
 0x973   : > { %v7927_v0 = vpop.f32.mrf.mxu0 }
 0x974   : > { %v8013_v14 = vpop.f32.mrf.mxu1  ;;  %v7923_v36 = vadd.f32 %v7922_v1, %v7834_v4  ;;  %8109 = vmatmul.bf16.gmra.mxu2 %v15303_v48  ;;  %v6949_v1 = vld [vmem:[#allocation3 + $0x107] sm:$0xff] }
 0x975   : > { %v7093_v19 = vpack.c.bf16 %v6950_v31, %v6949_v1  ;;  %v6888_v31 = vld [vmem:[#allocation3 + $0x110] sm:$0xff] }
 0x976   : > { %8242 = vmatmul.bf16.gmra.mxu0 %v15306_v15  ;;  %v15309_v29 = vadd.f32 %v8011_v38, %v7923_v36 }
 0x977   : > { %v8070_v42 = vpop.f32.mrf.mxu2 }
 0x978   : > { %v15312_v61 = vadd.f32 %v8070_v42, %v15179_v45 }
 0x979   : > { %v7835_v59 = vpop.f32.mrf.mxu3 }
 0x97a   : > { %v7836_v56 = vadd.f32 %v15209_v32, %v7835_v59 }
 0x97b   : > { %v7929_v63 = vpop.f32.mrf.mxu0 }
 0x97c   : > { %v8016_v43 = vpop.f32.mrf.mxu1  ;;  %v7925_v44 = vadd.f32 %v7924_v30, %v7836_v56  ;;  %v6952_v56 = vld [vmem:[#allocation3 + $0x12f] sm:$0xff] }
 0x97e   : > { %8153 = vmatmul.bf16.gmra.mxu3 %v15315_v8  ;;  %v15318_v38 = vadd.f32 %v8013_v14, %v7925_v44  ;;  %v15328_v14 = vpack.c.bf16 %v6920_v21, %v6919_v49  ;;  %v6887_v44 = vld [vmem:[#allocation3 + $0x108] sm:$0xff] }
 0x97f   : > { %8331 = vmatmul.bf16.gmra.mxu1 %v7093_v19  ;;  %v8072_v45 = vpop.f32.mrf.mxu2  ;;  %v6921_v21 = vld [vmem:[#allocation3 + $0x129] sm:$0xff] }
 0x980   : > { %v15321_v53 = vadd.f32 %v8072_v45, %v15185_v24  ;;  %v15337_v45 = vpack.c.bf16 %v6888_v31, %v6887_v44  ;;  %v6890_v44 = vld [vmem:[#allocation3 + $0x130] sm:$0xff] }
 0x981   : > { %v7838_v35 = vpop.f32.mrf.mxu3 }
 0x982   : > { %v7839_v30 = vadd.f32 %v15209_v32, %v7838_v35 }
 0x983   : > { %v7932_v4 = vpop.f32.mrf.mxu0 }
 0x984   : > { %v8018_v37 = vpop.f32.mrf.mxu1  ;;  %v7928_v36 = vadd.f32 %v7927_v0, %v7839_v30  ;;  %8390 = vmatmul.bf16.vlgmr.msrb.gmra.mxu2 %v15198_v58  ;;  %v6951_v0 = vld [vmem:[#allocation3 + $0x127] sm:$0xff]  ;;  %v6922_v30 = vld [vmem:[#allocation3 + $0x131] sm:$0xff] }
 0x985   : > { %v7102_v51 = vpack.c.bf16 %v6952_v56, %v6951_v0  ;;  %v6954_v0 = vld [vmem:[#allocation3 + $0x14f] sm:$0xff] }
 0x986   : > { %8247 = vmatmul.bf16.gmra.mxu0 %v15328_v14  ;;  %v15331_v24 = vadd.f32 %v8016_v43, %v7928_v36 }
 0x987   : > { %v8075_v42 = vpop.f32.mrf.mxu2 }
 0x988   : > { %v15334_v59 = vadd.f32 %v8075_v42, %v15192_v7 }
 0x989   : > { %v7840_v52 = vpop.f32.mrf.mxu3 }
 0x98a   : > { %v7841_v9 = vadd.f32 %v15209_v32, %v7840_v52 }
 0x98b   : > { %v7934_v19 = vpop.f32.mrf.mxu0 }
 0x98c   : > { %v8021_v1 = vpop.f32.mrf.mxu1  ;;  %v7930_v58 = vadd.f32 %v7929_v63, %v7841_v9  ;;  %v15347_v63 = vpack.c.bf16 %v6922_v30, %v6921_v21 }
 0x98e   : > { %8158 = vmatmul.bf16.gmra.mxu3 %v15337_v45  ;;  %v15340_v43 = vadd.f32 %v8018_v37, %v7930_v58 }
 0x98f   : > { %8336 = vmatmul.bf16.gmra.mxu1 %v7102_v51  ;;  %v8077_v7 = vpop.f32.mrf.mxu2 }
 0x990   : > { %v15343_v35 = vadd.f32 %v8077_v7, %v15201_v3  ;;  %v6953_v7 = vld [vmem:[#allocation3 + $0x147] sm:$0xff] }
 0x991   : > { %v7843_v49 = vpop.f32.mrf.mxu3  ;;  %v7111_v21 = vpack.c.bf16 %v6954_v0, %v6953_v7 }
 0x992   : > { %v7844_v36 = vadd.f32 %v15209_v32, %v7843_v49 }
 0x993   : > { %v8213_v31 = vpop.f32.mrf.mxu0 }
 0x994   : > { %v8023_v42 = vpop.f32.mrf.mxu1  ;;  %v7933_v52 = vadd.f32 %v7932_v4, %v7844_v36  ;;  %8395 = vmatmul.bf16.gmra.mxu2 %v15219_v20  ;;  %v6889_v4 = vld [vmem:[#allocation3 + $0x128] sm:$0xff] }
 0x995   : > { %v15356_v49 = vpack.c.bf16 %v6890_v44, %v6889_v4  ;;  %v6924_v44 = vld [vmem:[#allocation3 + $0x151] sm:$0xff] }
 0x996   : > { %8252 = vmatmul.bf16.gmra.mxu0 %v15347_v63  ;;  %v15350_v37 = vadd.f32 %v8021_v1, %v7933_v52  ;;  %v7771_v1 = vadd.f32 %v15209_v32, %v14969_v17 }
 0x997   : > { %v8080_v56 = vpop.f32.mrf.mxu2 }
 0x998   : > { %v15353_v3 = vadd.f32 %v8080_v56, %v15213_v28  ;;  %v7860_v0 = vadd.f32 %v14954_v18, %v7771_v1  ;;  %v6892_v1 = vld [vmem:[#allocation3 + $0x150] sm:$0xff] }
 0x999   : > { %v7845_v9 = vpop.f32.mrf.mxu3 }
 0x99a   : > { %v7846_v58 = vadd.f32 %v15209_v32, %v7845_v9  ;;  %v6923_v9 = vld [vmem:[#allocation3 + $0x149] sm:$0xff] }
 0x99b   : > { %v8215_v36 = vpop.f32.mrf.mxu0 }
 0x99c   : > { %v8302_v51 = vpop.f32.mrf.mxu1  ;;  %v7935_v20 = vadd.f32 %v7934_v19, %v7846_v58  ;;  %v11601_v19 = vld [vmem:[%s16382_s1 + $0x8f0] sm:$0xff]  ;;  %v15372_v58 = vpack.c.bf16 %v6924_v44, %v6923_v9 }
 0x99d   : > { %8472 = vmatpush.bf16.msrb.mxu3 %v11601_v19  ;;  %v6891_v19 = vld [vmem:[#allocation3 + $0x148] sm:$0xff] }
 0x99e   : > { %8163 = vmatmul.bf16.gmra.mxu3 %v15356_v49  ;;  %v15361_v28 = vadd.f32 %v8023_v42, %v7935_v20 }
 0x99f   : > { %8341 = vmatmul.bf16.gmra.mxu1 %v7111_v21  ;;  %v8082_v30 = vpop.f32.mrf.mxu2 }
 0x9a0   : > { %v15364_v52 = vadd.f32 %v8082_v30, %v15222_v39  ;;  %v7949_v39 = vadd.f32 %v14961_v27, %v7860_v0  ;;  %v15382_v27 = vpack.c.bf16 %v6892_v1, %v6891_v19  ;;  %v6958_v19 = vld [vmem:[#allocation3 + $0x18f] sm:$0xff] }
 0x9a1   : > { %v8124_v56 = vpop.f32.mrf.mxu3 }
 0x9a2   : > { %v8125_v17 = vadd.f32 %v8124_v56, %v15165_v46  ;;  %v8038_v20 = vadd.f32 %v15175_v10, %v7949_v39  ;;  %v6955_v56 = vld [vmem:[#allocation3 + $0x167] sm:$0xff] }
 0x9a3   : > { %v8218_v21 = vpop.f32.mrf.mxu0 }
 0x9a4   : > { %v8304_v32 = vpop.f32.mrf.mxu1  ;;  %v8214_v42 = vadd.f32 %v8213_v31, %v8125_v17  ;;  %8400 = vmatmul.bf16.gmra.mxu2 %v15238_v41  ;;  %v6956_v31 = vld [vmem:[#allocation3 + $0x16f] sm:$0xff] }
 0x9a5   : > { %v7120_v44 = vpack.c.bf16 %v6956_v31, %v6955_v56  ;;  %v6925_v17 = vld [vmem:[#allocation3 + $0x169] sm:$0xff] }
 0x9a6   : > { %8257 = vmatmul.bf16.gmra.mxu0 %v15372_v58  ;;  %v15376_v4 = vadd.f32 %v8302_v51, %v8214_v42  ;;  %v6926_v42 = vld [vmem:[#allocation3 + $0x171] sm:$0xff]  ;;  %v6893_v56 = vld [vmem:[#allocation3 + $0x168] sm:$0xff] }
 0x9a7   : > { %v8085_v7 = vpop.f32.mrf.mxu2 }
 0x9a8   : > { %v15380_v18 = vadd.f32 %v8085_v7, %v15232_v23 }
 0x9a9   : > { %v8126_v46 = vpop.f32.mrf.mxu3 }
 0x9aa   : > { %v8127_v30 = vadd.f32 %v8126_v46, %v8038_v20 }
 0x9ab   : > { %v8220_v7 = vpop.f32.mrf.mxu0 }
 0x9ac   : > { %v8307_v41 = vpop.f32.mrf.mxu1  ;;  %v8216_v9 = vadd.f32 %v8215_v36, %v8127_v30  ;;  %v15392_v36 = vpack.c.bf16 %v6926_v42, %v6925_v17  ;;  %v6894_v30 = vld [vmem:[#allocation3 + $0x170] sm:$0xff] }
 0x9ae   : > { %8168 = vmatmul.bf16.gmra.mxu3 %v15382_v27  ;;  %v15385_v51 = vadd.f32 %v8304_v32, %v8216_v9 }
 0x9af   : > { %8346 = vmatmul.bf16.gmra.mxu1 %v7120_v44  ;;  %v8087_v10 = vpop.f32.mrf.mxu2 }
 0x9b0   : > { %v15388_v23 = vadd.f32 %v8087_v10, %v15244_v62 }
 0x9b1   : > { %v8129_v0 = vpop.f32.mrf.mxu3 }
 0x9b2   : > { %v8130_v39 = vadd.f32 %v8129_v0, %v15182_v2 }
 0x9b3   : > { %v8223_v10 = vpop.f32.mrf.mxu0 }
 0x9b4   : > { %v8219_v20 = vadd.f32 %v8218_v21, %v8130_v39  ;;  %8405 = vmatmul.bf16.gmra.mxu2 %v15266_v34  ;;  %v8309_v46 = vpop.f32.mrf.mxu1  ;;  %v6957_v21 = vld [vmem:[#allocation3 + $0x187] sm:$0xff]  ;;  %v15401_v34 = vpack.c.bf16 %v6894_v30, %v6893_v56 }
 0x9b5   : > { %v7129_v44 = vpack.c.bf16 %v6958_v19, %v6957_v21  ;;  %v6927_v39 = vld [vmem:[#allocation3 + $0x189] sm:$0xff] }
 0x9b6   : > { %8262 = vmatmul.bf16.gmra.mxu0 %v15392_v36  ;;  %v15395_v32 = vadd.f32 %v8307_v41, %v8219_v20  ;;  %v6896_v21 = vld [vmem:[#allocation3 + $0x190] sm:$0xff] }
 0x9b7   : > { %v8090_v1 = vpop.f32.mrf.mxu2 }
 0x9b8   : > { %v15398_v62 = vadd.f32 %v8090_v1, %v15257_v12 }
 0x9b9   : > { %v8131_v31 = vpop.f32.mrf.mxu3 }
 0x9ba   : > { %v8132_v2 = vadd.f32 %v8131_v31, %v15188_v54  ;;  %v11600_v54 = vld [vmem:[%s16382_s1 + $0x8e8] sm:$0xff] }
 0x9bb   : > { %8473 = vmatpush.bf16.msrb.mxu3 %v11600_v54 }
 0x9bc   : > { %v8221_v9 = vadd.f32 %v8220_v7, %v8132_v2  ;;  %v8312_v0 = vpop.f32.mrf.mxu1  ;;  %v6928_v7 = vld [vmem:[#allocation3 + $0x191] sm:$0xff] }
 0x9be   : > { %8173 = vmatmul.bf16.gmra.mxu3 %v15401_v34  ;;  %v15404_v41 = vadd.f32 %v8309_v46, %v8221_v9  ;;  %v15414_v46 = vpack.c.bf16 %v6928_v7, %v6927_v39  ;;  %v6960_v9 = vld [vmem:[#allocation3 + $0x1af] sm:$0xff] }
 0x9bf   : > { %8351 = vmatmul.bf16.gmra.mxu1 %v7129_v44  ;;  %v8092_v12 = vpop.f32.mrf.mxu2  ;;  %v6895_v44 = vld [vmem:[#allocation3 + $0x188] sm:$0xff] }
 0x9c0   : > { %v15407_v17 = vadd.f32 %v8092_v12, %v15272_v13  ;;  %v8225_v13 = vpop.f32.mrf.mxu0  ;;  %v15423_v12 = vpack.c.bf16 %v6896_v21, %v6895_v44  ;;  %v6962_v44 = vld [vmem:[#allocation3 + $0x1cf] sm:$0xff] }
 0x9c1   : > { %v8134_v42 = vpop.f32.mrf.mxu3 }
 0x9c2   : > { %v8135_v20 = vadd.f32 %v8134_v42, %v15195_v57 }
 0x9c4   : > { %v8224_v1 = vadd.f32 %v8223_v10, %v8135_v20  ;;  %8410 = vmatmul.bf16.gmra.mxu2 %v15294_v16  ;;  %v8314_v2 = vpop.f32.mrf.mxu1  ;;  %v6959_v10 = vld [vmem:[#allocation3 + $0x1a7] sm:$0xff] }
 0x9c5   : > { %v7138_v54 = vpack.c.bf16 %v6960_v9, %v6959_v10  ;;  %v6929_v20 = vld [vmem:[#allocation3 + $0x1a9] sm:$0xff] }
 0x9c6   : > { %8267 = vmatmul.bf16.gmra.mxu0 %v15414_v46  ;;  %v15417_v31 = vadd.f32 %v8312_v0, %v8224_v1  ;;  %v6930_v1 = vld [vmem:[#allocation3 + $0x1b1] sm:$0xff] }
 0x9c7   : > { %v8095_v30 = vpop.f32.mrf.mxu2 }
 0x9c8   : > { %v15420_v19 = vadd.f32 %v8095_v30, %v15288_v55  ;;  %v8228_v39 = vpop.f32.mrf.mxu0 }
 0x9c9   : > { %v8136_v56 = vpop.f32.mrf.mxu3 }
 0x9ca   : > { %v8137_v57 = vadd.f32 %v8136_v56, %v15204_v60  ;;  %v15433_v56 = vpack.c.bf16 %v6930_v1, %v6929_v20 }
 0x9cc   : > { %v8226_v16 = vadd.f32 %v8225_v13, %v8137_v57  ;;  %v8317_v30 = vpop.f32.mrf.mxu1  ;;  %v6898_v57 = vld [vmem:[#allocation3 + $0x1b0] sm:$0xff] }
 0x9ce   : > { %8178 = vmatmul.bf16.gmra.mxu3 %v15423_v12  ;;  %v15426_v0 = vadd.f32 %v8314_v2, %v8226_v16  ;;  %v6897_v16 = vld [vmem:[#allocation3 + $0x1a8] sm:$0xff] }
 0x9cf   : > { %8356 = vmatmul.bf16.gmra.mxu1 %v7138_v54  ;;  %v8097_v42 = vpop.f32.mrf.mxu2  ;;  %v6961_v54 = vld [vmem:[#allocation3 + $0x1c7] sm:$0xff] }
 0x9d0   : > { %v15429_v55 = vadd.f32 %v8097_v42, %v15297_v5 }
 0x9d1   : > { %v8139_v7 = vpop.f32.mrf.mxu3 }
 0x9d2   : > { %v8140_v60 = vadd.f32 %v8139_v7, %v15216_v26  ;;  %v8230_v26 = vpop.f32.mrf.mxu0 }
 0x9d4   : > { %v8229_v13 = vadd.f32 %v8228_v39, %v8140_v60  ;;  %8415 = vmatmul.bf16.gmra.mxu2 %v15315_v8  ;;  %v15442_v8 = vpack.c.bf16 %v6898_v57, %v6897_v16  ;;  %v7147_v39 = vpack.c.bf16 %v6962_v44, %v6961_v54  ;;  %v8319_v7 = vpop.f32.mrf.mxu1  ;;  %v6899_v54 = vld [vmem:[#allocation3 + $0x1c8] sm:$0xff] }
 0x9d6   : > { %8272 = vmatmul.bf16.gmra.mxu0 %v15433_v56  ;;  %v15436_v2 = vadd.f32 %v8317_v30, %v8229_v13  ;;  %v6931_v30 = vld [vmem:[#allocation3 + $0x1c9] sm:$0xff]  ;;  %v6932_v13 = vld [vmem:[#allocation3 + $0x1d1] sm:$0xff] }
 0x9d7   : > { %v8100_v21 = vpop.f32.mrf.mxu2 }
 0x9d8   : > { %v15439_v5 = vadd.f32 %v8100_v21, %v15309_v29 }
 0x9d9   : > { %v8141_v9 = vpop.f32.mrf.mxu3 }
 0x9da   : > { %v8142_v10 = vadd.f32 %v8141_v9, %v15225_v47  ;;  %v11599_v47 = vld [vmem:[%s16382_s1 + $0x8e0] sm:$0xff]  ;;  %v15457_v9 = vpack.c.bf16 %v6932_v13, %v6931_v30 }
 0x9db   : > { %8474 = vmatpush.bf16.msrb.mxu3 %v11599_v47  ;;  %v6933_v47 = vld [vmem:[#allocation3 + $0x1e9] sm:$0xff] }
 0x9dc   : > { %v8231_v42 = vadd.f32 %v8230_v26, %v8142_v10  ;;  %v6900_v10 = vld [vmem:[#allocation3 + $0x1d0] sm:$0xff] }
 0x9dd   : > { %v6964_v26 = vld [vmem:[#allocation3 + $0x1ef] sm:$0xff] }
 0x9de   : > { %8183 = vmatmul.bf16.gmra.mxu3 %v15442_v8  ;;  %v15445_v20 = vadd.f32 %v8319_v7, %v8231_v42  ;;  %v15466_v42 = vpack.c.bf16 %v6900_v10, %v6899_v54  ;;  %v6902_v10 = vld [vmem:[#allocation3 + $0x1f0] sm:$0xff] }
 0x9df   : > { %8361 = vmatmul.bf16.gmra.mxu1 %v7147_v39  ;;  %v8102_v29 = vpop.f32.mrf.mxu2 }
 0x9e0   : > { %v15448_v1 = vadd.f32 %v8102_v29, %v15318_v38 }
 0x9e1   : > { %v8144_v60 = vpop.f32.mrf.mxu3 }
 0x9e2   : > { %v15454_v21 = vadd.f32 %v8144_v60, %v15235_v40  ;;  %v6963_v40 = vld [vmem:[#allocation3 + $0x1e7] sm:$0xff] }
 0x9e3   : > { %v7156_v39 = vpack.c.bf16 %v6964_v26, %v6963_v40  ;;  %v6901_v26 = vld [vmem:[#allocation3 + $0x1e8] sm:$0xff]  ;;  %v11595_v40 = vld [vmem:[%s16382_s1 + $0x8c0] sm:$0xff] }
 0x9e4   : > { %8420 = vmatmul.bf16.gmra.mxu2 %v15337_v45  ;;  %v15494_v54 = vpack.c.bf16 %v6902_v10, %v6901_v26 }
 0x9e6   : > { %8277 = vmatmul.bf16.gmra.mxu0 %v15457_v9 }
 0x9e7   : > { %v8105_v57 = vpop.f32.mrf.mxu2 }
 0x9e8   : > { %v15461_v38 = vadd.f32 %v8105_v57, %v15331_v24  ;;  %v11598_v24 = vld [vmem:[%s16382_s1 + $0x8d8] sm:$0xff] }
 0x9e9   : > { %v8146_v44 = vpop.f32.mrf.mxu3  ;;  %8475 = vmatpush.bf16.msrb.mxu3 %v11598_v24  ;;  %v6936_v24 = vld [vmem:[#allocation3 + $0x211] sm:$0xff] }
 0x9ea   : > { %v15464_v16 = vadd.f32 %v8146_v44, %v15250_v11  ;;  %v6934_v11 = vld [vmem:[#allocation3 + $0x1f1] sm:$0xff] }
 0x9eb   : > { %v15479_v30 = vpack.c.bf16 %v6934_v11, %v6933_v47 }
 0x9ee   : > { %8188 = vmatmul.bf16.gmra.mxu3 %v15466_v42 }
 0x9ef   : > { %8366 = vmatmul.bf16.gmra.mxu1 %v7156_v39  ;;  %v8107_v45 = vpop.f32.mrf.mxu2 }
 0x9f0   : > { %v15470_v7 = vadd.f32 %v8107_v45, %v15340_v43  ;;  %v11597_v43 = vld [vmem:[%s16382_s1 + $0x8d0] sm:$0xff] }
 0x9f1   : > { %v8149_v29 = vpop.f32.mrf.mxu3  ;;  %8476 = vmatpush.bf16.msrb.mxu3 %v11597_v43  ;;  %v6967_v43 = vld [vmem:[#allocation3 + $0x227] sm:$0xff] }
 0x9f2   : > { %v15476_v60 = vadd.f32 %v8149_v29, %v15263_v22  ;;  %v11596_v22 = vld [vmem:[%s16382_s1 + $0x8c8] sm:$0xff] }
 0x9f4   : > { %8425 = vmatmul.bf16.gmra.mxu2 %v15356_v49 }
 0x9f5   : > { %8477 = vmatpush.bf16.msrb.mxu3 %v11596_v22  ;;  %v6904_v22 = vld [vmem:[#allocation3 + $0x210] sm:$0xff] }
 0x9f6   : > { %8282 = vmatmul.bf16.gmra.mxu0 %v15479_v30 }
 0x9f7   : > { %v8110_v13 = vpop.f32.mrf.mxu2 }
 0x9f8   : > { %v15486_v57 = vadd.f32 %v8110_v13, %v15350_v37 }
 0x9f9   : > { %v8151_v44 = vpop.f32.mrf.mxu3  ;;  %8478 = vmatpush.bf16.msrb.mxu3 %v11595_v40 }
 0x9fa   : > { %v15492_v49 = vadd.f32 %v8151_v44, %v15278_v50  ;;  %v6935_v50 = vld [vmem:[#allocation3 + $0x209] sm:$0xff] }
 0x9fb   : > { %v15508_v47 = vpack.c.bf16 %v6936_v24, %v6935_v50  ;;  %v7001_v24 = vld [vmem:[#allocation3 + $0x49] sm:$0xff] }
 0x9fe   : > { %8193 = vmatmul.bf16.gmra.mxu3 %v15494_v54 }
 0x9ff   : > { %8371 = vmatmul.bf16.gmra.mxu1 %v15303_v48  ;;  %v8112_v37 = vpop.f32.mrf.mxu2  ;;  %v6968_v48 = vld [vmem:[#allocation3 + $0x22f] sm:$0xff] }
 0xa00   : > { %v15502_v39 = vadd.f32 %v8112_v37, %v15361_v28  ;;  %v7174_v10 = vpack.c.bf16 %v6968_v48, %v6967_v43 }
 0xa01   : > { %v8154_v45 = vpop.f32.mrf.mxu3 }
 0xa02   : > { %v15505_v29 = vadd.f32 %v8154_v45, %v15291_v25  ;;  %v6903_v25 = vld [vmem:[#allocation3 + $0x208] sm:$0xff] }
 0xa03   : > { %v7172_v26 = vpack.c.bf16 %v6904_v22, %v6903_v25  ;;  %v7003_v25 = vld [vmem:[#allocation3 + $0x69] sm:$0xff] }
 0xa04   : > { %8430 = vmatmul.bf16.gmra.mxu2 %v15382_v27 }
 0xa06   : > { %8287 = vmatmul.bf16.gmra.mxu0 %v15508_v47 }
 0xa07   : > { %v8391_v11 = vpop.f32.mrf.mxu2 }
 0xa08   : > { %v15512_v13 = vadd.f32 %v8391_v11, %v15376_v4  ;;  %v7002_v11 = vld [vmem:[#allocation3 + $0x51] sm:$0xff] }
 0xa09   : > { %v8156_v28 = vpop.f32.mrf.mxu3  ;;  %v7041_v48 = vpack.c.bf16 %v7002_v11, %v7001_v24  ;;  %v7005_v11 = vld [vmem:[#allocation3 + $0x89] sm:$0xff] }
 0xa0a   : > { %v15515_v44 = vadd.f32 %v8156_v28, %v15300_v6 }
 0xa0e   : > { %8198 = vmatmul.bf16.gmra.mxu3 %v7172_v26 }
 0xa0f   : > { %8376 = vmatmul.bf16.gmra.mxu1 %v7174_v10  ;;  %v8393_v27 = vpop.f32.mrf.mxu2 }
 0xa10   : > { %v15518_v40 = vadd.f32 %v8393_v27, %v15385_v51 }
 0xa11   : > { %v8159_v37 = vpop.f32.mrf.mxu3 }
 0xa12   : > { %v15521_v45 = vadd.f32 %v8159_v37, %v15312_v61 }
 0xa14   : > { %8435 = vmatmul.bf16.gmra.mxu2 %v15401_v34 }
 0xa17   : > { %v8396_v4 = vpop.f32.mrf.mxu2 }
 0xa18   : > { %v15525_v50 = vadd.f32 %v8396_v4, %v15395_v32 }
 0xa19   : > { %v8161_v6 = vpop.f32.mrf.mxu3 }
 0xa1a   : > { %v15528_v43 = vadd.f32 %v8161_v6, %v15321_v53  ;;  %v7004_v53 = vld [vmem:[#allocation3 + $0x71] sm:$0xff] }
 0xa1b   : > { %v7050_v37 = vpack.c.bf16 %v7004_v53, %v7003_v25 }
 0xa1e   : > { %8479 = vmatmul.bf16.vlgmr.msrb.gmra.mxu3 %v7041_v48 }
 0xa1f   : > { %v8398_v51 = vpop.f32.mrf.mxu2 }
 0xa20   : > { %v15531_v28 = vadd.f32 %v8398_v51, %v15404_v41 }
 0xa21   : > { %v8164_v61 = vpop.f32.mrf.mxu3 }
 0xa22   : > { %v15534_v22 = vadd.f32 %v8164_v61, %v15334_v59 }
 0xa24   : > { %8440 = vmatmul.bf16.gmra.mxu2 %v15423_v12 }
 0xa27   : > { %v8401_v32 = vpop.f32.mrf.mxu2 }
 0xa28   : > { %v15538_v34 = vadd.f32 %v8401_v32, %v15417_v31 }
 0xa29   : > { %v8166_v10 = vpop.f32.mrf.mxu3 }
 0xa2a   : > { %v15541_v27 = vadd.f32 %v8166_v10, %v15343_v35  ;;  %v7006_v35 = vld [vmem:[#allocation3 + $0x91] sm:$0xff] }
 0xa2b   : > { %v7059_v51 = vpack.c.bf16 %v7006_v35, %v7005_v11  ;;  %v7008_v10 = vld [vmem:[#allocation3 + $0xb1] sm:$0xff] }
 0xa2e   : > { %8484 = vmatmul.bf16.gmra.mxu3 %v7050_v37 }
 0xa2f   : > { %v8403_v41 = vpop.f32.mrf.mxu2 }
 0xa30   : > { %v15544_v4 = vadd.f32 %v8403_v41, %v15426_v0 }
 0xa31   : > { %v8169_v59 = vpop.f32.mrf.mxu3 }
 0xa32   : > { %v15547_v6 = vadd.f32 %v8169_v59, %v15353_v3 }
 0xa34   : > { %8445 = vmatmul.bf16.gmra.mxu2 %v15442_v8  ;;  %v7007_v8 = vld [vmem:[#allocation3 + $0xa9] sm:$0xff] }
 0xa37   : > { %v8406_v31 = vpop.f32.mrf.mxu2 }
 0xa38   : > { %v15551_v12 = vadd.f32 %v8406_v31, %v15436_v2 }
 0xa39   : > { %v8171_v24 = vpop.f32.mrf.mxu3 }
 0xa3a   : > { %v15554_v48 = vadd.f32 %v8171_v24, %v15364_v52  ;;  %v7068_v52 = vpack.c.bf16 %v7008_v10, %v7007_v8  ;;  %v15610_v8 = vpop.f32.mrf.mxu1 }
 0xa3e   : > { %8489 = vmatmul.bf16.gmra.mxu3 %v7059_v51 }
 0xa3f   : > { %v8408_v0 = vpop.f32.mrf.mxu2 }
 0xa40   : > { %v15557_v61 = vadd.f32 %v8408_v0, %v15445_v20 }
 0xa41   : > { %v8174_v3 = vpop.f32.mrf.mxu3 }
 0xa42   : > { %v15560_v32 = vadd.f32 %v8174_v3, %v15380_v18 }
 0xa44   : > { %8450 = vmatmul.bf16.gmra.mxu2 %v15466_v42 }
 0xa49   : > { %v8176_v2 = vpop.f32.mrf.mxu3 }
 0xa4a   : > { %v15564_v25 = vadd.f32 %v8176_v2, %v15388_v23 }
 0xa4e   : > { %8494 = vmatmul.bf16.gmra.mxu3 %v7068_v52 }
 0xa51   : > { %v8179_v53 = vpop.f32.mrf.mxu3 }
 0xa52   : > { %v15567_v37 = vadd.f32 %v8179_v53, %v15398_v62  ;;  %v15581_v62 = vld [vmem:[#allocation2] sm:$0xff] }
 0xa54   : > { %8455 = vmatmul.bf16.gmra.mxu2 %v15494_v54  ;;  %v7175_v54 = vpack.c.bf16 %v15581_v62, %v15581_v62 }
 0xa59   : > { %v8181_v20 = vpop.f32.mrf.mxu3 }
 0xa5a   : > { %v15571_v18 = vadd.f32 %v8181_v20, %v15407_v17 }
 0xa5e   : > { %8499 = vmatmul.bf16.gmra.mxu3 %v15282_v33 }
 0xa61   : > { %v8184_v42 = vpop.f32.mrf.mxu3 }
 0xa62   : > { %v15575_v41 = vadd.f32 %v8184_v42, %v15420_v19 }
 0xa64   : > { %8460 = vmatmul.bf16.gmra.mxu2 %v7172_v26 }
 0xa69   : > { %v8186_v23 = vpop.f32.mrf.mxu3 }
 0xa6a   : > { %v15578_v59 = vadd.f32 %v8186_v23, %v15429_v55 }
 0xa6e   : > { %8504 = vmatmul.bf16.gmra.mxu3 %v15306_v15 }
 0xa71   : > { %v8189_v17 = vpop.f32.mrf.mxu3 }
 0xa72   : > { %v15586_v31 = vadd.f32 %v8189_v17, %v15439_v5 }
 0xa74   : > { %8465 = vmatmul.bf16.gmra.mxu2 %v7175_v54 }
 0xa79   : > { %v8191_v33 = vpop.f32.mrf.mxu3 }
 0xa7a   : > { %v15589_v19 = vadd.f32 %v8191_v33, %v15448_v1  ;;  %v15621_v33 = vpop.f32.mrf.mxu1 }
 0xa7e   : > { %8509 = vmatmul.bf16.gmra.mxu3 %v15328_v14 }
 0xa81   : > { %v8194_v55 = vpop.f32.mrf.mxu3 }
 0xa82   : > { %v15593_v26 = vadd.f32 %v8194_v55, %v15461_v38 }
 0xa89   : > { %v8196_v15 = vpop.f32.mrf.mxu3 }
 0xa8a   : > { %v15596_v24 = vadd.f32 %v8196_v15, %v15470_v7 }
 0xa8e   : > { %8514 = vmatmul.bf16.gmra.mxu3 %v15347_v63  ;;  %v15608_v63 = vpop.f32.mrf.mxu0 }
 0xa91   : > { %v8199_v11 = vpop.f32.mrf.mxu3 }
 0xa92   : > { %v15600_v5 = vadd.f32 %v8199_v11, %v15486_v57 }
 0xa94   : > { %16550 = vst [vmem:[#allocation13_spill] sm:$0xff] %v15600_v5 }
 0xa96   : > { %v15618_v23 = vpop.f32.mrf.mxu0 }
 0xa99   : > { %v8201_v35 = vpop.f32.mrf.mxu3 }
 0xa9a   : > { %v15603_v1 = vadd.f32 %v8201_v35, %v15502_v39  ;;  %v15613_v39 = vpop.f32.mrf.mxu2 }
 0xa9c   : > { %16551 = vst [vmem:[#allocation26_spill] sm:$0xff] %v15603_v1 }
 0xa9e   : > { %8519 = vmatmul.bf16.gmra.mxu3 %v15372_v58 }
 0xaa1   : > { %v8480_v14 = vpop.f32.mrf.mxu3 }
 0xaa2   : > { %v8481_v38 = vadd.f32 %v8480_v14, %v15512_v13  ;;  %v15623_v55 = vpop.f32.mrf.mxu2 }
 0xaa4   : > { %v8560_v51 = vmin.f32 %v8481_v38, 0.0  ;;  %vm8720_vm1 = vcmp.gt.f32.partialorder %v8481_v38, 0.0 }
 0xaa6   : > { %v8592_v0 = vmul.f32 1.442695, %v8560_v51 }
 0xaa8   : > { %11827 = vpow2.f32 %v8592_v0 }
 0xaa9   : > { %v8482_v7 = vpop.f32.mrf.mxu3 }
 0xaaa   : > { %v8483_v3 = vadd.f32 %v8482_v7, %v15518_v40  ;;  %v15630_v7 = vpop.f32.mrf.mxu0 }
 0xaac   : > { %v8561_v2 = vmin.f32 %v8483_v3, 0.0  ;;  %vm8721_vm2 = vcmp.gt.f32.partialorder %v8483_v3, 0.0 }
 0xaae   : > { %v11828_v57 = vpop.eup %11827  ;;  %v8594_v10 = vmul.f32 1.442695, %v8561_v2  ;;  %8524 = vmatmul.bf16.gmra.mxu3 %v15392_v36 }
 0xaaf   : > { %v8656_v58 = vmul.f32 1.6732632, %v11828_v57 }
 0xab0   : > { %11829 = vpow2.f32 %v8594_v10 }
 0xab1   : > { %v11280_v13 = vadd.f32 -1.6732632, %v8656_v58  ;;  %v8485_v52 = vpop.f32.mrf.mxu3  ;;  %v15632_v58 = vpop.f32.mrf.mxu1 }
 0xab2   : > { %v8486_v53 = vadd.f32 %v8485_v52, %v15525_v50 }
 0xab3   : > { %v8752_v20 = vsel %vm8720_vm1, %v8481_v38, %v11280_v13 }
 0xab4   : > { %v15616_v40 = vmul.f32 1.050701, %v8752_v20  ;;  %v8562_v42 = vmin.f32 %v8486_v53, 0.0  ;;  %vm8722_vm3 = vcmp.gt.f32.partialorder %v8486_v53, 0.0 }
 0xab6   : > { %v11830_v54 = vpop.eup %11829  ;;  %8816 = vst [vmem:[#allocation2 + $0x28] sm:$0xff] %v15616_v40  ;;  %v8596_v17 = vmul.f32 1.442695, %v8562_v42 }
 0xab7   : > { %v8657_v36 = vmul.f32 1.6732632, %v11830_v54 }
 0xab8   : > { %11831 = vpow2.f32 %v8596_v17  ;;  %v15640_v17 = vpop.f32.mrf.mxu0 }
 0xab9   : > { %v11281_v15 = vadd.f32 -1.6732632, %v8657_v36  ;;  %v8487_v11 = vpop.f32.mrf.mxu3 }
 0xaba   : > { %v8488_v50 = vadd.f32 %v8487_v11, %v15531_v28 }
 0xabb   : > { %v8753_v35 = vsel %vm8721_vm2, %v8483_v3, %v11281_v15  ;;  %v15635_v3 = vpop.f32.mrf.mxu2 }
 0xabc   : > { %v15626_v14 = vmul.f32 1.050701, %v8753_v35  ;;  %v8563_v38 = vmin.f32 %v8488_v50, 0.0  ;;  %vm8723_vm4 = vcmp.gt.f32.partialorder %v8488_v50, 0.0  ;;  %v15643_v35 = vpop.f32.mrf.mxu1 }
 0xabe   : > { %v11832_v51 = vpop.eup %11831  ;;  %8817 = vst [vmem:[#allocation2 + $0x30] sm:$0xff] %v15626_v14  ;;  %v8598_v0 = vmul.f32 1.442695, %v8563_v38  ;;  %8529 = vmatmul.bf16.gmra.mxu3 %v15414_v46 }
 0xabf   : > { %v8658_v2 = vmul.f32 1.6732632, %v11832_v51 }
 0xac0   : > { %11833 = vpow2.f32 %v8598_v0 }
 0xac1   : > { %v11282_v57 = vadd.f32 -1.6732632, %v8658_v2  ;;  %v8490_v10 = vpop.f32.mrf.mxu3 }
 0xac2   : > { %v8491_v28 = vadd.f32 %v8490_v10, %v15538_v34 }
 0xac3   : > { %v8754_v13 = vsel %vm8722_vm3, %v8486_v53, %v11282_v57  ;;  %v15647_v51 = vpop.f32.mrf.mxu2 }
 0xac4   : > { %v15637_v52 = vmul.f32 1.050701, %v8754_v13  ;;  %v8564_v20 = vmin.f32 %v8491_v28, 0.0  ;;  %vm8724_vm5 = vcmp.gt.f32.partialorder %v8491_v28, 0.0 }
 0xac6   : > { %v11834_v42 = vpop.eup %11833  ;;  %8818 = vst [vmem:[#allocation2 + $0x48] sm:$0xff] %v15637_v52  ;;  %v8600_v46 = vmul.f32 1.442695, %v8564_v20 }
 0xac7   : > { %v8659_v54 = vmul.f32 1.6732632, %v11834_v42 }
 0xac8   : > { %11835 = vpow2.f32 %v8600_v46 }
 0xac9   : > { %v11283_v36 = vadd.f32 -1.6732632, %v8659_v54  ;;  %v8492_v15 = vpop.f32.mrf.mxu3 }
 0xaca   : > { %v8493_v11 = vadd.f32 %v8492_v15, %v15544_v4 }
 0xacb   : > { %v8755_v34 = vsel %vm8723_vm4, %v8488_v50, %v11283_v36  ;;  %v15652_v50 = vpop.f32.mrf.mxu0  ;;  %v15656_v36 = vpop.f32.mrf.mxu1 }
 0xacc   : > { %v15645_v53 = vmul.f32 1.050701, %v8755_v34  ;;  %v8565_v38 = vmin.f32 %v8493_v11, 0.0  ;;  %vm8725_vm6 = vcmp.gt.f32.partialorder %v8493_v11, 0.0 }
 0xace   : > { %v11836_v0 = vpop.eup %11835  ;;  %8819 = vst [vmem:[#allocation2 + $0x50] sm:$0xff] %v15645_v53  ;;  %v8602_v2 = vmul.f32 1.442695, %v8565_v38  ;;  %8534 = vmatmul.bf16.gmra.mxu3 %v15433_v56  ;;  %v15659_v56 = vpop.f32.mrf.mxu2 }
 0xacf   : > { %v8660_v57 = vmul.f32 1.6732632, %v11836_v0 }
 0xad0   : > { %11837 = vpow2.f32 %v8602_v2 }
 0xad1   : > { %v11284_v10 = vadd.f32 -1.6732632, %v8660_v57  ;;  %v8495_v13 = vpop.f32.mrf.mxu3 }
 0xad2   : > { %v8496_v4 = vadd.f32 %v8495_v13, %v15551_v12  ;;  %v8234_v12 = vadd.f32 %v15608_v63, %v15454_v21 }
 0xad3   : > { %v8756_v20 = vsel %vm8724_vm5, %v8491_v28, %v11284_v10  ;;  %v15666_v13 = vpop.f32.mrf.mxu0 }
 0xad4   : > { %v15654_v42 = vmul.f32 1.050701, %v8756_v20  ;;  %v8566_v46 = vmin.f32 %v8496_v4, 0.0  ;;  %vm8726_vm7 = vcmp.gt.f32.partialorder %v8496_v4, 0.0 }
 0xad6   : > { %v11838_v54 = vpop.eup %11837  ;;  %8820 = vst [vmem:[#allocation2 + $0x68] sm:$0xff] %v15654_v42  ;;  %v8604_v15 = vmul.f32 1.442695, %v8566_v46  ;;  %v8323_v46 = vadd.f32 %v15610_v8, %v8234_v12 }
 0xad7   : > { %v8661_v34 = vmul.f32 1.6732632, %v11838_v54 }
 0xad8   : > { %11839 = vpow2.f32 %v8604_v15  ;;  %v8412_v21 = vadd.f32 %v15613_v39, %v8323_v46 }
 0xad9   : > { %v11285_v38 = vadd.f32 -1.6732632, %v8661_v34  ;;  %v8497_v0 = vpop.f32.mrf.mxu3  ;;  %v15671_v34 = vpop.f32.mrf.mxu1 }
 0xada   : > { %v8498_v28 = vadd.f32 %v8497_v0, %v15557_v61  ;;  %v15674_v61 = vpop.f32.mrf.mxu2 }
 0xadb   : > { %v8757_v2 = vsel %vm8725_vm6, %v8493_v11, %v11285_v38  ;;  %v8236_v38 = vadd.f32 %v15618_v23, %v15464_v16  ;;  %v8239_v23 = vadd.f32 %v15630_v7, %v15476_v60 }
 0xadc   : > { %v15664_v57 = vmul.f32 1.050701, %v8757_v2  ;;  %v8567_v10 = vmin.f32 %v8498_v28, 0.0  ;;  %vm8727_vm8 = vcmp.gt.f32.partialorder %v8498_v28, 0.0 }
 0xade   : > { %v11840_v20 = vpop.eup %11839  ;;  %8821 = vst [vmem:[#allocation2 + $0x70] sm:$0xff] %v15664_v57  ;;  %v8606_v54 = vmul.f32 1.442695, %v8567_v10  ;;  %8539 = vmatmul.bf16.gmra.mxu3 %v15457_v9  ;;  %v8325_v10 = vadd.f32 %v15621_v33, %v8236_v38 }
 0xadf   : > { %v8662_v15 = vmul.f32 1.6732632, %v11840_v20  ;;  %v15682_v20 = vpop.f32.mrf.mxu0 }
 0xae0   : > { %11841 = vpow2.f32 %v8606_v54  ;;  %v8414_v54 = vadd.f32 %v15623_v55, %v8325_v10 }
 0xae1   : > { %v11286_v63 = vadd.f32 -1.6732632, %v8662_v15  ;;  %v8500_v11 = vpop.f32.mrf.mxu3 }
 0xae2   : > { %v8501_v8 = vadd.f32 %v8500_v11, %v8412_v21 }
 0xae3   : > { %v8758_v0 = vsel %vm8726_vm7, %v8496_v4, %v11286_v63  ;;  %v15687_v4 = vpop.f32.mrf.mxu1  ;;  %v15689_v63 = vpop.f32.mrf.mxu2 }
 0xae4   : > { %v15678_v12 = vmul.f32 1.050701, %v8758_v0  ;;  %v8568_v2 = vmin.f32 %v8501_v8, 0.0  ;;  %vm8728_vm9 = vcmp.gt.f32.partialorder %v8501_v8, 0.0 }
 0xae6   : > { %16552 = vst [vmem:[#allocation12_spill] sm:$0xff] %v15678_v12  ;;  %v11842_v9 = vpop.eup %11841  ;;  %v8608_v39 = vmul.f32 1.442695, %v8568_v2  ;;  %v8328_v2 = vadd.f32 %v15632_v58, %v8239_v23 }
 0xae7   : > { %8822 = vst [vmem:[#allocation2 + $0x88] sm:$0xff] %v15678_v12  ;;  %v8663_v46 = vmul.f32 1.6732632, %v11842_v9  ;;  %v15697_v7 = vpop.f32.mrf.mxu0 }
 0xae8   : > { %11843 = vpow2.f32 %v8608_v39  ;;  %v8417_v60 = vadd.f32 %v15635_v3, %v8328_v2 }
 0xae9   : > { %v11287_v15 = vadd.f32 -1.6732632, %v8663_v46  ;;  %v8502_v16 = vpop.f32.mrf.mxu3 }
 0xaea   : > { %v8503_v21 = vadd.f32 %v8502_v16, %v8414_v54 }
 0xaeb   : > { %v8759_v33 = vsel %vm8727_vm8, %v8498_v28, %v11287_v15  ;;  %v8241_v28 = vadd.f32 %v15640_v17, %v15492_v49  ;;  %v15701_v58 = vpop.f32.mrf.mxu1 }
 0xaec   : > { %v15691_v11 = vmul.f32 1.050701, %v8759_v33  ;;  %v8569_v38 = vmin.f32 %v8503_v21, 0.0  ;;  %vm8729_vm10 = vcmp.gt.f32.partialorder %v8503_v21, 0.0 }
 0xaed   : > { %v8330_v3 = vadd.f32 %v15643_v35, %v8241_v28 }
 0xaee   : > { %16553 = vst [vmem:[#allocation27_spill] sm:$0xff] %v15691_v11  ;;  %v11844_v0 = vpop.eup %11843  ;;  %v8610_v55 = vmul.f32 1.442695, %v8569_v38  ;;  %8544 = vmatmul.bf16.gmra.mxu3 %v15479_v30  ;;  %v15705_v30 = vpop.f32.mrf.mxu2 }
 0xaef   : > { %8823 = vst [vmem:[#allocation2 + $0x90] sm:$0xff] %v15691_v11  ;;  %v8664_v9 = vmul.f32 1.6732632, %v11844_v0  ;;  %v8419_v0 = vadd.f32 %v15647_v51, %v8330_v3 }
 0xaf0   : > { %11845 = vpow2.f32 %v8610_v55  ;;  %v15712_v55 = vpop.f32.mrf.mxu0 }
 0xaf1   : > { %v11288_v10 = vadd.f32 -1.6732632, %v8664_v9  ;;  %v8505_v39 = vpop.f32.mrf.mxu3 }
 0xaf2   : > { %v8506_v46 = vadd.f32 %v8505_v39, %v8417_v60 }
 0xaf3   : > { %v8760_v54 = vsel %vm8728_vm9, %v8501_v8, %v11288_v10  ;;  %v8244_v8 = vadd.f32 %v15652_v50, %v15505_v29  ;;  %v15716_v39 = vpop.f32.mrf.mxu1 }
 0xaf4   : > { %v15703_v15 = vmul.f32 1.050701, %v8760_v54  ;;  %v8570_v16 = vmin.f32 %v8506_v46, 0.0  ;;  %vm8730_vm11 = vcmp.gt.f32.partialorder %v8506_v46, 0.0 }
 0xaf5   : > { %v8333_v28 = vadd.f32 %v15656_v36, %v8244_v8  ;;  %v7031_v8 = vld [vmem:[#allocation3 + $0x229] sm:$0xff] }
 0xaf6   : > { %v11846_v23 = vpop.eup %11845  ;;  %8824 = vst [vmem:[#allocation2 + $0xa8] sm:$0xff] %v15703_v15  ;;  %v8612_v33 = vmul.f32 1.442695, %v8570_v16  ;;  %v15721_v54 = vpop.f32.mrf.mxu2 }
 0xaf7   : > { %v8665_v38 = vmul.f32 1.6732632, %v11846_v23  ;;  %v8422_v50 = vadd.f32 %v15659_v56, %v8333_v28  ;;  %v8246_v23 = vadd.f32 %v15666_v13, %v15515_v44  ;;  %v8249_v28 = vadd.f32 %v15682_v20, %v15521_v45 }
 0xaf8   : > { %11847 = vpow2.f32 %v8612_v33 }
 0xaf9   : > { %v11289_v49 = vadd.f32 -1.6732632, %v8665_v38  ;;  %v8507_v17 = vpop.f32.mrf.mxu3 }
 0xafa   : > { %v8508_v2 = vadd.f32 %v8507_v17, %v8419_v0  ;;  %v15728_v0 = vpop.f32.mrf.mxu0 }
 0xafb   : > { %v8761_v9 = vsel %vm8729_vm10, %v8503_v21, %v11289_v49  ;;  %v8335_v49 = vadd.f32 %v15671_v34, %v8246_v23  ;;  %v8338_v23 = vadd.f32 %v15687_v4, %v8249_v28 }
 0xafc   : > { %v15714_v60 = vmul.f32 1.050701, %v8761_v9  ;;  %v8571_v35 = vmin.f32 %v8508_v2, 0.0  ;;  %v7032_v9 = vld [vmem:[#allocation3 + $0x231] sm:$0xff]  ;;  %vm8731_vm12 = vcmp.gt.f32.partialorder %v8508_v2, 0.0 }
 0xafd   : > { %v8424_v44 = vadd.f32 %v15674_v61, %v8335_v49 }
 0xafe   : > { %v11848_v10 = vpop.eup %11847  ;;  %8825 = vst [vmem:[#allocation2 + $0xb0] sm:$0xff] %v15714_v60  ;;  %v8614_v51 = vmul.f32 1.442695, %v8571_v35  ;;  %8549 = vmatmul.bf16.gmra.mxu3 %v15508_v47  ;;  %v15732_v35 = vpop.f32.mrf.mxu1 }
 0xaff   : > { %v8666_v29 = vmul.f32 1.6732632, %v11848_v10  ;;  %v15735_v13 = vpop.f32.mrf.mxu2 }
 0xb00   : > { %11849 = vpow2.f32 %v8614_v51  ;;  %v7176_v51 = vpack.c.bf16 %v7032_v9, %v7031_v8 }
 0xb01   : > { %v11290_v21 = vadd.f32 -1.6732632, %v8666_v29  ;;  %v8510_v16 = vpop.f32.mrf.mxu3 }
 0xb02   : > { %v8511_v3 = vadd.f32 %v8510_v16, %v8422_v50 }
 0xb03   : > { %v8762_v33 = vsel %vm8730_vm11, %v8506_v46, %v11290_v21 }
 0xb04   : > { %v15726_v36 = vmul.f32 1.050701, %v8762_v33  ;;  %v8572_v38 = vmin.f32 %v8511_v3, 0.0  ;;  %v15743_v33 = vpop.f32.mrf.mxu0  ;;  %vm8732_vm13 = vcmp.gt.f32.partialorder %v8511_v3, 0.0 }
 0xb06   : > { %v11850_v47 = vpop.eup %11849  ;;  %8826 = vst [vmem:[#allocation2 + $0xc8] sm:$0xff] %v15726_v36  ;;  %v8616_v56 = vmul.f32 1.442695, %v8572_v38  ;;  %v15748_v49 = vpop.f32.mrf.mxu1 }
 0xb07   : > { %v8667_v17 = vmul.f32 1.6732632, %v11850_v47  ;;  %v8427_v47 = vadd.f32 %v15689_v63, %v8338_v23  ;;  %v15750_v4 = vpop.f32.mrf.mxu2 }
 0xb08   : > { %11851 = vpow2.f32 %v8616_v56 }
 0xb09   : > { %v11291_v46 = vadd.f32 -1.6732632, %v8667_v17  ;;  %v8512_v10 = vpop.f32.mrf.mxu3 }
 0xb0a   : > { %v8513_v34 = vadd.f32 %v8512_v10, %v8424_v44 }
 0xb0b   : > { %v8763_v29 = vsel %vm8731_vm12, %v8508_v2, %v11291_v46  ;;  %v8251_v2 = vadd.f32 %v15697_v7, %v15528_v43 }
 0xb0c   : > { %v15739_v50 = vmul.f32 1.050701, %v8763_v29  ;;  %v8573_v21 = vmin.f32 %v8513_v34, 0.0  ;;  %v15757_v43 = vpop.f32.mrf.mxu0  ;;  %vm8733_vm14 = vcmp.gt.f32.partialorder %v8513_v34, 0.0 }
 0xb0d   : > { %v8340_v46 = vadd.f32 %v15701_v58, %v8251_v2 }
 0xb0e   : > { %v11852_v16 = vpop.eup %11851  ;;  %8827 = vst [vmem:[#allocation2 + $0xd0] sm:$0xff] %v15739_v50  ;;  %v8618_v61 = vmul.f32 1.442695, %v8573_v21  ;;  %8554 = vmatmul.bf16.gmra.mxu3 %v7176_v51 }
 0xb0f   : > { %v8668_v38 = vmul.f32 1.6732632, %v11852_v16  ;;  %v8429_v28 = vadd.f32 %v15705_v30, %v8340_v46  ;;  %v15761_v16 = vpop.f32.mrf.mxu1 }
 0xb10   : > { %11853 = vpow2.f32 %v8618_v61  ;;  %v15765_v61 = vpop.f32.mrf.mxu2 }
 0xb11   : > { %v11292_v45 = vadd.f32 -1.6732632, %v8668_v38  ;;  %v8515_v20 = vpop.f32.mrf.mxu3 }
 0xb12   : > { %v8516_v56 = vadd.f32 %v8515_v20, %v8427_v47  ;;  %v8256_v20 = vadd.f32 %v15728_v0, %v15541_v27 }
 0xb13   : > { %v8764_v17 = vsel %vm8732_vm13, %v8511_v3, %v11292_v45  ;;  %v8254_v3 = vadd.f32 %v15712_v55, %v15534_v22 }
 0xb14   : > { %v15752_v8 = vmul.f32 1.050701, %v8764_v17  ;;  %v8574_v9 = vmin.f32 %v8516_v56, 0.0  ;;  %vm8734_vm15 = vcmp.gt.f32.partialorder %v8516_v56, 0.0  ;;  %v15774_v17 = vpop.f32.mrf.mxu0 }
 0xb15   : > { %v8343_v30 = vadd.f32 %v15716_v39, %v8254_v3 }
 0xb16   : > { %v11854_v44 = vpop.eup %11853  ;;  %8828 = vst [vmem:[#allocation2 + $0xe8] sm:$0xff] %v15752_v8  ;;  %v8620_v63 = vmul.f32 1.442695, %v8574_v9 }
 0xb17   : > { %v8669_v10 = vmul.f32 1.6732632, %v11854_v44  ;;  %v8432_v22 = vadd.f32 %v15721_v54, %v8343_v30 }
 0xb18   : > { %11855 = vpow2.f32 %v8620_v63  ;;  %v15788_v0 = vpop.f32.mrf.mxu2 }
 0xb19   : > { %v11293_v7 = vadd.f32 -1.6732632, %v8669_v10  ;;  %v8517_v51 = vpop.f32.mrf.mxu3  ;;  %v15782_v10 = vpop.f32.mrf.mxu1 }
 0xb1a   : > { %v8518_v29 = vadd.f32 %v8517_v51, %v8429_v28  ;;  %v8345_v28 = vadd.f32 %v15732_v35, %v8256_v20 }
 0xb1b   : > { %v8765_v21 = vsel %vm8733_vm14, %v8513_v34, %v11293_v7 }
 0xb1c   : > { %v15763_v58 = vmul.f32 1.050701, %v8765_v21  ;;  %v8575_v23 = vmin.f32 %v8518_v29, 0.0  ;;  %v8434_v7 = vadd.f32 %v15735_v13, %v8345_v28  ;;  %vm8735_vm0 = vcmp.gt.f32.partialorder %v8518_v29, 0.0 }
 0xb1d   : > { %v15792_v21 = vld [vmem:[#allocation2 + $0xe7] sm:$0xff] }
 0xb1e   : > { %v11856_v38 = vpop.eup %11855  ;;  %8829 = vst [vmem:[#allocation2 + $0xf0] sm:$0xff] %v15763_v58  ;;  %v8622_v47 = vmul.f32 1.442695, %v8575_v23  ;;  %9185 = vmatpush.xpose.msrb.mxu1 %v15763_v58  ;;  %v8259_v23 = vadd.f32 %v15743_v33, %v15547_v6 }
 0xb1f   : > { %v8670_v45 = vmul.f32 1.6732632, %v11856_v38 }
 0xb20   : > { %11857 = vpow2.f32 %v8622_v47  ;;  %v8348_v33 = vadd.f32 %v15748_v49, %v8259_v23  ;;  %v15822_v49 = vld [vmem:[#allocation2 + $0xc7] sm:$0xff]  ;;  %v15836_v23 = vld [vmem:[#allocation2 + $0xaf] sm:$0xff] }
 0xb21   : > { %v11294_v55 = vadd.f32 -1.6732632, %v8670_v45  ;;  %v8520_v34 = vpop.f32.mrf.mxu3  ;;  %v15806_v45 = vpop.f32.mrf.mxu0 }
 0xb22   : > { %v8521_v2 = vadd.f32 %v8520_v34, %v8432_v22  ;;  %9186 = vmatpush.xpose.msrb.mxu1 %v15752_v8  ;;  %v15808_v22 = vld [vmem:[#allocation2 + $0xcf] sm:$0xff]  ;;  %v15817_v20 = vpop.f32.mrf.mxu1 }
 0xb23   : > { %v8766_v39 = vsel %vm8734_vm15, %v8516_v56, %v11294_v55  ;;  %v15810_v55 = vld [vmem:[#allocation2 + $0xd1] sm:$0xff] }
 0xb24   : > { %v15776_v9 = vmul.f32 1.050701, %v8766_v39  ;;  %v8576_v44 = vmin.f32 %v8521_v2, 0.0  ;;  %v8437_v39 = vadd.f32 %v15750_v4, %v8348_v33  ;;  %vm8736_vm1 = vcmp.gt.f32.partialorder %v8521_v2, 0.0 }
 0xb25   : > { %v15778_v46 = vld [vmem:[#allocation2 + $0xef] sm:$0xff] }
 0xb26   : > { %v15780_v63 = vld [vmem:[#allocation2 + $0xf1] sm:$0xff]  ;;  %v11858_v54 = vpop.eup %11857  ;;  %8830 = vst [vmem:[#allocation2 + $0x108] sm:$0xff] %v15776_v9  ;;  %v8624_v27 = vmul.f32 1.442695, %v8576_v44  ;;  %9165 = vmatpush.xpose.msrb.mxu0 %v15778_v46  ;;  %9187 = vmatpush.xpose.msrb.mxu1 %v15739_v50  ;;  %v15794_v35 = vld [vmem:[#allocation2 + $0xe9] sm:$0xff]  ;;  %v15820_v44 = vpop.f32.mrf.mxu2 }
 0xb27   : > { %9205 = vmatpush.xpose.msra.mxu2 %v15780_v63  ;;  %v8671_v56 = vmul.f32 1.6732632, %v11858_v54 }
 0xb28   : > { %11859 = vpow2.f32 %v8624_v27  ;;  %v15824_v27 = vld [vmem:[#allocation2 + $0xc9] sm:$0xff] }
 0xb29   : > { %v11295_v51 = vadd.f32 -1.6732632, %v8671_v56  ;;  %v8522_v3 = vpop.f32.mrf.mxu3  ;;  %v8261_v56 = vadd.f32 %v15757_v43, %v15554_v48 }
 0xb2a   : > { %v15798_v38 = vadd.f32 %v8522_v3, %v8434_v7  ;;  %9166 = vmatpush.xpose.msrb.mxu0 %v15792_v21  ;;  %9188 = vmatpush.xpose.msrb.mxu1 %v15726_v36 }
 0xb2b   : > { %9206 = vmatpush.xpose.msra.mxu2 %v15794_v35  ;;  %v8767_v30 = vsel %vm8735_vm0, %v8518_v29, %v11295_v51  ;;  %v8350_v43 = vadd.f32 %v15761_v16, %v8261_v56  ;;  %v15851_v16 = vld [vmem:[#allocation2 + $0xa7] sm:$0xff]  ;;  %v15857_v56 = vpop.f32.mrf.mxu1 }
 0xb2c   : > { %v15803_v13 = vmul.f32 1.050701, %v8767_v30  ;;  %v8577_v47 = vmin.f32 %v15798_v38, 0.0  ;;  %v15838_v30 = vld [vmem:[#allocation2 + $0xb1] sm:$0xff]  ;;  %vm8737_vm2 = vcmp.gt.f32.partialorder %v15798_v38, 0.0 }
 0xb2e   : > { %v11860_v6 = vpop.eup %11859  ;;  %8831 = vst [vmem:[#allocation2 + $0x110] sm:$0xff] %v15803_v13  ;;  %v8626_v34 = vmul.f32 1.442695, %v8577_v47  ;;  %9167 = vmatpush.xpose.msrb.mxu0 %v15808_v22  ;;  %9189 = vmatpush.xpose.msrb.mxu1 %v15714_v60 }
 0xb2f   : > { %9207 = vmatpush.xpose.msra.mxu2 %v15810_v55  ;;  %v8672_v29 = vmul.f32 1.6732632, %v11860_v6 }
 0xb30   : > { %11861 = vpow2.f32 %v8626_v34  ;;  %v8439_v34 = vadd.f32 %v15765_v61, %v8350_v43  ;;  %v15864_v61 = vld [vmem:[#allocation2 + $0x107] sm:$0xff]  ;;  %v15874_v43 = vld [vmem:[#allocation2 + $0x8f] sm:$0xff] }
 0xb31   : > { %v11296_v54 = vadd.f32 -1.6732632, %v8672_v29  ;;  %v8525_v28 = vpop.f32.mrf.mxu3 }
 0xb32   : > { %v15828_v7 = vadd.f32 %v8525_v28, %v8437_v39  ;;  %9168 = vmatpush.xpose.msrb.mxu0 %v15822_v49  ;;  %9190 = vmatpush.xpose.msrb.mxu1 %v15703_v15  ;;  %v8264_v28 = vadd.f32 %v15774_v17, %v15560_v32 }
 0xb33   : > { %9208 = vmatpush.xpose.msra.mxu2 %v15824_v27  ;;  %v8768_v4 = vsel %vm8736_vm1, %v8521_v2, %v11296_v54  ;;  %v15846_v2 = vpop.f32.mrf.mxu0  ;;  %v15853_v54 = vld [vmem:[#allocation2 + $0xa9] sm:$0xff]  ;;  %vm9528_vm1 = vcmask 1040384  }
 0xb34   : > { %v15833_v51 = vmul.f32 1.050701, %v8768_v4  ;;  %v8578_v3 = vmin.f32 %v15828_v7, 0.0  ;;  %vm8738_vm3 = vcmp.gt.f32.partialorder %v15828_v7, 0.0 }
 0xb35   : > { %v15840_v47 = vld [vmem:[#allocation2 + $0x10f] sm:$0xff] }
 0xb36   : > { %v11862_v48 = vpop.eup %11861  ;;  %8832 = vst [vmem:[#allocation2 + $0x128] sm:$0xff] %v15833_v51  ;;  %v8628_v6 = vmul.f32 1.442695, %v8578_v3  ;;  %9169 = vmatpush.xpose.msrb.mxu0 %v15836_v23  ;;  %9225 = vmatpush.xpose.msra.mxu3 %v15840_v47  ;;  %v15866_v3 = vpop.f32.mrf.mxu2 }
 0xb37   : > { %9209 = vmatpush.xpose.msra.mxu2 %v15838_v30  ;;  %v8673_v33 = vmul.f32 1.6732632, %v11862_v48  ;;  %9191 = vmatpush.xpose.msrb.mxu1 %v15691_v11  ;;  %v15919_v11 = vld [vmem:[#allocation2 + $0x67] sm:$0xff] }
 0xb38   : > { %11863 = vpow2.f32 %v8628_v6  ;;  %v15876_v6 = vld [vmem:[#allocation2 + $0x91] sm:$0xff] }
 0xb39   : > { %v11297_v29 = vadd.f32 -1.6732632, %v8673_v33  ;;  %v8527_v39 = vpop.f32.mrf.mxu3 }
 0xb3a   : > { %v15860_v4 = vadd.f32 %v8527_v39, %v8439_v34  ;;  %9170 = vmatpush.xpose.msrb.mxu0 %v15851_v16  ;;  %9226 = vmatpush.xpose.msra.mxu3 %v15864_v61  ;;  %v8353_v34 = vadd.f32 %v15782_v10, %v8264_v28  ;;  %v15887_v10 = vld [vmem:[#allocation2 + $0x87] sm:$0xff] }
 0xb3b   : > { %9210 = vmatpush.xpose.msra.mxu2 %v15853_v54  ;;  %v8769_v48 = vsel %vm8737_vm2, %v15798_v38, %v11297_v29  ;;  %9192 = vmatpush.xpose.msrb.mxu1 %v15678_v12  ;;  %v15889_v28 = vld [vmem:[#allocation2 + $0x89] sm:$0xff] }
 0xb3c   : > { %v15871_v32 = vmul.f32 1.050701, %v8769_v48  ;;  %v8579_v17 = vmin.f32 %v15860_v4, 0.0  ;;  %v8442_v29 = vadd.f32 %v15788_v0, %v8353_v34  ;;  %v15885_v48 = vpop.f32.mrf.mxu0  ;;  %v15901_v0 = vpop.f32.mrf.mxu1  ;;  %vm8739_vm4 = vcmp.gt.f32.partialorder %v15860_v4, 0.0 }
 0xb3e   : > { %v11864_v33 = vpop.eup %11863  ;;  %8833 = vst [vmem:[#allocation2 + $0x130] sm:$0xff] %v15871_v32  ;;  %v8630_v39 = vmul.f32 1.442695, %v8579_v17  ;;  %9171 = vmatpush.xpose.msrb.mxu0 %v15874_v43  ;;  %9227 = vmatpush.xpose.msra.mxu3 %v15778_v46  ;;  %v8266_v17 = vadd.f32 %v15806_v45, %v15564_v25  ;;  %v15906_v45 = vpop.f32.mrf.mxu2 }
 0xb3f   : > { %9211 = vmatpush.xpose.msra.mxu2 %v15876_v6  ;;  %v8674_v38 = vmul.f32 1.6732632, %v11864_v33  ;;  %9193 = vmatpush.xpose.msrb.mxu1 %v15664_v57 }
 0xb40   : > { %11865 = vpow2.f32 %v8630_v39  ;;  %v15910_v39 = vld [vmem:[#allocation2 + $0x71] sm:$0xff] }
 0xb41   : > { %v11298_v1 = vadd.f32 -1.6732632, %v8674_v38  ;;  %v8530_v5 = vpop.f32.mrf.mxu3 }
 0xb42   : > { %v15894_v33 = vadd.f32 %v8530_v5, %v8442_v29  ;;  %9172 = vmatpush.xpose.msrb.mxu0 %v15887_v10  ;;  %9228 = vmatpush.xpose.msra.mxu3 %v15792_v21  ;;  %v15908_v5 = vld [vmem:[#allocation2 + $0x6f] sm:$0xff]  ;;  %v8355_v29 = vadd.f32 %v15817_v20, %v8266_v17  ;;  %v8269_v17 = vadd.f32 %v15846_v2, %v15567_v37 }
 0xb43   : > { %9212 = vmatpush.xpose.msra.mxu2 %v15889_v28  ;;  %v8770_v57 = vsel %vm8738_vm3, %v15828_v7, %v11298_v1  ;;  %9194 = vmatpush.xpose.msrb.mxu1 %v15654_v42  ;;  %v15921_v20 = vld [vmem:[#allocation2 + $0x69] sm:$0xff]  ;;  %v15938_v2 = vld [vmem:[#allocation2 + $0x51] sm:$0xff] }
 0xb44   : > { %v15903_v34 = vmul.f32 1.050701, %v8770_v57  ;;  %v8580_v25 = vmin.f32 %v15894_v33, 0.0  ;;  %v8444_v7 = vadd.f32 %v15820_v44, %v8355_v29  ;;  %v15936_v37 = vld [vmem:[#allocation2 + $0x4f] sm:$0xff]  ;;  %vm8740_vm5 = vcmp.gt.f32.partialorder %v15894_v33, 0.0 }
 0xb46   : > { %16554 = vst [vmem:[#allocation10_spill] sm:$0xff] %v15903_v34  ;;  %v11866_v38 = vpop.eup %11865  ;;  %v8632_v1 = vmul.f32 1.442695, %v8580_v25  ;;  %9173 = vmatpush.xpose.msrb.mxu0 %v15908_v5  ;;  %9229 = vmatpush.xpose.msra.mxu3 %v15808_v22 }
 0xb47   : > { %8834 = vst [vmem:[#allocation2 + $0x148] sm:$0xff] %v15903_v34  ;;  %9213 = vmatpush.xpose.msra.mxu2 %v15910_v39  ;;  %v8675_v42 = vmul.f32 1.6732632, %v11866_v38  ;;  %9195 = vmatpush.xpose.msrb.mxu1 %v15645_v53  ;;  %v8273_v53 = vpop.f32.mrf.mxu0 }
 0xb48   : > { %11867 = vpow2.f32 %v8632_v1  ;;  %v8362_v1 = vpop.f32.mrf.mxu1 }
 0xb49   : > { %v11299_v57 = vadd.f32 -1.6732632, %v8675_v42  ;;  %v8532_v12 = vpop.f32.mrf.mxu3  ;;  %v8358_v42 = vadd.f32 %v15857_v56, %v8269_v17  ;;  %v15949_v56 = vld [vmem:[#allocation2 + $0x47] sm:$0xff] }
 0xb4a   : > { %v15926_v25 = vadd.f32 %v8532_v12, %v8444_v7  ;;  %9174 = vmatpush.xpose.msrb.mxu0 %v15919_v11  ;;  %9230 = vmatpush.xpose.msra.mxu3 %v15822_v49  ;;  %v15951_v17 = vld [vmem:[#allocation2 + $0x49] sm:$0xff] }
 0xb4b   : > { %9214 = vmatpush.xpose.msra.mxu2 %v15921_v20  ;;  %v8771_v44 = vsel %vm8739_vm4, %v15860_v4, %v11299_v57  ;;  %9196 = vmatpush.xpose.msrb.mxu1 %v15637_v52  ;;  %v15944_v52 = vpop.f32.mrf.mxu2  ;;  %v8447_v57 = vadd.f32 %v15866_v3, %v8358_v42  ;;  %16556 = vst [vmem:[#allocation21_spill] sm:$0xff] %v15951_v17 }
 0xb4c   : > { %v15933_v38 = vmul.f32 1.050701, %v8771_v44  ;;  %v8581_v29 = vmin.f32 %v15926_v25, 0.0  ;;  %vm8741_vm6 = vcmp.gt.f32.partialorder %v15926_v25, 0.0 }
 0xb4e   : > { %16555 = vst [vmem:[#allocation22_spill] sm:$0xff] %v15933_v38  ;;  %v11868_v12 = vpop.eup %11867  ;;  %v8634_v7 = vmul.f32 1.442695, %v8581_v29  ;;  %9175 = vmatpush.xpose.msrb.mxu0 %v15936_v37  ;;  %9231 = vmatpush.xpose.msra.mxu3 %v15836_v23  ;;  %v8271_v29 = vadd.f32 %v15885_v48, %v15571_v18  ;;  %v15966_v18 = vld [vmem:[#allocation2 + $0x2f] sm:$0xff] }
 0xb4f   : > { %8835 = vst [vmem:[#allocation2 + $0x150] sm:$0xff] %v15933_v38  ;;  %9215 = vmatpush.xpose.msra.mxu2 %v15938_v2  ;;  %v8676_v4 = vmul.f32 1.6732632, %v11868_v12  ;;  %9197 = vmatpush.xpose.msrb.mxu1 %v15626_v14  ;;  %v8275_v42 = vpop.f32.mrf.mxu0  ;;  %v15968_v48 = vld [vmem:[#allocation2 + $0x31] sm:$0xff] }
 0xb50   : > { %11869 = vpow2.f32 %v8634_v7  ;;  %16558 = vst [vmem:[#allocation16_spill] sm:$0xff] %v15968_v48  ;;  %v8360_v7 = vadd.f32 %v15901_v0, %v8271_v29  ;;  %v15977_v0 = vld [vmem:[#allocation2 + $0x27] sm:$0xff] }
 0xb51   : > { %v11300_v44 = vadd.f32 -1.6732632, %v8676_v4  ;;  %v8535_v34 = vpop.f32.mrf.mxu3  ;;  %v15979_v29 = vld [vmem:[#allocation2 + $0x29] sm:$0xff] }
 0xb52   : > { %v15956_v38 = vadd.f32 %v8535_v34, %v8447_v57  ;;  %9176 = vmatpush.xpose.msrb.mxu0 %v15949_v56  ;;  %9232 = vmatpush.xpose.msra.mxu3 %v15851_v16  ;;  %v8449_v57 = vadd.f32 %v15906_v45, %v8360_v7  ;;  %16559 = vst [vmem:[#allocation9_spill] sm:$0xff] %v15979_v29  ;;  %v8849_v7 = vld [vmem:[#allocation2 + $0xf] sm:$0xff] }
 0xb53   : > { %9216 = vmatpush.xpose.msra.mxu2 %v15951_v17  ;;  %v8772_v14 = vsel %vm8740_vm5, %v15894_v33, %v11300_v44  ;;  %9198 = vmatpush.xpose.msrb.mxu1 %v15616_v40  ;;  %v8364_v33 = vpop.f32.mrf.mxu1  ;;  %v8453_v44 = vpop.f32.mrf.mxu2 }
 0xb54   : > { %v15963_v3 = vmul.f32 1.050701, %v8772_v14  ;;  %v8582_v12 = vmin.f32 %v15956_v38, 0.0  ;;  %vm8742_vm7 = vcmp.gt.f32.partialorder %v15956_v38, 0.0 }
 0xb56   : > { %16557 = vst [vmem:[#allocation28_spill] sm:$0xff] %v15963_v3  ;;  %v11870_v34 = vpop.eup %11869  ;;  %v8636_v4 = vmul.f32 1.442695, %v8582_v12  ;;  %9177 = vmatpush.xpose.msrb.mxu0 %v15966_v18  ;;  %9233 = vmatpush.xpose.msra.mxu3 %v15874_v43  ;;  %v8274_v12 = vadd.f32 %v8273_v53, %v15575_v41 }
 0xb57   : > { %8836 = vst [vmem:[#allocation2 + $0x168] sm:$0xff] %v15963_v3  ;;  %9217 = vmatpush.xpose.msra.mxu2 %v15968_v48  ;;  %v8677_v40 = vmul.f32 1.6732632, %v11870_v34  ;;  %9199 = vmatpush.xpose.msrb.mxu1 %v15581_v62  ;;  %v15998_v48 = vld [vmem:[#allocation2 + $0x109] sm:$0xff] }
 0xb58   : > { %11871 = vpow2.f32 %v8636_v4  ;;  %v8913_v4 = vld [vmem:[#allocation2 + $0x11] sm:$0xff] }
 0xb59   : > { %v11301_v14 = vadd.f32 -1.6732632, %v8677_v40  ;;  %v8537_v17 = vpop.f32.mrf.mxu3  ;;  %v15990_v40 = vld [vmem:[#allocation2 + $0x111] sm:$0xff] }
 0xb5a   : > { %v15983_v34 = vadd.f32 %v8537_v17, %v8449_v57  ;;  %9178 = vmatpush.xpose.msrb.mxu0 %v15977_v0  ;;  %9234 = vmatpush.xpose.msra.mxu3 %v15887_v10  ;;  %16560 = vst [vmem:[#allocation30_spill] sm:$0xff] %v15990_v40  ;;  %v8363_v17 = vadd.f32 %v8362_v1, %v8274_v12 }
 0xb5b   : > { %9218 = vmatpush.xpose.msra.mxu2 %v15979_v29  ;;  %v8773_v45 = vsel %vm8741_vm6, %v15926_v25, %v11301_v14  ;;  %9200 = vmatpush.xpose.msrb.mxu1 %v15581_v62  ;;  %v8278_v25 = vpop.f32.mrf.mxu0  ;;  %v8848_v62 = vld [vmem:[#allocation2 + $0x7] sm:$0xff]  ;;  %v8276_v12 = vadd.f32 %v8275_v42, %v15578_v59 }
 0xb5c   : > { %v15992_v3 = vmul.f32 1.050701, %v8773_v45  ;;  %v8583_v41 = vmin.f32 %v15983_v34, 0.0  ;;  %v8912_v29 = vld [vmem:[#allocation2 + $0x9] sm:$0xff]  ;;  %v8452_v45 = vadd.f32 %v15944_v52, %v8363_v17  ;;  %vm8743_vm8 = vcmp.gt.f32.partialorder %v15983_v34, 0.0 }
 0xb5d   : > { %v16007_v52 = vld [vmem:[#allocation2 + $0x12f] sm:$0xff]  ;;  %v8365_v42 = vadd.f32 %v8364_v33, %v8276_v12  ;;  %v8279_v33 = vadd.f32 %v8278_v25, %v15586_v31 }
 0xb5e   : > { %v11872_v53 = vpop.eup %11871  ;;  %8837 = vst [vmem:[#allocation2 + $0x170] sm:$0xff] %v15992_v3  ;;  %v8638_v57 = vmul.f32 1.442695, %v8583_v41  ;;  %9179 = vmatpush.xpose.msrb.mxu0 %v8849_v7  ;;  %9235 = vmatpush.xpose.msra.mxu3 %v15908_v5  ;;  %v8367_v41 = vpop.f32.mrf.mxu1 }
 0xb5f   : > { %9265 = vmatpush.xpose.msra.mxu1 %v15990_v40  ;;  %9219 = vmatpush.xpose.msra.mxu2 %v8913_v4  ;;  %v8678_v14 = vmul.f32 1.6732632, %v11872_v53  ;;  %v8456_v4 = vpop.f32.mrf.mxu2  ;;  %v8368_v31 = vadd.f32 %v8367_v41, %v8279_v33 }
 0xb60   : > { %11873 = vpow2.f32 %v8638_v57 }
 0xb61   : > { %v11302_v40 = vadd.f32 -1.6732632, %v8678_v14  ;;  %v8540_v1 = vpop.f32.mrf.mxu3 }
 0xb62   : > { %v8541_v7 = vadd.f32 %v8540_v1, %v8452_v45  ;;  %9180 = vmatpush.xpose.msrb.mxu0 %v8848_v62  ;;  %9236 = vmatpush.xpose.msra.mxu3 %v15919_v11 }
 0xb63   : > { %9266 = vmatpush.xpose.msra.mxu1 %v15998_v48  ;;  %9220 = vmatpush.xpose.msra.mxu2 %v8912_v29  ;;  %v8774_v53 = vsel %vm8742_vm7, %v15956_v38, %v11302_v40  ;;  %v16016_v38 = vld [vmem:[#allocation2 + $0x127] sm:$0xff]  ;;  %v8454_v40 = vadd.f32 %v8453_v44, %v8365_v42  ;;  %v8280_v62 = vpop.f32.mrf.mxu0 }
 0xb64   : > { %v16009_v17 = vmul.f32 1.050701, %v8774_v53  ;;  %v8584_v57 = vmin.f32 %v8541_v7, 0.0  ;;  %vm8744_vm9 = vcmp.gt.f32.partialorder %v8541_v7, 0.0 }
 0xb66   : > { %9245 = vmatpush.xpose.msra.mxu0 %v15803_v13  ;;  %v11874_v59 = vpop.eup %11873  ;;  %8838 = vst [vmem:[#allocation2 + $0x188] sm:$0xff] %v16009_v17  ;;  %v8640_v29 = vmul.f32 1.442695, %v8584_v57  ;;  %9237 = vmatpush.xpose.msra.mxu3 %v15936_v37  ;;  %v8369_v44 = vpop.f32.mrf.mxu1 }
 0xb67   : > { %9285 = vmatpush.xpose.msrb.mxu2 %v16007_v52  ;;  %9267 = vmatpush.xpose.msra.mxu1 %v15780_v63  ;;  %v8679_v14 = vmul.f32 1.6732632, %v11874_v59  ;;  %v8458_v42 = vpop.f32.mrf.mxu2 }
 0xb68   : > { %11875 = vpow2.f32 %v8640_v29 }
 0xb69   : > { %v11303_v45 = vadd.f32 -1.6732632, %v8679_v14  ;;  %v8542_v1 = vpop.f32.mrf.mxu3 }
 0xb6a   : > { %9246 = vmatpush.xpose.msra.mxu0 %v15776_v9  ;;  %v8543_v12 = vadd.f32 %v8542_v1, %v8454_v40  ;;  %9238 = vmatpush.xpose.msra.mxu3 %v15949_v56  ;;  %v8281_v1 = vadd.f32 %v8280_v62, %v15589_v19 }
 0xb6b   : > { %9286 = vmatpush.xpose.msrb.mxu2 %v16016_v38  ;;  %9268 = vmatpush.xpose.msra.mxu1 %v15794_v35  ;;  %v8775_v53 = vsel %vm8743_vm8, %v15983_v34, %v11303_v45  ;;  %v8457_v34 = vadd.f32 %v8456_v4, %v8368_v31  ;;  %v8283_v33 = vpop.f32.mrf.mxu0 }
 0xb6c   : > { %v16025_v57 = vmul.f32 1.050701, %v8775_v53  ;;  %v8585_v59 = vmin.f32 %v8543_v12, 0.0  ;;  %v8370_v19 = vadd.f32 %v8369_v44, %v8281_v1  ;;  %vm8745_vm10 = vcmp.gt.f32.partialorder %v8543_v12, 0.0 }
 0xb6e   : > { %9247 = vmatpush.xpose.msra.mxu0 %v15763_v58  ;;  %v11876_v29 = vpop.eup %11875  ;;  %8839 = vst [vmem:[#allocation2 + $0x190] sm:$0xff] %v16025_v57  ;;  %v8642_v25 = vmul.f32 1.442695, %v8585_v59  ;;  %9239 = vmatpush.xpose.msra.mxu3 %v15966_v18 }
 0xb6f   : > { %9287 = vmatpush.xpose.msrb.mxu2 %v15840_v47  ;;  %9269 = vmatpush.xpose.msra.mxu1 %v15810_v55  ;;  %v8680_v14 = vmul.f32 1.6732632, %v11876_v29  ;;  %v8372_v29 = vpop.f32.mrf.mxu1 }
 0xb70   : > { %11877 = vpow2.f32 %v8642_v25 }
 0xb71   : > { %v11304_v40 = vadd.f32 -1.6732632, %v8680_v14  ;;  %v8545_v45 = vpop.f32.mrf.mxu3  ;;  %v8284_v14 = vadd.f32 %v8283_v33, %v15593_v26 }
 0xb72   : > { %9248 = vmatpush.xpose.msra.mxu0 %v15752_v8  ;;  %v8546_v41 = vadd.f32 %v8545_v45, %v8457_v34  ;;  %9240 = vmatpush.xpose.msra.mxu3 %v15977_v0  ;;  %v8459_v0 = vadd.f32 %v8458_v42, %v8370_v19  ;;  %v16561_v19 = vld [vmem:[#allocation27_spill] sm:$0xff] }
 0xb73   : > { %9288 = vmatpush.xpose.msrb.mxu2 %v15864_v61  ;;  %9270 = vmatpush.xpose.msra.mxu1 %v15824_v27  ;;  %v8776_v53 = vsel %vm8744_vm9, %v8541_v7, %v11304_v40  ;;  %v8461_v7 = vpop.f32.mrf.mxu2  ;;  %v8373_v42 = vadd.f32 %v8372_v29, %v8284_v14 }
 0xb74   : > { %v16037_v18 = vmul.f32 1.050701, %v8776_v53  ;;  %v8586_v4 = vmin.f32 %v8546_v41, 0.0  ;;  %vm8746_vm11 = vcmp.gt.f32.partialorder %v8546_v41, 0.0 }
 0xb75   : > { %v8462_v33 = vadd.f32 %v8461_v7, %v8373_v42 }
 0xb76   : > { %9249 = vmatpush.xpose.msra.mxu0 %v15739_v50  ;;  %9305 = vmatpush.xpose.msrb.mxu3 %v15871_v32  ;;  %v11878_v59 = vpop.eup %11877  ;;  %8840 = vst [vmem:[#allocation2 + $0x1a8] sm:$0xff] %v16037_v18  ;;  %v8644_v62 = vmul.f32 1.442695, %v8586_v4 }
 0xb77   : > { %9289 = vmatpush.xpose.msrb.mxu2 %v15778_v46  ;;  %9271 = vmatpush.xpose.msra.mxu1 %v15838_v30  ;;  %v8681_v31 = vmul.f32 1.6732632, %v11878_v59 }
 0xb78   : > { %11879 = vpow2.f32 %v8644_v62 }
 0xb79   : > { %v11305_v46 = vadd.f32 -1.6732632, %v8681_v31  ;;  %v8547_v25 = vpop.f32.mrf.mxu3 }
 0xb7a   : > { %9250 = vmatpush.xpose.msra.mxu0 %v15726_v36  ;;  %9306 = vmatpush.xpose.msrb.mxu3 %v15833_v51  ;;  %v8548_v44 = vadd.f32 %v8547_v25, %v8459_v0  ;;  %v16563_v25 = vld [vmem:[#allocation13_spill] sm:$0xff] }
 0xb7b   : > { %9290 = vmatpush.xpose.msrb.mxu2 %v15792_v21  ;;  %9272 = vmatpush.xpose.msra.mxu1 %v15853_v54  ;;  %v8777_v34 = vsel %vm8745_vm10, %v8543_v12, %v11305_v46  ;;  %v8285_v21 = vpop.f32.mrf.mxu0  ;;  %v8374_v12 = vpop.f32.mrf.mxu1 }
 0xb7c   : > { %v16049_v40 = vmul.f32 1.050701, %v8777_v34  ;;  %v8587_v45 = vmin.f32 %v8548_v44, 0.0  ;;  %v8286_v4 = vadd.f32 %v8285_v21, %v15596_v24  ;;  %vm8747_vm12 = vcmp.gt.f32.partialorder %v8548_v44, 0.0 }
 0xb7e   : > { %9251 = vmatpush.xpose.msra.mxu0 %v15714_v60  ;;  %9307 = vmatpush.xpose.msrb.mxu3 %v15803_v13  ;;  %v11880_v51 = vpop.eup %11879  ;;  %8841 = vst [vmem:[#allocation2 + $0x1b0] sm:$0xff] %v16049_v40  ;;  %v8646_v26 = vmul.f32 1.442695, %v8587_v45 }
 0xb7f   : > { %9291 = vmatpush.xpose.msrb.mxu2 %v15808_v22  ;;  %9273 = vmatpush.xpose.msra.mxu1 %v15876_v6  ;;  %v8682_v1 = vmul.f32 1.6732632, %v11880_v51  ;;  %v8463_v22 = vpop.f32.mrf.mxu2  ;;  %v11898_v51 = vld [vmem:[#allocation2 + $0x70] sm:$0xff] }
 0xb80   : > { %11881 = vpow2.f32 %v8646_v26 }
 0xb81   : > { %v11306_v13 = vadd.f32 -1.6732632, %v8682_v1  ;;  %v8550_v53 = vpop.f32.mrf.mxu3 }
 0xb82   : > { %9252 = vmatpush.xpose.msra.mxu0 %v15703_v15  ;;  %9308 = vmatpush.xpose.msrb.mxu3 %v15776_v9  ;;  %v16060_v59 = vadd.f32 %v8550_v53, %v8462_v33 }
 0xb83   : > { %9292 = vmatpush.xpose.msrb.mxu2 %v15822_v49  ;;  %9274 = vmatpush.xpose.msra.mxu1 %v15889_v28  ;;  %v8778_v29 = vsel %vm8746_vm11, %v8546_v41, %v11306_v13  ;;  %v8375_v49 = vadd.f32 %v8374_v12, %v8286_v4  ;;  %v8288_v7 = vpop.f32.mrf.mxu0  ;;  %v16562_v41 = vld [vmem:[#allocation12_spill] sm:$0xff] }
 0xb84   : > { %v16063_v15 = vmul.f32 1.050701, %v8778_v29  ;;  %v8588_v62 = vmin.f32 %v16060_v59, 0.0  ;;  %v8289_v14 = vadd.f32 %v8288_v7, %v16563_v25  ;;  %vm8748_vm13 = vcmp.gt.f32.partialorder %v16060_v59, 0.0  ;;  %v16107_v7 = vld [vmem:[#allocation2 + $0x50] sm:$0xff] }
 0xb85   : > { %v8464_v0 = vadd.f32 %v8463_v22, %v8375_v49  ;;  %v16091_v22 = vld [vmem:[#allocation2 + $0x68] sm:$0xff] }
 0xb86   : > { %9253 = vmatpush.xpose.msra.mxu0 %v16561_v19  ;;  %9309 = vmatpush.xpose.msrb.mxu3 %v15763_v58  ;;  %v11882_v9 = vpop.eup %11881  ;;  %8842 = vst [vmem:[#allocation2 + $0x1c8] sm:$0xff] %v16063_v15  ;;  %v8648_v24 = vmul.f32 1.442695, %v8588_v62  ;;  %v16564_v62 = vld [vmem:[#allocation21_spill] sm:$0xff] }
 0xb87   : > { %9293 = vmatpush.xpose.msrb.mxu2 %v15836_v23  ;;  %9275 = vmatpush.xpose.msra.mxu1 %v15910_v39  ;;  %v8683_v31 = vmul.f32 1.6732632, %v11882_v9  ;;  %v8377_v23 = vpop.f32.mrf.mxu1  ;;  %v8466_v45 = vpop.f32.mrf.mxu2  ;;  %v16565_v9 = vld [vmem:[#allocation26_spill] sm:$0xff] }
 0xb88   : > { %11883 = vpow2.f32 %v8648_v24  ;;  %v8378_v12 = vadd.f32 %v8377_v23, %v8289_v14  ;;  %v16566_v23 = vld [vmem:[#allocation16_spill] sm:$0xff]  ;;  %v16122_v14 = vld [vmem:[#allocation2 + $0x48] sm:$0xff] }
 0xb89   : > { %v11307_v46 = vadd.f32 -1.6732632, %v8683_v31  ;;  %v8552_v58 = vpop.f32.mrf.mxu3 }
 0xb8a   : > { %9254 = vmatpush.xpose.msra.mxu0 %v16562_v41  ;;  %9310 = vmatpush.xpose.msrb.mxu3 %v15752_v8  ;;  %v16075_v34 = vadd.f32 %v8552_v58, %v8464_v0 }
 0xb8b   : > { %9294 = vmatpush.xpose.msrb.mxu2 %v15851_v16  ;;  %9276 = vmatpush.xpose.msra.mxu1 %v15921_v20  ;;  %v8779_v21 = vsel %vm8747_vm12, %v8548_v44, %v11307_v46  ;;  %v16080_v16 = vld [vmem:[%s16384_s3] sm:$0xff]  ;;  %v8290_v4 = vpop.f32.mrf.mxu0 }
 0xb8c   : > { %v16082_v8 = vmul.f32 1.050701, %v8779_v21  ;;  %v8589_v42 = vmin.f32 %v16075_v34, 0.0  ;;  %v9147_v26 = vperm.slane %v16080_v16, 0  ;;  %v9149_v44 = vperm.slane %v16080_v16, 2 }
 0xb8d   : > { %v9150_v53 = vperm.slane %v16080_v16, 3  ;;  %v8291_v49 = vadd.f32 %v8290_v4, %v16565_v9  ;;  %vm8749_vm14 = vcmp.gt.f32.partialorder %v16075_v34, 0.0  ;;  %v9077_v4 = vld [vmem:[#allocation2 + $0x90] sm:$0xff] }
 0xb8e   : > { %9255 = vmatpush.xpose.msra.mxu0 %v11898_v51  ;;  %9311 = vmatpush.xpose.msrb.mxu3 %v15739_v50  ;;  %v11884_v1 = vpop.eup %11883  ;;  %8843 = vst [vmem:[#allocation2 + $0x1d0] sm:$0xff] %v16082_v8  ;;  %v8650_v33 = vmul.f32 1.442695, %v8589_v42  ;;  %v8467_v50 = vadd.f32 %v8466_v45, %v8378_v12  ;;  %v16567_v51 = vld [vmem:[#allocation9_spill] sm:$0xff]  ;;  %v9152_v12 = vperm.slane %v16080_v16, 5 }
 0xb8f   : > { %9295 = vmatpush.xpose.msrb.mxu2 %v15874_v43  ;;  %9277 = vmatpush.xpose.msra.mxu1 %v15938_v2  ;;  %v9148_v43 = vperm.slane %v16080_v16, 1  ;;  %v8684_v13 = vmul.f32 1.6732632, %v11884_v1  ;;  %v8468_v0 = vpop.f32.mrf.mxu2  ;;  %v8977_v1 = vld [vmem:[#allocation2 + $0x30] sm:$0xff] }
 0xb90   : > { %9181 = vmatmul.f32.vlgmr.msrb.gmra.mxu0 %v9147_v26  ;;  %9221 = vmatmul.f32.vlgmr.msra.gmra.mxu2 %v9149_v44  ;;  %11885 = vpow2.f32 %v8650_v33  ;;  %v11911_v33 = vmov 0  }
 0xb91   : > { %v11308_v29 = vadd.f32 -1.6732632, %v8684_v13  ;;  %v8555_v19 = vpop.f32.mrf.mxu3  ;;  %9201 = vmatmul.f32.vlgmr.msrb.gmra.mxu1 %v9148_v43  ;;  %9241 = vmatmul.f32.vlgmr.msra.gmra.mxu3 %v9150_v53  ;;  %v9138_v13 = vld [vmem:[#allocation4] sm:$0x1] }
 0xb92   : > { %9256 = vmatpush.xpose.msra.mxu0 %v16091_v22  ;;  %9312 = vmatpush.xpose.msrb.mxu3 %v15726_v36  ;;  %v16105_v24 = vadd.f32 %v8555_v19, %v8467_v50  ;;  %v8379_v36 = vpop.f32.mrf.mxu1 }
 0xb93   : > { %9296 = vmatpush.xpose.msrb.mxu2 %v15887_v10  ;;  %9278 = vmatpush.xpose.msra.mxu1 %v16564_v62  ;;  %v8780_v10 = vsel %vm8748_vm13, %v16060_v59, %v11308_v29  ;;  %v8380_v58 = vadd.f32 %v8379_v36, %v8291_v49  ;;  %v8976_v49 = vld [vmem:[#allocation2 + $0x28] sm:$0xff]  ;;  %v9151_v36 = vperm.slane %v16080_v16, 4 }
 0xb94   : > { %v16115_v31 = vmul.f32 1.050701, %v8780_v10  ;;  %v8590_v41 = vmin.f32 %v16105_v24, 0.0  ;;  %11629 = vset.pattern.permute.xlu0 %v11911_v33  ;;  %v9076_v10 = vld [vmem:[#allocation2 + $0x88] sm:$0xff]  ;;  %vm8750_vm15 = vcmp.gt.f32.partialorder %v16105_v24, 0.0 }
 0xb95   : > { %v8469_v45 = vadd.f32 %v8468_v0, %v8380_v58  ;;  %9141 = vperm.xlu0 %11629, %v9138_v13   ;;  %v16151_v58 = vld [vmem:[#allocation2 + $0x129] sm:$0xff] }
 0xb96   : > { %9257 = vmatpush.xpose.msra.mxu0 %v16107_v7  ;;  %9313 = vmatpush.xpose.msrb.mxu3 %v15714_v60  ;;  %v11886_v46 = vpop.eup %11885  ;;  %8844 = vst [vmem:[#allocation2 + $0x1e8] sm:$0xff] %v16115_v31  ;;  %v8652_v25 = vmul.f32 1.442695, %v8590_v41  ;;  %v9153_v41 = vperm.slane %v16080_v16, 6  ;;  %v16198_v13 = vld [vmem:[#allocation2 + $0x1a7] sm:$0xff] }
 0xb97   : > { %9297 = vmatpush.xpose.msrb.mxu2 %v15908_v5  ;;  %9279 = vmatpush.xpose.msra.mxu1 %v16566_v23  ;;  %v8685_v59 = vmul.f32 1.6732632, %v11886_v46  ;;  %v11899_v5 = vld [vmem:[#allocation2 + $0xa8] sm:$0xff]  ;;  %v9075_v46 = vld [vmem:[#allocation2 + $0x70] sm:$0xff] }
 0xb98   : > { %11887 = vpow2.f32 %v8652_v25 }
 0xb99   : > { %v11309_v60 = vadd.f32 -1.6732632, %v8685_v59  ;;  %v8557_v21 = vpop.f32.mrf.mxu3 }
 0xb9a   : > { %9258 = vmatpush.xpose.msra.mxu0 %v16122_v14  ;;  %9314 = vmatpush.xpose.msrb.mxu3 %v11899_v5  ;;  %v8558_v42 = vadd.f32 %v8557_v21, %v8469_v45  ;;  %v16568_v5 = vld [vmem:[#allocation30_spill] sm:$0xff] }
 0xb9b   : > { %9298 = vmatpush.xpose.msrb.mxu2 %v15919_v11  ;;  %9280 = vmatpush.xpose.msra.mxu1 %v16567_v51  ;;  %v8781_v50 = vsel %vm8749_vm14, %v16075_v34, %v11309_v60 }
 0xb9c   : > { %v16130_v11 = vmul.f32 1.050701, %v8781_v50  ;;  %v8591_v29 = vmin.f32 %v8558_v42, 0.0  ;;  %vm8751_vm0 = vcmp.gt.f32.partialorder %v8558_v42, 0.0  ;;  %v16206_v50 = vld [vmem:[#allocation2 + $0x18f] sm:$0xff] }
 0xb9d   : > { %v16161_v60 = vld [vmem:[#allocation2 + $0x1e7] sm:$0xff] }
 0xb9e   : > { %9259 = vmatpush.xpose.msra.mxu0 %v8977_v1  ;;  %9315 = vmatpush.xpose.msrb.mxu3 %v9077_v4  ;;  %v11888_v19 = vpop.eup %11887  ;;  %8845 = vst [vmem:[#allocation2 + $0x1f0] sm:$0xff] %v16130_v11  ;;  %v8654_v9 = vmul.f32 1.442695, %v8591_v29  ;;  %v16169_v1 = vld [vmem:[#allocation2 + $0x1cf] sm:$0xff]  ;;  %v16214_v4 = vld [vmem:[#allocation2 + $0x187] sm:$0xff] }
 0xb9f   : > { %9299 = vmatpush.xpose.msrb.mxu2 %v15936_v37  ;;  %9281 = vmatmul.f32.vlgmr.msra.gmra.mxu1 %v9152_v12  ;;  %v8686_v34 = vmul.f32 1.6732632, %v11888_v19  ;;  %v16139_v37 = vld [vmem:[#allocation2 + $0x131] sm:$0xff]  ;;  %v16569_v19 = vld [vmem:[#allocation28_spill] sm:$0xff] }
 0xba0   : > { %11889 = vpow2.f32 %v8654_v9  ;;  %v16222_v29 = vld [vmem:[#allocation2 + $0x16f] sm:$0xff]  ;;  %v16230_v9 = vld [vmem:[#allocation2 + $0x167] sm:$0xff] }
 0xba1   : > { %v11310_v0 = vadd.f32 -1.6732632, %v8686_v34  ;;  %v16571_v34 = vld [vmem:[#allocation10_spill] sm:$0xff] }
 0xba2   : > { %9260 = vmatpush.xpose.msra.mxu0 %v8976_v49  ;;  %9316 = vmatpush.xpose.msrb.mxu3 %v9076_v10  ;;  %v16238_v49 = vld [vmem:[#allocation2 + $0x14f] sm:$0xff]  ;;  %v16246_v10 = vld [vmem:[#allocation2 + $0x147] sm:$0xff] }
 0xba3   : > { %9300 = vmatpush.xpose.msrb.mxu2 %v15949_v56  ;;  %v8782_v23 = vsel %vm8750_vm15, %v16105_v24, %v11310_v0  ;;  %v16254_v0 = vld [vmem:[#allocation2 + $0x128] sm:$0xff] }
 0xba4   : > { %v16149_v56 = vmul.f32 1.050701, %v8782_v23  ;;  %v8897_v23 = vld [vmem:[#allocation2 + $0x110] sm:$0xff] }
 0xba5   : > { %9261 = vmatmul.f32.vlgmr.msra.gmra.mxu0 %v9151_v36  ;;  %v16154_v25 = vld [vmem:[#allocation2 + $0x1ef] sm:$0xff] }
 0xba6   : > { %9325 = vmatpush.xpose.msrb.mxu0 %v16139_v37  ;;  %9301 = vmatmul.f32.vlgmr.msrb.gmra.mxu2 %v9153_v41  ;;  %v11890_v59 = vpop.eup %11889  ;;  %8846 = vst [vmem:[#allocation2 + $0x208] sm:$0xff] %v16149_v56  ;;  %v16176_v33 = vld [vmem:[#allocation2 + $0x1f1] sm:$0xff] }
 0xba7   : > { %9365 = vmatpush.xpose.msra.mxu2 %v16130_v11  ;;  %9317 = vmatpush.xpose.msrb.mxu3 %v9075_v46  ;;  %v8687_v24 = vmul.f32 1.6732632, %v11890_v59 }
 0xba8   : > { %9345 = vmatpush.xpose.msrb.mxu1 %v16154_v25 }
 0xba9   : > { %v11311_v45 = vadd.f32 -1.6732632, %v8687_v24 }
 0xbaa   : > { %9326 = vmatpush.xpose.msrb.mxu0 %v16151_v58 }
 0xbab   : > { %9366 = vmatpush.xpose.msra.mxu2 %v16115_v31  ;;  %9318 = vmatpush.xpose.msrb.mxu3 %v16091_v22  ;;  %v8783_v21 = vsel %vm8751_vm0, %v8558_v42, %v11311_v45  ;;  %v9154_v22 = vperm.slane %v16080_v16, 7  ;;  %v16186_v42 = vld [vmem:[#allocation2 + $0x1e9] sm:$0xff] }
 0xbac   : > { %9346 = vmatpush.xpose.msrb.mxu1 %v16161_v60  ;;  %v16165_v51 = vmul.f32 1.050701, %v8783_v21 }
 0xbad   : > { %v8974_v24 = vld [vmem:[#allocation2 + $0x207] sm:$0xff] }
 0xbae   : > { %9327 = vmatpush.xpose.msrb.mxu0 %v16568_v5  ;;  %8847 = vst [vmem:[#allocation2 + $0x210] sm:$0xff] %v16165_v51 }
 0xbaf   : > { %9367 = vmatpush.xpose.msra.mxu2 %v16082_v8  ;;  %9319 = vmatpush.xpose.msrb.mxu3 %v16107_v7  ;;  %v16180_v7 = vld [vmem:[#allocation2 + $0x1c7] sm:$0xff] }
 0xbb0   : > { %9347 = vmatpush.xpose.msrb.mxu1 %v16169_v1 }
 0xbb2   : > { %9328 = vmatpush.xpose.msrb.mxu0 %v15998_v48 }
 0xbb3   : > { %9368 = vmatpush.xpose.msra.mxu2 %v16063_v15  ;;  %9320 = vmatpush.xpose.msrb.mxu3 %v16122_v14  ;;  %v16190_v14 = vld [vmem:[#allocation2 + $0x1af] sm:$0xff] }
 0xbb4   : > { %9348 = vmatpush.xpose.msrb.mxu1 %v16180_v7 }
 0xbb5   : > { %v8975_v46 = vld [vmem:[#allocation2 + $0x20f] sm:$0xff] }
 0xbb6   : > { %9329 = vmatpush.xpose.msrb.mxu0 %v15780_v63  ;;  %9321 = vmatmul.f32.vlgmr.msrb.gmra.mxu3 %v9154_v22  ;;  %v16194_v63 = vld [vmem:[#allocation2 + $0x1d1] sm:$0xff] }
 0xbb7   : > { %9385 = vmatpush.xpose.msra.mxu3 %v16176_v33  ;;  %9369 = vmatpush.xpose.msra.mxu2 %v16049_v40  ;;  %v16273_v59 = vld [vmem:[#allocation2 + $0x211] sm:$0xff] }
 0xbb8   : > { %9349 = vmatpush.xpose.msrb.mxu1 %v16190_v14 }
 0xbba   : > { %9330 = vmatpush.xpose.msrb.mxu0 %v15794_v35  ;;  %v16202_v35 = vld [vmem:[#allocation2 + $0x1c9] sm:$0xff] }
 0xbbb   : > { %9386 = vmatpush.xpose.msra.mxu3 %v16186_v42  ;;  %9370 = vmatpush.xpose.msra.mxu2 %v16037_v18 }
 0xbbc   : > { %9350 = vmatpush.xpose.msrb.mxu1 %v16198_v13 }
 0xbbe   : > { %9331 = vmatpush.xpose.msrb.mxu0 %v15810_v55  ;;  %v16210_v55 = vld [vmem:[#allocation2 + $0x1b1] sm:$0xff] }
 0xbbf   : > { %9387 = vmatpush.xpose.msra.mxu3 %v16194_v63  ;;  %9371 = vmatpush.xpose.msra.mxu2 %v16025_v57 }
 0xbc0   : > { %9351 = vmatpush.xpose.msrb.mxu1 %v16206_v50 }
 0xbc2   : > { %9332 = vmatpush.xpose.msrb.mxu0 %v15824_v27  ;;  %v16218_v27 = vld [vmem:[#allocation2 + $0x1a9] sm:$0xff] }
 0xbc3   : > { %9388 = vmatpush.xpose.msra.mxu3 %v16202_v35  ;;  %9372 = vmatpush.xpose.msra.mxu2 %v16009_v17 }
 0xbc4   : > { %9352 = vmatpush.xpose.msrb.mxu1 %v16214_v4 }
 0xbc6   : > { %9333 = vmatpush.xpose.msrb.mxu0 %v15838_v30  ;;  %v16226_v30 = vld [vmem:[#allocation2 + $0x191] sm:$0xff] }
 0xbc7   : > { %9389 = vmatpush.xpose.msra.mxu3 %v16210_v55  ;;  %9373 = vmatpush.xpose.msra.mxu2 %v15992_v3  ;;  %v16570_v3 = vld [vmem:[#allocation22_spill] sm:$0xff] }
 0xbc8   : > { %9353 = vmatpush.xpose.msrb.mxu1 %v16222_v29 }
 0xbca   : > { %9334 = vmatpush.xpose.msrb.mxu0 %v15853_v54  ;;  %v16234_v54 = vld [vmem:[#allocation2 + $0x189] sm:$0xff] }
 0xbcb   : > { %9390 = vmatpush.xpose.msra.mxu3 %v16218_v27  ;;  %9374 = vmatpush.xpose.msra.mxu2 %v16569_v19 }
 0xbcc   : > { %9354 = vmatpush.xpose.msrb.mxu1 %v16230_v9 }
 0xbce   : > { %9335 = vmatpush.xpose.msrb.mxu0 %v15876_v6  ;;  %v16242_v6 = vld [vmem:[#allocation2 + $0x171] sm:$0xff] }
 0xbcf   : > { %9391 = vmatpush.xpose.msra.mxu3 %v16226_v30  ;;  %9375 = vmatpush.xpose.msra.mxu2 %v16570_v3  ;;  %v9531_v3 = vlaneseq }
 0xbd0   : > { %9355 = vmatpush.xpose.msrb.mxu1 %v16238_v49 }
 0xbd1   : > { %vm9533_vm2 = vcmp.lt.s32.totalorder %v9531_v3, 256 }
 0xbd2   : > { %9336 = vmatpush.xpose.msrb.mxu0 %v15889_v28  ;;  %v16250_v28 = vld [vmem:[#allocation2 + $0x169] sm:$0xff] }
 0xbd3   : > { %9392 = vmatpush.xpose.msra.mxu3 %v16234_v54  ;;  %9376 = vmatpush.xpose.msra.mxu2 %v16571_v34 }
 0xbd4   : > { %9356 = vmatpush.xpose.msrb.mxu1 %v16246_v10 }
 0xbd6   : > { %9337 = vmatpush.xpose.msrb.mxu0 %v15910_v39  ;;  %v16258_v39 = vld [vmem:[#allocation2 + $0x151] sm:$0xff] }
 0xbd7   : > { %9393 = vmatpush.xpose.msra.mxu3 %v16242_v6  ;;  %9377 = vmatpush.xpose.msra.mxu2 %v15871_v32  ;;  %v16263_v32 = vld [vmem:[#allocation2 + $0x149] sm:$0xff] }
 0xbd8   : > { %9357 = vmatpush.xpose.msrb.mxu1 %v16007_v52 }
 0xbda   : > { %9338 = vmatpush.xpose.msrb.mxu0 %v15921_v20  ;;  %v16268_v20 = vld [vmem:[%s16384_s3 + $0x8] ss:$0 sm:$0xff] }
 0xbdb   : > { %9394 = vmatpush.xpose.msra.mxu3 %v16250_v28  ;;  %9378 = vmatpush.xpose.msra.mxu2 %v16254_v0 }
 0xbdc   : > { %9358 = vmatpush.xpose.msrb.mxu1 %v16016_v38 }
 0xbde   : > { %9339 = vmatpush.xpose.msrb.mxu0 %v15938_v2  ;;  %v8896_v2 = vld [vmem:[#allocation2 + $0x108] sm:$0xff] }
 0xbdf   : > { %9395 = vmatpush.xpose.msra.mxu3 %v16258_v39  ;;  %9379 = vmatpush.xpose.msra.mxu2 %v8897_v23 }
 0xbe0   : > { %9359 = vmatpush.xpose.msrb.mxu1 %v15840_v47  ;;  %v9071_v47 = vld [vmem:[#allocation2 + $0x22f] sm:$0xff] }
 0xbe2   : > { %9340 = vmatpush.xpose.msrb.mxu0 %v16564_v62  ;;  %v16280_v62 = vld [vmem:[#allocation2 + $0x209] sm:$0xff] }
 0xbe3   : > { %9396 = vmatpush.xpose.msra.mxu3 %v16263_v32  ;;  %9380 = vmatpush.xpose.msra.mxu2 %v8896_v2 }
 0xbe4   : > { %9360 = vmatpush.xpose.msrb.mxu1 %v15864_v61  ;;  %v9070_v61 = vld [vmem:[#allocation2 + $0x227] sm:$0xff] }
 0xbe5   : > { %9341 = vmatmul.f32.vlgmr.msrb.gmra.mxu0 %v16268_v20 }
 0xbe6   : > { %9405 = vmatpush.xpose.msra.mxu0 %v8975_v46  ;;  %9381 = vmatmul.f32.vlgmr.msra.gmra.mxu2 %v9148_v43  ;;  %v9135_v43 = vld [vmem:[#allocation2 + $0x231] sm:$0xff] }
 0xbe7   : > { %9445 = vmatpush.xpose.msrb.mxu2 %v16273_v59  ;;  %9397 = vmatpush.xpose.msra.mxu3 %v16139_v37 }
 0xbe8   : > { %9425 = vmatpush.xpose.msra.mxu1 %v16165_v51 }
 0xbe9   : > { %9361 = vmatmul.f32.vlgmr.msrb.gmra.mxu1 %v9147_v26  ;;  %v8993_v26 = vld [vmem:[#allocation2 + $0x130] sm:$0xff] }
 0xbea   : > { %9406 = vmatpush.xpose.msra.mxu0 %v8974_v24 }
 0xbeb   : > { %9446 = vmatpush.xpose.msrb.mxu2 %v16280_v62  ;;  %9398 = vmatpush.xpose.msra.mxu3 %v16151_v58 }
 0xbec   : > { %9426 = vmatpush.xpose.msra.mxu1 %v16149_v56 }
 0xbee   : > { %9407 = vmatpush.xpose.msra.mxu0 %v16154_v25 }
 0xbef   : > { %9447 = vmatpush.xpose.msrb.mxu2 %v16176_v33  ;;  %9399 = vmatpush.xpose.msra.mxu3 %v16568_v5 }
 0xbf0   : > { %9427 = vmatpush.xpose.msra.mxu1 %v16130_v11 }
 0xbf2   : > { %9408 = vmatpush.xpose.msra.mxu0 %v16161_v60 }
 0xbf3   : > { %9448 = vmatpush.xpose.msrb.mxu2 %v16186_v42  ;;  %9400 = vmatpush.xpose.msra.mxu3 %v15998_v48  ;;  %v8997_v48 = vld [vmem:[#allocation2 + $0x170] sm:$0xff] }
 0xbf4   : > { %9428 = vmatpush.xpose.msra.mxu1 %v16115_v31 }
 0xbf6   : > { %9409 = vmatpush.xpose.msra.mxu0 %v16169_v1  ;;  %9401 = vmatmul.f32.vlgmr.msra.gmra.mxu3 %v9149_v44  ;;  %v11900_v44 = vld [vmem:[#allocation2] sm:$0xff] }
 0xbf7   : > { %9465 = vmatpush.xpose.msrb.mxu3 %v9071_v47  ;;  %9449 = vmatpush.xpose.msrb.mxu2 %v16194_v63 }
 0xbf8   : > { %9429 = vmatpush.xpose.msra.mxu1 %v16082_v8 }
 0xbfa   : > { %9410 = vmatpush.xpose.msra.mxu0 %v16180_v7 }
 0xbfb   : > { %9466 = vmatpush.xpose.msrb.mxu3 %v9070_v61  ;;  %9450 = vmatpush.xpose.msrb.mxu2 %v16202_v35 }
 0xbfc   : > { %9430 = vmatpush.xpose.msra.mxu1 %v16063_v15 }
 0xbfe   : > { %9411 = vmatpush.xpose.msra.mxu0 %v16190_v14 }
 0xbff   : > { %9467 = vmatpush.xpose.msrb.mxu3 %v8975_v46  ;;  %9451 = vmatpush.xpose.msrb.mxu2 %v16210_v55 }
 0xc00   : > { %9431 = vmatpush.xpose.msra.mxu1 %v16049_v40 }
 0xc02   : > { %9412 = vmatpush.xpose.msra.mxu0 %v16198_v13 }
 0xc03   : > { %9468 = vmatpush.xpose.msrb.mxu3 %v8974_v24  ;;  %9452 = vmatpush.xpose.msrb.mxu2 %v16218_v27 }
 0xc04   : > { %9432 = vmatpush.xpose.msra.mxu1 %v16037_v18  ;;  %v8994_v18 = vld [vmem:[#allocation2 + $0x148] sm:$0xff] }
 0xc06   : > { %9413 = vmatpush.xpose.msra.mxu0 %v16206_v50 }
 0xc07   : > { %9469 = vmatpush.xpose.msrb.mxu3 %v16154_v25  ;;  %9453 = vmatpush.xpose.msrb.mxu2 %v16226_v30 }
 0xc08   : > { %9433 = vmatpush.xpose.msra.mxu1 %v16025_v57  ;;  %v8996_v57 = vld [vmem:[#allocation2 + $0x168] sm:$0xff] }
 0xc0a   : > { %9414 = vmatpush.xpose.msra.mxu0 %v16214_v4 }
 0xc0b   : > { %9470 = vmatpush.xpose.msrb.mxu3 %v16161_v60  ;;  %9454 = vmatpush.xpose.msrb.mxu2 %v16234_v54 }
 0xc0c   : > { %9434 = vmatpush.xpose.msra.mxu1 %v16009_v17  ;;  %v8995_v17 = vld [vmem:[#allocation2 + $0x150] sm:$0xff] }
 0xc0e   : > { %9415 = vmatpush.xpose.msra.mxu0 %v16222_v29 }
 0xc0f   : > { %9471 = vmatpush.xpose.msrb.mxu3 %v16169_v1  ;;  %9455 = vmatpush.xpose.msrb.mxu2 %v16242_v6 }
 0xc10   : > { %9435 = vmatpush.xpose.msra.mxu1 %v8997_v48 }
 0xc12   : > { %9416 = vmatpush.xpose.msra.mxu0 %v16230_v9 }
 0xc13   : > { %9472 = vmatpush.xpose.msrb.mxu3 %v16180_v7  ;;  %9456 = vmatpush.xpose.msrb.mxu2 %v16250_v28 }
 0xc14   : > { %9436 = vmatpush.xpose.msra.mxu1 %v8996_v57 }
 0xc16   : > { %9417 = vmatpush.xpose.msra.mxu0 %v16238_v49 }
 0xc17   : > { %9473 = vmatpush.xpose.msrb.mxu3 %v16190_v14  ;;  %9457 = vmatpush.xpose.msrb.mxu2 %v16258_v39 }
 0xc18   : > { %9437 = vmatpush.xpose.msra.mxu1 %v8995_v17 }
 0xc1a   : > { %9418 = vmatpush.xpose.msra.mxu0 %v16246_v10 }
 0xc1b   : > { %9474 = vmatpush.xpose.msrb.mxu3 %v16198_v13  ;;  %9458 = vmatpush.xpose.msrb.mxu2 %v16263_v32 }
 0xc1c   : > { %9438 = vmatpush.xpose.msra.mxu1 %v8994_v18 }
 0xc1e   : > { %9419 = vmatpush.xpose.msra.mxu0 %v16007_v52  ;;  %v9134_v52 = vld [vmem:[#allocation2 + $0x229] sm:$0xff] }
 0xc1f   : > { %9475 = vmatpush.xpose.msrb.mxu3 %v16206_v50  ;;  %9459 = vmatpush.xpose.msrb.mxu2 %v16139_v37 }
 0xc20   : > { %9439 = vmatpush.xpose.msra.mxu1 %v8993_v26 }
 0xc22   : > { %9420 = vmatpush.xpose.msra.mxu0 %v16016_v38  ;;  %v9094_v38 = vld [vmem:[#allocation2 + $0x1a8] sm:$0xff] }
 0xc23   : > { %9476 = vmatpush.xpose.msrb.mxu3 %v16214_v4  ;;  %9460 = vmatpush.xpose.msrb.mxu2 %v16151_v58 }
 0xc24   : > { %9440 = vmatpush.xpose.msra.mxu1 %v16254_v0 }
 0xc25   : > { %9421 = vmatmul.f32.vlgmr.msra.gmra.mxu0 %v9150_v53  ;;  %v9093_v53 = vld [vmem:[#allocation2 + $0x190] sm:$0xff] }
 0xc26   : > { %9485 = vmatpush.xpose.msrb.mxu0 %v11900_v44  ;;  %9461 = vmatmul.f32.vlgmr.msrb.gmra.mxu2 %v9152_v12  ;;  %v9242_v12 = vpop.f32.mrf.mxu3 }
 0xc27   : > { %9477 = vmatpush.xpose.msrb.mxu3 %v16222_v29  ;;  %9441 = vmatmul.f32.vlgmr.msra.gmra.mxu1 %v9151_v36  ;;  %v9142_v36 = vpop.permute.xlu0 %9141 }
 0xc28   : > { %9505 = vmatpush.xpose.msrb.mxu1 %v9135_v43 }
 0xc2a   : > { %9486 = vmatpush.xpose.msrb.mxu0 %v11900_v44 }
 0xc2b   : > { %9478 = vmatpush.xpose.msrb.mxu3 %v16230_v9 }
 0xc2c   : > { %9506 = vmatpush.xpose.msrb.mxu1 %v9134_v52 }
 0xc2e   : > { %9487 = vmatpush.xpose.msrb.mxu0 %v16165_v51 }
 0xc2f   : > { %9479 = vmatpush.xpose.msrb.mxu3 %v16238_v49 }
 0xc30   : > { %9507 = vmatpush.xpose.msrb.mxu1 %v16273_v59 }
 0xc32   : > { %9488 = vmatpush.xpose.msrb.mxu0 %v16149_v56  ;;  %v9144_v56 = vperm.slane %v9142_v36, 0 }
 0xc33   : > { %9480 = vmatpush.xpose.msrb.mxu3 %v16246_v10 }
 0xc34   : > { %9508 = vmatpush.xpose.msrb.mxu1 %v16280_v62 }
 0xc36   : > { %9489 = vmatpush.xpose.msrb.mxu0 %v16130_v11  ;;  %9481 = vmatmul.f32.vlgmr.msrb.gmra.mxu3 %v9153_v41 }
 0xc38   : > { %9509 = vmatpush.xpose.msrb.mxu1 %v16176_v33 }
 0xc39   : > { %v9322_v58 = vpop.f32.mrf.mxu3 }
 0xc3a   : > { %9490 = vmatpush.xpose.msrb.mxu0 %v16115_v31  ;;  %v9092_v31 = vld [vmem:[#allocation2 + $0x188] sm:$0xff] }
 0xc3c   : > { %9510 = vmatpush.xpose.msrb.mxu1 %v16186_v42 }
 0xc3e   : > { %9491 = vmatpush.xpose.msrb.mxu0 %v16082_v8  ;;  %v9222_v8 = vpop.f32.mrf.mxu2 }
 0xc40   : > { %9511 = vmatpush.xpose.msrb.mxu1 %v16194_v63 }
 0xc42   : > { %9492 = vmatpush.xpose.msrb.mxu0 %v16063_v15  ;;  %v9182_v15 = vpop.f32.mrf.mxu0 }
 0xc43   : > { %v9183_v45 = vadd.f32 %v9182_v15, %v9144_v56 }
 0xc44   : > { %9512 = vmatpush.xpose.msrb.mxu1 %v16202_v35 }
 0xc46   : > { %9493 = vmatpush.xpose.msrb.mxu0 %v16049_v40  ;;  %v9202_v40 = vpop.f32.mrf.mxu1  ;;  %v9302_v37 = vpop.f32.mrf.mxu2 }
 0xc47   : > { %v9203_v21 = vadd.f32 %v9202_v40, %v9183_v45 }
 0xc48   : > { %9513 = vmatpush.xpose.msrb.mxu1 %v16210_v55 }
 0xc4a   : > { %9494 = vmatpush.xpose.msrb.mxu0 %v9094_v38  ;;  %v9262_v41 = vpop.f32.mrf.mxu0 }
 0xc4c   : > { %9514 = vmatpush.xpose.msrb.mxu1 %v16218_v27 }
 0xc4e   : > { %9495 = vmatpush.xpose.msrb.mxu0 %v9093_v53  ;;  %v9282_v11 = vpop.f32.mrf.mxu1 }
 0xc50   : > { %9515 = vmatpush.xpose.msrb.mxu1 %v16226_v30 }
 0xc52   : > { %9496 = vmatpush.xpose.msrb.mxu0 %v9092_v31 }
 0xc54   : > { %9516 = vmatpush.xpose.msrb.mxu1 %v16234_v54 }
 0xc56   : > { %9497 = vmatpush.xpose.msrb.mxu0 %v8997_v48 }
 0xc58   : > { %9517 = vmatpush.xpose.msrb.mxu1 %v16242_v6 }
 0xc5a   : > { %9498 = vmatpush.xpose.msrb.mxu0 %v8996_v57 }
 0xc5c   : > { %9518 = vmatpush.xpose.msrb.mxu1 %v16250_v28 }
 0xc5e   : > { %9499 = vmatpush.xpose.msrb.mxu0 %v8995_v17 }
 0xc60   : > { %9519 = vmatpush.xpose.msrb.mxu1 %v16258_v39 }
 0xc62   : > { %9500 = vmatpush.xpose.msrb.mxu0 %v8994_v18  ;;  %v9342_v60 = vpop.f32.mrf.mxu0 }
 0xc64   : > { %9520 = vmatpush.xpose.msrb.mxu1 %v16263_v32 }
 0xc65   : > { %9501 = vmatmul.f32.vlgmr.msrb.gmra.mxu0 %v9154_v22  ;;  %v9223_v22 = vadd.f32 %v9222_v8, %v9203_v21 }
 0xc66   : > { %v9362_v25 = vpop.f32.mrf.mxu1 }
 0xc67   : > { %9521 = vmatmul.f32.vlgmr.msrb.gmra.mxu1 %v16268_v20  ;;  %v9363_v5 = vadd.f32 %v9362_v25, %v9144_v56  ;;  %v9243_v42 = vadd.f32 %v9242_v12, %v9223_v22 }
 0xc69   : > { %v9382_v16 = vpop.f32.mrf.mxu2  ;;  %v9263_v13 = vadd.f32 %v9262_v41, %v9243_v42 }
 0xc6a   : > { %v9383_v51 = vadd.f32 %v9382_v16, %v9363_v5 }
 0xc6b   : > { %v9283_v4 = vadd.f32 %v9282_v11, %v9263_v13 }
 0xc6d   : > { %v9303_v30 = vadd.f32 %v9302_v37, %v9283_v4 }
 0xc6f   : > { %v9323_v49 = vadd.f32 %v9322_v58, %v9303_v30 }
 0xc71   : > { %v9343_v6 = vadd.f32 %v9342_v60, %v9323_v49 }
 0xc79   : > { %v9402_v1 = vpop.f32.mrf.mxu3 }
 0xc7a   : > { %v9403_v33 = vadd.f32 %v9402_v1, %v9383_v51 }
 0xca2   : > { %v9422_v7 = vpop.f32.mrf.mxu0 }
 0xca3   : > { %v9423_v14 = vadd.f32 %v9422_v7, %v9403_v33 }
 0xca4   : > { %v9442_v63 = vpop.f32.mrf.mxu1 }
 0xca5   : > { %v9443_v35 = vadd.f32 %v9442_v63, %v9423_v14 }
 0xca9   : > { %v9462_v50 = vpop.f32.mrf.mxu2 }
 0xcaa   : > { %v9463_v27 = vadd.f32 %v9462_v50, %v9443_v35 }
 0xcb9   : > { %v9482_v55 = vpop.f32.mrf.mxu3 }
 0xcba   : > { %v9483_v19 = vadd.f32 %v9482_v55, %v9463_v27 }
 0xce2   : > { %v9502_v29 = vpop.f32.mrf.mxu0 }
 0xce3   : > { %v9503_v9 = vadd.f32 %v9502_v29, %v9483_v19 }
 0xce4   : > { %v9522_v54 = vpop.f32.mrf.mxu1 }
 0xce5   : > { %v9523_v34 = vadd.f32 %v9522_v54, %v9503_v9 }
 0xce7   : > { %v9527_v10 = vrot.slane %v9523_v34, 7 }
 0xce9   : > { %v9529_v28 = vsel %vm9528_vm1, %v9343_v6, %v9527_v10 }
 0xcea   : > { %9535 = vst.msk [vmem:[%s224_s4] sm:$0x3] %vm9533_vm2, %v9529_v28 }
 0xceb PF: > { %s17_s20 = sadd.s32 1, %s11907_s20  }
 0xcec   : > { %p14_p4 = scmp.ge.s32.totalorder %s17_s20, 4  }
 0xcee   :  { %16 = sbr.rel (!%p14_p4) target bundleno = 3 (0x3), region = 80 }

</bundles_post_ra>
